<compile_context>
chip_gen: v7x
topology: tpu7x:2x2x1
jax: 0.10.0
libtpu: 0.0.40
codegen_flags: <defaults>
</compile_context>

<pallas_src>
import functools

import numpy as np
import jax
import jax.numpy as jnp
from jax import lax
from jax.experimental import pallas as pl
from jax.experimental.pallas import tpu as pltpu


P = 2  # uniform spatial halo; the largest padding in the module is conv0 (5x5, pad 2)


# ----------------------------------------------------------------------------
# In-kernel building blocks (lane-dense (C, L) slabs, L = round_up(B*Hp*Wp,128))
# ----------------------------------------------------------------------------

def _shift(x, d):
    """y[:, c] = x[:, c + d] with zero fill at the clipped end.

    Conv taps of interior (true-pixel) columns never reach outside the
    [0, B*Hp*Wp) data region, so the clipping only affects halo / lane-padding
    columns, which are masked to zero afterwards anyway."""
    if d == 0:
        return x
    c, l = x.shape
    z = jnp.zeros((c, abs(d)), x.dtype)
    if d > 0:
        return jnp.concatenate([x[:, d:], z], axis=1)
    return jnp.concatenate([z, x[:, :l + d]], axis=1)


def _conv(x, w_ref, b, mask, K, Wp):
    """KxK conv of a zero-haloed slab as K*K accumulated per-tap MXU matmuls.

    x:     (Cin, L)           f32 activation, zero outside interior pixels
    w_ref: (K*K, Cout, Cin)   bf16 per-tap (block-diagonal, group-stacked) weights
    b:     (Cout, 1)          f32 bias
    mask:  (1, L)             f32, 1.0 on interior pixels, 0.0 on halo / padding
    returns (Cout, L) f32 with a zero halo."""
    p = (K - 1) // 2
    xb = x.astype(jnp.bfloat16)        # cast once, shift bf16 (half the bytes)
    acc = None
    t = 0
    for dy in range(-p, p + 1):
        for dx in range(-p, p + 1):
            y = jnp.dot(w_ref[t], _shift(xb, dy * Wp + dx),
                        preferred_element_type=jnp.float32)
            acc = y if acc is None else acc + y
            t += 1
    return (acc + b) * mask


def _bn_relu(x, gamma, beta, inv_count):
    """Training-mode BatchNorm (biased variance over interior pixels) + ReLU.

    Halo / padding columns of x are zero, so full-lane sums == interior sums."""
    mean = jnp.sum(x, axis=1, keepdims=True) * inv_count
    var = jnp.sum(x * x, axis=1, keepdims=True) * inv_count - mean * mean
    var = jnp.maximum(var, 0.0)        # guard against f32 cancellation -> NaN
    inv = gamma * lax.rsqrt(var + 1e-5)
    return jnp.maximum(x * inv + (beta - mean * inv), 0.0)


# ----------------------------------------------------------------------------
# Fused kernel: conv_extract -> gate -> conv0 .. conv_last (+ all BN/ReLU/cat)
# ----------------------------------------------------------------------------

def _make_kernel(M, N, Wp, inv_count):
    MN = M * N

    def kernel(x_ref, att_ref, mask_ref,
               we_ref, w0_ref, w1_ref, w2_ref, w3_ref, wl_ref,
               be_ref, b0_ref, b1_ref, b2_ref, b3_ref, bl_ref,
               g1_ref, t1_ref, g2_ref, t2_ref, g3_ref, t3_ref,
               g4_ref, t4_ref, gl_ref, tl_ref,
               out_ref, fmd_ref, cat_ref):
        mask = mask_ref[...]                                     # (1, L)

        # conv_extract (3x3, shared across groups); also the fm_d output.
        fm = _conv(x_ref[...], we_ref, be_ref[...], mask, 3, Wp)  # (N, L)
        fmd_ref[...] = fm

        # attention gating: stacked rows [g*N:(g+1)*N] = fm * tanh(att_g)
        t = jnp.tanh(att_ref[...])                               # (M, L)
        act0 = jnp.concatenate([fm * t[g:g + 1, :] for g in range(M)], axis=0)

        # conv0 -> bn1/relu -> conv1
        f0 = _conv(act0, w0_ref, b0_ref[...], mask, 5, Wp)
        cat_ref[0:MN, :] = f0
        a1 = _bn_relu(f0, g1_ref[...], t1_ref[...], inv_count) * mask
        f1 = _conv(a1, w1_ref, b1_ref[...], mask, 3, Wp)
        cat_ref[MN:2 * MN, :] = f1

        # cat -> bn2/relu -> conv2
        a2 = _bn_relu(cat_ref[0:2 * MN, :], g2_ref[...], t2_ref[...],
                      inv_count) * mask
        f2 = _conv(a2, w2_ref, b2_ref[...], mask, 3, Wp)
        cat_ref[2 * MN:3 * MN, :] = f2

        # cat -> bn3/relu -> conv3
        a3 = _bn_relu(cat_ref[0:3 * MN, :], g3_ref[...], t3_ref[...],
                      inv_count) * mask
        f3 = _conv(a3, w3_ref, b3_ref[...], mask, 3, Wp)
        cat_ref[3 * MN:4 * MN, :] = f3

        # cat -> bn4/relu -> conv_last -> bn_last/relu
        a4 = _bn_relu(cat_ref[...], g4_ref[...], t4_ref[...], inv_count) * mask
        fl = _conv(a4, wl_ref, bl_ref[...], mask, 1, Wp)
        out_ref[...] = _bn_relu(fl, gl_ref[...], tl_ref[...], inv_count) * mask

    return kernel


# ----------------------------------------------------------------------------
# Host-side parameter layout transforms
# ----------------------------------------------------------------------------

def _tap_weights_grouped(w_pt, M, N):
    """PyTorch grouped-conv weight (M*N, Lc*N, K, K) -> block-diagonal per-tap
    weights (K*K, M*N, Lc*M*N) in the kernel's layer-major stacked channel
    order (row/col index = layer*M*N + group*N + chan)."""
    _, cin_g, K, _ = w_pt.shape
    Lc = cin_g // N
    w = w_pt.reshape(M, N, Lc, N, K, K)
    w = jnp.transpose(w, (4, 5, 2, 0, 1, 3))                     # (ky,kx,l,g,n,m)
    eye = jnp.eye(M, dtype=w.dtype)
    full = w[:, :, :, :, :, None, :] * eye[None, None, None, :, None, :, None]
    full = jnp.transpose(full, (0, 1, 3, 4, 2, 5, 6))            # (ky,kx,g,n,l,h,m)
    return full.reshape(K * K, M * N, Lc * M * N).astype(jnp.bfloat16)


def _tap_weights_plain(w_pt):
    """PyTorch conv weight (O, I, K, K) -> (K*K, O, I) bf16 per-tap weights."""
    O, I, K, _ = w_pt.shape
    return jnp.transpose(w_pt, (2, 3, 0, 1)).reshape(K * K, O, I).astype(jnp.bfloat16)


def _col(v):
    """Conv bias (PyTorch order == kernel row order) -> (C, 1) f32 column."""
    return v.reshape(-1, 1).astype(jnp.float32)


def _bn_col(v, M, N):
    """BN gamma/beta: PyTorch group-major channel order -> kernel layer-major."""
    Lc = v.shape[0] // (M * N)
    return jnp.transpose(v.reshape(M, Lc, N), (1, 0, 2)).reshape(-1, 1).astype(jnp.float32)


# ----------------------------------------------------------------------------
# Forward pass
# ----------------------------------------------------------------------------

def texture_enhance_v2_forward(params, feature_maps, attention_maps,
                               num_features, num_attentions):
    B, N, H, W = feature_maps.shape
    M = num_attentions
    MN = M * N
    assert N == num_features
    assert attention_maps.shape == (B, M, H, W), \
        "only matching attention spatial size implemented"
    # TODO(synk): adaptive_avg_pool2d / F.interpolate resampling for mismatched
    # attention sizes (and the tuple-attention path) is resampling glue not
    # implemented here; with (Ha, Wa) == (H, W) those ops are exact identities.

    Hp, Wp = H + 2 * P, W + 2 * P
    S = B * Hp * Wp
    L = ((S + 127) // 128) * 128               # lane-aligned slab width
    inv_count = 1.0 / (B * H * W)
    f32 = jnp.float32

    # ---- host-side re-layout to lane-dense, channel-major padded slabs ------
    def to_slab(a):                            # (B, C, H, W) -> (C, L)
        ap = jnp.pad(a.astype(f32), ((0, 0), (0, 0), (P, P), (P, P)))
        ap = jnp.transpose(ap, (1, 0, 2, 3)).reshape(a.shape[1], S)
        return jnp.pad(ap, ((0, 0), (0, L - S)))

    x_cs = to_slab(feature_maps)                                  # (N, L)
    att_cs = to_slab(attention_maps)                              # (M, L)
    mask = jnp.pad(jnp.ones((B, H, W), f32),
                   ((0, 0), (P, P), (P, P))).reshape(1, S)
    mask = jnp.pad(mask, ((0, 0), (0, L - S)))                    # (1, L)

    # ---- parameters in kernel layout (block-diagonal group-stacked taps) ----
    we = _tap_weights_plain(params['ce_w']);         be = _col(params['ce_b'])
    w0 = _tap_weights_grouped(params['c0_w'], M, N); b0 = _col(params['c0_b'])
    w1 = _tap_weights_grouped(params['c1_w'], M, N); b1 = _col(params['c1_b'])
    w2 = _tap_weights_grouped(params['c2_w'], M, N); b2 = _col(params['c2_b'])
    w3 = _tap_weights_grouped(params['c3_w'], M, N); b3 = _col(params['c3_b'])
    wl = _tap_weights_grouped(params['cl_w'], M, N); bl = _col(params['cl_b'])
    bn = {k: _bn_col(params[k], M, N) for k in
          ('bn1_w', 'bn1_b', 'bn2_w', 'bn2_b', 'bn3_w', 'bn3_b',
           'bn4_w', 'bn4_b', 'bnl_w', 'bnl_b')}

    # ---- single fused pallas_call (no grid; everything resident in VMEM) ----
    out_slab, fmd_slab = pl.pallas_call(
        _make_kernel(M, N, Wp, inv_count),
        out_shape=(jax.ShapeDtypeStruct((MN, L), f32),
                   jax.ShapeDtypeStruct((N, L), f32)),
        scratch_shapes=[pltpu.VMEM((4 * MN, L), f32)],            # dense-cat slab
    )(x_cs, att_cs, mask,
      we, w0, w1, w2, w3, wl,
      be, b0, b1, b2, b3, bl,
      bn['bn1_w'], bn['bn1_b'], bn['bn2_w'], bn['bn2_b'],
      bn['bn3_w'], bn['bn3_b'], bn['bn4_w'], bn['bn4_b'],
      bn['bnl_w'], bn['bnl_b'])

    out = out_slab[:, :S].reshape(M, N, B, Hp, Wp)[:, :, :, P:P + H, P:P + W]
    out = jnp.transpose(out, (2, 0, 1, 3, 4))                     # (B, M, N, H, W)
    fm_d = fmd_slab[:, :S].reshape(N, B, Hp, Wp)[:, :, P:P + H, P:P + W]
    fm_d = jnp.transpose(fm_d, (1, 0, 2, 3))                      # (B, N, H, W)
    return out, fm_d


# ----------------------------------------------------------------------------
# Pure-JAX reference (lax.conv, HIGHEST precision) for numerical verification
# ----------------------------------------------------------------------------

def reference_forward(params, feature_maps, attention_maps, N, M):
    eps = 1e-5

    def conv(x, w, b, pad, groups):
        y = lax.conv_general_dilated(
            x, w, window_strides=(1, 1), padding=[(pad, pad), (pad, pad)],
            dimension_numbers=('NCHW', 'OIHW', 'NCHW'),
            feature_group_count=groups, precision=lax.Precision.HIGHEST)
        return y + b[None, :, None, None]

    def bn(x, g, bta):
        mean = jnp.mean(x, axis=(0, 2, 3), keepdims=True)
        var = jnp.mean(jnp.square(x - mean), axis=(0, 2, 3), keepdims=True)
        return (x - mean) / jnp.sqrt(var + eps) * g[None, :, None, None] + bta[None, :, None, None]

    def cat(a, b):
        B, _, H, W = a.shape
        return jnp.concatenate([a.reshape(B, M, -1, H, W),
                                b.reshape(B, M, -1, H, W)], axis=2).reshape(B, -1, H, W)

    B, _, H, W = feature_maps.shape
    fm = conv(feature_maps, params['ce_w'], params['ce_b'], 1, 1)
    fm_d = fm
    amap = jnp.tanh(attention_maps)[:, :, None, :, :]
    fm = (fm[:, None] * amap).reshape(B, -1, H, W)
    f0 = conv(fm, params['c0_w'], params['c0_b'], 2, M)
    f1 = conv(jnp.maximum(bn(f0, params['bn1_w'], params['bn1_b']), 0.0),
              params['c1_w'], params['c1_b'], 1, M)
    f1_ = cat(f0, f1)
    f2 = conv(jnp.maximum(bn(f1_, params['bn2_w'], params['bn2_b']), 0.0),
              params['c2_w'], params['c2_b'], 1, M)
    f2_ = cat(f1_, f2)
    f3 = conv(jnp.maximum(bn(f2_, params['bn3_w'], params['bn3_b']), 0.0),
              params['c3_w'], params['c3_b'], 1, M)
    f3_ = cat(f2_, f3)
    fl = conv(jnp.maximum(bn(f3_, params['bn4_w'], params['bn4_b']), 0.0),
              params['cl_w'], params['cl_b'], 0, M)
    out = jnp.maximum(bn(fl, params['bnl_w'], params['bnl_b']), 0.0)
    return out.reshape(B, M, N, H, W), fm_d


# ----------------------------------------------------------------------------
# Deterministic parameter init (PyTorch OIHW layout, then converted)
# ----------------------------------------------------------------------------

def init_params(key, N, M):
    ks = jax.random.split(key, 22)
    cw = lambda k, co, ci, K: 0.1 * jax.random.normal(k, (co, ci, K, K), jnp.float32)
    vec = lambda k, c: 0.1 * jax.random.normal(k, (c,), jnp.float32)
    p = {}
    p['ce_w'] = cw(ks[0], N, N, 3);            p['ce_b'] = vec(ks[1], N)
    p['c0_w'] = cw(ks[2], M * N, N, 5);        p['c0_b'] = vec(ks[3], M * N)
    p['c1_w'] = cw(ks[4], M * N, N, 3);        p['c1_b'] = vec(ks[5], M * N)
    p['c2_w'] = cw(ks[6], M * N, 2 * N, 3);    p['c2_b'] = vec(ks[7], M * N)
    p['c3_w'] = cw(ks[8], M * N, 3 * N, 3);    p['c3_b'] = vec(ks[9], M * N)
    p['cl_w'] = cw(ks[10], M * N, 4 * N, 1);   p['cl_b'] = vec(ks[11], M * N)
    p['bn1_w'] = 1.0 + vec(ks[12], M * N);     p['bn1_b'] = vec(ks[13], M * N)
    p['bn2_w'] = 1.0 + vec(ks[14], 2 * M * N); p['bn2_b'] = vec(ks[15], 2 * M * N)
    p['bn3_w'] = 1.0 + vec(ks[16], 3 * M * N); p['bn3_b'] = vec(ks[17], 3 * M * N)
    p['bn4_w'] = 1.0 + vec(ks[18], 4 * M * N); p['bn4_b'] = vec(ks[19], 4 * M * N)
    p['bnl_w'] = 1.0 + vec(ks[20], M * N);     p['bnl_b'] = vec(ks[21], M * N)
    return p


if __name__ == "__main__":
    num_features, num_attentions = 4, 2          # N, M
    B, H, W = 2, 16, 16

    key = jax.random.PRNGKey(0)
    kp, kx, ka = jax.random.split(key, 3)
    params = init_params(kp, num_features, num_attentions)
    feature_maps = jax.random.normal(kx, (B, num_features, H, W), jnp.float32)
    attention_maps = jax.random.normal(ka, (B, num_attentions, H, W), jnp.float32)

    fwd = jax.jit(functools.partial(texture_enhance_v2_forward,
                                    num_features=num_features,
                                    num_attentions=num_attentions))
    out, out_d = fwd(params, feature_maps, attention_maps)
    jax.block_until_ready((out, out_d))

    ref, ref_d = jax.jit(functools.partial(reference_forward,
                                           N=num_features, M=num_attentions))(
        params, feature_maps, attention_maps)
    np.testing.assert_allclose(np.asarray(out), np.asarray(ref), rtol=4e-2, atol=4e-2)
    np.testing.assert_allclose(np.asarray(out_d), np.asarray(ref_d), rtol=4e-2, atol=4e-2)
    assert out.shape == (B, num_attentions, num_features, H, W)
    assert out_d.shape == (B, num_features, H, W)
    print("KERNEL_OK")
</pallas_src>

<mosaic_0001>
module attributes {stable_mosaic.version = 11 : i64} {
  func.func @kernel(%arg0: memref<4x896xf32, #tpu.memory_space<vmem>>, %arg1: memref<2x896xf32, #tpu.memory_space<vmem>>, %arg2: memref<1x896xf32, #tpu.memory_space<vmem>>, %arg3: memref<9x4x4xbf16, #tpu.memory_space<vmem>>, %arg4: memref<25x8x8xbf16, #tpu.memory_space<vmem>>, %arg5: memref<9x8x8xbf16, #tpu.memory_space<vmem>>, %arg6: memref<9x8x16xbf16, #tpu.memory_space<vmem>>, %arg7: memref<9x8x24xbf16, #tpu.memory_space<vmem>>, %arg8: memref<1x8x32xbf16, #tpu.memory_space<vmem>>, %arg9: memref<4x1xf32, #tpu.memory_space<vmem>>, %arg10: memref<8x1xf32, #tpu.memory_space<vmem>>, %arg11: memref<8x1xf32, #tpu.memory_space<vmem>>, %arg12: memref<8x1xf32, #tpu.memory_space<vmem>>, %arg13: memref<8x1xf32, #tpu.memory_space<vmem>>, %arg14: memref<8x1xf32, #tpu.memory_space<vmem>>, %arg15: memref<8x1xf32, #tpu.memory_space<vmem>>, %arg16: memref<8x1xf32, #tpu.memory_space<vmem>>, %arg17: memref<16x1xf32, #tpu.memory_space<vmem>>, %arg18: memref<16x1xf32, #tpu.memory_space<vmem>>, %arg19: memref<24x1xf32, #tpu.memory_space<vmem>>, %arg20: memref<24x1xf32, #tpu.memory_space<vmem>>, %arg21: memref<32x1xf32, #tpu.memory_space<vmem>>, %arg22: memref<32x1xf32, #tpu.memory_space<vmem>>, %arg23: memref<8x1xf32, #tpu.memory_space<vmem>>, %arg24: memref<8x1xf32, #tpu.memory_space<vmem>>, %arg25: memref<8x896xf32, #tpu.memory_space<vmem>>, %arg26: memref<4x896xf32, #tpu.memory_space<vmem>>, %arg27: memref<32x896xf32, #tpu.memory_space<vmem>>) attributes {dimension_semantics = [], scalar_prefetch = 0 : i64, scratch_operands = 1 : i64, tpu.core_type = #tpu.core_type<tc>} {
    %c0 = arith.constant 0 : index
    %c0_0 = arith.constant 0 : index
    %0 = vector.load %arg2[%c0, %c0_0] : memref<1x896xf32, #tpu.memory_space<vmem>>, vector<1x896xf32>
    %c0_1 = arith.constant 0 : index
    %c0_2 = arith.constant 0 : index
    %1 = vector.load %arg0[%c0_1, %c0_2] : memref<4x896xf32, #tpu.memory_space<vmem>>, vector<4x896xf32>
    %c0_3 = arith.constant 0 : index
    %c0_4 = arith.constant 0 : index
    %2 = vector.load %arg9[%c0_3, %c0_4] : memref<4x1xf32, #tpu.memory_space<vmem>>, vector<4x1xf32>
    %3 = arith.truncf %1 : vector<4x896xf32> to vector<4x896xbf16>
    %c0_5 = arith.constant 0 : index
    %c0_6 = arith.constant 0 : index
    %c0_7 = arith.constant 0 : index
    %4 = vector.load %arg3[%c0_5, %c0_6, %c0_7] : memref<9x4x4xbf16, #tpu.memory_space<vmem>>, vector<1x4x4xbf16>
    %5 = vector.shape_cast %4 : vector<1x4x4xbf16> to vector<4x4xbf16>
    %cst = arith.constant 0.000000e+00 : bf16
    %6 = vector.broadcast %cst : bf16 to vector<4x21xbf16>
    %7 = vector.extract_strided_slice %3 {offsets = [0, 0], sizes = [4, 875], strides = [1, 1]} : vector<4x896xbf16> to vector<4x875xbf16>
    %8 = tpu.concatenate %6, %7 in 1 : vector<4x21xbf16>, vector<4x875xbf16> -> vector<4x896xbf16>
    %cst_8 = arith.constant dense<0.000000e+00> : vector<4x896xf32>
    %9 = tpu.matmul %5, %8, %cst_8 {dimension_numbers = #tpu.dot_dimension_numbers<[1], [0], [0], [1], [0, 0, 1, 1], [], []>} : vector<4x4xbf16>, vector<4x896xbf16>, vector<4x896xf32> -> vector<4x896xf32>
    %c1 = arith.constant 1 : index
    %c0_9 = arith.constant 0 : index
    %c0_10 = arith.constant 0 : index
    %10 = vector.load %arg3[%c1, %c0_9, %c0_10] : memref<9x4x4xbf16, #tpu.memory_space<vmem>>, vector<1x4x4xbf16>
    %11 = vector.shape_cast %10 : vector<1x4x4xbf16> to vector<4x4xbf16>
    %cst_11 = arith.constant 0.000000e+00 : bf16
    %12 = vector.broadcast %cst_11 : bf16 to vector<4x20xbf16>
    %13 = vector.extract_strided_slice %3 {offsets = [0, 0], sizes = [4, 876], strides = [1, 1]} : vector<4x896xbf16> to vector<4x876xbf16>
    %14 = tpu.concatenate %12, %13 in 1 : vector<4x20xbf16>, vector<4x876xbf16> -> vector<4x896xbf16>
    %cst_12 = arith.constant dense<0.000000e+00> : vector<4x896xf32>
    %15 = tpu.matmul %11, %14, %cst_12 {dimension_numbers = #tpu.dot_dimension_numbers<[1], [0], [0], [1], [0, 0, 1, 1], [], []>} : vector<4x4xbf16>, vector<4x896xbf16>, vector<4x896xf32> -> vector<4x896xf32>
    %16 = arith.addf %9, %15 : vector<4x896xf32>
    %c2 = arith.constant 2 : index
    %c0_13 = arith.constant 0 : index
    %c0_14 = arith.constant 0 : index
    %17 = vector.load %arg3[%c2, %c0_13, %c0_14] : memref<9x4x4xbf16, #tpu.memory_space<vmem>>, vector<1x4x4xbf16>
    %18 = vector.shape_cast %17 : vector<1x4x4xbf16> to vector<4x4xbf16>
    %cst_15 = arith.constant 0.000000e+00 : bf16
    %19 = vector.broadcast %cst_15 : bf16 to vector<4x19xbf16>
    %20 = vector.extract_strided_slice %3 {offsets = [0, 0], sizes = [4, 877], strides = [1, 1]} : vector<4x896xbf16> to vector<4x877xbf16>
    %21 = tpu.concatenate %19, %20 in 1 : vector<4x19xbf16>, vector<4x877xbf16> -> vector<4x896xbf16>
    %cst_16 = arith.constant dense<0.000000e+00> : vector<4x896xf32>
    %22 = tpu.matmul %18, %21, %cst_16 {dimension_numbers = #tpu.dot_dimension_numbers<[1], [0], [0], [1], [0, 0, 1, 1], [], []>} : vector<4x4xbf16>, vector<4x896xbf16>, vector<4x896xf32> -> vector<4x896xf32>
    %23 = arith.addf %16, %22 : vector<4x896xf32>
    %c3 = arith.constant 3 : index
    %c0_17 = arith.constant 0 : index
    %c0_18 = arith.constant 0 : index
    %24 = vector.load %arg3[%c3, %c0_17, %c0_18] : memref<9x4x4xbf16, #tpu.memory_space<vmem>>, vector<1x4x4xbf16>
    %25 = vector.shape_cast %24 : vector<1x4x4xbf16> to vector<4x4xbf16>
    %cst_19 = arith.constant 0.000000e+00 : bf16
    %26 = vector.broadcast %cst_19 : bf16 to vector<4x1xbf16>
    %27 = vector.extract_strided_slice %3 {offsets = [0, 0], sizes = [4, 895], strides = [1, 1]} : vector<4x896xbf16> to vector<4x895xbf16>
    %28 = tpu.concatenate %26, %27 in 1 : vector<4x1xbf16>, vector<4x895xbf16> -> vector<4x896xbf16>
    %cst_20 = arith.constant dense<0.000000e+00> : vector<4x896xf32>
    %29 = tpu.matmul %25, %28, %cst_20 {dimension_numbers = #tpu.dot_dimension_numbers<[1], [0], [0], [1], [0, 0, 1, 1], [], []>} : vector<4x4xbf16>, vector<4x896xbf16>, vector<4x896xf32> -> vector<4x896xf32>
    %30 = arith.addf %23, %29 : vector<4x896xf32>
    %c4 = arith.constant 4 : index
    %c0_21 = arith.constant 0 : index
    %c0_22 = arith.constant 0 : index
    %31 = vector.load %arg3[%c4, %c0_21, %c0_22] : memref<9x4x4xbf16, #tpu.memory_space<vmem>>, vector<1x4x4xbf16>
    %32 = vector.shape_cast %31 : vector<1x4x4xbf16> to vector<4x4xbf16>
    %cst_23 = arith.constant dense<0.000000e+00> : vector<4x896xf32>
    %33 = tpu.matmul %32, %3, %cst_23 {dimension_numbers = #tpu.dot_dimension_numbers<[1], [0], [0], [1], [0, 0, 1, 1], [], []>} : vector<4x4xbf16>, vector<4x896xbf16>, vector<4x896xf32> -> vector<4x896xf32>
    %34 = arith.addf %30, %33 : vector<4x896xf32>
    %c5 = arith.constant 5 : index
    %c0_24 = arith.constant 0 : index
    %c0_25 = arith.constant 0 : index
    %35 = vector.load %arg3[%c5, %c0_24, %c0_25] : memref<9x4x4xbf16, #tpu.memory_space<vmem>>, vector<1x4x4xbf16>
    %36 = vector.shape_cast %35 : vector<1x4x4xbf16> to vector<4x4xbf16>
    %cst_26 = arith.constant 0.000000e+00 : bf16
    %37 = vector.broadcast %cst_26 : bf16 to vector<4x1xbf16>
    %38 = vector.extract_strided_slice %3 {offsets = [0, 1], sizes = [4, 895], strides = [1, 1]} : vector<4x896xbf16> to vector<4x895xbf16>
    %39 = tpu.concatenate %38, %37 in 1 : vector<4x895xbf16>, vector<4x1xbf16> -> vector<4x896xbf16>
    %cst_27 = arith.constant dense<0.000000e+00> : vector<4x896xf32>
    %40 = tpu.matmul %36, %39, %cst_27 {dimension_numbers = #tpu.dot_dimension_numbers<[1], [0], [0], [1], [0, 0, 1, 1], [], []>} : vector<4x4xbf16>, vector<4x896xbf16>, vector<4x896xf32> -> vector<4x896xf32>
    %41 = arith.addf %34, %40 : vector<4x896xf32>
    %c6 = arith.constant 6 : index
    %c0_28 = arith.constant 0 : index
    %c0_29 = arith.constant 0 : index
    %42 = vector.load %arg3[%c6, %c0_28, %c0_29] : memref<9x4x4xbf16, #tpu.memory_space<vmem>>, vector<1x4x4xbf16>
    %43 = vector.shape_cast %42 : vector<1x4x4xbf16> to vector<4x4xbf16>
    %cst_30 = arith.constant 0.000000e+00 : bf16
    %44 = vector.broadcast %cst_30 : bf16 to vector<4x19xbf16>
    %45 = vector.extract_strided_slice %3 {offsets = [0, 19], sizes = [4, 877], strides = [1, 1]} : vector<4x896xbf16> to vector<4x877xbf16>
    %46 = tpu.concatenate %45, %44 in 1 : vector<4x877xbf16>, vector<4x19xbf16> -> vector<4x896xbf16>
    %cst_31 = arith.constant dense<0.000000e+00> : vector<4x896xf32>
    %47 = tpu.matmul %43, %46, %cst_31 {dimension_numbers = #tpu.dot_dimension_numbers<[1], [0], [0], [1], [0, 0, 1, 1], [], []>} : vector<4x4xbf16>, vector<4x896xbf16>, vector<4x896xf32> -> vector<4x896xf32>
    %48 = arith.addf %41, %47 : vector<4x896xf32>
    %c7 = arith.constant 7 : index
    %c0_32 = arith.constant 0 : index
    %c0_33 = arith.constant 0 : index
    %49 = vector.load %arg3[%c7, %c0_32, %c0_33] : memref<9x4x4xbf16, #tpu.memory_space<vmem>>, vector<1x4x4xbf16>
    %50 = vector.shape_cast %49 : vector<1x4x4xbf16> to vector<4x4xbf16>
    %cst_34 = arith.constant 0.000000e+00 : bf16
    %51 = vector.broadcast %cst_34 : bf16 to vector<4x20xbf16>
    %52 = vector.extract_strided_slice %3 {offsets = [0, 20], sizes = [4, 876], strides = [1, 1]} : vector<4x896xbf16> to vector<4x876xbf16>
    %53 = tpu.concatenate %52, %51 in 1 : vector<4x876xbf16>, vector<4x20xbf16> -> vector<4x896xbf16>
    %cst_35 = arith.constant dense<0.000000e+00> : vector<4x896xf32>
    %54 = tpu.matmul %50, %53, %cst_35 {dimension_numbers = #tpu.dot_dimension_numbers<[1], [0], [0], [1], [0, 0, 1, 1], [], []>} : vector<4x4xbf16>, vector<4x896xbf16>, vector<4x896xf32> -> vector<4x896xf32>
    %55 = arith.addf %48, %54 : vector<4x896xf32>
    %c8 = arith.constant 8 : index
    %c0_36 = arith.constant 0 : index
    %c0_37 = arith.constant 0 : index
    %56 = vector.load %arg3[%c8, %c0_36, %c0_37] : memref<9x4x4xbf16, #tpu.memory_space<vmem>>, vector<1x4x4xbf16>
    %57 = vector.shape_cast %56 : vector<1x4x4xbf16> to vector<4x4xbf16>
    %cst_38 = arith.constant 0.000000e+00 : bf16
    %58 = vector.broadcast %cst_38 : bf16 to vector<4x21xbf16>
    %59 = vector.extract_strided_slice %3 {offsets = [0, 21], sizes = [4, 875], strides = [1, 1]} : vector<4x896xbf16> to vector<4x875xbf16>
    %60 = tpu.concatenate %59, %58 in 1 : vector<4x875xbf16>, vector<4x21xbf16> -> vector<4x896xbf16>
    %cst_39 = arith.constant dense<0.000000e+00> : vector<4x896xf32>
    %61 = tpu.matmul %57, %60, %cst_39 {dimension_numbers = #tpu.dot_dimension_numbers<[1], [0], [0], [1], [0, 0, 1, 1], [], []>} : vector<4x4xbf16>, vector<4x896xbf16>, vector<4x896xf32> -> vector<4x896xf32>
    %62 = arith.addf %55, %61 : vector<4x896xf32>
    %63 = vector.broadcast %2 : vector<4x1xf32> to vector<4x896xf32>
    %64 = arith.addf %62, %63 : vector<4x896xf32>
    %65 = vector.broadcast %0 : vector<1x896xf32> to vector<4x896xf32>
    %66 = arith.mulf %64, %65 : vector<4x896xf32>
    %c0_40 = arith.constant 0 : index
    %c0_41 = arith.constant 0 : index
    %67 = vector.load %arg26[%c0_40, %c0_41] : memref<4x896xf32, #tpu.memory_space<vmem>>, vector<4x896xf32>
    tpu.vector_store %arg26[%c0_40, %c0_41], %66 {strides = array<i32>} : memref<4x896xf32, #tpu.memory_space<vmem>>, vector<4x896xf32>,
    %c0_42 = arith.constant 0 : index
    %c0_43 = arith.constant 0 : index
    %68 = vector.load %arg1[%c0_42, %c0_43] : memref<2x896xf32, #tpu.memory_space<vmem>>, vector<2x896xf32>
    %69 = math.tanh %68 : vector<2x896xf32>
    %70 = vector.extract_strided_slice %69 {offsets = [0, 0], sizes = [1, 896], strides = [1, 1]} : vector<2x896xf32> to vector<1x896xf32>
    %71 = vector.broadcast %70 : vector<1x896xf32> to vector<4x896xf32>
    %72 = arith.mulf %66, %71 : vector<4x896xf32>
    %73 = vector.extract_strided_slice %69 {offsets = [1, 0], sizes = [1, 896], strides = [1, 1]} : vector<2x896xf32> to vector<1x896xf32>
    %74 = vector.broadcast %73 : vector<1x896xf32> to vector<4x896xf32>
    %75 = arith.mulf %66, %74 : vector<4x896xf32>
    %76 = tpu.concatenate %72, %75 in 0 : vector<4x896xf32>, vector<4x896xf32> -> vector<8x896xf32>
    %c0_44 = arith.constant 0 : index
    %c0_45 = arith.constant 0 : index
    %77 = vector.load %arg10[%c0_44, %c0_45] : memref<8x1xf32, #tpu.memory_space<vmem>>, vector<8x1xf32>
    %78 = arith.truncf %76 : vector<8x896xf32> to vector<8x896xbf16>
    %c0_46 = arith.constant 0 : index
    %c0_47 = arith.constant 0 : index
    %c0_48 = arith.constant 0 : index
    %79 = vector.load %arg4[%c0_46, %c0_47, %c0_48] : memref<25x8x8xbf16, #tpu.memory_space<vmem>>, vector<1x8x8xbf16>
    %80 = vector.shape_cast %79 : vector<1x8x8xbf16> to vector<8x8xbf16>
    %cst_49 = arith.constant 0.000000e+00 : bf16
    %81 = vector.broadcast %cst_49 : bf16 to vector<8x42xbf16>
    %82 = vector.extract_strided_slice %78 {offsets = [0, 0], sizes = [8, 854], strides = [1, 1]} : vector<8x896xbf16> to vector<8x854xbf16>
    %83 = tpu.concatenate %81, %82 in 1 : vector<8x42xbf16>, vector<8x854xbf16> -> vector<8x896xbf16>
    %cst_50 = arith.constant dense<0.000000e+00> : vector<8x896xf32>
    %84 = tpu.matmul %80, %83, %cst_50 {dimension_numbers = #tpu.dot_dimension_numbers<[1], [0], [0], [1], [0, 0, 1, 1], [], []>} : vector<8x8xbf16>, vector<8x896xbf16>, vector<8x896xf32> -> vector<8x896xf32>
    %c1_51 = arith.constant 1 : index
    %c0_52 = arith.constant 0 : index
    %c0_53 = arith.constant 0 : index
    %85 = vector.load %arg4[%c1_51, %c0_52, %c0_53] : memref<25x8x8xbf16, #tpu.memory_space<vmem>>, vector<1x8x8xbf16>
    %86 = vector.shape_cast %85 : vector<1x8x8xbf16> to vector<8x8xbf16>
    %cst_54 = arith.constant 0.000000e+00 : bf16
    %87 = vector.broadcast %cst_54 : bf16 to vector<8x41xbf16>
    %88 = vector.extract_strided_slice %78 {offsets = [0, 0], sizes = [8, 855], strides = [1, 1]} : vector<8x896xbf16> to vector<8x855xbf16>
    %89 = tpu.concatenate %87, %88 in 1 : vector<8x41xbf16>, vector<8x855xbf16> -> vector<8x896xbf16>
    %cst_55 = arith.constant dense<0.000000e+00> : vector<8x896xf32>
    %90 = tpu.matmul %86, %89, %cst_55 {dimension_numbers = #tpu.dot_dimension_numbers<[1], [0], [0], [1], [0, 0, 1, 1], [], []>} : vector<8x8xbf16>, vector<8x896xbf16>, vector<8x896xf32> -> vector<8x896xf32>
    %91 = arith.addf %84, %90 : vector<8x896xf32>
    %c2_56 = arith.constant 2 : index
    %c0_57 = arith.constant 0 : index
    %c0_58 = arith.constant 0 : index
    %92 = vector.load %arg4[%c2_56, %c0_57, %c0_58] : memref<25x8x8xbf16, #tpu.memory_space<vmem>>, vector<1x8x8xbf16>
    %93 = vector.shape_cast %92 : vector<1x8x8xbf16> to vector<8x8xbf16>
    %cst_59 = arith.constant 0.000000e+00 : bf16
    %94 = vector.broadcast %cst_59 : bf16 to vector<8x40xbf16>
    %95 = vector.extract_strided_slice %78 {offsets = [0, 0], sizes = [8, 856], strides = [1, 1]} : vector<8x896xbf16> to vector<8x856xbf16>
    %96 = tpu.concatenate %94, %95 in 1 : vector<8x40xbf16>, vector<8x856xbf16> -> vector<8x896xbf16>
    %cst_60 = arith.constant dense<0.000000e+00> : vector<8x896xf32>
    %97 = tpu.matmul %93, %96, %cst_60 {dimension_numbers = #tpu.dot_dimension_numbers<[1], [0], [0], [1], [0, 0, 1, 1], [], []>} : vector<8x8xbf16>, vector<8x896xbf16>, vector<8x896xf32> -> vector<8x896xf32>
    %98 = arith.addf %91, %97 : vector<8x896xf32>
    %c3_61 = arith.constant 3 : index
    %c0_62 = arith.constant 0 : index
    %c0_63 = arith.constant 0 : index
    %99 = vector.load %arg4[%c3_61, %c0_62, %c0_63] : memref<25x8x8xbf16, #tpu.memory_space<vmem>>, vector<1x8x8xbf16>
    %100 = vector.shape_cast %99 : vector<1x8x8xbf16> to vector<8x8xbf16>
    %cst_64 = arith.constant 0.000000e+00 : bf16
    %101 = vector.broadcast %cst_64 : bf16 to vector<8x39xbf16>
    %102 = vector.extract_strided_slice %78 {offsets = [0, 0], sizes = [8, 857], strides = [1, 1]} : vector<8x896xbf16> to vector<8x857xbf16>
    %103 = tpu.concatenate %101, %102 in 1 : vector<8x39xbf16>, vector<8x857xbf16> -> vector<8x896xbf16>
    %cst_65 = arith.constant dense<0.000000e+00> : vector<8x896xf32>
    %104 = tpu.matmul %100, %103, %cst_65 {dimension_numbers = #tpu.dot_dimension_numbers<[1], [0], [0], [1], [0, 0, 1, 1], [], []>} : vector<8x8xbf16>, vector<8x896xbf16>, vector<8x896xf32> -> vector<8x896xf32>
    %105 = arith.addf %98, %104 : vector<8x896xf32>
    %c4_66 = arith.constant 4 : index
    %c0_67 = arith.constant 0 : index
    %c0_68 = arith.constant 0 : index
    %106 = vector.load %arg4[%c4_66, %c0_67, %c0_68] : memref<25x8x8xbf16, #tpu.memory_space<vmem>>, vector<1x8x8xbf16>
    %107 = vector.shape_cast %106 : vector<1x8x8xbf16> to vector<8x8xbf16>
    %cst_69 = arith.constant 0.000000e+00 : bf16
    %108 = vector.broadcast %cst_69 : bf16 to vector<8x38xbf16>
    %109 = vector.extract_strided_slice %78 {offsets = [0, 0], sizes = [8, 858], strides = [1, 1]} : vector<8x896xbf16> to vector<8x858xbf16>
    %110 = tpu.concatenate %108, %109 in 1 : vector<8x38xbf16>, vector<8x858xbf16> -> vector<8x896xbf16>
    %cst_70 = arith.constant dense<0.000000e+00> : vector<8x896xf32>
    %111 = tpu.matmul %107, %110, %cst_70 {dimension_numbers = #tpu.dot_dimension_numbers<[1], [0], [0], [1], [0, 0, 1, 1], [], []>} : vector<8x8xbf16>, vector<8x896xbf16>, vector<8x896xf32> -> vector<8x896xf32>
    %112 = arith.addf %105, %111 : vector<8x896xf32>
    %c5_71 = arith.constant 5 : index
    %c0_72 = arith.constant 0 : index
    %c0_73 = arith.constant 0 : index
    %113 = vector.load %arg4[%c5_71, %c0_72, %c0_73] : memref<25x8x8xbf16, #tpu.memory_space<vmem>>, vector<1x8x8xbf16>
    %114 = vector.shape_cast %113 : vector<1x8x8xbf16> to vector<8x8xbf16>
    %cst_74 = arith.constant 0.000000e+00 : bf16
    %115 = vector.broadcast %cst_74 : bf16 to vector<8x22xbf16>
    %116 = vector.extract_strided_slice %78 {offsets = [0, 0], sizes = [8, 874], strides = [1, 1]} : vector<8x896xbf16> to vector<8x874xbf16>
    %117 = tpu.concatenate %115, %116 in 1 : vector<8x22xbf16>, vector<8x874xbf16> -> vector<8x896xbf16>
    %cst_75 = arith.constant dense<0.000000e+00> : vector<8x896xf32>
    %118 = tpu.matmul %114, %117, %cst_75 {dimension_numbers = #tpu.dot_dimension_numbers<[1], [0], [0], [1], [0, 0, 1, 1], [], []>} : vector<8x8xbf16>, vector<8x896xbf16>, vector<8x896xf32> -> vector<8x896xf32>
    %119 = arith.addf %112, %118 : vector<8x896xf32>
    %c6_76 = arith.constant 6 : index
    %c0_77 = arith.constant 0 : index
    %c0_78 = arith.constant 0 : index
    %120 = vector.load %arg4[%c6_76, %c0_77, %c0_78] : memref<25x8x8xbf16, #tpu.memory_space<vmem>>, vector<1x8x8xbf16>
    %121 = vector.shape_cast %120 : vector<1x8x8xbf16> to vector<8x8xbf16>
    %cst_79 = arith.constant 0.000000e+00 : bf16
    %122 = vector.broadcast %cst_79 : bf16 to vector<8x21xbf16>
    %123 = vector.extract_strided_slice %78 {offsets = [0, 0], sizes = [8, 875], strides = [1, 1]} : vector<8x896xbf16> to vector<8x875xbf16>
    %124 = tpu.concatenate %122, %123 in 1 : vector<8x21xbf16>, vector<8x875xbf16> -> vector<8x896xbf16>
    %cst_80 = arith.constant dense<0.000000e+00> : vector<8x896xf32>
    %125 = tpu.matmul %121, %124, %cst_80 {dimension_numbers = #tpu.dot_dimension_numbers<[1], [0], [0], [1], [0, 0, 1, 1], [], []>} : vector<8x8xbf16>, vector<8x896xbf16>, vector<8x896xf32> -> vector<8x896xf32>
    %126 = arith.addf %119, %125 : vector<8x896xf32>
    %c7_81 = arith.constant 7 : index
    %c0_82 = arith.constant 0 : index
    %c0_83 = arith.constant 0 : index
    %127 = vector.load %arg4[%c7_81, %c0_82, %c0_83] : memref<25x8x8xbf16, #tpu.memory_space<vmem>>, vector<1x8x8xbf16>
    %128 = vector.shape_cast %127 : vector<1x8x8xbf16> to vector<8x8xbf16>
    %cst_84 = arith.constant 0.000000e+00 : bf16
    %129 = vector.broadcast %cst_84 : bf16 to vector<8x20xbf16>
    %130 = vector.extract_strided_slice %78 {offsets = [0, 0], sizes = [8, 876], strides = [1, 1]} : vector<8x896xbf16> to vector<8x876xbf16>
    %131 = tpu.concatenate %129, %130 in 1 : vector<8x20xbf16>, vector<8x876xbf16> -> vector<8x896xbf16>
    %cst_85 = arith.constant dense<0.000000e+00> : vector<8x896xf32>
    %132 = tpu.matmul %128, %131, %cst_85 {dimension_numbers = #tpu.dot_dimension_numbers<[1], [0], [0], [1], [0, 0, 1, 1], [], []>} : vector<8x8xbf16>, vector<8x896xbf16>, vector<8x896xf32> -> vector<8x896xf32>
    %133 = arith.addf %126, %132 : vector<8x896xf32>
    %c8_86 = arith.constant 8 : index
    %c0_87 = arith.constant 0 : index
    %c0_88 = arith.constant 0 : index
    %134 = vector.load %arg4[%c8_86, %c0_87, %c0_88] : memref<25x8x8xbf16, #tpu.memory_space<vmem>>, vector<1x8x8xbf16>
    %135 = vector.shape_cast %134 : vector<1x8x8xbf16> to vector<8x8xbf16>
    %cst_89 = arith.constant 0.000000e+00 : bf16
    %136 = vector.broadcast %cst_89 : bf16 to vector<8x19xbf16>
    %137 = vector.extract_strided_slice %78 {offsets = [0, 0], sizes = [8, 877], strides = [1, 1]} : vector<8x896xbf16> to vector<8x877xbf16>
    %138 = tpu.concatenate %136, %137 in 1 : vector<8x19xbf16>, vector<8x877xbf16> -> vector<8x896xbf16>
    %cst_90 = arith.constant dense<0.000000e+00> : vector<8x896xf32>
    %139 = tpu.matmul %135, %138, %cst_90 {dimension_numbers = #tpu.dot_dimension_numbers<[1], [0], [0], [1], [0, 0, 1, 1], [], []>} : vector<8x8xbf16>, vector<8x896xbf16>, vector<8x896xf32> -> vector<8x896xf32>
    %140 = arith.addf %133, %139 : vector<8x896xf32>
    %c9 = arith.constant 9 : index
    %c0_91 = arith.constant 0 : index
    %c0_92 = arith.constant 0 : index
    %141 = vector.load %arg4[%c9, %c0_91, %c0_92] : memref<25x8x8xbf16, #tpu.memory_space<vmem>>, vector<1x8x8xbf16>
    %142 = vector.shape_cast %141 : vector<1x8x8xbf16> to vector<8x8xbf16>
    %cst_93 = arith.constant 0.000000e+00 : bf16
    %143 = vector.broadcast %cst_93 : bf16 to vector<8x18xbf16>
    %144 = vector.extract_strided_slice %78 {offsets = [0, 0], sizes = [8, 878], strides = [1, 1]} : vector<8x896xbf16> to vector<8x878xbf16>
    %145 = tpu.concatenate %143, %144 in 1 : vector<8x18xbf16>, vector<8x878xbf16> -> vector<8x896xbf16>
    %cst_94 = arith.constant dense<0.000000e+00> : vector<8x896xf32>
    %146 = tpu.matmul %142, %145, %cst_94 {dimension_numbers = #tpu.dot_dimension_numbers<[1], [0], [0], [1], [0, 0, 1, 1], [], []>} : vector<8x8xbf16>, vector<8x896xbf16>, vector<8x896xf32> -> vector<8x896xf32>
    %147 = arith.addf %140, %146 : vector<8x896xf32>
    %c10 = arith.constant 10 : index
    %c0_95 = arith.constant 0 : index
    %c0_96 = arith.constant 0 : index
    %148 = vector.load %arg4[%c10, %c0_95, %c0_96] : memref<25x8x8xbf16, #tpu.memory_space<vmem>>, vector<1x8x8xbf16>
    %149 = vector.shape_cast %148 : vector<1x8x8xbf16> to vector<8x8xbf16>
    %cst_97 = arith.constant 0.000000e+00 : bf16
    %150 = vector.broadcast %cst_97 : bf16 to vector<8x2xbf16>
    %151 = vector.extract_strided_slice %78 {offsets = [0, 0], sizes = [8, 894], strides = [1, 1]} : vector<8x896xbf16> to vector<8x894xbf16>
    %152 = tpu.concatenate %150, %151 in 1 : vector<8x2xbf16>, vector<8x894xbf16> -> vector<8x896xbf16>
    %cst_98 = arith.constant dense<0.000000e+00> : vector<8x896xf32>
    %153 = tpu.matmul %149, %152, %cst_98 {dimension_numbers = #tpu.dot_dimension_numbers<[1], [0], [0], [1], [0, 0, 1, 1], [], []>} : vector<8x8xbf16>, vector<8x896xbf16>, vector<8x896xf32> -> vector<8x896xf32>
    %154 = arith.addf %147, %153 : vector<8x896xf32>
    %c11 = arith.constant 11 : index
    %c0_99 = arith.constant 0 : index
    %c0_100 = arith.constant 0 : index
    %155 = vector.load %arg4[%c11, %c0_99, %c0_100] : memref<25x8x8xbf16, #tpu.memory_space<vmem>>, vector<1x8x8xbf16>
    %156 = vector.shape_cast %155 : vector<1x8x8xbf16> to vector<8x8xbf16>
    %cst_101 = arith.constant 0.000000e+00 : bf16
    %157 = vector.broadcast %cst_101 : bf16 to vector<8x1xbf16>
    %158 = vector.extract_strided_slice %78 {offsets = [0, 0], sizes = [8, 895], strides = [1, 1]} : vector<8x896xbf16> to vector<8x895xbf16>
    %159 = tpu.concatenate %157, %158 in 1 : vector<8x1xbf16>, vector<8x895xbf16> -> vector<8x896xbf16>
    %cst_102 = arith.constant dense<0.000000e+00> : vector<8x896xf32>
    %160 = tpu.matmul %156, %159, %cst_102 {dimension_numbers = #tpu.dot_dimension_numbers<[1], [0], [0], [1], [0, 0, 1, 1], [], []>} : vector<8x8xbf16>, vector<8x896xbf16>, vector<8x896xf32> -> vector<8x896xf32>
    %161 = arith.addf %154, %160 : vector<8x896xf32>
    %c12 = arith.constant 12 : index
    %c0_103 = arith.constant 0 : index
    %c0_104 = arith.constant 0 : index
    %162 = vector.load %arg4[%c12, %c0_103, %c0_104] : memref<25x8x8xbf16, #tpu.memory_space<vmem>>, vector<1x8x8xbf16>
    %163 = vector.shape_cast %162 : vector<1x8x8xbf16> to vector<8x8xbf16>
    %cst_105 = arith.constant dense<0.000000e+00> : vector<8x896xf32>
    %164 = tpu.matmul %163, %78, %cst_105 {dimension_numbers = #tpu.dot_dimension_numbers<[1], [0], [0], [1], [0, 0, 1, 1], [], []>} : vector<8x8xbf16>, vector<8x896xbf16>, vector<8x896xf32> -> vector<8x896xf32>
    %165 = arith.addf %161, %164 : vector<8x896xf32>
    %c13 = arith.constant 13 : index
    %c0_106 = arith.constant 0 : index
    %c0_107 = arith.constant 0 : index
    %166 = vector.load %arg4[%c13, %c0_106, %c0_107] : memref<25x8x8xbf16, #tpu.memory_space<vmem>>, vector<1x8x8xbf16>
    %167 = vector.shape_cast %166 : vector<1x8x8xbf16> to vector<8x8xbf16>
    %cst_108 = arith.constant 0.000000e+00 : bf16
    %168 = vector.broadcast %cst_108 : bf16 to vector<8x1xbf16>
    %169 = vector.extract_strided_slice %78 {offsets = [0, 1], sizes = [8, 895], strides = [1, 1]} : vector<8x896xbf16> to vector<8x895xbf16>
    %170 = tpu.concatenate %169, %168 in 1 : vector<8x895xbf16>, vector<8x1xbf16> -> vector<8x896xbf16>
    %cst_109 = arith.constant dense<0.000000e+00> : vector<8x896xf32>
    %171 = tpu.matmul %167, %170, %cst_109 {dimension_numbers = #tpu.dot_dimension_numbers<[1], [0], [0], [1], [0, 0, 1, 1], [], []>} : vector<8x8xbf16>, vector<8x896xbf16>, vector<8x896xf32> -> vector<8x896xf32>
    %172 = arith.addf %165, %171 : vector<8x896xf32>
    %c14 = arith.constant 14 : index
    %c0_110 = arith.constant 0 : index
    %c0_111 = arith.constant 0 : index
    %173 = vector.load %arg4[%c14, %c0_110, %c0_111] : memref<25x8x8xbf16, #tpu.memory_space<vmem>>, vector<1x8x8xbf16>
    %174 = vector.shape_cast %173 : vector<1x8x8xbf16> to vector<8x8xbf16>
    %cst_112 = arith.constant 0.000000e+00 : bf16
    %175 = vector.broadcast %cst_112 : bf16 to vector<8x2xbf16>
    %176 = vector.extract_strided_slice %78 {offsets = [0, 2], sizes = [8, 894], strides = [1, 1]} : vector<8x896xbf16> to vector<8x894xbf16>
    %177 = tpu.concatenate %176, %175 in 1 : vector<8x894xbf16>, vector<8x2xbf16> -> vector<8x896xbf16>
    %cst_113 = arith.constant dense<0.000000e+00> : vector<8x896xf32>
    %178 = tpu.matmul %174, %177, %cst_113 {dimension_numbers = #tpu.dot_dimension_numbers<[1], [0], [0], [1], [0, 0, 1, 1], [], []>} : vector<8x8xbf16>, vector<8x896xbf16>, vector<8x896xf32> -> vector<8x896xf32>
    %179 = arith.addf %172, %178 : vector<8x896xf32>
    %c15 = arith.constant 15 : index
    %c0_114 = arith.constant 0 : index
    %c0_115 = arith.constant 0 : index
    %180 = vector.load %arg4[%c15, %c0_114, %c0_115] : memref<25x8x8xbf16, #tpu.memory_space<vmem>>, vector<1x8x8xbf16>
    %181 = vector.shape_cast %180 : vector<1x8x8xbf16> to vector<8x8xbf16>
    %cst_116 = arith.constant 0.000000e+00 : bf16
    %182 = vector.broadcast %cst_116 : bf16 to vector<8x18xbf16>
    %183 = vector.extract_strided_slice %78 {offsets = [0, 18], sizes = [8, 878], strides = [1, 1]} : vector<8x896xbf16> to vector<8x878xbf16>
    %184 = tpu.concatenate %183, %182 in 1 : vector<8x878xbf16>, vector<8x18xbf16> -> vector<8x896xbf16>
    %cst_117 = arith.constant dense<0.000000e+00> : vector<8x896xf32>
    %185 = tpu.matmul %181, %184, %cst_117 {dimension_numbers = #tpu.dot_dimension_numbers<[1], [0], [0], [1], [0, 0, 1, 1], [], []>} : vector<8x8xbf16>, vector<8x896xbf16>, vector<8x896xf32> -> vector<8x896xf32>
    %186 = arith.addf %179, %185 : vector<8x896xf32>
    %c16 = arith.constant 16 : index
    %c0_118 = arith.constant 0 : index
    %c0_119 = arith.constant 0 : index
    %187 = vector.load %arg4[%c16, %c0_118, %c0_119] : memref<25x8x8xbf16, #tpu.memory_space<vmem>>, vector<1x8x8xbf16>
    %188 = vector.shape_cast %187 : vector<1x8x8xbf16> to vector<8x8xbf16>
    %cst_120 = arith.constant 0.000000e+00 : bf16
    %189 = vector.broadcast %cst_120 : bf16 to vector<8x19xbf16>
    %190 = vector.extract_strided_slice %78 {offsets = [0, 19], sizes = [8, 877], strides = [1, 1]} : vector<8x896xbf16> to vector<8x877xbf16>
    %191 = tpu.concatenate %190, %189 in 1 : vector<8x877xbf16>, vector<8x19xbf16> -> vector<8x896xbf16>
    %cst_121 = arith.constant dense<0.000000e+00> : vector<8x896xf32>
    %192 = tpu.matmul %188, %191, %cst_121 {dimension_numbers = #tpu.dot_dimension_numbers<[1], [0], [0], [1], [0, 0, 1, 1], [], []>} : vector<8x8xbf16>, vector<8x896xbf16>, vector<8x896xf32> -> vector<8x896xf32>
    %193 = arith.addf %186, %192 : vector<8x896xf32>
    %c17 = arith.constant 17 : index
    %c0_122 = arith.constant 0 : index
    %c0_123 = arith.constant 0 : index
    %194 = vector.load %arg4[%c17, %c0_122, %c0_123] : memref<25x8x8xbf16, #tpu.memory_space<vmem>>, vector<1x8x8xbf16>
    %195 = vector.shape_cast %194 : vector<1x8x8xbf16> to vector<8x8xbf16>
    %cst_124 = arith.constant 0.000000e+00 : bf16
    %196 = vector.broadcast %cst_124 : bf16 to vector<8x20xbf16>
    %197 = vector.extract_strided_slice %78 {offsets = [0, 20], sizes = [8, 876], strides = [1, 1]} : vector<8x896xbf16> to vector<8x876xbf16>
    %198 = tpu.concatenate %197, %196 in 1 : vector<8x876xbf16>, vector<8x20xbf16> -> vector<8x896xbf16>
    %cst_125 = arith.constant dense<0.000000e+00> : vector<8x896xf32>
    %199 = tpu.matmul %195, %198, %cst_125 {dimension_numbers = #tpu.dot_dimension_numbers<[1], [0], [0], [1], [0, 0, 1, 1], [], []>} : vector<8x8xbf16>, vector<8x896xbf16>, vector<8x896xf32> -> vector<8x896xf32>
    %200 = arith.addf %193, %199 : vector<8x896xf32>
    %c18 = arith.constant 18 : index
    %c0_126 = arith.constant 0 : index
    %c0_127 = arith.constant 0 : index
    %201 = vector.load %arg4[%c18, %c0_126, %c0_127] : memref<25x8x8xbf16, #tpu.memory_space<vmem>>, vector<1x8x8xbf16>
    %202 = vector.shape_cast %201 : vector<1x8x8xbf16> to vector<8x8xbf16>
    %cst_128 = arith.constant 0.000000e+00 : bf16
    %203 = vector.broadcast %cst_128 : bf16 to vector<8x21xbf16>
    %204 = vector.extract_strided_slice %78 {offsets = [0, 21], sizes = [8, 875], strides = [1, 1]} : vector<8x896xbf16> to vector<8x875xbf16>
    %205 = tpu.concatenate %204, %203 in 1 : vector<8x875xbf16>, vector<8x21xbf16> -> vector<8x896xbf16>
    %cst_129 = arith.constant dense<0.000000e+00> : vector<8x896xf32>
    %206 = tpu.matmul %202, %205, %cst_129 {dimension_numbers = #tpu.dot_dimension_numbers<[1], [0], [0], [1], [0, 0, 1, 1], [], []>} : vector<8x8xbf16>, vector<8x896xbf16>, vector<8x896xf32> -> vector<8x896xf32>
    %207 = arith.addf %200, %206 : vector<8x896xf32>
    %c19 = arith.constant 19 : index
    %c0_130 = arith.constant 0 : index
    %c0_131 = arith.constant 0 : index
    %208 = vector.load %arg4[%c19, %c0_130, %c0_131] : memref<25x8x8xbf16, #tpu.memory_space<vmem>>, vector<1x8x8xbf16>
    %209 = vector.shape_cast %208 : vector<1x8x8xbf16> to vector<8x8xbf16>
    %cst_132 = arith.constant 0.000000e+00 : bf16
    %210 = vector.broadcast %cst_132 : bf16 to vector<8x22xbf16>
    %211 = vector.extract_strided_slice %78 {offsets = [0, 22], sizes = [8, 874], strides = [1, 1]} : vector<8x896xbf16> to vector<8x874xbf16>
    %212 = tpu.concatenate %211, %210 in 1 : vector<8x874xbf16>, vector<8x22xbf16> -> vector<8x896xbf16>
    %cst_133 = arith.constant dense<0.000000e+00> : vector<8x896xf32>
    %213 = tpu.matmul %209, %212, %cst_133 {dimension_numbers = #tpu.dot_dimension_numbers<[1], [0], [0], [1], [0, 0, 1, 1], [], []>} : vector<8x8xbf16>, vector<8x896xbf16>, vector<8x896xf32> -> vector<8x896xf32>
    %214 = arith.addf %207, %213 : vector<8x896xf32>
    %c20 = arith.constant 20 : index
    %c0_134 = arith.constant 0 : index
    %c0_135 = arith.constant 0 : index
    %215 = vector.load %arg4[%c20, %c0_134, %c0_135] : memref<25x8x8xbf16, #tpu.memory_space<vmem>>, vector<1x8x8xbf16>
    %216 = vector.shape_cast %215 : vector<1x8x8xbf16> to vector<8x8xbf16>
    %cst_136 = arith.constant 0.000000e+00 : bf16
    %217 = vector.broadcast %cst_136 : bf16 to vector<8x38xbf16>
    %218 = vector.extract_strided_slice %78 {offsets = [0, 38], sizes = [8, 858], strides = [1, 1]} : vector<8x896xbf16> to vector<8x858xbf16>
    %219 = tpu.concatenate %218, %217 in 1 : vector<8x858xbf16>, vector<8x38xbf16> -> vector<8x896xbf16>
    %cst_137 = arith.constant dense<0.000000e+00> : vector<8x896xf32>
    %220 = tpu.matmul %216, %219, %cst_137 {dimension_numbers = #tpu.dot_dimension_numbers<[1], [0], [0], [1], [0, 0, 1, 1], [], []>} : vector<8x8xbf16>, vector<8x896xbf16>, vector<8x896xf32> -> vector<8x896xf32>
    %221 = arith.addf %214, %220 : vector<8x896xf32>
    %c21 = arith.constant 21 : index
    %c0_138 = arith.constant 0 : index
    %c0_139 = arith.constant 0 : index
    %222 = vector.load %arg4[%c21, %c0_138, %c0_139] : memref<25x8x8xbf16, #tpu.memory_space<vmem>>, vector<1x8x8xbf16>
    %223 = vector.shape_cast %222 : vector<1x8x8xbf16> to vector<8x8xbf16>
    %cst_140 = arith.constant 0.000000e+00 : bf16
    %224 = vector.broadcast %cst_140 : bf16 to vector<8x39xbf16>
    %225 = vector.extract_strided_slice %78 {offsets = [0, 39], sizes = [8, 857], strides = [1, 1]} : vector<8x896xbf16> to vector<8x857xbf16>
    %226 = tpu.concatenate %225, %224 in 1 : vector<8x857xbf16>, vector<8x39xbf16> -> vector<8x896xbf16>
    %cst_141 = arith.constant dense<0.000000e+00> : vector<8x896xf32>
    %227 = tpu.matmul %223, %226, %cst_141 {dimension_numbers = #tpu.dot_dimension_numbers<[1], [0], [0], [1], [0, 0, 1, 1], [], []>} : vector<8x8xbf16>, vector<8x896xbf16>, vector<8x896xf32> -> vector<8x896xf32>
    %228 = arith.addf %221, %227 : vector<8x896xf32>
    %c22 = arith.constant 22 : index
    %c0_142 = arith.constant 0 : index
    %c0_143 = arith.constant 0 : index
    %229 = vector.load %arg4[%c22, %c0_142, %c0_143] : memref<25x8x8xbf16, #tpu.memory_space<vmem>>, vector<1x8x8xbf16>
    %230 = vector.shape_cast %229 : vector<1x8x8xbf16> to vector<8x8xbf16>
    %cst_144 = arith.constant 0.000000e+00 : bf16
    %231 = vector.broadcast %cst_144 : bf16 to vector<8x40xbf16>
    %232 = vector.extract_strided_slice %78 {offsets = [0, 40], sizes = [8, 856], strides = [1, 1]} : vector<8x896xbf16> to vector<8x856xbf16>
    %233 = tpu.concatenate %232, %231 in 1 : vector<8x856xbf16>, vector<8x40xbf16> -> vector<8x896xbf16>
    %cst_145 = arith.constant dense<0.000000e+00> : vector<8x896xf32>
    %234 = tpu.matmul %230, %233, %cst_145 {dimension_numbers = #tpu.dot_dimension_numbers<[1], [0], [0], [1], [0, 0, 1, 1], [], []>} : vector<8x8xbf16>, vector<8x896xbf16>, vector<8x896xf32> -> vector<8x896xf32>
    %235 = arith.addf %228, %234 : vector<8x896xf32>
    %c23 = arith.constant 23 : index
    %c0_146 = arith.constant 0 : index
    %c0_147 = arith.constant 0 : index
    %236 = vector.load %arg4[%c23, %c0_146, %c0_147] : memref<25x8x8xbf16, #tpu.memory_space<vmem>>, vector<1x8x8xbf16>
    %237 = vector.shape_cast %236 : vector<1x8x8xbf16> to vector<8x8xbf16>
    %cst_148 = arith.constant 0.000000e+00 : bf16
    %238 = vector.broadcast %cst_148 : bf16 to vector<8x41xbf16>
    %239 = vector.extract_strided_slice %78 {offsets = [0, 41], sizes = [8, 855], strides = [1, 1]} : vector<8x896xbf16> to vector<8x855xbf16>
    %240 = tpu.concatenate %239, %238 in 1 : vector<8x855xbf16>, vector<8x41xbf16> -> vector<8x896xbf16>
    %cst_149 = arith.constant dense<0.000000e+00> : vector<8x896xf32>
    %241 = tpu.matmul %237, %240, %cst_149 {dimension_numbers = #tpu.dot_dimension_numbers<[1], [0], [0], [1], [0, 0, 1, 1], [], []>} : vector<8x8xbf16>, vector<8x896xbf16>, vector<8x896xf32> -> vector<8x896xf32>
    %242 = arith.addf %235, %241 : vector<8x896xf32>
    %c24 = arith.constant 24 : index
    %c0_150 = arith.constant 0 : index
    %c0_151 = arith.constant 0 : index
    %243 = vector.load %arg4[%c24, %c0_150, %c0_151] : memref<25x8x8xbf16, #tpu.memory_space<vmem>>, vector<1x8x8xbf16>
    %244 = vector.shape_cast %243 : vector<1x8x8xbf16> to vector<8x8xbf16>
    %cst_152 = arith.constant 0.000000e+00 : bf16
    %245 = vector.broadcast %cst_152 : bf16 to vector<8x42xbf16>
    %246 = vector.extract_strided_slice %78 {offsets = [0, 42], sizes = [8, 854], strides = [1, 1]} : vector<8x896xbf16> to vector<8x854xbf16>
    %247 = tpu.concatenate %246, %245 in 1 : vector<8x854xbf16>, vector<8x42xbf16> -> vector<8x896xbf16>
    %cst_153 = arith.constant dense<0.000000e+00> : vector<8x896xf32>
    %248 = tpu.matmul %244, %247, %cst_153 {dimension_numbers = #tpu.dot_dimension_numbers<[1], [0], [0], [1], [0, 0, 1, 1], [], []>} : vector<8x8xbf16>, vector<8x896xbf16>, vector<8x896xf32> -> vector<8x896xf32>
    %249 = arith.addf %242, %248 : vector<8x896xf32>
    %250 = vector.broadcast %77 : vector<8x1xf32> to vector<8x896xf32>
    %251 = arith.addf %249, %250 : vector<8x896xf32>
    %252 = vector.broadcast %0 : vector<1x896xf32> to vector<8x896xf32>
    %253 = arith.mulf %251, %252 : vector<8x896xf32>
    %c0_154 = arith.constant 0 : index
    %c0_155 = arith.constant 0 : index
    %254 = vector.load %arg27[%c0_154, %c0_155] : memref<32x896xf32, #tpu.memory_space<vmem>>, vector<8x896xf32>
    tpu.vector_store %arg27[%c0_154, %c0_155], %253 {strides = array<i32>} : memref<32x896xf32, #tpu.memory_space<vmem>>, vector<8x896xf32>,
    %c0_156 = arith.constant 0 : index
    %c0_157 = arith.constant 0 : index
    %255 = vector.load %arg15[%c0_156, %c0_157] : memref<8x1xf32, #tpu.memory_space<vmem>>, vector<8x1xf32>
    %c0_158 = arith.constant 0 : index
    %c0_159 = arith.constant 0 : index
    %256 = vector.load %arg16[%c0_158, %c0_159] : memref<8x1xf32, #tpu.memory_space<vmem>>, vector<8x1xf32>
    %cst_160 = arith.constant dense<0.000000e+00> : vector<8xf32>
    %257 = vector.multi_reduction <add>, %253, %cst_160 [1] : vector<8x896xf32> to vector<8xf32>
    %258 = vector.shape_cast %257 : vector<8xf32> to vector<8x1xf32>
    %cst_161 = arith.constant 0.001953125 : f32
    %259 = vector.broadcast %cst_161 : f32 to vector<8x1xf32>
    %260 = arith.mulf %258, %259 : vector<8x1xf32>
    %261 = arith.mulf %253, %253 : vector<8x896xf32>
    %cst_162 = arith.constant dense<0.000000e+00> : vector<8xf32>
    %262 = vector.multi_reduction <add>, %261, %cst_162 [1] : vector<8x896xf32> to vector<8xf32>
    %263 = vector.shape_cast %262 : vector<8xf32> to vector<8x1xf32>
    %cst_163 = arith.constant 0.001953125 : f32
    %264 = vector.broadcast %cst_163 : f32 to vector<8x1xf32>
    %265 = arith.mulf %263, %264 : vector<8x1xf32>
    %266 = arith.mulf %260, %260 : vector<8x1xf32>
    %267 = arith.subf %265, %266 : vector<8x1xf32>
    %cst_164 = arith.constant 0.000000e+00 : f32
    %268 = vector.broadcast %cst_164 : f32 to vector<8x1xf32>
    %269 = arith.maximumf %267, %268 : vector<8x1xf32>
    %cst_165 = arith.constant 9.99999974E-6 : f32
    %270 = vector.broadcast %cst_165 : f32 to vector<8x1xf32>
    %271 = arith.addf %269, %270 : vector<8x1xf32>
    %272 = math.rsqrt %271 : vector<8x1xf32>
    %273 = arith.mulf %255, %272 : vector<8x1xf32>
    %274 = vector.broadcast %273 : vector<8x1xf32> to vector<8x896xf32>
    %275 = arith.mulf %253, %274 : vector<8x896xf32>
    %276 = arith.mulf %260, %273 : vector<8x1xf32>
    %277 = arith.subf %256, %276 : vector<8x1xf32>
    %278 = vector.broadcast %277 : vector<8x1xf32> to vector<8x896xf32>
    %279 = arith.addf %275, %278 : vector<8x896xf32>
    %cst_166 = arith.constant 0.000000e+00 : f32
    %280 = vector.broadcast %cst_166 : f32 to vector<8x896xf32>
    %281 = arith.maximumf %279, %280 : vector<8x896xf32>
    %282 = vector.broadcast %0 : vector<1x896xf32> to vector<8x896xf32>
    %283 = arith.mulf %281, %282 : vector<8x896xf32>
    %c0_167 = arith.constant 0 : index
    %c0_168 = arith.constant 0 : index
    %284 = vector.load %arg11[%c0_167, %c0_168] : memref<8x1xf32, #tpu.memory_space<vmem>>, vector<8x1xf32>
    %285 = arith.truncf %283 : vector<8x896xf32> to vector<8x896xbf16>
    %c0_169 = arith.constant 0 : index
    %c0_170 = arith.constant 0 : index
    %c0_171 = arith.constant 0 : index
    %286 = vector.load %arg5[%c0_169, %c0_170, %c0_171] : memref<9x8x8xbf16, #tpu.memory_space<vmem>>, vector<1x8x8xbf16>
    %287 = vector.shape_cast %286 : vector<1x8x8xbf16> to vector<8x8xbf16>
    %cst_172 = arith.constant 0.000000e+00 : bf16
    %288 = vector.broadcast %cst_172 : bf16 to vector<8x21xbf16>
    %289 = vector.extract_strided_slice %285 {offsets = [0, 0], sizes = [8, 875], strides = [1, 1]} : vector<8x896xbf16> to vector<8x875xbf16>
    %290 = tpu.concatenate %288, %289 in 1 : vector<8x21xbf16>, vector<8x875xbf16> -> vector<8x896xbf16>
    %cst_173 = arith.constant dense<0.000000e+00> : vector<8x896xf32>
    %291 = tpu.matmul %287, %290, %cst_173 {dimension_numbers = #tpu.dot_dimension_numbers<[1], [0], [0], [1], [0, 0, 1, 1], [], []>} : vector<8x8xbf16>, vector<8x896xbf16>, vector<8x896xf32> -> vector<8x896xf32>
    %c1_174 = arith.constant 1 : index
    %c0_175 = arith.constant 0 : index
    %c0_176 = arith.constant 0 : index
    %292 = vector.load %arg5[%c1_174, %c0_175, %c0_176] : memref<9x8x8xbf16, #tpu.memory_space<vmem>>, vector<1x8x8xbf16>
    %293 = vector.shape_cast %292 : vector<1x8x8xbf16> to vector<8x8xbf16>
    %cst_177 = arith.constant 0.000000e+00 : bf16
    %294 = vector.broadcast %cst_177 : bf16 to vector<8x20xbf16>
    %295 = vector.extract_strided_slice %285 {offsets = [0, 0], sizes = [8, 876], strides = [1, 1]} : vector<8x896xbf16> to vector<8x876xbf16>
    %296 = tpu.concatenate %294, %295 in 1 : vector<8x20xbf16>, vector<8x876xbf16> -> vector<8x896xbf16>
    %cst_178 = arith.constant dense<0.000000e+00> : vector<8x896xf32>
    %297 = tpu.matmul %293, %296, %cst_178 {dimension_numbers = #tpu.dot_dimension_numbers<[1], [0], [0], [1], [0, 0, 1, 1], [], []>} : vector<8x8xbf16>, vector<8x896xbf16>, vector<8x896xf32> -> vector<8x896xf32>
    %298 = arith.addf %291, %297 : vector<8x896xf32>
    %c2_179 = arith.constant 2 : index
    %c0_180 = arith.constant 0 : index
    %c0_181 = arith.constant 0 : index
    %299 = vector.load %arg5[%c2_179, %c0_180, %c0_181] : memref<9x8x8xbf16, #tpu.memory_space<vmem>>, vector<1x8x8xbf16>
    %300 = vector.shape_cast %299 : vector<1x8x8xbf16> to vector<8x8xbf16>
    %cst_182 = arith.constant 0.000000e+00 : bf16
    %301 = vector.broadcast %cst_182 : bf16 to vector<8x19xbf16>
    %302 = vector.extract_strided_slice %285 {offsets = [0, 0], sizes = [8, 877], strides = [1, 1]} : vector<8x896xbf16> to vector<8x877xbf16>
    %303 = tpu.concatenate %301, %302 in 1 : vector<8x19xbf16>, vector<8x877xbf16> -> vector<8x896xbf16>
    %cst_183 = arith.constant dense<0.000000e+00> : vector<8x896xf32>
    %304 = tpu.matmul %300, %303, %cst_183 {dimension_numbers = #tpu.dot_dimension_numbers<[1], [0], [0], [1], [0, 0, 1, 1], [], []>} : vector<8x8xbf16>, vector<8x896xbf16>, vector<8x896xf32> -> vector<8x896xf32>
    %305 = arith.addf %298, %304 : vector<8x896xf32>
    %c3_184 = arith.constant 3 : index
    %c0_185 = arith.constant 0 : index
    %c0_186 = arith.constant 0 : index
    %306 = vector.load %arg5[%c3_184, %c0_185, %c0_186] : memref<9x8x8xbf16, #tpu.memory_space<vmem>>, vector<1x8x8xbf16>
    %307 = vector.shape_cast %306 : vector<1x8x8xbf16> to vector<8x8xbf16>
    %cst_187 = arith.constant 0.000000e+00 : bf16
    %308 = vector.broadcast %cst_187 : bf16 to vector<8x1xbf16>
    %309 = vector.extract_strided_slice %285 {offsets = [0, 0], sizes = [8, 895], strides = [1, 1]} : vector<8x896xbf16> to vector<8x895xbf16>
    %310 = tpu.concatenate %308, %309 in 1 : vector<8x1xbf16>, vector<8x895xbf16> -> vector<8x896xbf16>
    %cst_188 = arith.constant dense<0.000000e+00> : vector<8x896xf32>
    %311 = tpu.matmul %307, %310, %cst_188 {dimension_numbers = #tpu.dot_dimension_numbers<[1], [0], [0], [1], [0, 0, 1, 1], [], []>} : vector<8x8xbf16>, vector<8x896xbf16>, vector<8x896xf32> -> vector<8x896xf32>
    %312 = arith.addf %305, %311 : vector<8x896xf32>
    %c4_189 = arith.constant 4 : index
    %c0_190 = arith.constant 0 : index
    %c0_191 = arith.constant 0 : index
    %313 = vector.load %arg5[%c4_189, %c0_190, %c0_191] : memref<9x8x8xbf16, #tpu.memory_space<vmem>>, vector<1x8x8xbf16>
    %314 = vector.shape_cast %313 : vector<1x8x8xbf16> to vector<8x8xbf16>
    %cst_192 = arith.constant dense<0.000000e+00> : vector<8x896xf32>
    %315 = tpu.matmul %314, %285, %cst_192 {dimension_numbers = #tpu.dot_dimension_numbers<[1], [0], [0], [1], [0, 0, 1, 1], [], []>} : vector<8x8xbf16>, vector<8x896xbf16>, vector<8x896xf32> -> vector<8x896xf32>
    %316 = arith.addf %312, %315 : vector<8x896xf32>
    %c5_193 = arith.constant 5 : index
    %c0_194 = arith.constant 0 : index
    %c0_195 = arith.constant 0 : index
    %317 = vector.load %arg5[%c5_193, %c0_194, %c0_195] : memref<9x8x8xbf16, #tpu.memory_space<vmem>>, vector<1x8x8xbf16>
    %318 = vector.shape_cast %317 : vector<1x8x8xbf16> to vector<8x8xbf16>
    %cst_196 = arith.constant 0.000000e+00 : bf16
    %319 = vector.broadcast %cst_196 : bf16 to vector<8x1xbf16>
    %320 = vector.extract_strided_slice %285 {offsets = [0, 1], sizes = [8, 895], strides = [1, 1]} : vector<8x896xbf16> to vector<8x895xbf16>
    %321 = tpu.concatenate %320, %319 in 1 : vector<8x895xbf16>, vector<8x1xbf16> -> vector<8x896xbf16>
    %cst_197 = arith.constant dense<0.000000e+00> : vector<8x896xf32>
    %322 = tpu.matmul %318, %321, %cst_197 {dimension_numbers = #tpu.dot_dimension_numbers<[1], [0], [0], [1], [0, 0, 1, 1], [], []>} : vector<8x8xbf16>, vector<8x896xbf16>, vector<8x896xf32> -> vector<8x896xf32>
    %323 = arith.addf %316, %322 : vector<8x896xf32>
    %c6_198 = arith.constant 6 : index
    %c0_199 = arith.constant 0 : index
    %c0_200 = arith.constant 0 : index
    %324 = vector.load %arg5[%c6_198, %c0_199, %c0_200] : memref<9x8x8xbf16, #tpu.memory_space<vmem>>, vector<1x8x8xbf16>
    %325 = vector.shape_cast %324 : vector<1x8x8xbf16> to vector<8x8xbf16>
    %cst_201 = arith.constant 0.000000e+00 : bf16
    %326 = vector.broadcast %cst_201 : bf16 to vector<8x19xbf16>
    %327 = vector.extract_strided_slice %285 {offsets = [0, 19], sizes = [8, 877], strides = [1, 1]} : vector<8x896xbf16> to vector<8x877xbf16>
    %328 = tpu.concatenate %327, %326 in 1 : vector<8x877xbf16>, vector<8x19xbf16> -> vector<8x896xbf16>
    %cst_202 = arith.constant dense<0.000000e+00> : vector<8x896xf32>
    %329 = tpu.matmul %325, %328, %cst_202 {dimension_numbers = #tpu.dot_dimension_numbers<[1], [0], [0], [1], [0, 0, 1, 1], [], []>} : vector<8x8xbf16>, vector<8x896xbf16>, vector<8x896xf32> -> vector<8x896xf32>
    %330 = arith.addf %323, %329 : vector<8x896xf32>
    %c7_203 = arith.constant 7 : index
    %c0_204 = arith.constant 0 : index
    %c0_205 = arith.constant 0 : index
    %331 = vector.load %arg5[%c7_203, %c0_204, %c0_205] : memref<9x8x8xbf16, #tpu.memory_space<vmem>>, vector<1x8x8xbf16>
    %332 = vector.shape_cast %331 : vector<1x8x8xbf16> to vector<8x8xbf16>
    %cst_206 = arith.constant 0.000000e+00 : bf16
    %333 = vector.broadcast %cst_206 : bf16 to vector<8x20xbf16>
    %334 = vector.extract_strided_slice %285 {offsets = [0, 20], sizes = [8, 876], strides = [1, 1]} : vector<8x896xbf16> to vector<8x876xbf16>
    %335 = tpu.concatenate %334, %333 in 1 : vector<8x876xbf16>, vector<8x20xbf16> -> vector<8x896xbf16>
    %cst_207 = arith.constant dense<0.000000e+00> : vector<8x896xf32>
    %336 = tpu.matmul %332, %335, %cst_207 {dimension_numbers = #tpu.dot_dimension_numbers<[1], [0], [0], [1], [0, 0, 1, 1], [], []>} : vector<8x8xbf16>, vector<8x896xbf16>, vector<8x896xf32> -> vector<8x896xf32>
    %337 = arith.addf %330, %336 : vector<8x896xf32>
    %c8_208 = arith.constant 8 : index
    %c0_209 = arith.constant 0 : index
    %c0_210 = arith.constant 0 : index
    %338 = vector.load %arg5[%c8_208, %c0_209, %c0_210] : memref<9x8x8xbf16, #tpu.memory_space<vmem>>, vector<1x8x8xbf16>
    %339 = vector.shape_cast %338 : vector<1x8x8xbf16> to vector<8x8xbf16>
    %cst_211 = arith.constant 0.000000e+00 : bf16
    %340 = vector.broadcast %cst_211 : bf16 to vector<8x21xbf16>
    %341 = vector.extract_strided_slice %285 {offsets = [0, 21], sizes = [8, 875], strides = [1, 1]} : vector<8x896xbf16> to vector<8x875xbf16>
    %342 = tpu.concatenate %341, %340 in 1 : vector<8x875xbf16>, vector<8x21xbf16> -> vector<8x896xbf16>
    %cst_212 = arith.constant dense<0.000000e+00> : vector<8x896xf32>
    %343 = tpu.matmul %339, %342, %cst_212 {dimension_numbers = #tpu.dot_dimension_numbers<[1], [0], [0], [1], [0, 0, 1, 1], [], []>} : vector<8x8xbf16>, vector<8x896xbf16>, vector<8x896xf32> -> vector<8x896xf32>
    %344 = arith.addf %337, %343 : vector<8x896xf32>
    %345 = vector.broadcast %284 : vector<8x1xf32> to vector<8x896xf32>
    %346 = arith.addf %344, %345 : vector<8x896xf32>
    %347 = vector.broadcast %0 : vector<1x896xf32> to vector<8x896xf32>
    %348 = arith.mulf %346, %347 : vector<8x896xf32>
    %c8_213 = arith.constant 8 : index
    %c0_214 = arith.constant 0 : index
    %349 = vector.load %arg27[%c8_213, %c0_214] : memref<32x896xf32, #tpu.memory_space<vmem>>, vector<8x896xf32>
    tpu.vector_store %arg27[%c8_213, %c0_214], %348 {strides = array<i32>} : memref<32x896xf32, #tpu.memory_space<vmem>>, vector<8x896xf32>,
    %c0_215 = arith.constant 0 : index
    %c0_216 = arith.constant 0 : index
    %350 = vector.load %arg27[%c0_215, %c0_216] : memref<32x896xf32, #tpu.memory_space<vmem>>, vector<16x896xf32>
    %c0_217 = arith.constant 0 : index
    %c0_218 = arith.constant 0 : index
    %351 = vector.load %arg17[%c0_217, %c0_218] : memref<16x1xf32, #tpu.memory_space<vmem>>, vector<16x1xf32>
    %c0_219 = arith.constant 0 : index
    %c0_220 = arith.constant 0 : index
    %352 = vector.load %arg18[%c0_219, %c0_220] : memref<16x1xf32, #tpu.memory_space<vmem>>, vector<16x1xf32>
    %cst_221 = arith.constant dense<0.000000e+00> : vector<16xf32>
    %353 = vector.multi_reduction <add>, %350, %cst_221 [1] : vector<16x896xf32> to vector<16xf32>
    %354 = vector.shape_cast %353 : vector<16xf32> to vector<16x1xf32>
    %cst_222 = arith.constant 0.001953125 : f32
    %355 = vector.broadcast %cst_222 : f32 to vector<16x1xf32>
    %356 = arith.mulf %354, %355 : vector<16x1xf32>
    %357 = arith.mulf %350, %350 : vector<16x896xf32>
    %cst_223 = arith.constant dense<0.000000e+00> : vector<16xf32>
    %358 = vector.multi_reduction <add>, %357, %cst_223 [1] : vector<16x896xf32> to vector<16xf32>
    %359 = vector.shape_cast %358 : vector<16xf32> to vector<16x1xf32>
    %cst_224 = arith.constant 0.001953125 : f32
    %360 = vector.broadcast %cst_224 : f32 to vector<16x1xf32>
    %361 = arith.mulf %359, %360 : vector<16x1xf32>
    %362 = arith.mulf %356, %356 : vector<16x1xf32>
    %363 = arith.subf %361, %362 : vector<16x1xf32>
    %cst_225 = arith.constant 0.000000e+00 : f32
    %364 = vector.broadcast %cst_225 : f32 to vector<16x1xf32>
    %365 = arith.maximumf %363, %364 : vector<16x1xf32>
    %cst_226 = arith.constant 9.99999974E-6 : f32
    %366 = vector.broadcast %cst_226 : f32 to vector<16x1xf32>
    %367 = arith.addf %365, %366 : vector<16x1xf32>
    %368 = math.rsqrt %367 : vector<16x1xf32>
    %369 = arith.mulf %351, %368 : vector<16x1xf32>
    %370 = vector.broadcast %369 : vector<16x1xf32> to vector<16x896xf32>
    %371 = arith.mulf %350, %370 : vector<16x896xf32>
    %372 = arith.mulf %356, %369 : vector<16x1xf32>
    %373 = arith.subf %352, %372 : vector<16x1xf32>
    %374 = vector.broadcast %373 : vector<16x1xf32> to vector<16x896xf32>
    %375 = arith.addf %371, %374 : vector<16x896xf32>
    %cst_227 = arith.constant 0.000000e+00 : f32
    %376 = vector.broadcast %cst_227 : f32 to vector<16x896xf32>
    %377 = arith.maximumf %375, %376 : vector<16x896xf32>
    %378 = vector.broadcast %0 : vector<1x896xf32> to vector<16x896xf32>
    %379 = arith.mulf %377, %378 : vector<16x896xf32>
    %c0_228 = arith.constant 0 : index
    %c0_229 = arith.constant 0 : index
    %380 = vector.load %arg12[%c0_228, %c0_229] : memref<8x1xf32, #tpu.memory_space<vmem>>, vector<8x1xf32>
    %381 = arith.truncf %379 : vector<16x896xf32> to vector<16x896xbf16>
    %c0_230 = arith.constant 0 : index
    %c0_231 = arith.constant 0 : index
    %c0_232 = arith.constant 0 : index
    %382 = vector.load %arg6[%c0_230, %c0_231, %c0_232] : memref<9x8x16xbf16, #tpu.memory_space<vmem>>, vector<1x8x16xbf16>
    %383 = vector.shape_cast %382 : vector<1x8x16xbf16> to vector<8x16xbf16>
    %cst_233 = arith.constant 0.000000e+00 : bf16
    %384 = vector.broadcast %cst_233 : bf16 to vector<16x21xbf16>
    %385 = vector.extract_strided_slice %381 {offsets = [0, 0], sizes = [16, 875], strides = [1, 1]} : vector<16x896xbf16> to vector<16x875xbf16>
    %386 = tpu.concatenate %384, %385 in 1 : vector<16x21xbf16>, vector<16x875xbf16> -> vector<16x896xbf16>
    %cst_234 = arith.constant dense<0.000000e+00> : vector<8x896xf32>
    %387 = tpu.matmul %383, %386, %cst_234 {dimension_numbers = #tpu.dot_dimension_numbers<[1], [0], [0], [1], [0, 0, 1, 1], [], []>} : vector<8x16xbf16>, vector<16x896xbf16>, vector<8x896xf32> -> vector<8x896xf32>
    %c1_235 = arith.constant 1 : index
    %c0_236 = arith.constant 0 : index
    %c0_237 = arith.constant 0 : index
    %388 = vector.load %arg6[%c1_235, %c0_236, %c0_237] : memref<9x8x16xbf16, #tpu.memory_space<vmem>>, vector<1x8x16xbf16>
    %389 = vector.shape_cast %388 : vector<1x8x16xbf16> to vector<8x16xbf16>
    %cst_238 = arith.constant 0.000000e+00 : bf16
    %390 = vector.broadcast %cst_238 : bf16 to vector<16x20xbf16>
    %391 = vector.extract_strided_slice %381 {offsets = [0, 0], sizes = [16, 876], strides = [1, 1]} : vector<16x896xbf16> to vector<16x876xbf16>
    %392 = tpu.concatenate %390, %391 in 1 : vector<16x20xbf16>, vector<16x876xbf16> -> vector<16x896xbf16>
    %cst_239 = arith.constant dense<0.000000e+00> : vector<8x896xf32>
    %393 = tpu.matmul %389, %392, %cst_239 {dimension_numbers = #tpu.dot_dimension_numbers<[1], [0], [0], [1], [0, 0, 1, 1], [], []>} : vector<8x16xbf16>, vector<16x896xbf16>, vector<8x896xf32> -> vector<8x896xf32>
    %394 = arith.addf %387, %393 : vector<8x896xf32>
    %c2_240 = arith.constant 2 : index
    %c0_241 = arith.constant 0 : index
    %c0_242 = arith.constant 0 : index
    %395 = vector.load %arg6[%c2_240, %c0_241, %c0_242] : memref<9x8x16xbf16, #tpu.memory_space<vmem>>, vector<1x8x16xbf16>
    %396 = vector.shape_cast %395 : vector<1x8x16xbf16> to vector<8x16xbf16>
    %cst_243 = arith.constant 0.000000e+00 : bf16
    %397 = vector.broadcast %cst_243 : bf16 to vector<16x19xbf16>
    %398 = vector.extract_strided_slice %381 {offsets = [0, 0], sizes = [16, 877], strides = [1, 1]} : vector<16x896xbf16> to vector<16x877xbf16>
    %399 = tpu.concatenate %397, %398 in 1 : vector<16x19xbf16>, vector<16x877xbf16> -> vector<16x896xbf16>
    %cst_244 = arith.constant dense<0.000000e+00> : vector<8x896xf32>
    %400 = tpu.matmul %396, %399, %cst_244 {dimension_numbers = #tpu.dot_dimension_numbers<[1], [0], [0], [1], [0, 0, 1, 1], [], []>} : vector<8x16xbf16>, vector<16x896xbf16>, vector<8x896xf32> -> vector<8x896xf32>
    %401 = arith.addf %394, %400 : vector<8x896xf32>
    %c3_245 = arith.constant 3 : index
    %c0_246 = arith.constant 0 : index
    %c0_247 = arith.constant 0 : index
    %402 = vector.load %arg6[%c3_245, %c0_246, %c0_247] : memref<9x8x16xbf16, #tpu.memory_space<vmem>>, vector<1x8x16xbf16>
    %403 = vector.shape_cast %402 : vector<1x8x16xbf16> to vector<8x16xbf16>
    %cst_248 = arith.constant 0.000000e+00 : bf16
    %404 = vector.broadcast %cst_248 : bf16 to vector<16x1xbf16>
    %405 = vector.extract_strided_slice %381 {offsets = [0, 0], sizes = [16, 895], strides = [1, 1]} : vector<16x896xbf16> to vector<16x895xbf16>
    %406 = tpu.concatenate %404, %405 in 1 : vector<16x1xbf16>, vector<16x895xbf16> -> vector<16x896xbf16>
    %cst_249 = arith.constant dense<0.000000e+00> : vector<8x896xf32>
    %407 = tpu.matmul %403, %406, %cst_249 {dimension_numbers = #tpu.dot_dimension_numbers<[1], [0], [0], [1], [0, 0, 1, 1], [], []>} : vector<8x16xbf16>, vector<16x896xbf16>, vector<8x896xf32> -> vector<8x896xf32>
    %408 = arith.addf %401, %407 : vector<8x896xf32>
    %c4_250 = arith.constant 4 : index
    %c0_251 = arith.constant 0 : index
    %c0_252 = arith.constant 0 : index
    %409 = vector.load %arg6[%c4_250, %c0_251, %c0_252] : memref<9x8x16xbf16, #tpu.memory_space<vmem>>, vector<1x8x16xbf16>
    %410 = vector.shape_cast %409 : vector<1x8x16xbf16> to vector<8x16xbf16>
    %cst_253 = arith.constant dense<0.000000e+00> : vector<8x896xf32>
    %411 = tpu.matmul %410, %381, %cst_253 {dimension_numbers = #tpu.dot_dimension_numbers<[1], [0], [0], [1], [0, 0, 1, 1], [], []>} : vector<8x16xbf16>, vector<16x896xbf16>, vector<8x896xf32> -> vector<8x896xf32>
    %412 = arith.addf %408, %411 : vector<8x896xf32>
    %c5_254 = arith.constant 5 : index
    %c0_255 = arith.constant 0 : index
    %c0_256 = arith.constant 0 : index
    %413 = vector.load %arg6[%c5_254, %c0_255, %c0_256] : memref<9x8x16xbf16, #tpu.memory_space<vmem>>, vector<1x8x16xbf16>
    %414 = vector.shape_cast %413 : vector<1x8x16xbf16> to vector<8x16xbf16>
    %cst_257 = arith.constant 0.000000e+00 : bf16
    %415 = vector.broadcast %cst_257 : bf16 to vector<16x1xbf16>
    %416 = vector.extract_strided_slice %381 {offsets = [0, 1], sizes = [16, 895], strides = [1, 1]} : vector<16x896xbf16> to vector<16x895xbf16>
    %417 = tpu.concatenate %416, %415 in 1 : vector<16x895xbf16>, vector<16x1xbf16> -> vector<16x896xbf16>
    %cst_258 = arith.constant dense<0.000000e+00> : vector<8x896xf32>
    %418 = tpu.matmul %414, %417, %cst_258 {dimension_numbers = #tpu.dot_dimension_numbers<[1], [0], [0], [1], [0, 0, 1, 1], [], []>} : vector<8x16xbf16>, vector<16x896xbf16>, vector<8x896xf32> -> vector<8x896xf32>
    %419 = arith.addf %412, %418 : vector<8x896xf32>
    %c6_259 = arith.constant 6 : index
    %c0_260 = arith.constant 0 : index
    %c0_261 = arith.constant 0 : index
    %420 = vector.load %arg6[%c6_259, %c0_260, %c0_261] : memref<9x8x16xbf16, #tpu.memory_space<vmem>>, vector<1x8x16xbf16>
    %421 = vector.shape_cast %420 : vector<1x8x16xbf16> to vector<8x16xbf16>
    %cst_262 = arith.constant 0.000000e+00 : bf16
    %422 = vector.broadcast %cst_262 : bf16 to vector<16x19xbf16>
    %423 = vector.extract_strided_slice %381 {offsets = [0, 19], sizes = [16, 877], strides = [1, 1]} : vector<16x896xbf16> to vector<16x877xbf16>
    %424 = tpu.concatenate %423, %422 in 1 : vector<16x877xbf16>, vector<16x19xbf16> -> vector<16x896xbf16>
    %cst_263 = arith.constant dense<0.000000e+00> : vector<8x896xf32>
    %425 = tpu.matmul %421, %424, %cst_263 {dimension_numbers = #tpu.dot_dimension_numbers<[1], [0], [0], [1], [0, 0, 1, 1], [], []>} : vector<8x16xbf16>, vector<16x896xbf16>, vector<8x896xf32> -> vector<8x896xf32>
    %426 = arith.addf %419, %425 : vector<8x896xf32>
    %c7_264 = arith.constant 7 : index
    %c0_265 = arith.constant 0 : index
    %c0_266 = arith.constant 0 : index
    %427 = vector.load %arg6[%c7_264, %c0_265, %c0_266] : memref<9x8x16xbf16, #tpu.memory_space<vmem>>, vector<1x8x16xbf16>
    %428 = vector.shape_cast %427 : vector<1x8x16xbf16> to vector<8x16xbf16>
    %cst_267 = arith.constant 0.000000e+00 : bf16
    %429 = vector.broadcast %cst_267 : bf16 to vector<16x20xbf16>
    %430 = vector.extract_strided_slice %381 {offsets = [0, 20], sizes = [16, 876], strides = [1, 1]} : vector<16x896xbf16> to vector<16x876xbf16>
    %431 = tpu.concatenate %430, %429 in 1 : vector<16x876xbf16>, vector<16x20xbf16> -> vector<16x896xbf16>
    %cst_268 = arith.constant dense<0.000000e+00> : vector<8x896xf32>
    %432 = tpu.matmul %428, %431, %cst_268 {dimension_numbers = #tpu.dot_dimension_numbers<[1], [0], [0], [1], [0, 0, 1, 1], [], []>} : vector<8x16xbf16>, vector<16x896xbf16>, vector<8x896xf32> -> vector<8x896xf32>
    %433 = arith.addf %426, %432 : vector<8x896xf32>
    %c8_269 = arith.constant 8 : index
    %c0_270 = arith.constant 0 : index
    %c0_271 = arith.constant 0 : index
    %434 = vector.load %arg6[%c8_269, %c0_270, %c0_271] : memref<9x8x16xbf16, #tpu.memory_space<vmem>>, vector<1x8x16xbf16>
    %435 = vector.shape_cast %434 : vector<1x8x16xbf16> to vector<8x16xbf16>
    %cst_272 = arith.constant 0.000000e+00 : bf16
    %436 = vector.broadcast %cst_272 : bf16 to vector<16x21xbf16>
    %437 = vector.extract_strided_slice %381 {offsets = [0, 21], sizes = [16, 875], strides = [1, 1]} : vector<16x896xbf16> to vector<16x875xbf16>
    %438 = tpu.concatenate %437, %436 in 1 : vector<16x875xbf16>, vector<16x21xbf16> -> vector<16x896xbf16>
    %cst_273 = arith.constant dense<0.000000e+00> : vector<8x896xf32>
    %439 = tpu.matmul %435, %438, %cst_273 {dimension_numbers = #tpu.dot_dimension_numbers<[1], [0], [0], [1], [0, 0, 1, 1], [], []>} : vector<8x16xbf16>, vector<16x896xbf16>, vector<8x896xf32> -> vector<8x896xf32>
    %440 = arith.addf %433, %439 : vector<8x896xf32>
    %441 = vector.broadcast %380 : vector<8x1xf32> to vector<8x896xf32>
    %442 = arith.addf %440, %441 : vector<8x896xf32>
    %443 = vector.broadcast %0 : vector<1x896xf32> to vector<8x896xf32>
    %444 = arith.mulf %442, %443 : vector<8x896xf32>
    %c16_274 = arith.constant 16 : index
    %c0_275 = arith.constant 0 : index
    %445 = vector.load %arg27[%c16_274, %c0_275] : memref<32x896xf32, #tpu.memory_space<vmem>>, vector<8x896xf32>
    tpu.vector_store %arg27[%c16_274, %c0_275], %444 {strides = array<i32>} : memref<32x896xf32, #tpu.memory_space<vmem>>, vector<8x896xf32>,
    %c0_276 = arith.constant 0 : index
    %c0_277 = arith.constant 0 : index
    %446 = vector.load %arg27[%c0_276, %c0_277] : memref<32x896xf32, #tpu.memory_space<vmem>>, vector<24x896xf32>
    %c0_278 = arith.constant 0 : index
    %c0_279 = arith.constant 0 : index
    %447 = vector.load %arg19[%c0_278, %c0_279] : memref<24x1xf32, #tpu.memory_space<vmem>>, vector<24x1xf32>
    %c0_280 = arith.constant 0 : index
    %c0_281 = arith.constant 0 : index
    %448 = vector.load %arg20[%c0_280, %c0_281] : memref<24x1xf32, #tpu.memory_space<vmem>>, vector<24x1xf32>
    %cst_282 = arith.constant dense<0.000000e+00> : vector<24xf32>
    %449 = vector.multi_reduction <add>, %446, %cst_282 [1] : vector<24x896xf32> to vector<24xf32>
    %450 = vector.shape_cast %449 : vector<24xf32> to vector<24x1xf32>
    %cst_283 = arith.constant 0.001953125 : f32
    %451 = vector.broadcast %cst_283 : f32 to vector<24x1xf32>
    %452 = arith.mulf %450, %451 : vector<24x1xf32>
    %453 = arith.mulf %446, %446 : vector<24x896xf32>
    %cst_284 = arith.constant dense<0.000000e+00> : vector<24xf32>
    %454 = vector.multi_reduction <add>, %453, %cst_284 [1] : vector<24x896xf32> to vector<24xf32>
    %455 = vector.shape_cast %454 : vector<24xf32> to vector<24x1xf32>
    %cst_285 = arith.constant 0.001953125 : f32
    %456 = vector.broadcast %cst_285 : f32 to vector<24x1xf32>
    %457 = arith.mulf %455, %456 : vector<24x1xf32>
    %458 = arith.mulf %452, %452 : vector<24x1xf32>
    %459 = arith.subf %457, %458 : vector<24x1xf32>
    %cst_286 = arith.constant 0.000000e+00 : f32
    %460 = vector.broadcast %cst_286 : f32 to vector<24x1xf32>
    %461 = arith.maximumf %459, %460 : vector<24x1xf32>
    %cst_287 = arith.constant 9.99999974E-6 : f32
    %462 = vector.broadcast %cst_287 : f32 to vector<24x1xf32>
    %463 = arith.addf %461, %462 : vector<24x1xf32>
    %464 = math.rsqrt %463 : vector<24x1xf32>
    %465 = arith.mulf %447, %464 : vector<24x1xf32>
    %466 = vector.broadcast %465 : vector<24x1xf32> to vector<24x896xf32>
    %467 = arith.mulf %446, %466 : vector<24x896xf32>
    %468 = arith.mulf %452, %465 : vector<24x1xf32>
    %469 = arith.subf %448, %468 : vector<24x1xf32>
    %470 = vector.broadcast %469 : vector<24x1xf32> to vector<24x896xf32>
    %471 = arith.addf %467, %470 : vector<24x896xf32>
    %cst_288 = arith.constant 0.000000e+00 : f32
    %472 = vector.broadcast %cst_288 : f32 to vector<24x896xf32>
    %473 = arith.maximumf %471, %472 : vector<24x896xf32>
    %474 = vector.broadcast %0 : vector<1x896xf32> to vector<24x896xf32>
    %475 = arith.mulf %473, %474 : vector<24x896xf32>
    %c0_289 = arith.constant 0 : index
    %c0_290 = arith.constant 0 : index
    %476 = vector.load %arg13[%c0_289, %c0_290] : memref<8x1xf32, #tpu.memory_space<vmem>>, vector<8x1xf32>
    %477 = arith.truncf %475 : vector<24x896xf32> to vector<24x896xbf16>
    %c0_291 = arith.constant 0 : index
    %c0_292 = arith.constant 0 : index
    %c0_293 = arith.constant 0 : index
    %478 = vector.load %arg7[%c0_291, %c0_292, %c0_293] : memref<9x8x24xbf16, #tpu.memory_space<vmem>>, vector<1x8x24xbf16>
    %479 = vector.shape_cast %478 : vector<1x8x24xbf16> to vector<8x24xbf16>
    %cst_294 = arith.constant 0.000000e+00 : bf16
    %480 = vector.broadcast %cst_294 : bf16 to vector<24x21xbf16>
    %481 = vector.extract_strided_slice %477 {offsets = [0, 0], sizes = [24, 875], strides = [1, 1]} : vector<24x896xbf16> to vector<24x875xbf16>
    %482 = tpu.concatenate %480, %481 in 1 : vector<24x21xbf16>, vector<24x875xbf16> -> vector<24x896xbf16>
    %cst_295 = arith.constant dense<0.000000e+00> : vector<8x896xf32>
    %483 = tpu.matmul %479, %482, %cst_295 {dimension_numbers = #tpu.dot_dimension_numbers<[1], [0], [0], [1], [0, 0, 1, 1], [], []>} : vector<8x24xbf16>, vector<24x896xbf16>, vector<8x896xf32> -> vector<8x896xf32>
    %c1_296 = arith.constant 1 : index
    %c0_297 = arith.constant 0 : index
    %c0_298 = arith.constant 0 : index
    %484 = vector.load %arg7[%c1_296, %c0_297, %c0_298] : memref<9x8x24xbf16, #tpu.memory_space<vmem>>, vector<1x8x24xbf16>
    %485 = vector.shape_cast %484 : vector<1x8x24xbf16> to vector<8x24xbf16>
    %cst_299 = arith.constant 0.000000e+00 : bf16
    %486 = vector.broadcast %cst_299 : bf16 to vector<24x20xbf16>
    %487 = vector.extract_strided_slice %477 {offsets = [0, 0], sizes = [24, 876], strides = [1, 1]} : vector<24x896xbf16> to vector<24x876xbf16>
    %488 = tpu.concatenate %486, %487 in 1 : vector<24x20xbf16>, vector<24x876xbf16> -> vector<24x896xbf16>
    %cst_300 = arith.constant dense<0.000000e+00> : vector<8x896xf32>
    %489 = tpu.matmul %485, %488, %cst_300 {dimension_numbers = #tpu.dot_dimension_numbers<[1], [0], [0], [1], [0, 0, 1, 1], [], []>} : vector<8x24xbf16>, vector<24x896xbf16>, vector<8x896xf32> -> vector<8x896xf32>
    %490 = arith.addf %483, %489 : vector<8x896xf32>
    %c2_301 = arith.constant 2 : index
    %c0_302 = arith.constant 0 : index
    %c0_303 = arith.constant 0 : index
    %491 = vector.load %arg7[%c2_301, %c0_302, %c0_303] : memref<9x8x24xbf16, #tpu.memory_space<vmem>>, vector<1x8x24xbf16>
    %492 = vector.shape_cast %491 : vector<1x8x24xbf16> to vector<8x24xbf16>
    %cst_304 = arith.constant 0.000000e+00 : bf16
    %493 = vector.broadcast %cst_304 : bf16 to vector<24x19xbf16>
    %494 = vector.extract_strided_slice %477 {offsets = [0, 0], sizes = [24, 877], strides = [1, 1]} : vector<24x896xbf16> to vector<24x877xbf16>
    %495 = tpu.concatenate %493, %494 in 1 : vector<24x19xbf16>, vector<24x877xbf16> -> vector<24x896xbf16>
    %cst_305 = arith.constant dense<0.000000e+00> : vector<8x896xf32>
    %496 = tpu.matmul %492, %495, %cst_305 {dimension_numbers = #tpu.dot_dimension_numbers<[1], [0], [0], [1], [0, 0, 1, 1], [], []>} : vector<8x24xbf16>, vector<24x896xbf16>, vector<8x896xf32> -> vector<8x896xf32>
    %497 = arith.addf %490, %496 : vector<8x896xf32>
    %c3_306 = arith.constant 3 : index
    %c0_307 = arith.constant 0 : index
    %c0_308 = arith.constant 0 : index
    %498 = vector.load %arg7[%c3_306, %c0_307, %c0_308] : memref<9x8x24xbf16, #tpu.memory_space<vmem>>, vector<1x8x24xbf16>
    %499 = vector.shape_cast %498 : vector<1x8x24xbf16> to vector<8x24xbf16>
    %cst_309 = arith.constant 0.000000e+00 : bf16
    %500 = vector.broadcast %cst_309 : bf16 to vector<24x1xbf16>
    %501 = vector.extract_strided_slice %477 {offsets = [0, 0], sizes = [24, 895], strides = [1, 1]} : vector<24x896xbf16> to vector<24x895xbf16>
    %502 = tpu.concatenate %500, %501 in 1 : vector<24x1xbf16>, vector<24x895xbf16> -> vector<24x896xbf16>
    %cst_310 = arith.constant dense<0.000000e+00> : vector<8x896xf32>
    %503 = tpu.matmul %499, %502, %cst_310 {dimension_numbers = #tpu.dot_dimension_numbers<[1], [0], [0], [1], [0, 0, 1, 1], [], []>} : vector<8x24xbf16>, vector<24x896xbf16>, vector<8x896xf32> -> vector<8x896xf32>
    %504 = arith.addf %497, %503 : vector<8x896xf32>
    %c4_311 = arith.constant 4 : index
    %c0_312 = arith.constant 0 : index
    %c0_313 = arith.constant 0 : index
    %505 = vector.load %arg7[%c4_311, %c0_312, %c0_313] : memref<9x8x24xbf16, #tpu.memory_space<vmem>>, vector<1x8x24xbf16>
    %506 = vector.shape_cast %505 : vector<1x8x24xbf16> to vector<8x24xbf16>
    %cst_314 = arith.constant dense<0.000000e+00> : vector<8x896xf32>
    %507 = tpu.matmul %506, %477, %cst_314 {dimension_numbers = #tpu.dot_dimension_numbers<[1], [0], [0], [1], [0, 0, 1, 1], [], []>} : vector<8x24xbf16>, vector<24x896xbf16>, vector<8x896xf32> -> vector<8x896xf32>
    %508 = arith.addf %504, %507 : vector<8x896xf32>
    %c5_315 = arith.constant 5 : index
    %c0_316 = arith.constant 0 : index
    %c0_317 = arith.constant 0 : index
    %509 = vector.load %arg7[%c5_315, %c0_316, %c0_317] : memref<9x8x24xbf16, #tpu.memory_space<vmem>>, vector<1x8x24xbf16>
    %510 = vector.shape_cast %509 : vector<1x8x24xbf16> to vector<8x24xbf16>
    %cst_318 = arith.constant 0.000000e+00 : bf16
    %511 = vector.broadcast %cst_318 : bf16 to vector<24x1xbf16>
    %512 = vector.extract_strided_slice %477 {offsets = [0, 1], sizes = [24, 895], strides = [1, 1]} : vector<24x896xbf16> to vector<24x895xbf16>
    %513 = tpu.concatenate %512, %511 in 1 : vector<24x895xbf16>, vector<24x1xbf16> -> vector<24x896xbf16>
    %cst_319 = arith.constant dense<0.000000e+00> : vector<8x896xf32>
    %514 = tpu.matmul %510, %513, %cst_319 {dimension_numbers = #tpu.dot_dimension_numbers<[1], [0], [0], [1], [0, 0, 1, 1], [], []>} : vector<8x24xbf16>, vector<24x896xbf16>, vector<8x896xf32> -> vector<8x896xf32>
    %515 = arith.addf %508, %514 : vector<8x896xf32>
    %c6_320 = arith.constant 6 : index
    %c0_321 = arith.constant 0 : index
    %c0_322 = arith.constant 0 : index
    %516 = vector.load %arg7[%c6_320, %c0_321, %c0_322] : memref<9x8x24xbf16, #tpu.memory_space<vmem>>, vector<1x8x24xbf16>
    %517 = vector.shape_cast %516 : vector<1x8x24xbf16> to vector<8x24xbf16>
    %cst_323 = arith.constant 0.000000e+00 : bf16
    %518 = vector.broadcast %cst_323 : bf16 to vector<24x19xbf16>
    %519 = vector.extract_strided_slice %477 {offsets = [0, 19], sizes = [24, 877], strides = [1, 1]} : vector<24x896xbf16> to vector<24x877xbf16>
    %520 = tpu.concatenate %519, %518 in 1 : vector<24x877xbf16>, vector<24x19xbf16> -> vector<24x896xbf16>
    %cst_324 = arith.constant dense<0.000000e+00> : vector<8x896xf32>
    %521 = tpu.matmul %517, %520, %cst_324 {dimension_numbers = #tpu.dot_dimension_numbers<[1], [0], [0], [1], [0, 0, 1, 1], [], []>} : vector<8x24xbf16>, vector<24x896xbf16>, vector<8x896xf32> -> vector<8x896xf32>
    %522 = arith.addf %515, %521 : vector<8x896xf32>
    %c7_325 = arith.constant 7 : index
    %c0_326 = arith.constant 0 : index
    %c0_327 = arith.constant 0 : index
    %523 = vector.load %arg7[%c7_325, %c0_326, %c0_327] : memref<9x8x24xbf16, #tpu.memory_space<vmem>>, vector<1x8x24xbf16>
    %524 = vector.shape_cast %523 : vector<1x8x24xbf16> to vector<8x24xbf16>
    %cst_328 = arith.constant 0.000000e+00 : bf16
    %525 = vector.broadcast %cst_328 : bf16 to vector<24x20xbf16>
    %526 = vector.extract_strided_slice %477 {offsets = [0, 20], sizes = [24, 876], strides = [1, 1]} : vector<24x896xbf16> to vector<24x876xbf16>
    %527 = tpu.concatenate %526, %525 in 1 : vector<24x876xbf16>, vector<24x20xbf16> -> vector<24x896xbf16>
    %cst_329 = arith.constant dense<0.000000e+00> : vector<8x896xf32>
    %528 = tpu.matmul %524, %527, %cst_329 {dimension_numbers = #tpu.dot_dimension_numbers<[1], [0], [0], [1], [0, 0, 1, 1], [], []>} : vector<8x24xbf16>, vector<24x896xbf16>, vector<8x896xf32> -> vector<8x896xf32>
    %529 = arith.addf %522, %528 : vector<8x896xf32>
    %c8_330 = arith.constant 8 : index
    %c0_331 = arith.constant 0 : index
    %c0_332 = arith.constant 0 : index
    %530 = vector.load %arg7[%c8_330, %c0_331, %c0_332] : memref<9x8x24xbf16, #tpu.memory_space<vmem>>, vector<1x8x24xbf16>
    %531 = vector.shape_cast %530 : vector<1x8x24xbf16> to vector<8x24xbf16>
    %cst_333 = arith.constant 0.000000e+00 : bf16
    %532 = vector.broadcast %cst_333 : bf16 to vector<24x21xbf16>
    %533 = vector.extract_strided_slice %477 {offsets = [0, 21], sizes = [24, 875], strides = [1, 1]} : vector<24x896xbf16> to vector<24x875xbf16>
    %534 = tpu.concatenate %533, %532 in 1 : vector<24x875xbf16>, vector<24x21xbf16> -> vector<24x896xbf16>
    %cst_334 = arith.constant dense<0.000000e+00> : vector<8x896xf32>
    %535 = tpu.matmul %531, %534, %cst_334 {dimension_numbers = #tpu.dot_dimension_numbers<[1], [0], [0], [1], [0, 0, 1, 1], [], []>} : vector<8x24xbf16>, vector<24x896xbf16>, vector<8x896xf32> -> vector<8x896xf32>
    %536 = arith.addf %529, %535 : vector<8x896xf32>
    %537 = vector.broadcast %476 : vector<8x1xf32> to vector<8x896xf32>
    %538 = arith.addf %536, %537 : vector<8x896xf32>
    %539 = vector.broadcast %0 : vector<1x896xf32> to vector<8x896xf32>
    %540 = arith.mulf %538, %539 : vector<8x896xf32>
    %c24_335 = arith.constant 24 : index
    %c0_336 = arith.constant 0 : index
    %541 = vector.load %arg27[%c24_335, %c0_336] : memref<32x896xf32, #tpu.memory_space<vmem>>, vector<8x896xf32>
    tpu.vector_store %arg27[%c24_335, %c0_336], %540 {strides = array<i32>} : memref<32x896xf32, #tpu.memory_space<vmem>>, vector<8x896xf32>,
    %c0_337 = arith.constant 0 : index
    %c0_338 = arith.constant 0 : index
    %542 = vector.load %arg27[%c0_337, %c0_338] : memref<32x896xf32, #tpu.memory_space<vmem>>, vector<32x896xf32>
    %c0_339 = arith.constant 0 : index
    %c0_340 = arith.constant 0 : index
    %543 = vector.load %arg21[%c0_339, %c0_340] : memref<32x1xf32, #tpu.memory_space<vmem>>, vector<32x1xf32>
    %c0_341 = arith.constant 0 : index
    %c0_342 = arith.constant 0 : index
    %544 = vector.load %arg22[%c0_341, %c0_342] : memref<32x1xf32, #tpu.memory_space<vmem>>, vector<32x1xf32>
    %cst_343 = arith.constant dense<0.000000e+00> : vector<32xf32>
    %545 = vector.multi_reduction <add>, %542, %cst_343 [1] : vector<32x896xf32> to vector<32xf32>
    %546 = vector.shape_cast %545 : vector<32xf32> to vector<32x1xf32>
    %cst_344 = arith.constant 0.001953125 : f32
    %547 = vector.broadcast %cst_344 : f32 to vector<32x1xf32>
    %548 = arith.mulf %546, %547 : vector<32x1xf32>
    %549 = arith.mulf %542, %542 : vector<32x896xf32>
    %cst_345 = arith.constant dense<0.000000e+00> : vector<32xf32>
    %550 = vector.multi_reduction <add>, %549, %cst_345 [1] : vector<32x896xf32> to vector<32xf32>
    %551 = vector.shape_cast %550 : vector<32xf32> to vector<32x1xf32>
    %cst_346 = arith.constant 0.001953125 : f32
    %552 = vector.broadcast %cst_346 : f32 to vector<32x1xf32>
    %553 = arith.mulf %551, %552 : vector<32x1xf32>
    %554 = arith.mulf %548, %548 : vector<32x1xf32>
    %555 = arith.subf %553, %554 : vector<32x1xf32>
    %cst_347 = arith.constant 0.000000e+00 : f32
    %556 = vector.broadcast %cst_347 : f32 to vector<32x1xf32>
    %557 = arith.maximumf %555, %556 : vector<32x1xf32>
    %cst_348 = arith.constant 9.99999974E-6 : f32
    %558 = vector.broadcast %cst_348 : f32 to vector<32x1xf32>
    %559 = arith.addf %557, %558 : vector<32x1xf32>
    %560 = math.rsqrt %559 : vector<32x1xf32>
    %561 = arith.mulf %543, %560 : vector<32x1xf32>
    %562 = vector.broadcast %561 : vector<32x1xf32> to vector<32x896xf32>
    %563 = arith.mulf %542, %562 : vector<32x896xf32>
    %564 = arith.mulf %548, %561 : vector<32x1xf32>
    %565 = arith.subf %544, %564 : vector<32x1xf32>
    %566 = vector.broadcast %565 : vector<32x1xf32> to vector<32x896xf32>
    %567 = arith.addf %563, %566 : vector<32x896xf32>
    %cst_349 = arith.constant 0.000000e+00 : f32
    %568 = vector.broadcast %cst_349 : f32 to vector<32x896xf32>
    %569 = arith.maximumf %567, %568 : vector<32x896xf32>
    %570 = vector.broadcast %0 : vector<1x896xf32> to vector<32x896xf32>
    %571 = arith.mulf %569, %570 : vector<32x896xf32>
    %c0_350 = arith.constant 0 : index
    %c0_351 = arith.constant 0 : index
    %572 = vector.load %arg14[%c0_350, %c0_351] : memref<8x1xf32, #tpu.memory_space<vmem>>, vector<8x1xf32>
    %573 = arith.truncf %571 : vector<32x896xf32> to vector<32x896xbf16>
    %c0_352 = arith.constant 0 : index
    %c0_353 = arith.constant 0 : index
    %c0_354 = arith.constant 0 : index
    %574 = vector.load %arg8[%c0_352, %c0_353, %c0_354] : memref<1x8x32xbf16, #tpu.memory_space<vmem>>, vector<1x8x32xbf16>
    %575 = vector.shape_cast %574 : vector<1x8x32xbf16> to vector<8x32xbf16>
    %cst_355 = arith.constant dense<0.000000e+00> : vector<8x896xf32>
    %576 = tpu.matmul %575, %573, %cst_355 {dimension_numbers = #tpu.dot_dimension_numbers<[1], [0], [0], [1], [0, 0, 1, 1], [], []>} : vector<8x32xbf16>, vector<32x896xbf16>, vector<8x896xf32> -> vector<8x896xf32>
    %577 = vector.broadcast %572 : vector<8x1xf32> to vector<8x896xf32>
    %578 = arith.addf %576, %577 : vector<8x896xf32>
    %579 = vector.broadcast %0 : vector<1x896xf32> to vector<8x896xf32>
    %580 = arith.mulf %578, %579 : vector<8x896xf32>
    %c0_356 = arith.constant 0 : index
    %c0_357 = arith.constant 0 : index
    %581 = vector.load %arg23[%c0_356, %c0_357] : memref<8x1xf32, #tpu.memory_space<vmem>>, vector<8x1xf32>
    %c0_358 = arith.constant 0 : index
    %c0_359 = arith.constant 0 : index
    %582 = vector.load %arg24[%c0_358, %c0_359] : memref<8x1xf32, #tpu.memory_space<vmem>>, vector<8x1xf32>
    %cst_360 = arith.constant dense<0.000000e+00> : vector<8xf32>
    %583 = vector.multi_reduction <add>, %580, %cst_360 [1] : vector<8x896xf32> to vector<8xf32>
    %584 = vector.shape_cast %583 : vector<8xf32> to vector<8x1xf32>
    %cst_361 = arith.constant 0.001953125 : f32
    %585 = vector.broadcast %cst_361 : f32 to vector<8x1xf32>
    %586 = arith.mulf %584, %585 : vector<8x1xf32>
    %587 = arith.mulf %580, %580 : vector<8x896xf32>
    %cst_362 = arith.constant dense<0.000000e+00> : vector<8xf32>
    %588 = vector.multi_reduction <add>, %587, %cst_362 [1] : vector<8x896xf32> to vector<8xf32>
    %589 = vector.shape_cast %588 : vector<8xf32> to vector<8x1xf32>
    %cst_363 = arith.constant 0.001953125 : f32
    %590 = vector.broadcast %cst_363 : f32 to vector<8x1xf32>
    %591 = arith.mulf %589, %590 : vector<8x1xf32>
    %592 = arith.mulf %586, %586 : vector<8x1xf32>
    %593 = arith.subf %591, %592 : vector<8x1xf32>
    %cst_364 = arith.constant 0.000000e+00 : f32
    %594 = vector.broadcast %cst_364 : f32 to vector<8x1xf32>
    %595 = arith.maximumf %593, %594 : vector<8x1xf32>
    %cst_365 = arith.constant 9.99999974E-6 : f32
    %596 = vector.broadcast %cst_365 : f32 to vector<8x1xf32>
    %597 = arith.addf %595, %596 : vector<8x1xf32>
    %598 = math.rsqrt %597 : vector<8x1xf32>
    %599 = arith.mulf %581, %598 : vector<8x1xf32>
    %600 = vector.broadcast %599 : vector<8x1xf32> to vector<8x896xf32>
    %601 = arith.mulf %580, %600 : vector<8x896xf32>
    %602 = arith.mulf %586, %599 : vector<8x1xf32>
    %603 = arith.subf %582, %602 : vector<8x1xf32>
    %604 = vector.broadcast %603 : vector<8x1xf32> to vector<8x896xf32>
    %605 = arith.addf %601, %604 : vector<8x896xf32>
    %cst_366 = arith.constant 0.000000e+00 : f32
    %606 = vector.broadcast %cst_366 : f32 to vector<8x896xf32>
    %607 = arith.maximumf %605, %606 : vector<8x896xf32>
    %608 = vector.broadcast %0 : vector<1x896xf32> to vector<8x896xf32>
    %609 = arith.mulf %607, %608 : vector<8x896xf32>
    %c0_367 = arith.constant 0 : index
    %c0_368 = arith.constant 0 : index
    %610 = vector.load %arg25[%c0_367, %c0_368] : memref<8x896xf32, #tpu.memory_space<vmem>>, vector<8x896xf32>
    tpu.vector_store %arg25[%c0_367, %c0_368], %609 {strides = array<i32>} : memref<8x896xf32, #tpu.memory_space<vmem>>, vector<8x896xf32>,
    return
  }
}

</mosaic_0001>

<bundles_post_ra>
// kernel: texture_enhance_v2_forward.1
= control target key start
LH: loop header
LB: loop body
LE: loop exit
PB: predicated region body
PF: predicated region fallthrough
CT: control target
= control target key end

     0   :  { %v19917_v3 = vmov 0   ;;  %s15897_s27 = smov 108   ;;  %vm154_vm0 = vcmask 162816   ;;  %vm168_vm1 = vcmask 1041408   ;;  %vm164_vm2 = vcmask 31744   ;;  %s15903_s28 = smov 40   ;;  %s19885_s0 = inlined_call_operand.vmem [shape: f32[4,896], index: 0, kind: input, shape index: {}]   ;;  %s19886_s3 = inlined_call_operand.vmem [shape: bf16[9,4,4], index: 3, kind: input, shape index: {}]   ;;  %s19887_s9 = inlined_call_operand.vmem [shape: f32[4,1], index: 9, kind: input, shape index: {}]   ;;  %s19888_s1 = inlined_call_operand.vmem [shape: f32[2,896], index: 1, kind: input, shape index: {}]   ;;  %s19889_s2 = inlined_call_operand.vmem [shape: f32[1,896], index: 2, kind: input, shape index: {}]   ;;  %s19890_s26 = inlined_call_operand.vmem [shape: f32[4,896], index: 26, kind: output, shape index: {1}]   ;;  %s19891_s4 = inlined_call_operand.vmem [shape: bf16[25,8,8], index: 4, kind: input, shape index: {}]   ;;  %s19892_s10 = inlined_call_operand.vmem [shape: f32[8,1], index: 10, kind: input, shape index: {}]   ;;  %s19893_s15 = inlined_call_operand.vmem [shape: f32[8,1], index: 15, kind: input, shape index: {}]   ;;  %s19894_s16 = inlined_call_operand.vmem [shape: f32[8,1], index: 16, kind: input, shape index: {}]   ;;  %s19895_s11 = inlined_call_operand.vmem [shape: f32[8,1], index: 11, kind: input, shape index: {}]   ;;  %s19896_s5 = inlined_call_operand.vmem [shape: bf16[9,8,8], index: 5, kind: input, shape index: {}]   ;;  %s19897_s17 = inlined_call_operand.vmem [shape: f32[16,1], index: 17, kind: input, shape index: {}]   ;;  %s19898_s18 = inlined_call_operand.vmem [shape: f32[16,1], index: 18, kind: input, shape index: {}]   ;;  %s19899_s12 = inlined_call_operand.vmem [shape: f32[8,1], index: 12, kind: input, shape index: {}]   ;;  %s19900_s6 = inlined_call_operand.vmem [shape: bf16[9,8,16], index: 6, kind: input, shape index: {}]   ;;  %s19901_s19 = inlined_call_operand.vmem [shape: f32[24,1], index: 19, kind: input, shape index: {}]   ;;  %s19902_s20 = inlined_call_operand.vmem [shape: f32[24,1], index: 20, kind: input, shape index: {}]   ;;  %s19903_s7 = inlined_call_operand.vmem [shape: bf16[9,8,24], index: 7, kind: input, shape index: {}]   ;;  %s19904_s13 = inlined_call_operand.vmem [shape: f32[8,1], index: 13, kind: input, shape index: {}]   ;;  %s19905_s21 = inlined_call_operand.vmem [shape: f32[32,1], index: 21, kind: input, shape index: {}]   ;;  %s19906_s22 = inlined_call_operand.vmem [shape: f32[32,1], index: 22, kind: input, shape index: {}]   ;;  %s19907_s14 = inlined_call_operand.vmem [shape: f32[8,1], index: 14, kind: input, shape index: {}]   ;;  %s19908_s8 = inlined_call_operand.vmem [shape: bf16[1,8,32], index: 8, kind: input, shape index: {}]   ;;  %s19909_s23 = inlined_call_operand.vmem [shape: f32[8,1], index: 23, kind: input, shape index: {}]   ;;  %s19910_s24 = inlined_call_operand.vmem [shape: f32[8,1], index: 24, kind: input, shape index: {}]   ;;  %s19911_s25 = inlined_call_operand.vmem [shape: f32[8,896], index: 25, kind: output, shape index: {0}]  }
   0x1   :  { %19959 = sst [smem:[#allocation35_spill]] %s19885_s0  ;;  %221 = vmatprep.mubr.bf16.mxu0 %v19917_v3  ;;  %262 = vmatprep.mubr.bf16.mxu1 %v19917_v3  ;;  %s15891_s0 = smov 20   ;;  %v19919_v28 = vmov 0.0   ;;  %vm127_vm3 = vcmask 171008   ;;  %vm15900_vm4 = vmmov 0   ;;  %vm554_vm5 = vcmask 154624  }
   0x2   :  { %19960 = sst [smem:[#allocation36_spill]] %s19886_s3  ;;  %15859 = vset.pattern.permute.xlu0 %v19917_v3  ;;  %15860 = vset.pattern.permute.xlu1 %v19917_v3  ;;  %s15898_s3 = smov 107   ;;  %vm773_vm6 = vcmask 7168   ;;  %vm1188_vm7 = vcmask 1039360   ;;  %vm1407_vm8 = vcmask 891904   ;;  %vm1626_vm9 = vcmask 883712  }
   0x3   :  { %19961 = sst [smem:[#allocation37_spill]] %s19887_s9  ;;  %s15892_s9 = smov 21   ;;  %vm1845_vm10 = vcmask 875520   ;;  %vm2286_vm11 = vcmask 1043456   ;;  %vm2350_vm12 = vcmask 334848   ;;  %vm2360_vm13 = vcmask 64512  }
   0x4   :  { %19962 = sst [smem:[#allocation38_spill]] %s19888_s1  ;;  %s15896_s1 = smov 109   ;;  %vm2324_vm14 = vcmask 343040   ;;  %vm2749_vm15 = vcmask 326656  }
   0x5   :  { %19963 = sst [smem:[#allocation39_spill]] %s19889_s2  ;;  %s19972_s2 = sld [smem:[#allocation37_spill]] }
   0x6   :  { %19964 = sst [smem:[#allocation40_spill]] %s19890_s26  ;;  %s15893_s26 = smov 19  }
   0x7   :  { %19965 = sst [smem:[#allocation41_spill]] %s19891_s4  ;;  %s15895_s4 = smov 127  }
   0x8   :  { %19966 = sst [smem:[#allocation42_spill]] %s19892_s10  ;;  %s19970_s10 = sld [smem:[#allocation35_spill]] }
   0x9   :  { %19967 = sst [smem:[#allocation43_spill]] %s19893_s15  ;;  %s19971_s15 = sld [smem:[#allocation36_spill]] }
   0xa   :  { %19968 = sst [smem:[#allocation44_spill]] %s19894_s16  ;;  %s19973_s16 = sld [smem:[#allocation38_spill]] }
   0xb   :  { %19969 = sst [smem:[#allocation45_spill]] %s19895_s11  ;;  %s15894_s11 = smov 1  }
   0xc   :  { %s19982_s30 = sld [smem:[#allocation40_spill]]  ;;  %s15906_s29 = smov 22  }
   0xe   :  { %v85_v0 = vld [vmem:[%s19970_s10 + $0x8] sm:$0xff]  ;;  %v84_v1 = vld [vmem:[%s19970_s10] sm:$0xff]  ;;  %v86_v2 = vld [vmem:[%s19970_s10 + $0x10] sm:$0xff] }
   0xf   :  { %v16063_v4 = vpack.c.bf16 %v85_v0, %v85_v0  ;;  %v16065_v5 = vpack.c.bf16 %v84_v1, %v84_v1  ;;  %v93_v6 = vcombine.high %v85_v0, %v85_v0  ;;  %v92_v7 = vcombine.high %v84_v1, %v84_v1  ;;  %v87_v13 = vld [vmem:[%s19970_s10 + $0x18] sm:$0xf]  ;;  %v14830_v25 = vld [vmem:[%s19971_s15 + $0x2] sm:$0x3]  ;;  %v105_v47 = vld [vmem:[%s19971_s15] sm:$0x3] }
  0x10   :  { %v94_v10 = vcombine.high %v86_v2, %v86_v2  ;;  %v16083_v12 = vpack.c.bf16 %v86_v2, %v86_v2  ;;  %v16092_v14 = vpack.c.bf16 %v87_v13, %v87_v13  ;;  %s15910_s10 = smov 110  }
  0x11   :  { %144 = vrot.lane.b32.xlu1 %v16063_v4, %s15891_s0  ;;  %140 = vrot.lane.b32.xlu0 %v16065_v5, %s15891_s0  ;;  %v16073_v8 = vpack.c.bf16 %v93_v6, %v93_v6  ;;  %v16075_v9 = vpack.c.bf16 %v92_v7, %v92_v7  ;;  %v14845_v7 = vld [vmem:[%s19971_s15 + $0x4] sm:$0x3] }
  0x12   :  { %v16081_v11 = vpack.c.bf16 %v94_v10, %v94_v10 }
  0x15   :  { %146 = vrot.lane.b32.xlu1 %v16073_v8, %s15891_s0  ;;  %142 = vrot.lane.b32.xlu0 %v16075_v9, %s15891_s0 }
  0x19   :  { %150 = vrot.lane.b32.xlu1 %v16081_v11, %s15891_s0  ;;  %148 = vrot.lane.b32.xlu0 %v16083_v12, %s15891_s0 }
  0x1d   :  { %152 = vrot.lane.b32.xlu0 %v16092_v14, %s15891_s0  ;;  %113 = vrot.lane.b32.xlu1 %v16065_v5, %s15892_s9 }
  0x21   :  { %115 = vrot.lane.b32.xlu0 %v16075_v9, %s15892_s9  ;;  %117 = vrot.lane.b32.xlu1 %v16063_v4, %s15892_s9 }
  0x25   :  { %119 = vrot.lane.b32.xlu0 %v16073_v8, %s15892_s9  ;;  %121 = vrot.lane.b32.xlu1 %v16083_v12, %s15892_s9 }
  0x29   :  { %123 = vrot.lane.b32.xlu0 %v16081_v11, %s15892_s9  ;;  %125 = vrot.lane.b32.xlu1 %v16092_v14, %s15892_s9 }
  0x2d   :  { %542 = vrot.lane.b32.xlu1 %v16075_v9, %s15893_s26  ;;  %540 = vrot.lane.b32.xlu0 %v16065_v5, %s15893_s26 }
  0x31   :  { %546 = vrot.lane.b32.xlu1 %v16073_v8, %s15893_s26  ;;  %544 = vrot.lane.b32.xlu0 %v16063_v4, %s15893_s26 }
  0x35   :  { %550 = vrot.lane.b32.xlu1 %v16081_v11, %s15893_s26  ;;  %548 = vrot.lane.b32.xlu0 %v16083_v12, %s15893_s26 }
  0x39   :  { %552 = vrot.lane.b32.xlu0 %v16092_v14, %s15893_s26  ;;  %759 = vrot.lane.b32.xlu1 %v16065_v5, %s15894_s11 }
  0x3d   :  { %761 = vrot.lane.b32.xlu0 %v16075_v9, %s15894_s11  ;;  %763 = vrot.lane.b32.xlu1 %v16063_v4, %s15894_s11 }
  0x41   :  { %765 = vrot.lane.b32.xlu0 %v16073_v8, %s15894_s11  ;;  %767 = vrot.lane.b32.xlu1 %v16083_v12, %s15894_s11 }
  0x45   :  { %769 = vrot.lane.b32.xlu0 %v16081_v11, %s15894_s11  ;;  %771 = vrot.lane.b32.xlu1 %v16092_v14, %s15894_s11 }
  0x49   :  { %1174 = vrot.lane.b32.xlu0 %v16065_v5, %s15895_s4  ;;  %1176 = vrot.lane.b32.xlu1 %v16075_v9, %s15895_s4 }
  0x4d   :  { %1178 = vrot.lane.b32.xlu0 %v16063_v4, %s15895_s4  ;;  %1180 = vrot.lane.b32.xlu1 %v16073_v8, %s15895_s4 }
  0x51   :  { %1182 = vrot.lane.b32.xlu0 %v16083_v12, %s15895_s4  ;;  %1184 = vrot.lane.b32.xlu1 %v16081_v11, %s15895_s4 }
  0x55   :  { %1186 = vrot.lane.b32.xlu0 %v16092_v14, %s15895_s4  ;;  %1393 = vrot.lane.b32.xlu1 %v16065_v5, %s15896_s1 }
  0x59   :  { %1397 = vrot.lane.b32.xlu1 %v16063_v4, %s15896_s1  ;;  %1395 = vrot.lane.b32.xlu0 %v16075_v9, %s15896_s1 }
  0x5d   :  { %1401 = vrot.lane.b32.xlu1 %v16083_v12, %s15896_s1  ;;  %1399 = vrot.lane.b32.xlu0 %v16073_v8, %s15896_s1 }
  0x61   :  { %1405 = vrot.lane.b32.xlu1 %v16092_v14, %s15896_s1  ;;  %1403 = vrot.lane.b32.xlu0 %v16081_v11, %s15896_s1 }
  0x65   :  { %1612 = vrot.lane.b32.xlu0 %v16065_v5, %s15897_s27  ;;  %1614 = vrot.lane.b32.xlu1 %v16075_v9, %s15897_s27 }
  0x69   :  { %1616 = vrot.lane.b32.xlu0 %v16063_v4, %s15897_s27  ;;  %1618 = vrot.lane.b32.xlu1 %v16073_v8, %s15897_s27 }
  0x6d   :  { %1620 = vrot.lane.b32.xlu0 %v16083_v12, %s15897_s27  ;;  %1622 = vrot.lane.b32.xlu1 %v16081_v11, %s15897_s27 }
  0x71   :  { %1624 = vrot.lane.b32.xlu0 %v16092_v14, %s15897_s27  ;;  %1831 = vrot.lane.b32.xlu1 %v16065_v5, %s15898_s3 }
  0x75   :  { %1835 = vrot.lane.b32.xlu1 %v16063_v4, %s15898_s3  ;;  %1833 = vrot.lane.b32.xlu0 %v16075_v9, %s15898_s3 }
  0x79   :  { %1839 = vrot.lane.b32.xlu1 %v16083_v12, %s15898_s3  ;;  %1837 = vrot.lane.b32.xlu0 %v16073_v8, %s15898_s3 }
  0x7d   :  { %1843 = vrot.lane.b32.xlu1 %v16092_v14, %s15898_s3  ;;  %1841 = vrot.lane.b32.xlu0 %v16081_v11, %s15898_s3 }
  0x83   :  { %v145_v15 = vpop.permute.xlu1 %144  ;;  %v141_v16 = vpop.permute.xlu0 %140 }
  0x84   :  { %v163_v17 = vsel %vm154_vm0, 0, %v141_v16 }
  0x85   :  { %v169_v23 = vsel %vm168_vm1, %v163_v17, 0 }
  0x87   :  { %v147_v18 = vpop.permute.xlu1 %146  ;;  %v143_v19 = vpop.permute.xlu0 %142 }
  0x88   :  { %v157_v20 = vsel %vm154_vm0, %v145_v15, %v147_v18  ;;  %v155_v21 = vsel %vm154_vm0, %v141_v16, %v143_v19  ;;  %v156_v22 = vsel %vm154_vm0, %v143_v19, %v145_v15 }
  0x89   :  { %14833 = vmatprep.subr.msk.bf16.mxu1 %vm168_vm1, %v157_v20  ;;  %14831 = vmatprep.subr.msk.bf16.mxu0 %vm168_vm1, %v155_v21  ;;  %v175_v24 = vsel %vm168_vm1, %v156_v22, 0 }
  0x8a   :  { %190 = vmatpush1.bf16.msra.mxu0 %v169_v23  ;;  %231 = vmatpush1.bf16.msra.mxu1 %v175_v24 }
  0x8b   :  { %v151_v26 = vpop.permute.xlu1 %150  ;;  %v149_v27 = vpop.permute.xlu0 %148  ;;  %15440 = vmatprep.subr.bf16.mxu1 %v19919_v28 }
  0x8c   :  { %v158_v29 = vsel %vm154_vm0, %v147_v18, %v149_v27  ;;  %v159_v30 = vsel %vm154_vm0, %v149_v27, %v151_v26 }
  0x8d   :  { %14832 = vmatmul.mubr.msk.bf16.vlgmr.msra.gmra.mrb[0].mxu0 %vm164_vm2, %v14830_v25  ;;  %14834 = vmatmul.mubr.msk.bf16.vlgmr.msra.gmra.mrb[0].mxu1 %vm164_vm2, %v14830_v25  ;;  %v181_v31 = vsel %vm168_vm1, %v158_v29, 0 }
  0x8e   :  { %14835 = vmatprep.subr.msk.bf16.mxu0 %vm168_vm1, %v159_v30  ;;  %303 = vmatprep.mubr.bf16.mxu0 %v19917_v3 }
  0x8f   :  { %272 = vmatpush1.bf16.msra.mxu0 %v181_v31  ;;  %v153_v32 = vpop.permute.xlu0 %152  ;;  %v114_v33 = vpop.permute.xlu1 %113  ;;  %15442 = vmatprep.mubr.msk.bf16.mxu1 %vm15900_vm4, %v19919_v28 }
  0x90   :  { %v160_v34 = vsel %vm154_vm0, %v151_v26, %v153_v32  ;;  %v137_v36 = vsel %vm127_vm3, 0, %v114_v33 }
  0x91   :  { %v187_v35 = vsel %vm168_vm1, %v160_v34, 0  ;;  %v355_v41 = vsel %vm168_vm1, %v137_v36, 0  ;;  %v14853_v34 = vld [vmem:[%s19971_s15 + $0x6] sm:$0x3] }
  0x92   :  { %15441 = vmatpush3.bf16.msra.mxu1 %v187_v35 }
  0x93   :  { %v116_v37 = vpop.permute.xlu0 %115  ;;  %v118_v38 = vpop.permute.xlu1 %117 }
  0x94   :  { %v129_v39 = vsel %vm127_vm3, %v116_v37, %v118_v38  ;;  %v128_v40 = vsel %vm127_vm3, %v114_v33, %v116_v37 }
  0x95   :  { %14836 = vmatmul.mubr.msk.bf16.vlgmr.msra.gmra.mrb[4].mxu0 %vm164_vm2, %v14830_v25  ;;  %15443 = vmatmul.mubr.msk.bf16.vlgmr.msra.gmra.mrb[4].mxu1 %vm164_vm2, %v14830_v25  ;;  %v361_v43 = vsel %vm168_vm1, %v129_v39, 0 }
  0x96   :  { %14838 = vmatprep.subr.msk.bf16.mxu0 %vm168_vm1, %v128_v40  ;;  %407 = vmatprep.mubr.bf16.mxu0 %v19917_v3 }
  0x97   :  { %v120_v42 = vpop.permute.xlu0 %119  ;;  %376 = vmatpush1.bf16.msra.mxu0 %v355_v41  ;;  %v122_v44 = vpop.permute.xlu1 %121  ;;  %448 = vmatprep.mubr.bf16.mxu1 %v19917_v3  ;;  %v982_v41 = vsel %vm168_vm1, %v16065_v5, 0 }
  0x98   :  { %v130_v45 = vsel %vm127_vm3, %v118_v38, %v120_v42  ;;  %v131_v46 = vsel %vm127_vm3, %v120_v42, %v122_v44  ;;  %v988_v42 = vsel %vm168_vm1, %v16063_v4, 0  ;;  %v14861_v4 = vld [vmem:[%s19971_s15 + $0x8] sm:$0x3] }
  0x99   :  { %14840 = vmatprep.subr.msk.bf16.mxu1 %vm168_vm1, %v130_v45  ;;  %v367_v51 = vsel %vm168_vm1, %v131_v46, 0  ;;  %v1000_v45 = vsel %vm168_vm1, %v16092_v14, 0 }
  0x9a   :  { %417 = vmatpush1.bf16.msra.mxu1 %v361_v43 }
  0x9b   :  { %v124_v48 = vpop.permute.xlu0 %123  ;;  %v126_v49 = vpop.permute.xlu1 %125  ;;  %15446 = vmatprep.subr.bf16.mxu1 %v19919_v28 }
  0x9c   :  { %v132_v50 = vsel %vm127_vm3, %v122_v44, %v124_v48  ;;  %v133_v52 = vsel %vm127_vm3, %v124_v48, %v126_v49 }
  0x9d   :  { %14839 = vmatmul.mubr.msk.bf16.vlgmr.msra.gmra.mrb[8].mxu0 %vm164_vm2, %v105_v47  ;;  %14841 = vmatmul.mubr.msk.bf16.vlgmr.msra.gmra.mrb[8].mxu1 %vm164_vm2, %v105_v47  ;;  %v373_v53 = vsel %vm168_vm1, %v133_v52, 0 }
  0x9e   :  { %14842 = vmatprep.subr.msk.bf16.mxu0 %vm168_vm1, %v132_v50  ;;  %15447 = vmatpush3.bf16.msra.mxu1 %v373_v53 }
  0x9f   :  { %458 = vmatpush1.bf16.msra.mxu0 %v367_v51  ;;  %v543_v54 = vpop.permute.xlu1 %542  ;;  %v541_v55 = vpop.permute.xlu0 %540  ;;  %489 = vmatprep.mubr.bf16.mxu0 %v19917_v3 }
  0xa0   :  { %v563_v56 = vsel %vm554_vm5, 0, %v541_v55  ;;  %15448 = vmatprep.mubr.msk.bf16.mxu1 %vm15900_vm4, %v19919_v28  ;;  %v555_v57 = vsel %vm554_vm5, %v541_v55, %v543_v54 }
  0xa1   :  { %14846 = vmatprep.subr.msk.bf16.mxu0 %vm168_vm1, %v555_v57  ;;  %v567_v60 = vsel %vm168_vm1, %v563_v56, 0 }
  0xa3   :  { %v547_v58 = vpop.permute.xlu1 %546  ;;  %v545_v59 = vpop.permute.xlu0 %544 }
  0xa4   :  { %v556_v61 = vsel %vm554_vm5, %v543_v54, %v545_v59  ;;  %v557_v62 = vsel %vm554_vm5, %v545_v59, %v547_v58 }
  0xa5   :  { %14843 = vmatmul.mubr.msk.bf16.vlgmr.msra.gmra.mrb[12].mxu0 %vm164_vm2, %v105_v47  ;;  %15449 = vmatmul.mubr.msk.bf16.vlgmr.msra.gmra.mrb[12].mxu1 %vm164_vm2, %v105_v47  ;;  %v573_v63 = vsel %vm168_vm1, %v556_v61, 0 }
  0xa6   :  { %14848 = vmatprep.subr.msk.bf16.mxu1 %vm168_vm1, %v557_v62  ;;  %588 = vmatpush1.bf16.msra.mxu0 %v567_v60 }
  0xa7   :  { %629 = vmatpush1.bf16.msra.mxu1 %v573_v63  ;;  %v551_v0 = vpop.permute.xlu1 %550  ;;  %v549_v1 = vpop.permute.xlu0 %548  ;;  %619 = vmatprep.mubr.bf16.mxu0 %v19917_v3 }
  0xa8   :  { %v558_v2 = vsel %vm554_vm5, %v547_v58, %v549_v1  ;;  %660 = vmatprep.mubr.bf16.mxu1 %v19917_v3  ;;  %v559_v6 = vsel %vm554_vm5, %v549_v1, %v551_v0  ;;  %15452 = vmatprep.subr.bf16.mxu1 %v19919_v28  ;;  %v14869_v58 = vld [vmem:[%s19971_s15 + $0xa] sm:$0x3] }
  0xa9   :  { %14850 = vmatprep.subr.msk.bf16.mxu0 %vm168_vm1, %v559_v6  ;;  %v579_v10 = vsel %vm168_vm1, %v558_v2, 0 }
  0xab   :  { %v553_v13 = vpop.permute.xlu0 %552  ;;  %v760_v15 = vpop.permute.xlu1 %759 }
  0xac   :  { %v560_v16 = vsel %vm554_vm5, %v551_v0, %v553_v13  ;;  %v782_v20 = vsel %vm773_vm6, 0, %v760_v15  ;;  %v88_v13 = vld [vmem:[%s19972_s2] sm:$0xf]  ;;  %s15901_s2 = smov 41  }
  0xad   :  { %14847 = vmatmul.mubr.msk.bf16.vlgmr.msra.gmra.mrb[16].mxu0 %vm164_vm2, %v14845_v7  ;;  %14849 = vmatmul.mubr.msk.bf16.vlgmr.msra.gmra.mrb[16].mxu1 %vm164_vm2, %v14845_v7  ;;  %v585_v17 = vsel %vm168_vm1, %v560_v16, 0  ;;  %v786_v24 = vsel %vm168_vm1, %v782_v20, 0  ;;  %v14877_v20 = vld [vmem:[%s19971_s15 + $0xc] sm:$0x3] }
  0xae   :  { %670 = vmatpush1.bf16.msra.mxu0 %v579_v10  ;;  %15453 = vmatpush3.bf16.msra.mxu1 %v585_v17 }
  0xaf   :  { %v762_v18 = vpop.permute.xlu0 %761  ;;  %701 = vmatprep.mubr.bf16.mxu0 %v19917_v3  ;;  %15454 = vmatprep.mubr.msk.bf16.mxu1 %vm15900_vm4, %v19919_v28  ;;  %v764_v19 = vpop.permute.xlu1 %763 }
  0xb0   :  { %v774_v21 = vsel %vm773_vm6, %v760_v15, %v762_v18  ;;  %v775_v22 = vsel %vm773_vm6, %v762_v18, %v764_v19  ;;  %2050 = vperm.xlu0 %15859, %v88_v13  }
  0xb1   :  { %14854 = vmatprep.subr.msk.bf16.mxu0 %vm168_vm1, %v774_v21  ;;  %v792_v27 = vsel %vm168_vm1, %v775_v22, 0 }
  0xb3   :  { %v766_v23 = vpop.permute.xlu0 %765  ;;  %v768_v25 = vpop.permute.xlu1 %767 }
  0xb4   :  { %v776_v26 = vsel %vm773_vm6, %v764_v19, %v766_v23  ;;  %v777_v31 = vsel %vm773_vm6, %v766_v23, %v768_v25 }
  0xb5   :  { %14851 = vmatmul.mubr.msk.bf16.vlgmr.msra.gmra.mrb[20].mxu0 %vm164_vm2, %v14845_v7  ;;  %15455 = vmatmul.mubr.msk.bf16.vlgmr.msra.gmra.mrb[20].mxu1 %vm164_vm2, %v14845_v7  ;;  %v798_v35 = vsel %vm168_vm1, %v777_v31, 0 }
  0xb6   :  { %14856 = vmatprep.subr.msk.bf16.mxu1 %vm168_vm1, %v776_v26  ;;  %807 = vmatpush1.bf16.msra.mxu0 %v786_v24 }
  0xb7   :  { %848 = vmatpush1.bf16.msra.mxu1 %v792_v27  ;;  %v770_v29 = vpop.permute.xlu0 %769  ;;  %838 = vmatprep.mubr.bf16.mxu0 %v19917_v3  ;;  %v772_v30 = vpop.permute.xlu1 %771 }
  0xb8   :  { %879 = vmatprep.mubr.bf16.mxu1 %v19917_v3  ;;  %v778_v32 = vsel %vm773_vm6, %v768_v25, %v770_v29  ;;  %v779_v33 = vsel %vm773_vm6, %v770_v29, %v772_v30  ;;  %15458 = vmatprep.subr.bf16.mxu1 %v19919_v28 }
  0xb9   :  { %14858 = vmatprep.subr.msk.bf16.mxu0 %vm168_vm1, %v778_v32  ;;  %v804_v36 = vsel %vm168_vm1, %v779_v33, 0 }
  0xbb   :  { %v1175_v37 = vpop.permute.xlu0 %1174  ;;  %v1177_v38 = vpop.permute.xlu1 %1176 }
  0xbd   :  { %14855 = vmatmul.mubr.msk.bf16.vlgmr.msra.gmra.mrb[24].mxu0 %vm164_vm2, %v14853_v34  ;;  %14857 = vmatmul.mubr.msk.bf16.vlgmr.msra.gmra.mrb[24].mxu1 %vm164_vm2, %v14853_v34 }
  0xbe   :  { %889 = vmatpush1.bf16.msra.mxu0 %v798_v35  ;;  %15459 = vmatpush3.bf16.msra.mxu1 %v804_v36 }
  0xbf   :  { %920 = vmatprep.mubr.bf16.mxu0 %v19917_v3  ;;  %15460 = vmatprep.mubr.msk.bf16.mxu1 %vm15900_vm4, %v19919_v28  ;;  %v1179_v39 = vpop.permute.xlu0 %1178  ;;  %v1181_v40 = vpop.permute.xlu1 %1180 }
  0xc0   :  { %14862 = vmatprep.subr.msk.bf16.mxu0 %vm168_vm1, %v16075_v9  ;;  %14864 = vmatprep.subr.msk.bf16.mxu1 %vm168_vm1, %v16073_v8  ;;  %v994_v8 = vsel %vm168_vm1, %v16083_v12, 0  ;;  %v1189_v12 = vsel %vm1188_vm7, %v1175_v37, %v1177_v38  ;;  %v1191_v14 = vsel %vm1188_vm7, %v1179_v39, %v1181_v40 }
  0xc1   :  { %v1202_v51 = vsel %vm168_vm1, %v1189_v12, 0  ;;  %v1208_v52 = vsel %vm168_vm1, %v1191_v14, 0  ;;  %v14893_v12 = vld [vmem:[%s19971_s15 + $0x10] sm:$0x3] }
  0xc3   :  { %v1183_v43 = vpop.permute.xlu0 %1182  ;;  %v1185_v44 = vpop.permute.xlu1 %1184 }
  0xc4   :  { %v1192_v48 = vsel %vm1188_vm7, %v1181_v40, %v1183_v43  ;;  %v1193_v54 = vsel %vm1188_vm7, %v1183_v43, %v1185_v44 }
  0xc5   :  { %14859 = vmatmul.mubr.msk.bf16.vlgmr.msra.gmra.mrb[28].mxu0 %vm164_vm2, %v14853_v34  ;;  %15461 = vmatmul.mubr.msk.bf16.vlgmr.msra.gmra.mrb[28].mxu1 %vm164_vm2, %v14853_v34  ;;  %v1214_v59 = vsel %vm168_vm1, %v1193_v54, 0 }
  0xc6   :  { %1003 = vmatpush1.bf16.msra.mxu0 %v982_v41  ;;  %1044 = vmatpush1.bf16.msra.mxu1 %v988_v42 }
  0xc7   :  { %1034 = vmatprep.mubr.bf16.mxu0 %v19917_v3  ;;  %1075 = vmatprep.mubr.bf16.mxu1 %v19917_v3  ;;  %v1394_v9 = vpop.permute.xlu1 %1393  ;;  %v1187_v5 = vpop.permute.xlu0 %1186 }
  0xc8   :  { %14866 = vmatprep.subr.msk.bf16.mxu0 %vm168_vm1, %v16081_v11  ;;  %15464 = vmatprep.subr.bf16.mxu1 %v19919_v28  ;;  %v1190_v11 = vsel %vm1188_vm7, %v1177_v38, %v1179_v39  ;;  %v1194_v53 = vsel %vm1188_vm7, %v1185_v44, %v1187_v5  ;;  %v1197_v55 = vsel %vm1188_vm7, %v1187_v5, 0  ;;  %v14885_v38 = vld [vmem:[%s19971_s15 + $0xe] sm:$0x3]  ;;  %s19974_s15 = sld [smem:[#allocation39_spill]] }
  0xc9   :  { %v1219_v60 = vsel %vm168_vm1, %v1197_v55, 0 }
  0xcb   :  { %v1398_v46 = vpop.permute.xlu1 %1397  ;;  %v1396_v47 = vpop.permute.xlu0 %1395 }
  0xcc   :  { %v1409_v62 = vsel %vm1407_vm8, %v1396_v47, %v1398_v46  ;;  %v1408_v1 = vsel %vm1407_vm8, %v1394_v9, %v1396_v47 }
  0xcd   :  { %14863 = vmatmul.mubr.msk.bf16.vlgmr.msra.gmra.mrb[32].mxu0 %vm164_vm2, %v14861_v4  ;;  %14865 = vmatmul.mubr.msk.bf16.vlgmr.msra.gmra.mrb[32].mxu1 %vm164_vm2, %v14861_v4  ;;  %v1421_v7 = vsel %vm168_vm1, %v1408_v1, 0 }
  0xce   :  { %1085 = vmatpush1.bf16.msra.mxu0 %v994_v8  ;;  %15465 = vmatpush3.bf16.msra.mxu1 %v1000_v45 }
  0xcf   :  { %1116 = vmatprep.mubr.bf16.mxu0 %v19917_v3  ;;  %15466 = vmatprep.mubr.msk.bf16.mxu1 %vm15900_vm4, %v19919_v28  ;;  %v1402_v49 = vpop.permute.xlu1 %1401  ;;  %v1400_v50 = vpop.permute.xlu0 %1399 }
  0xd0   :  { %14870 = vmatprep.subr.msk.bf16.mxu0 %vm168_vm1, %v1190_v11  ;;  %14872 = vmatprep.subr.msk.bf16.mxu1 %vm168_vm1, %v1192_v48  ;;  %v1411_v63 = vsel %vm1407_vm8, %v1400_v50, %v1402_v49  ;;  %v1410_v2 = vsel %vm1407_vm8, %v1398_v46, %v1400_v50 }
  0xd1   :  { %v1427_v10 = vsel %vm168_vm1, %v1410_v2, 0 }
  0xd3   :  { %v1406_v56 = vpop.permute.xlu1 %1405  ;;  %v1404_v57 = vpop.permute.xlu0 %1403 }
  0xd4   :  { %v1413_v16 = vsel %vm1407_vm8, %v1404_v57, %v1406_v56  ;;  %v1416_v17 = vsel %vm1407_vm8, %v1406_v56, 0  ;;  %v1412_v18 = vsel %vm1407_vm8, %v1402_v49, %v1404_v57 }
  0xd5   :  { %14867 = vmatmul.mubr.msk.bf16.vlgmr.msra.gmra.mrb[36].mxu0 %vm164_vm2, %v14861_v4  ;;  %15467 = vmatmul.mubr.msk.bf16.vlgmr.msra.gmra.mrb[36].mxu1 %vm164_vm2, %v14861_v4  ;;  %v1433_v22 = vsel %vm168_vm1, %v1412_v18, 0  ;;  %v1438_v23 = vsel %vm168_vm1, %v1416_v17, 0 }
  0xd6   :  { %1222 = vmatpush1.bf16.msra.mxu0 %v1202_v51  ;;  %1263 = vmatpush1.bf16.msra.mxu1 %v1208_v52 }
  0xd7   :  { %1253 = vmatprep.mubr.bf16.mxu0 %v19917_v3  ;;  %1294 = vmatprep.mubr.bf16.mxu1 %v19917_v3  ;;  %v1615_v61 = vpop.permute.xlu1 %1614  ;;  %v1613_v0 = vpop.permute.xlu0 %1612 }
  0xd8   :  { %14874 = vmatprep.subr.msk.bf16.mxu0 %vm168_vm1, %v1194_v53  ;;  %15470 = vmatprep.subr.bf16.mxu1 %v19919_v28  ;;  %v1627_v27 = vsel %vm1626_vm9, %v1613_v0, %v1615_v61 }
  0xd9   :  { %v1640_v31 = vsel %vm168_vm1, %v1627_v27, 0 }
  0xdb   :  { %v1619_v6 = vpop.permute.xlu1 %1618  ;;  %v1617_v15 = vpop.permute.xlu0 %1616 }
  0xdc   :  { %v1628_v24 = vsel %vm1626_vm9, %v1615_v61, %v1617_v15  ;;  %v1629_v29 = vsel %vm1626_vm9, %v1617_v15, %v1619_v6 }
  0xdd   :  { %14871 = vmatmul.mubr.msk.bf16.vlgmr.msra.gmra.mrb[40].mxu0 %vm164_vm2, %v14869_v58  ;;  %14873 = vmatmul.mubr.msk.bf16.vlgmr.msra.gmra.mrb[40].mxu1 %vm164_vm2, %v14869_v58  ;;  %v1646_v32 = vsel %vm168_vm1, %v1629_v29, 0 }
  0xde   :  { %1304 = vmatpush1.bf16.msra.mxu0 %v1214_v59  ;;  %15471 = vmatpush3.bf16.msra.mxu1 %v1219_v60 }
  0xdf   :  { %1335 = vmatprep.mubr.bf16.mxu0 %v19917_v3  ;;  %15472 = vmatprep.mubr.msk.bf16.mxu1 %vm15900_vm4, %v19919_v28  ;;  %v1623_v19 = vpop.permute.xlu1 %1622  ;;  %v1621_v21 = vpop.permute.xlu0 %1620 }
  0xe0   :  { %14878 = vmatprep.subr.msk.bf16.mxu0 %vm168_vm1, %v1409_v62  ;;  %14880 = vmatprep.subr.msk.bf16.mxu1 %vm168_vm1, %v1411_v63  ;;  %v1630_v25 = vsel %vm1626_vm9, %v1619_v6, %v1621_v21  ;;  %v1631_v36 = vsel %vm1626_vm9, %v1621_v21, %v1623_v19 }
  0xe1   :  { %v1652_v41 = vsel %vm168_vm1, %v1631_v36, 0 }
  0xe3   :  { %v1832_v26 = vpop.permute.xlu1 %1831  ;;  %v1625_v30 = vpop.permute.xlu0 %1624 }
  0xe4   :  { %v1632_v35 = vsel %vm1626_vm9, %v1623_v19, %v1625_v30  ;;  %v1635_v37 = vsel %vm1626_vm9, %v1625_v30, 0 }
  0xe5   :  { %14875 = vmatmul.mubr.msk.bf16.vlgmr.msra.gmra.mrb[44].mxu0 %vm164_vm2, %v14869_v58  ;;  %15473 = vmatmul.mubr.msk.bf16.vlgmr.msra.gmra.mrb[44].mxu1 %vm164_vm2, %v14869_v58  ;;  %v1657_v42 = vsel %vm168_vm1, %v1635_v37, 0 }
  0xe6   :  { %1441 = vmatpush1.bf16.msra.mxu0 %v1421_v7  ;;  %1482 = vmatpush1.bf16.msra.mxu1 %v1427_v10 }
  0xe7   :  { %1472 = vmatprep.mubr.bf16.mxu0 %v19917_v3  ;;  %1513 = vmatprep.mubr.bf16.mxu1 %v19917_v3  ;;  %v1836_v33 = vpop.permute.xlu1 %1835  ;;  %v1834_v34 = vpop.permute.xlu0 %1833 }
  0xe8   :  { %14882 = vmatprep.subr.msk.bf16.mxu0 %vm168_vm1, %v1413_v16  ;;  %15476 = vmatprep.subr.bf16.mxu1 %v19919_v28  ;;  %v1847_v43 = vsel %vm1845_vm10, %v1834_v34, %v1836_v33  ;;  %v1846_v9 = vsel %vm1845_vm10, %v1832_v26, %v1834_v34 }
  0xe9   :  { %v1859_v45 = vsel %vm168_vm1, %v1846_v9, 0 }
  0xeb   :  { %v1840_v39 = vpop.permute.xlu1 %1839  ;;  %v1838_v40 = vpop.permute.xlu0 %1837 }
  0xec   :  { %v1849_v44 = vsel %vm1845_vm10, %v1838_v40, %v1840_v39  ;;  %v1848_v5 = vsel %vm1845_vm10, %v1836_v33, %v1838_v40 }
  0xed   :  { %14879 = vmatmul.mubr.msk.bf16.vlgmr.msra.gmra.mrb[48].mxu0 %vm164_vm2, %v14877_v20  ;;  %14881 = vmatmul.mubr.msk.bf16.vlgmr.msra.gmra.mrb[48].mxu1 %vm164_vm2, %v14877_v20  ;;  %v1865_v46 = vsel %vm168_vm1, %v1848_v5, 0 }
  0xee   :  { %1523 = vmatpush1.bf16.msra.mxu0 %v1433_v22  ;;  %15477 = vmatpush3.bf16.msra.mxu1 %v1438_v23 }
  0xef   :  { %1554 = vmatprep.mubr.bf16.mxu0 %v19917_v3  ;;  %15478 = vmatprep.mubr.msk.bf16.mxu1 %vm15900_vm4, %v19919_v28  ;;  %v1844_v4 = vpop.permute.xlu1 %1843  ;;  %v1842_v8 = vpop.permute.xlu0 %1841 }
  0xf0   :  { %14886 = vmatprep.subr.msk.bf16.mxu0 %vm168_vm1, %v1628_v24  ;;  %14888 = vmatprep.subr.msk.bf16.mxu1 %vm168_vm1, %v1630_v25  ;;  %v1851_v47 = vsel %vm1845_vm10, %v1842_v8, %v1844_v4  ;;  %v1854_v11 = vsel %vm1845_vm10, %v1844_v4, 0  ;;  %v1850_v48 = vsel %vm1845_vm10, %v1840_v39, %v1842_v8 }
  0xf1   :  { %v1871_v14 = vsel %vm168_vm1, %v1850_v48, 0  ;;  %v1876_v49 = vsel %vm168_vm1, %v1854_v11, 0 }
  0xf5   :  { %14883 = vmatmul.mubr.msk.bf16.vlgmr.msra.gmra.mrb[52].mxu0 %vm164_vm2, %v14877_v20  ;;  %15479 = vmatmul.mubr.msk.bf16.vlgmr.msra.gmra.mrb[52].mxu1 %vm164_vm2, %v14877_v20 }
  0xf6   :  { %1660 = vmatpush1.bf16.msra.mxu0 %v1640_v31  ;;  %1701 = vmatpush1.bf16.msra.mxu1 %v1646_v32 }
  0xf7   :  { %1691 = vmatprep.mubr.bf16.mxu0 %v19917_v3  ;;  %1732 = vmatprep.mubr.bf16.mxu1 %v19917_v3 }
  0xf8   :  { %14890 = vmatprep.subr.msk.bf16.mxu0 %vm168_vm1, %v1632_v35  ;;  %15482 = vmatprep.subr.bf16.mxu1 %v19919_v28 }
  0xfd   :  { %14887 = vmatmul.mubr.msk.bf16.vlgmr.msra.gmra.mrb[56].mxu0 %vm164_vm2, %v14885_v38  ;;  %14889 = vmatmul.mubr.msk.bf16.vlgmr.msra.gmra.mrb[56].mxu1 %vm164_vm2, %v14885_v38 }
  0xfe   :  { %1742 = vmatpush1.bf16.msra.mxu0 %v1652_v41  ;;  %15483 = vmatpush3.bf16.msra.mxu1 %v1657_v42 }
  0xff   :  { %1773 = vmatprep.mubr.bf16.mxu0 %v19917_v3  ;;  %15484 = vmatprep.mubr.msk.bf16.mxu1 %vm15900_vm4, %v19919_v28 }
 0x100   :  { %14894 = vmatprep.subr.msk.bf16.mxu0 %vm168_vm1, %v1847_v43  ;;  %14896 = vmatprep.subr.msk.bf16.mxu1 %vm168_vm1, %v1849_v44 }
 0x105   :  { %14891 = vmatmul.mubr.msk.bf16.vlgmr.msra.gmra.mrb[60].mxu0 %vm164_vm2, %v14885_v38  ;;  %15485 = vmatmul.mubr.msk.bf16.vlgmr.msra.gmra.mrb[60].mxu1 %vm164_vm2, %v14885_v38 }
 0x106   :  { %1879 = vmatpush1.bf16.msra.mxu0 %v1859_v45  ;;  %1920 = vmatpush1.bf16.msra.mxu1 %v1865_v46 }
 0x107   :  { %1910 = vmatprep.mubr.bf16.mxu0 %v19917_v3  ;;  %1951 = vmatprep.mubr.bf16.mxu1 %v19917_v3 }
 0x108   :  { %14898 = vmatprep.subr.msk.bf16.mxu0 %vm168_vm1, %v1851_v47  ;;  %15488 = vmatprep.subr.bf16.mxu1 %v19919_v28  ;;  %vm2968_vm1 = vcmask 318464  }
 0x10d   :  { %14895 = vmatmul.mubr.msk.bf16.vlgmr.msra.gmra.mrb[64].mxu0 %vm164_vm2, %v14893_v12  ;;  %14897 = vmatmul.mubr.msk.bf16.vlgmr.msra.gmra.mrb[64].mxu1 %vm164_vm2, %v14893_v12 }
 0x10e   :  { %1961 = vmatpush1.bf16.msra.mxu0 %v1871_v14  ;;  %15489 = vmatpush3.bf16.msra.mxu1 %v1876_v49 }
 0x10f   :  { %1992 = vmatprep.mubr.bf16.mxu0 %v19917_v3  ;;  %15490 = vmatprep.mubr.msk.bf16.mxu1 %vm15900_vm4, %v19919_v28 }
 0x115   :  { %14899 = vmatmul.mubr.msk.bf16.vlgmr.msra.gmra.mrb[68].mxu0 %vm164_vm2, %v14893_v12  ;;  %15491 = vmatmul.mubr.msk.bf16.vlgmr.msra.gmra.mrb[68].mxu1 %vm164_vm2, %v14893_v12  ;;  %vm3187_vm2 = vcmask 310272  }
 0x116   :  { %2416 = vmatprep.mubr.bf16.mxu0 %v19917_v3  ;;  %2457 = vmatprep.mubr.bf16.mxu1 %v19917_v3 }
 0x160   :  { %v223_v50 = vpop.f32.mrb[0].mxu0  ;;  %v264_v51 = vpop.f32.mrb[0].mxu1 }
 0x161   :  { %v225_v52 = vpop.f32.mrb[1].mxu0  ;;  %v266_v53 = vpop.f32.mrb[1].mxu1 }
 0x162   :  { %v227_v54 = vpop.f32.mrb[2].mxu0  ;;  %v268_v55 = vpop.f32.mrb[2].mxu1 }
 0x163   :  { %v228_v56 = vpop.f32.mrb[3].mxu0  ;;  %v269_v57 = vpop.f32.mrb[3].mxu1 }
 0x168   :  { %v305_v58 = vpop.f32.mrb[4].mxu0  ;;  %v346_v59 = vpop.f32.mrb[4].mxu1 }
 0x169   :  { %v307_v60 = vpop.f32.mrb[5].mxu0  ;;  %v15444_v61 = vpop.f32.mrb[5].mxu1 }
 0x16a   :  { %v309_v62 = vpop.f32.mrb[6].mxu0  ;;  %v349_v63 = vpop.f32.mrb[6].mxu1 }
 0x16b   :  { %v310_v0 = vpop.f32.mrb[7].mxu0  ;;  %v15445_v1 = vpop.f32.mrb[7].mxu1 }
 0x170   :  { %v409_v2 = vpop.f32.mrb[8].mxu0  ;;  %v450_v6 = vpop.f32.mrb[8].mxu1 }
 0x171   :  { %v410_v7 = vadd.f32 %v409_v2, %v223_v50  ;;  %v451_v10 = vadd.f32 %v450_v6, %v264_v51  ;;  %v411_v13 = vpop.f32.mrb[9].mxu0  ;;  %v452_v15 = vpop.f32.mrb[9].mxu1 }
 0x172   :  { %v412_v16 = vadd.f32 %v411_v13, %v225_v52  ;;  %v453_v17 = vadd.f32 %v452_v15, %v266_v53  ;;  %v413_v18 = vpop.f32.mrb[10].mxu0  ;;  %v454_v19 = vpop.f32.mrb[10].mxu1 }
 0x173   :  { %v414_v20 = vpop.f32.mrb[11].mxu0  ;;  %v455_v21 = vpop.f32.mrb[11].mxu1 }
 0x178   :  { %v491_v22 = vpop.f32.mrb[12].mxu0  ;;  %v532_v23 = vpop.f32.mrb[12].mxu1 }
 0x179   :  { %v492_v24 = vadd.f32 %v491_v22, %v305_v58  ;;  %v533_v25 = vadd.f32 %v532_v23, %v346_v59  ;;  %v493_v26 = vpop.f32.mrb[13].mxu0  ;;  %v15450_v27 = vpop.f32.mrb[13].mxu1 }
 0x17a   :  { %v494_v29 = vadd.f32 %v493_v26, %v307_v60  ;;  %v495_v30 = vpop.f32.mrb[14].mxu0  ;;  %v535_v31 = vpop.f32.mrb[14].mxu1 }
 0x17b   :  { %v496_v32 = vpop.f32.mrb[15].mxu0  ;;  %v15451_v33 = vpop.f32.mrb[15].mxu1 }
 0x180   :  { %v621_v34 = vpop.f32.mrb[16].mxu0  ;;  %v662_v35 = vpop.f32.mrb[16].mxu1 }
 0x181   :  { %v750_v36 = vadd.f32 %v621_v34, %v410_v7  ;;  %v752_v37 = vadd.f32 %v662_v35, %v451_v10  ;;  %v623_v38 = vpop.f32.mrb[17].mxu0  ;;  %v664_v39 = vpop.f32.mrb[17].mxu1 }
 0x182   :  { %v751_v40 = vadd.f32 %v623_v38, %v412_v16  ;;  %v753_v41 = vadd.f32 %v664_v39, %v453_v17  ;;  %v625_v42 = vpop.f32.mrb[18].mxu0  ;;  %v666_v43 = vpop.f32.mrb[18].mxu1 }
 0x183   :  { %v626_v44 = vpop.f32.mrb[19].mxu0  ;;  %v667_v9 = vpop.f32.mrb[19].mxu1 }
 0x188   :  { %v703_v5 = vpop.f32.mrb[20].mxu0  ;;  %v744_v4 = vpop.f32.mrb[20].mxu1 }
 0x189   :  { %v754_v8 = vadd.f32 %v703_v5, %v492_v24  ;;  %v756_v45 = vadd.f32 %v744_v4, %v533_v25  ;;  %v705_v46 = vpop.f32.mrb[21].mxu0  ;;  %v15456_v47 = vpop.f32.mrb[21].mxu1 }
 0x18a   :  { %v755_v11 = vadd.f32 %v705_v46, %v494_v29  ;;  %v707_v48 = vpop.f32.mrb[22].mxu0  ;;  %v747_v12 = vpop.f32.mrb[22].mxu1 }
 0x18b   :  { %v708_v14 = vpop.f32.mrb[23].mxu0  ;;  %v15457_v49 = vpop.f32.mrb[23].mxu1 }
 0x190   :  { %v840_v50 = vpop.f32.mrb[24].mxu0  ;;  %v881_v51 = vpop.f32.mrb[24].mxu1 }
 0x191   :  { %v969_v52 = vadd.f32 %v840_v50, %v750_v36  ;;  %v971_v53 = vadd.f32 %v881_v51, %v752_v37  ;;  %v842_v54 = vpop.f32.mrb[25].mxu0  ;;  %v883_v55 = vpop.f32.mrb[25].mxu1 }
 0x192   :  { %v970_v56 = vadd.f32 %v842_v54, %v751_v40  ;;  %v972_v57 = vadd.f32 %v883_v55, %v753_v41  ;;  %v844_v58 = vpop.f32.mrb[26].mxu0  ;;  %v885_v59 = vpop.f32.mrb[26].mxu1 }
 0x193   :  { %v845_v60 = vpop.f32.mrb[27].mxu0  ;;  %v886_v61 = vpop.f32.mrb[27].mxu1 }
 0x198   :  { %v922_v62 = vpop.f32.mrb[28].mxu0  ;;  %v963_v63 = vpop.f32.mrb[28].mxu1 }
 0x199   :  { %v973_v0 = vadd.f32 %v922_v62, %v754_v8  ;;  %v975_v1 = vadd.f32 %v963_v63, %v756_v45  ;;  %v924_v2 = vpop.f32.mrb[29].mxu0  ;;  %v15462_v6 = vpop.f32.mrb[29].mxu1 }
 0x19a   :  { %v974_v7 = vadd.f32 %v924_v2, %v755_v11  ;;  %v926_v10 = vpop.f32.mrb[30].mxu0  ;;  %v966_v13 = vpop.f32.mrb[30].mxu1 }
 0x19b   :  { %v927_v15 = vpop.f32.mrb[31].mxu0  ;;  %v15463_v16 = vpop.f32.mrb[31].mxu1 }
 0x1a0   :  { %v1036_v17 = vpop.f32.mrb[32].mxu0  ;;  %v1077_v18 = vpop.f32.mrb[32].mxu1 }
 0x1a1   :  { %v1165_v19 = vadd.f32 %v1036_v17, %v969_v52  ;;  %v1167_v20 = vadd.f32 %v1077_v18, %v971_v53  ;;  %v1038_v21 = vpop.f32.mrb[33].mxu0  ;;  %v1079_v22 = vpop.f32.mrb[33].mxu1 }
 0x1a2   :  { %v1166_v23 = vadd.f32 %v1038_v21, %v970_v56  ;;  %v1168_v24 = vadd.f32 %v1079_v22, %v972_v57  ;;  %v1040_v25 = vpop.f32.mrb[34].mxu0  ;;  %v1081_v26 = vpop.f32.mrb[34].mxu1 }
 0x1a3   :  { %v1041_v27 = vpop.f32.mrb[35].mxu0  ;;  %v1082_v29 = vpop.f32.mrb[35].mxu1  ;;  %v2061_v25 = vlaneseq }
 0x1a8   :  { %v1118_v30 = vpop.f32.mrb[36].mxu0  ;;  %v1159_v31 = vpop.f32.mrb[36].mxu1 }
 0x1a9   :  { %v1169_v32 = vadd.f32 %v1118_v30, %v973_v0  ;;  %v1171_v33 = vadd.f32 %v1159_v31, %v975_v1  ;;  %v1120_v34 = vpop.f32.mrb[37].mxu0  ;;  %v15468_v35 = vpop.f32.mrb[37].mxu1 }
 0x1aa   :  { %v1170_v36 = vadd.f32 %v1120_v34, %v974_v7  ;;  %v1122_v37 = vpop.f32.mrb[38].mxu0  ;;  %v1162_v38 = vpop.f32.mrb[38].mxu1 }
 0x1ab   :  { %v1123_v39 = vpop.f32.mrb[39].mxu0  ;;  %v15469_v40 = vpop.f32.mrb[39].mxu1 }
 0x1ac   :  { %v16446_v40 = vshrl.u32 %v2061_v25, 7 }
 0x1b0   :  { %v1255_v41 = vpop.f32.mrb[40].mxu0  ;;  %v1296_v42 = vpop.f32.mrb[40].mxu1 }
 0x1b1   :  { %v1384_v43 = vadd.f32 %v1255_v41, %v1165_v19  ;;  %v1386_v44 = vadd.f32 %v1296_v42, %v1167_v20  ;;  %v1257_v9 = vpop.f32.mrb[41].mxu0  ;;  %v1298_v5 = vpop.f32.mrb[41].mxu1  ;;  %v16449_v41 = vsub.s32 0, %v16446_v40  ;;  %v16452_v42 = vsub.s32 1, %v16446_v40 }
 0x1b2   :  { %v1385_v4 = vadd.f32 %v1257_v9, %v1166_v23  ;;  %v1387_v8 = vadd.f32 %v1298_v5, %v1168_v24  ;;  %v1259_v45 = vpop.f32.mrb[42].mxu0  ;;  %v1300_v46 = vpop.f32.mrb[42].mxu1  ;;  %v2119_v24 = vld [vmem:[%s19973_s16] sm:$0xff]  ;;  %v16455_v5 = vsub.s32 4, %v16446_v40 }
 0x1b3   :  { %v1260_v47 = vpop.f32.mrb[43].mxu0  ;;  %v1301_v11 = vpop.f32.mrb[43].mxu1  ;;  %15864 = vtanh.f32 %v2119_v24  ;;  %v2087_v45 = vsub.s32 6, %v16446_v40 }
 0x1b8   :  { %v1337_v48 = vpop.f32.mrb[44].mxu0  ;;  %v1378_v12 = vpop.f32.mrb[44].mxu1 }
 0x1b9   :  { %v1388_v14 = vadd.f32 %v1337_v48, %v1169_v32  ;;  %v1390_v49 = vadd.f32 %v1378_v12, %v1171_v33  ;;  %v1339_v50 = vpop.f32.mrb[45].mxu0  ;;  %v15474_v51 = vpop.f32.mrb[45].mxu1  ;;  %v2120_v33 = vld [vmem:[%s19973_s16 + $0x8] sm:$0x3f]  ;;  %v2083_v12 = vsub.s32 5, %v16446_v40 }
 0x1ba   :  { %v1389_v52 = vadd.f32 %v1339_v50, %v1170_v36  ;;  %v1341_v53 = vpop.f32.mrb[46].mxu0  ;;  %v1381_v54 = vpop.f32.mrb[46].mxu1  ;;  %15866 = vtanh.f32 %v2120_v33 }
 0x1bb   :  { %v1342_v55 = vpop.f32.mrb[47].mxu0  ;;  %v15475_v56 = vpop.f32.mrb[47].mxu1  ;;  %v83_v53 = vld [vmem:[%s19974_s15] sm:$0xff]  ;;  %s15905_s15 = smov 38  }
 0x1bc   :  { %v2209_v56 = vsub.s32 7, %v16446_v40 }
 0x1c0   :  { %v1474_v57 = vpop.f32.mrb[48].mxu0  ;;  %v1515_v58 = vpop.f32.mrb[48].mxu1 }
 0x1c1   :  { %v1603_v59 = vadd.f32 %v1474_v57, %v1384_v43  ;;  %v1605_v60 = vadd.f32 %v1515_v58, %v1386_v44  ;;  %v1476_v61 = vpop.f32.mrb[49].mxu0  ;;  %v1517_v62 = vpop.f32.mrb[49].mxu1 }
 0x1c2   :  { %v1604_v63 = vadd.f32 %v1476_v61, %v1385_v4  ;;  %v1606_v0 = vadd.f32 %v1517_v62, %v1387_v8  ;;  %v1478_v1 = vpop.f32.mrb[50].mxu0  ;;  %v1519_v2 = vpop.f32.mrb[50].mxu1  ;;  %v16458_v4 = vsub.s32 2, %v16446_v40  ;;  %v16461_v8 = vsub.s32 3, %v16446_v40 }
 0x1c3   :  { %v1479_v6 = vpop.f32.mrb[51].mxu0  ;;  %v1520_v7 = vpop.f32.mrb[51].mxu1  ;;  %v16491_v1 = vrot.slane %v83_v53, %v16455_v5 }
 0x1c4   :  { %v15865_v43 = vpop.eup %15864  ;;  %v16494_v2 = vrot.slane %v83_v53, %v16458_v4 }
 0x1c5   :  { %v2128_v54 = vrot.slane %v15865_v43, %v16449_v41  ;;  %v2198_v55 = vrot.slane %v15865_v43, %v16452_v42  ;;  %v2132_v57 = vrot.slane %v15865_v43, %v16458_v4  ;;  %v2136_v58 = vrot.slane %v15865_v43, %v16455_v5  ;;  %v16482_v62 = vpop.eup %15866  ;;  %19977 = vst [vmem:[#allocation5_spill] sm:$0xff] %v16491_v1 }
 0x1c6   :  { %v2206_v61 = vrot.slane %v15865_v43, %v2083_v12  ;;  %19978 = vst [vmem:[#allocation6_spill] sm:$0xff] %v16494_v2 }
 0x1c7   :  { %v2163_v6 = vrot.slane %v2128_v54, %v16449_v41  ;;  %v2233_v7 = vrot.slane %v2198_v55, %v16452_v42 }
 0x1c8   :  { %v1556_v10 = vpop.f32.mrb[52].mxu0  ;;  %v1597_v13 = vpop.f32.mrb[52].mxu1 }
 0x1c9   :  { %v1607_v15 = vadd.f32 %v1556_v10, %v1388_v14  ;;  %v1609_v16 = vadd.f32 %v1597_v13, %v1390_v49  ;;  %v1558_v17 = vpop.f32.mrb[53].mxu0  ;;  %v15480_v18 = vpop.f32.mrb[53].mxu1  ;;  %v16501_v13 = vrot.slane %v83_v53, %v16461_v8 }
 0x1ca   :  { %v1608_v19 = vadd.f32 %v1558_v17, %v1389_v52  ;;  %v1560_v20 = vpop.f32.mrb[54].mxu0  ;;  %v1600_v21 = vpop.f32.mrb[54].mxu1  ;;  %v2167_v18 = vrot.slane %v2132_v57, %v16449_v41 }
 0x1cb   :  { %v1561_v22 = vpop.f32.mrb[55].mxu0  ;;  %v15481_v23 = vpop.f32.mrb[55].mxu1  ;;  %19979 = vst [vmem:[#allocation7_spill] sm:$0xff] %v16501_v13 }
 0x1cc   :  { %v16498_v10 = vpop.permute.xlu0 %2050 }
 0x1d0   :  { %v1693_v26 = vpop.f32.mrb[56].mxu0  ;;  %v1734_v27 = vpop.f32.mrb[56].mxu1 }
 0x1d1   :  { %v1822_v29 = vadd.f32 %v1693_v26, %v1603_v59  ;;  %v1824_v30 = vadd.f32 %v1734_v27, %v1605_v60  ;;  %v1695_v31 = vpop.f32.mrb[57].mxu0  ;;  %v1736_v32 = vpop.f32.mrb[57].mxu1  ;;  %v16479_v59 = vrot.slane %v15865_v43, %v2087_v45  ;;  %v2202_v60 = vrot.slane %v15865_v43, %v16461_v8 }
 0x1d2   :  { %v1823_v34 = vadd.f32 %v1695_v31, %v1604_v63  ;;  %v1825_v35 = vadd.f32 %v1736_v32, %v1606_v0  ;;  %v1697_v36 = vpop.f32.mrb[58].mxu0  ;;  %v1738_v37 = vpop.f32.mrb[58].mxu1  ;;  %v16485_v63 = vrot.slane %v83_v53, %v16449_v41  ;;  %v16488_v0 = vrot.slane %v83_v53, %v16452_v42 }
 0x1d3   :  { %v1698_v38 = vpop.f32.mrb[59].mxu0  ;;  %v1739_v39 = vpop.f32.mrb[59].mxu1  ;;  %v2175_v20 = vrot.slane %v16479_v59, %v16449_v41  ;;  %v2237_v21 = vrot.slane %v2202_v60, %v16452_v42  ;;  %v2144_v26 = vrot.slane %v16482_v62, %v16449_v41  ;;  %v2241_v27 = vrot.slane %v2206_v61, %v16452_v42 }
 0x1d4   :  { %19975 = vst [vmem:[#allocation3_spill] sm:$0xff] %v16485_v63  ;;  %19976 = vst [vmem:[#allocation4_spill] sm:$0xff] %v16488_v0  ;;  %v2214_v37 = vrot.slane %v16482_v62, %v16452_v42  ;;  %v2222_v38 = vrot.slane %v16482_v62, %v2083_v12 }
 0x1d8   :  { %v1775_v44 = vpop.f32.mrb[60].mxu0  ;;  %v1816_v9 = vpop.f32.mrb[60].mxu1 }
 0x1d9   :  { %v16464_v46 = vadd.f32 %v1775_v44, %v1607_v15  ;;  %v16466_v47 = vadd.f32 %v1816_v9, %v1609_v16  ;;  %v1777_v11 = vpop.f32.mrb[61].mxu0  ;;  %v15486_v48 = vpop.f32.mrb[61].mxu1  ;;  %v2210_v15 = vrot.slane %v15865_v43, %v2209_v56  ;;  %v2218_v44 = vrot.slane %v16482_v62, %v16461_v8 }
 0x1da   :  { %v16469_v14 = vadd.f32 %v1777_v11, %v1608_v19  ;;  %v1779_v49 = vpop.f32.mrb[62].mxu0  ;;  %v1819_v50 = vpop.f32.mrb[62].mxu1  ;;  %v2171_v19 = vrot.slane %v2136_v58, %v16449_v41  ;;  %v16521_v9 = vrot.slane %v83_v53, %v2087_v45  ;;  %v2152_v11 = vrot.slane %v16482_v62, %v16455_v5 }
 0x1db   :  { %v1780_v51 = vpop.f32.mrb[63].mxu0  ;;  %v15487_v52 = vpop.f32.mrb[63].mxu1  ;;  %v2245_v43 = vrot.slane %v2210_v15, %v16452_v42  ;;  %v2179_v49 = vrot.slane %v2144_v26, %v16449_v41  ;;  %v16527_v50 = vrot.slane %v83_v53, %v2083_v12  ;;  %v2249_v8 = vrot.slane %v2214_v37, %v16452_v42 }
 0x1dc   :  { %19980 = vst [vmem:[#allocation8_spill] sm:$0xff] %v16521_v9  ;;  %v2257_v45 = vrot.slane %v2222_v38, %v16452_v42  ;;  %v2148_v5 = vrot.slane %v16482_v62, %v16458_v4  ;;  %v2253_v57 = vrot.slane %v2218_v44, %v16452_v42 }
 0x1dd   :  { %19981 = vst [vmem:[#allocation9_spill] sm:$0xff] %v16527_v50 }
 0x1de   :  { %v2183_v44 = vrot.slane %v2148_v5, %v16449_v41 }
 0x1e0   :  { %v1912_v16 = vpop.f32.mrb[64].mxu0  ;;  %v1953_v17 = vpop.f32.mrb[64].mxu1 }
 0x1e1   :  { %v2041_v22 = vadd.f32 %v1912_v16, %v1822_v29  ;;  %v2043_v23 = vadd.f32 %v1953_v17, %v1824_v30  ;;  %v1914_v24 = vpop.f32.mrb[65].mxu0  ;;  %v1955_v25 = vpop.f32.mrb[65].mxu1 }
 0x1e2   :  { %v2042_v31 = vadd.f32 %v1914_v24, %v1823_v34  ;;  %v2044_v32 = vadd.f32 %v1955_v25, %v1825_v35  ;;  %v1916_v33 = vpop.f32.mrb[66].mxu0  ;;  %v1957_v36 = vpop.f32.mrb[66].mxu1 }
 0x1e3   :  { %v2053_v39 = vadd.f32 %v16498_v10, %v2041_v22  ;;  %v2055_v29 = vadd.f32 %v16498_v10, %v2043_v23  ;;  %v1917_v30 = vpop.f32.mrb[67].mxu0  ;;  %v1958_v40 = vpop.f32.mrb[67].mxu1 }
 0x1e4   :  { %v2054_v34 = vadd.f32 %v16498_v10, %v2042_v31  ;;  %v2056_v35 = vadd.f32 %v16498_v10, %v2044_v32 }
 0x1e5   :  { %v2096_v48 = vmul.f32 %v16485_v63, %v2053_v39  ;;  %v2098_v51 = vmul.f32 %v16494_v2, %v2055_v29  ;;  %v2187_v29 = vrot.slane %v2152_v11, %v16449_v41 }
 0x1e6   :  { %v2097_v52 = vmul.f32 %v16488_v0, %v2054_v34  ;;  %v2099_v54 = vmul.f32 %v16501_v13, %v2056_v35 }
 0x1e7   :  { %v2258_v55 = vmul.f32 %v2233_v7, %v2096_v48  ;;  %v2260_v56 = vmul.f32 %v2241_v27, %v2098_v51  ;;  %v2188_v58 = vmul.f32 %v2163_v6, %v2096_v48  ;;  %v2190_v15 = vmul.f32 %v2171_v19, %v2098_v51 }
 0x1e8   :  { %v1994_v12 = vpop.f32.mrb[68].mxu0  ;;  %v2035_v53 = vpop.f32.mrb[68].mxu1  ;;  %v2109_v60 = vcombine.low %v2096_v48, %v2097_v52  ;;  %v2110_v61 = vcombine.low %v2098_v51, %v2099_v54  ;;  %v2259_v23 = vmul.f32 %v2237_v21, %v2097_v52  ;;  %v2189_v42 = vmul.f32 %v2167_v18, %v2097_v52 }
 0x1e9   :  { %v2272_v16 = vrot.slane %v2258_v55, 4  ;;  %v2045_v17 = vadd.f32 %v1994_v12, %v16464_v46  ;;  %v2047_v22 = vadd.f32 %v2035_v53, %v16466_v47  ;;  %v1996_v24 = vpop.f32.mrb[69].mxu0  ;;  %v15492_v7 = vpop.f32.mrb[69].mxu1  ;;  %v2261_v4 = vmul.f32 %v2245_v43, %v2099_v54 }
 0x1ea   :  { %2115 = vst [vmem:[%s19982_s30] sm:$0xff] %v2109_v60  ;;  %2116 = vst [vmem:[%s19982_s30 + $0x8] sm:$0xff] %v2110_v61  ;;  %v2274_v62 = vrot.slane %v2260_v56, 4  ;;  %v2046_v6 = vadd.f32 %v1996_v24, %v16469_v14  ;;  %v1998_v19 = vpop.f32.mrb[70].mxu0  ;;  %v2038_v46 = vpop.f32.mrb[70].mxu1  ;;  %v2273_v26 = vrot.slane %v2259_v23, 4 }
 0x1eb   :  { %v2287_v47 = vsel %vm2286_vm11, %v2188_v58, %v2272_v16  ;;  %v2057_v21 = vadd.f32 %v16498_v10, %v2045_v17  ;;  %v2059_v25 = vadd.f32 %v16498_v10, %v2047_v22  ;;  %v1999_v27 = vpop.f32.mrb[71].mxu0  ;;  %v15493_v31 = vpop.f32.mrb[71].mxu1  ;;  %v2275_v33 = vrot.slane %v2261_v4, 4 }
 0x1ec   :  { %v16549_v32 = vpack.c.bf16 %v2287_v47, %v2287_v47  ;;  %v2289_v18 = vsel %vm2286_vm11, %v2190_v15, %v2274_v62  ;;  %v2058_v36 = vadd.f32 %v16498_v10, %v2046_v6  ;;  %v2288_v38 = vsel %vm2286_vm11, %v2189_v42, %v2273_v26 }
 0x1ed   :  { %v2100_v14 = vmul.f32 %v16491_v1, %v2057_v21  ;;  %v2102_v37 = vmul.f32 %v16521_v9, %v2059_v25  ;;  %v16556_v39 = vpack.c.bf16 %v2289_v18, %v2289_v18  ;;  %v2191_v10 = vmul.f32 %v2175_v20, %v2099_v54 }
 0x1ee   :  { %v2101_v30 = vmul.f32 %v16527_v50, %v2058_v36  ;;  %2336 = vrot.lane.b32.xlu1 %v16549_v32, %s15901_s2  ;;  %v16569_v34 = vpack.c.bf16 %v2288_v38, %v2288_v38 }
 0x1ef   :  { %v2262_v40 = vmul.f32 %v2249_v8, %v2100_v14  ;;  %2118 = vst [vmem:[%s19982_s30 + $0x18] sm:$0xf] %v2102_v37  ;;  %v2264_v43 = vmul.f32 %v2257_v45, %v2102_v37  ;;  %2340 = vrot.lane.b32.xlu0 %v16556_v39, %s15901_s2  ;;  %v2192_v48 = vmul.f32 %v2179_v49, %v2100_v14 }
 0x1f0   :  { %v2111_v35 = vcombine.low %v2100_v14, %v2101_v30  ;;  %v2263_v11 = vmul.f32 %v2253_v57, %v2101_v30  ;;  %v2290_v8 = vsel %vm2286_vm11, %v2191_v10, %v2275_v33  ;;  %v2194_v20 = vmul.f32 %v2187_v29, %v2102_v37 }
 0x1f1   :  { %v2276_v51 = vrot.slane %v2262_v40, 4  ;;  %v2278_v52 = vrot.slane %v2264_v43, 4  ;;  %v2193_v54 = vmul.f32 %v2183_v44, %v2101_v30  ;;  %v16579_v55 = vpack.c.bf16 %v2290_v8, %v2290_v8 }
 0x1f2   :  { %2117 = vst [vmem:[%s19982_s30 + $0x10] sm:$0xff] %v2111_v35  ;;  %v2277_v59 = vrot.slane %v2263_v11, 4  ;;  %2338 = vrot.lane.b32.xlu1 %v16569_v34, %s15901_s2  ;;  %s15902_s30 = smov 42  }
 0x1f3   :  { %v2291_v41 = vsel %vm2286_vm11, %v2192_v48, %v2276_v51  ;;  %v2293_v49 = vsel %vm2286_vm11, %v2194_v20, %v2278_v52 }
 0x1f4   :  { %v16577_v45 = vpack.c.bf16 %v2291_v41, %v2291_v41  ;;  %v2292_v56 = vsel %vm2286_vm11, %v2193_v54, %v2277_v59  ;;  %v16585_v5 = vpack.c.bf16 %v2293_v49, %v2293_v49 }
 0x1f5   :  { %v16587_v57 = vpack.c.bf16 %v2292_v56, %v2292_v56 }
 0x1f6   :  { %2344 = vrot.lane.b32.xlu0 %v16577_v45, %s15901_s2  ;;  %2342 = vrot.lane.b32.xlu1 %v16579_v55, %s15901_s2 }
 0x1fa   :  { %2348 = vrot.lane.b32.xlu0 %v16585_v5, %s15901_s2  ;;  %2346 = vrot.lane.b32.xlu1 %v16587_v57, %s15901_s2  ;;  %s15904_s2 = smov 39  }
 0x1fe   :  { %2312 = vrot.lane.b32.xlu0 %v16569_v34, %s15902_s30  ;;  %2310 = vrot.lane.b32.xlu1 %v16549_v32, %s15902_s30 }
 0x202   :  { %2316 = vrot.lane.b32.xlu0 %v16579_v55, %s15902_s30  ;;  %2314 = vrot.lane.b32.xlu1 %v16556_v39, %s15902_s30 }
 0x206   :  { %2320 = vrot.lane.b32.xlu0 %v16587_v57, %s15902_s30  ;;  %2318 = vrot.lane.b32.xlu1 %v16577_v45, %s15902_s30 }
 0x20a   :  { %2735 = vrot.lane.b32.xlu0 %v16549_v32, %s15903_s28  ;;  %2322 = vrot.lane.b32.xlu1 %v16585_v5, %s15902_s30  ;;  %s19983_s30 = sld [smem:[#allocation41_spill]] }
 0x20e   :  { %2739 = vrot.lane.b32.xlu0 %v16556_v39, %s15903_s28  ;;  %2737 = vrot.lane.b32.xlu1 %v16569_v34, %s15903_s28 }
 0x210   :  { %v14901_v23 = vld [vmem:[%s19983_s30 + $0x4] sm:$0xf]  ;;  %v2302_v30 = vld [vmem:[%s19983_s30] sm:$0xf] }
 0x212   :  { %2743 = vrot.lane.b32.xlu0 %v16577_v45, %s15903_s28  ;;  %2741 = vrot.lane.b32.xlu1 %v16579_v55, %s15903_s28 }
 0x216   :  { %2747 = vrot.lane.b32.xlu0 %v16585_v5, %s15903_s28  ;;  %2745 = vrot.lane.b32.xlu1 %v16587_v57, %s15903_s28  ;;  %s15907_s28 = smov 18  }
 0x21a   :  { %2956 = vrot.lane.b32.xlu0 %v16569_v34, %s15904_s2  ;;  %2954 = vrot.lane.b32.xlu1 %v16549_v32, %s15904_s2 }
 0x21e   :  { %2960 = vrot.lane.b32.xlu0 %v16579_v55, %s15904_s2  ;;  %2958 = vrot.lane.b32.xlu1 %v16556_v39, %s15904_s2 }
 0x222   :  { %2964 = vrot.lane.b32.xlu0 %v16587_v57, %s15904_s2  ;;  %2962 = vrot.lane.b32.xlu1 %v16577_v45, %s15904_s2 }
 0x226   :  { %3173 = vrot.lane.b32.xlu0 %v16549_v32, %s15905_s15  ;;  %2966 = vrot.lane.b32.xlu1 %v16585_v5, %s15904_s2  ;;  %s19994_s2 = sld [smem:[#allocation45_spill]] }
 0x22a   :  { %3177 = vrot.lane.b32.xlu0 %v16556_v39, %s15905_s15  ;;  %3175 = vrot.lane.b32.xlu1 %v16569_v34, %s15905_s15 }
 0x22e   :  { %3181 = vrot.lane.b32.xlu0 %v16577_v45, %s15905_s15  ;;  %3179 = vrot.lane.b32.xlu1 %v16579_v55, %s15905_s15 }
 0x232   :  { %3185 = vrot.lane.b32.xlu0 %v16585_v5, %s15905_s15  ;;  %3183 = vrot.lane.b32.xlu1 %v16587_v57, %s15905_s15  ;;  %s15909_s15 = smov 126  }
 0x236   :  { %3394 = vrot.lane.b32.xlu0 %v16569_v34, %s15906_s29  ;;  %3392 = vrot.lane.b32.xlu1 %v16549_v32, %s15906_s29 }
 0x23a   :  { %3398 = vrot.lane.b32.xlu0 %v16579_v55, %s15906_s29  ;;  %3396 = vrot.lane.b32.xlu1 %v16556_v39, %s15906_s29 }
 0x23e   :  { %3402 = vrot.lane.b32.xlu0 %v16587_v57, %s15906_s29  ;;  %3400 = vrot.lane.b32.xlu1 %v16577_v45, %s15906_s29 }
 0x242   :  { %3611 = vrot.lane.b32.xlu0 %v16549_v32, %s15892_s9  ;;  %3404 = vrot.lane.b32.xlu1 %v16585_v5, %s15906_s29  ;;  %s15908_s29 = smov 2  }
 0x246   :  { %3615 = vrot.lane.b32.xlu0 %v16556_v39, %s15892_s9  ;;  %3613 = vrot.lane.b32.xlu1 %v16569_v34, %s15892_s9 }
 0x24a   :  { %3619 = vrot.lane.b32.xlu0 %v16577_v45, %s15892_s9  ;;  %3617 = vrot.lane.b32.xlu1 %v16579_v55, %s15892_s9 }
 0x24e   :  { %3623 = vrot.lane.b32.xlu0 %v16585_v5, %s15892_s9  ;;  %3621 = vrot.lane.b32.xlu1 %v16587_v57, %s15892_s9 }
 0x252   :  { %3830 = vrot.lane.b32.xlu0 %v16569_v34, %s15891_s0  ;;  %3828 = vrot.lane.b32.xlu1 %v16549_v32, %s15891_s0 }
 0x256   :  { %3834 = vrot.lane.b32.xlu0 %v16579_v55, %s15891_s0  ;;  %3832 = vrot.lane.b32.xlu1 %v16556_v39, %s15891_s0 }
 0x25a   :  { %3838 = vrot.lane.b32.xlu0 %v16587_v57, %s15891_s0  ;;  %3836 = vrot.lane.b32.xlu1 %v16577_v45, %s15891_s0 }
 0x25e   :  { %4045 = vrot.lane.b32.xlu0 %v16549_v32, %s15893_s26  ;;  %3840 = vrot.lane.b32.xlu1 %v16585_v5, %s15891_s0 }
 0x260   :  { %v2337_v58 = vpop.permute.xlu1 %2336 }
 0x261   :  { %v2341_v12 = vpop.permute.xlu0 %2340  ;;  %v2359_v53 = vsel %vm2350_vm12, 0, %v2337_v58 }
 0x262   :  { %4049 = vrot.lane.b32.xlu0 %v16556_v39, %s15893_s26  ;;  %4047 = vrot.lane.b32.xlu1 %v16569_v34, %s15893_s26  ;;  %v2364_v15 = vsel %vm2286_vm11, %v2359_v53, 0 }
 0x264   :  { %v2339_v60 = vpop.permute.xlu1 %2338 }
 0x265   :  { %v2351_v61 = vsel %vm2350_vm12, %v2337_v58, %v2339_v60  ;;  %v2352_v16 = vsel %vm2350_vm12, %v2339_v60, %v2341_v12 }
 0x266   :  { %4053 = vrot.lane.b32.xlu0 %v16577_v45, %s15893_s26  ;;  %4051 = vrot.lane.b32.xlu1 %v16579_v55, %s15893_s26  ;;  %v2370_v7 = vsel %vm2286_vm11, %v2352_v16, 0 }
 0x267   :  { %14902 = vmatprep.subr.msk.bf16.mxu0 %vm2286_vm11, %v2351_v61  ;;  %v14916_v61 = vld [vmem:[%s19983_s30 + $0x8] sm:$0xf] }
 0x268   :  { %2385 = vmatpush1.bf16.msra.mxu0 %v2364_v15  ;;  %v2345_v17 = vpop.permute.xlu0 %2344  ;;  %v2343_v22 = vpop.permute.xlu1 %2342 }
 0x269   :  { %v2353_v24 = vsel %vm2350_vm12, %v2341_v12, %v2343_v22  ;;  %v2354_v42 = vsel %vm2350_vm12, %v2343_v22, %v2345_v17 }
 0x26a   :  { %4057 = vrot.lane.b32.xlu0 %v16585_v5, %s15893_s26  ;;  %4055 = vrot.lane.b32.xlu1 %v16587_v57, %s15893_s26  ;;  %v2376_v47 = vsel %vm2286_vm11, %v2354_v42, 0 }
 0x26b   :  { %14903 = vmatmul.mubr.msk.bf16.vlgmr.msra.gmra.mrb[72].mxu0 %vm2360_vm13, %v14901_v23  ;;  %14904 = vmatprep.subr.msk.bf16.mxu1 %vm2286_vm11, %v2353_v24 }
 0x26c   :  { %2426 = vmatpush1.bf16.msra.mxu1 %v2370_v7  ;;  %v2349_v4 = vpop.permute.xlu0 %2348  ;;  %v2347_v62 = vpop.permute.xlu1 %2346  ;;  %2498 = vmatprep.mubr.bf16.mxu0 %v19917_v3 }
 0x26d   :  { %v2356_v6 = vsel %vm2350_vm12, %v2347_v62, %v2349_v4  ;;  %v2355_v19 = vsel %vm2350_vm12, %v2345_v17, %v2347_v62  ;;  %15494 = vmatprep.subr.bf16.mxu1 %v19919_v28  ;;  %vm3406_vm12 = vcmask 179200  }
 0x26e   :  { %4264 = vrot.lane.b32.xlu0 %v16569_v34, %s15907_s28  ;;  %4262 = vrot.lane.b32.xlu1 %v16549_v32, %s15907_s28  ;;  %v2382_v46 = vsel %vm2286_vm11, %v2356_v6, 0 }
 0x26f   :  { %14905 = vmatmul.mubr.msk.bf16.vlgmr.msra.gmra.mrb[72].mxu1 %vm2360_vm13, %v14901_v23  ;;  %14906 = vmatprep.subr.msk.bf16.mxu0 %vm2286_vm11, %v2355_v19 }
 0x270   :  { %2467 = vmatpush1.bf16.msra.mxu0 %v2376_v47  ;;  %15495 = vmatpush3.bf16.msra.mxu1 %v2382_v46  ;;  %v2313_v21 = vpop.permute.xlu0 %2312  ;;  %v2311_v25 = vpop.permute.xlu1 %2310 }
 0x271   :  { %v2333_v26 = vsel %vm2324_vm14, 0, %v2311_v25  ;;  %v2325_v27 = vsel %vm2324_vm14, %v2311_v25, %v2313_v21  ;;  %15496 = vmatprep.mubr.msk.bf16.mxu1 %vm15900_vm4, %v19919_v28 }
 0x272   :  { %4268 = vrot.lane.b32.xlu0 %v16579_v55, %s15907_s28  ;;  %4266 = vrot.lane.b32.xlu1 %v16556_v39, %s15907_s28  ;;  %v2550_v31 = vsel %vm2286_vm11, %v2333_v26, 0 }
 0x273   :  { %14907 = vmatmul.mubr.msk.bf16.vlgmr.msra.gmra.mrb[76].mxu0 %vm2360_vm13, %v14901_v23  ;;  %14909 = vmatprep.subr.msk.bf16.mxu0 %vm2286_vm11, %v2325_v27 }
 0x274   :  { %2571 = vmatpush1.bf16.msra.mxu0 %v2550_v31  ;;  %v2317_v33 = vpop.permute.xlu0 %2316  ;;  %v2315_v18 = vpop.permute.xlu1 %2314  ;;  %2602 = vmatprep.mubr.bf16.mxu0 %v19917_v3 }
 0x275   :  { %v2326_v36 = vsel %vm2324_vm14, %v2313_v21, %v2315_v18  ;;  %v2327_v14 = vsel %vm2324_vm14, %v2315_v18, %v2317_v33  ;;  %v14924_v18 = vld [vmem:[%s19983_s30 + $0xc] sm:$0xf] }
 0x276   :  { %4272 = vrot.lane.b32.xlu0 %v16587_v57, %s15907_s28  ;;  %4270 = vrot.lane.b32.xlu1 %v16577_v45, %s15907_s28  ;;  %v2556_v37 = vsel %vm2286_vm11, %v2326_v36, 0 }
 0x277   :  { %15497 = vmatmul.mubr.msk.bf16.vlgmr.msra.gmra.mrb[76].mxu1 %vm2360_vm13, %v14901_v23  ;;  %14911 = vmatprep.subr.msk.bf16.mxu1 %vm2286_vm11, %v2327_v14 }
 0x278   :  { %2612 = vmatpush1.bf16.msra.mxu1 %v2556_v37  ;;  %v2321_v38 = vpop.permute.xlu0 %2320  ;;  %v2319_v29 = vpop.permute.xlu1 %2318  ;;  %2643 = vmatprep.mubr.bf16.mxu1 %v19917_v3 }
 0x279   :  { %v2328_v40 = vsel %vm2324_vm14, %v2317_v33, %v2319_v29  ;;  %v2329_v10 = vsel %vm2324_vm14, %v2319_v29, %v2321_v38  ;;  %15500 = vmatprep.subr.bf16.mxu1 %v19919_v28 }
 0x27a   :  { %4481 = vrot.lane.b32.xlu0 %v16549_v32, %s15908_s29  ;;  %4274 = vrot.lane.b32.xlu1 %v16585_v5, %s15907_s28  ;;  %v2562_v43 = vsel %vm2286_vm11, %v2328_v40, 0  ;;  %s15913_s28 = smov 89  }
 0x27b   :  { %14910 = vmatmul.mubr.msk.bf16.vlgmr.msra.gmra.mrb[80].mxu0 %vm2360_vm13, %v2302_v30  ;;  %14913 = vmatprep.subr.msk.bf16.mxu0 %vm2286_vm11, %v2329_v10 }
 0x27c   :  { %2653 = vmatpush1.bf16.msra.mxu0 %v2562_v43  ;;  %v2736_v44 = vpop.permute.xlu0 %2735  ;;  %v2323_v35 = vpop.permute.xlu1 %2322  ;;  %2684 = vmatprep.mubr.bf16.mxu0 %v19917_v3 }
 0x27d   :  { %v2330_v11 = vsel %vm2324_vm14, %v2321_v38, %v2323_v35  ;;  %v2758_v51 = vsel %vm2749_vm15, 0, %v2736_v44  ;;  %vm4276_vm14 = vcmask 146432  }
 0x27e   :  { %v2568_v48 = vsel %vm2286_vm11, %v2330_v11, 0  ;;  %4485 = vrot.lane.b32.xlu0 %v16556_v39, %s15908_s29  ;;  %4483 = vrot.lane.b32.xlu1 %v16569_v34, %s15908_s29  ;;  %v2762_v41 = vsel %vm2286_vm11, %v2758_v51, 0 }
 0x27f   :  { %14912 = vmatmul.mubr.msk.bf16.vlgmr.msra.gmra.mrb[80].mxu1 %vm2360_vm13, %v2302_v30 }
 0x280   :  { %15501 = vmatpush3.bf16.msra.mxu1 %v2568_v48  ;;  %v2740_v52 = vpop.permute.xlu0 %2739  ;;  %v2738_v8 = vpop.permute.xlu1 %2737  ;;  %15502 = vmatprep.mubr.msk.bf16.mxu1 %vm15900_vm4, %v19919_v28 }
 0x281   :  { %v2750_v59 = vsel %vm2749_vm15, %v2736_v44, %v2738_v8  ;;  %v2751_v20 = vsel %vm2749_vm15, %v2738_v8, %v2740_v52 }
 0x282   :  { %4489 = vrot.lane.b32.xlu0 %v16577_v45, %s15908_s29  ;;  %4487 = vrot.lane.b32.xlu1 %v16579_v55, %s15908_s29  ;;  %v2768_v58 = vsel %vm2286_vm11, %v2751_v20, 0 }
 0x283   :  { %14914 = vmatmul.mubr.msk.bf16.vlgmr.msra.gmra.mrb[84].mxu0 %vm2360_vm13, %v2302_v30  ;;  %14917 = vmatprep.subr.msk.bf16.mxu0 %vm2286_vm11, %v2750_v59 }
 0x284   :  { %2783 = vmatpush1.bf16.msra.mxu0 %v2762_v41  ;;  %v2744_v54 = vpop.permute.xlu0 %2743  ;;  %v2742_v49 = vpop.permute.xlu1 %2741  ;;  %2814 = vmatprep.mubr.bf16.mxu0 %v19917_v3 }
 0x285   :  { %v2752_v56 = vsel %vm2749_vm15, %v2740_v52, %v2742_v49  ;;  %v2753_v12 = vsel %vm2749_vm15, %v2742_v49, %v2744_v54 }
 0x286   :  { %4493 = vrot.lane.b32.xlu0 %v16585_v5, %s15908_s29  ;;  %4491 = vrot.lane.b32.xlu1 %v16587_v57, %s15908_s29  ;;  %v2774_v16 = vsel %vm2286_vm11, %v2753_v12, 0  ;;  %s15914_s29 = smov 88  }
 0x287   :  { %15503 = vmatmul.mubr.msk.bf16.vlgmr.msra.gmra.mrb[84].mxu1 %vm2360_vm13, %v2302_v30  ;;  %14919 = vmatprep.subr.msk.bf16.mxu1 %vm2286_vm11, %v2752_v56 }
 0x288   :  { %2824 = vmatpush1.bf16.msra.mxu1 %v2768_v58  ;;  %v2748_v53 = vpop.permute.xlu0 %2747  ;;  %v2746_v60 = vpop.permute.xlu1 %2745  ;;  %2855 = vmatprep.mubr.bf16.mxu1 %v19917_v3 }
 0x289   :  { %v2754_v15 = vsel %vm2749_vm15, %v2744_v54, %v2746_v60  ;;  %15506 = vmatprep.subr.bf16.mxu1 %v19919_v28  ;;  %v2755_v17 = vsel %vm2749_vm15, %v2746_v60, %v2748_v53  ;;  %v14932_v54 = vld [vmem:[%s19983_s30 + $0x10] sm:$0xf]  ;;  %vm4495_vm15 = vcmask 15360  }
 0x28a   :  { %4702 = vrot.lane.b32.xlu0 %v16569_v34, %s15894_s11  ;;  %4700 = vrot.lane.b32.xlu1 %v16549_v32, %s15894_s11  ;;  %v2780_v7 = vsel %vm2286_vm11, %v2755_v17, 0 }
 0x28b   :  { %14918 = vmatmul.mubr.msk.bf16.vlgmr.msra.gmra.mrb[88].mxu0 %vm2360_vm13, %v14916_v61  ;;  %14921 = vmatprep.subr.msk.bf16.mxu0 %vm2286_vm11, %v2754_v15 }
 0x28c   :  { %2865 = vmatpush1.bf16.msra.mxu0 %v2774_v16  ;;  %v2957_v22 = vpop.permute.xlu0 %2956  ;;  %v2955_v23 = vpop.permute.xlu1 %2954  ;;  %2896 = vmatprep.mubr.bf16.mxu0 %v19917_v3 }
 0x28d   :  { %v2969_v24 = vsel %vm2968_vm1, %v2955_v23, %v2957_v22  ;;  %v2977_v42 = vsel %vm2968_vm1, 0, %v2955_v23 }
 0x28e   :  { %4706 = vrot.lane.b32.xlu0 %v16579_v55, %s15894_s11  ;;  %4704 = vrot.lane.b32.xlu1 %v16556_v39, %s15894_s11  ;;  %v2981_v19 = vsel %vm2286_vm11, %v2977_v42, 0 }
 0x28f   :  { %14920 = vmatmul.mubr.msk.bf16.vlgmr.msra.gmra.mrb[88].mxu1 %vm2360_vm13, %v14916_v61  ;;  %14925 = vmatprep.subr.msk.bf16.mxu0 %vm2286_vm11, %v2969_v24 }
 0x290   :  { %15507 = vmatpush3.bf16.msra.mxu1 %v2780_v7  ;;  %v2961_v4 = vpop.permute.xlu0 %2960  ;;  %v2959_v62 = vpop.permute.xlu1 %2958  ;;  %15508 = vmatprep.mubr.msk.bf16.mxu1 %vm15900_vm4, %v19919_v28 }
 0x291   :  { %v2971_v6 = vsel %vm2968_vm1, %v2959_v62, %v2961_v4  ;;  %v2970_v46 = vsel %vm2968_vm1, %v2957_v22, %v2959_v62 }
 0x292   :  { %4710 = vrot.lane.b32.xlu0 %v16587_v57, %s15894_s11  ;;  %4708 = vrot.lane.b32.xlu1 %v16577_v45, %s15894_s11  ;;  %v2987_v26 = vsel %vm2286_vm11, %v2970_v46, 0  ;;  %v14940_v46 = vld [vmem:[%s19983_s30 + $0x14] sm:$0xf] }
 0x293   :  { %14922 = vmatmul.mubr.msk.bf16.vlgmr.msra.gmra.mrb[92].mxu0 %vm2360_vm13, %v14916_v61  ;;  %14927 = vmatprep.subr.msk.bf16.mxu1 %vm2286_vm11, %v2971_v6 }
 0x294   :  { %3002 = vmatpush1.bf16.msra.mxu0 %v2981_v19  ;;  %v2965_v47 = vpop.permute.xlu0 %2964  ;;  %v2963_v21 = vpop.permute.xlu1 %2962  ;;  %3033 = vmatprep.mubr.bf16.mxu0 %v19917_v3 }
 0x295   :  { %v2973_v25 = vsel %vm2968_vm1, %v2963_v21, %v2965_v47  ;;  %v2972_v27 = vsel %vm2968_vm1, %v2961_v4, %v2963_v21 }
 0x296   :  { %5113 = vrot.lane.b32.xlu0 %v16549_v32, %s15895_s4  ;;  %4712 = vrot.lane.b32.xlu1 %v16585_v5, %s15894_s11  ;;  %v2993_v36 = vsel %vm2286_vm11, %v2972_v27, 0 }
 0x297   :  { %15509 = vmatmul.mubr.msk.bf16.vlgmr.msra.gmra.mrb[92].mxu1 %vm2360_vm13, %v14916_v61  ;;  %14929 = vmatprep.subr.msk.bf16.mxu0 %vm2286_vm11, %v2973_v25 }
 0x298   :  { %3043 = vmatpush1.bf16.msra.mxu1 %v2987_v26  ;;  %v3174_v31 = vpop.permute.xlu0 %3173  ;;  %v2967_v33 = vpop.permute.xlu1 %2966  ;;  %3074 = vmatprep.mubr.bf16.mxu1 %v19917_v3 }
 0x299   :  { %15512 = vmatprep.subr.bf16.mxu1 %v19919_v28  ;;  %v2974_v14 = vsel %vm2968_vm1, %v2965_v47, %v2967_v33  ;;  %v3196_v40 = vsel %vm3187_vm2, 0, %v3174_v31  ;;  %vm5344_vm1 = vcmask 1031168  }
 0x29a   :  { %5117 = vrot.lane.b32.xlu0 %v16556_v39, %s15895_s4  ;;  %5115 = vrot.lane.b32.xlu1 %v16569_v34, %s15895_s4  ;;  %v2999_v30 = vsel %vm2286_vm11, %v2974_v14, 0  ;;  %v3200_v35 = vsel %vm2286_vm11, %v3196_v40, 0 }
 0x29b   :  { %14926 = vmatmul.mubr.msk.bf16.vlgmr.msra.gmra.mrb[96].mxu0 %vm2360_vm13, %v14924_v18 }
 0x29c   :  { %3084 = vmatpush1.bf16.msra.mxu0 %v2993_v36  ;;  %v3178_v37 = vpop.permute.xlu0 %3177  ;;  %v3176_v38 = vpop.permute.xlu1 %3175  ;;  %3115 = vmatprep.mubr.bf16.mxu0 %v19917_v3 }
 0x29d   :  { %v3188_v29 = vsel %vm3187_vm2, %v3174_v31, %v3176_v38  ;;  %v3189_v11 = vsel %vm3187_vm2, %v3176_v38, %v3178_v37 }
 0x29e   :  { %5121 = vrot.lane.b32.xlu0 %v16577_v45, %s15895_s4  ;;  %5119 = vrot.lane.b32.xlu1 %v16579_v55, %s15895_s4  ;;  %v3206_v8 = vsel %vm2286_vm11, %v3189_v11, 0  ;;  %v14948_v11 = vld [vmem:[%s19983_s30 + $0x18] sm:$0xf] }
 0x29f   :  { %14928 = vmatmul.mubr.msk.bf16.vlgmr.msra.gmra.mrb[96].mxu1 %vm2360_vm13, %v14924_v18  ;;  %14933 = vmatprep.subr.msk.bf16.mxu0 %vm2286_vm11, %v3188_v29 }
 0x2a0   :  { %15513 = vmatpush3.bf16.msra.mxu1 %v2999_v30  ;;  %v3182_v10 = vpop.permute.xlu0 %3181  ;;  %v3180_v43 = vpop.permute.xlu1 %3179  ;;  %15514 = vmatprep.mubr.msk.bf16.mxu1 %vm15900_vm4, %v19919_v28 }
 0x2a1   :  { %v3190_v44 = vsel %vm3187_vm2, %v3178_v37, %v3180_v43  ;;  %v3191_v59 = vsel %vm3187_vm2, %v3180_v43, %v3182_v10 }
 0x2a2   :  { %5125 = vrot.lane.b32.xlu0 %v16585_v5, %s15895_s4  ;;  %5123 = vrot.lane.b32.xlu1 %v16587_v57, %s15895_s4  ;;  %v3212_v56 = vsel %vm2286_vm11, %v3191_v59, 0 }
 0x2a3   :  { %14930 = vmatmul.mubr.msk.bf16.vlgmr.msra.gmra.mrb[100].mxu0 %vm2360_vm13, %v14924_v18  ;;  %14935 = vmatprep.subr.msk.bf16.mxu1 %vm2286_vm11, %v3190_v44 }
 0x2a4   :  { %3221 = vmatpush1.bf16.msra.mxu0 %v3200_v35  ;;  %v3186_v48 = vpop.permute.xlu0 %3185  ;;  %v3184_v51 = vpop.permute.xlu1 %3183  ;;  %3252 = vmatprep.mubr.bf16.mxu0 %v19917_v3 }
 0x2a5   :  { %v3192_v52 = vsel %vm3187_vm2, %v3182_v10, %v3184_v51  ;;  %v3193_v58 = vsel %vm3187_vm2, %v3184_v51, %v3186_v48  ;;  %vm5563_vm2 = vcmask 900096  }
 0x2a6   :  { %5332 = vrot.lane.b32.xlu0 %v16569_v34, %s15909_s15  ;;  %5330 = vrot.lane.b32.xlu1 %v16549_v32, %s15909_s15  ;;  %v3218_v61 = vsel %vm2286_vm11, %v3193_v58, 0 }
 0x2a7   :  { %15515 = vmatmul.mubr.msk.bf16.vlgmr.msra.gmra.mrb[100].mxu1 %vm2360_vm13, %v14924_v18  ;;  %14937 = vmatprep.subr.msk.bf16.mxu0 %vm2286_vm11, %v3192_v52 }
 0x2a8   :  { %3262 = vmatpush1.bf16.msra.mxu1 %v3206_v8  ;;  %v3395_v41 = vpop.permute.xlu0 %3394  ;;  %v3393_v20 = vpop.permute.xlu1 %3392  ;;  %3293 = vmatprep.mubr.bf16.mxu1 %v19917_v3 }
 0x2a9   :  { %15518 = vmatprep.subr.bf16.mxu1 %v19919_v28  ;;  %v3407_v49 = vsel %vm3406_vm12, %v3393_v20, %v3395_v41  ;;  %v3415_v15 = vsel %vm3406_vm12, 0, %v3393_v20 }
 0x2aa   :  { %5336 = vrot.lane.b32.xlu0 %v16579_v55, %s15909_s15  ;;  %5334 = vrot.lane.b32.xlu1 %v16556_v39, %s15909_s15  ;;  %v3419_v23 = vsel %vm2286_vm11, %v3415_v15, 0 }
 0x2ab   :  { %14934 = vmatmul.mubr.msk.bf16.vlgmr.msra.gmra.mrb[104].mxu0 %vm2360_vm13, %v14932_v54 }
 0x2ac   :  { %3303 = vmatpush1.bf16.msra.mxu0 %v3212_v56  ;;  %v3399_v12 = vpop.permute.xlu0 %3398  ;;  %v3397_v53 = vpop.permute.xlu1 %3396  ;;  %3334 = vmatprep.mubr.bf16.mxu0 %v19917_v3 }
 0x2ad   :  { %14941 = vmatprep.subr.msk.bf16.mxu0 %vm2286_vm11, %v3407_v49  ;;  %v3409_v60 = vsel %vm3406_vm12, %v3397_v53, %v3399_v12  ;;  %v3408_v24 = vsel %vm3406_vm12, %v3395_v41, %v3397_v53 }
 0x2ae   :  { %5340 = vrot.lane.b32.xlu0 %v16587_v57, %s15909_s15  ;;  %5338 = vrot.lane.b32.xlu1 %v16577_v45, %s15909_s15  ;;  %v3425_v4 = vsel %vm2286_vm11, %v3408_v24, 0 }
 0x2af   :  { %14936 = vmatmul.mubr.msk.bf16.vlgmr.msra.gmra.mrb[104].mxu1 %vm2360_vm13, %v14932_v54 }
 0x2b0   :  { %15519 = vmatpush3.bf16.msra.mxu1 %v3218_v61  ;;  %v3403_v16 = vpop.permute.xlu0 %3402  ;;  %v3401_v17 = vpop.permute.xlu1 %3400  ;;  %15520 = vmatprep.mubr.msk.bf16.mxu1 %vm15900_vm4, %v19919_v28 }
 0x2b1   :  { %14943 = vmatprep.subr.msk.bf16.mxu1 %vm2286_vm11, %v3409_v60  ;;  %v3411_v22 = vsel %vm3406_vm12, %v3401_v17, %v3403_v16  ;;  %v3410_v62 = vsel %vm3406_vm12, %v3399_v12, %v3401_v17 }
 0x2b2   :  { %5549 = vrot.lane.b32.xlu0 %v16549_v32, %s15910_s10  ;;  %5342 = vrot.lane.b32.xlu1 %v16585_v5, %s15909_s15  ;;  %v3431_v21 = vsel %vm2286_vm11, %v3410_v62, 0  ;;  %s15911_s15 = smov 106  }
 0x2b3   :  { %14938 = vmatmul.mubr.msk.bf16.vlgmr.msra.gmra.mrb[108].mxu0 %vm2360_vm13, %v14932_v54 }
 0x2b4   :  { %3440 = vmatpush1.bf16.msra.mxu0 %v3419_v23  ;;  %v3612_v7 = vpop.permute.xlu0 %3611  ;;  %v3405_v42 = vpop.permute.xlu1 %3404  ;;  %3471 = vmatprep.mubr.bf16.mxu0 %v19917_v3  ;;  %v14956_v23 = vld [vmem:[%s19983_s30 + $0x1c] sm:$0xf] }
 0x2b5   :  { %14945 = vmatprep.subr.msk.bf16.mxu0 %vm2286_vm11, %v3411_v22  ;;  %v3412_v25 = vsel %vm3406_vm12, %v3403_v16, %v3405_v42  ;;  %v3632_v18 = vsel %vm127_vm3, 0, %v3612_v7  ;;  %vm6433_vm12 = vcmask 867328  }
 0x2b6   :  { %5553 = vrot.lane.b32.xlu0 %v16556_v39, %s15910_s10  ;;  %5551 = vrot.lane.b32.xlu1 %v16569_v34, %s15910_s10  ;;  %v3437_v33 = vsel %vm2286_vm11, %v3412_v25, 0  ;;  %v3636_v38 = vsel %vm2286_vm11, %v3632_v18, 0 }
 0x2b7   :  { %15521 = vmatmul.mubr.msk.bf16.vlgmr.msra.gmra.mrb[108].mxu1 %vm2360_vm13, %v14932_v54 }
 0x2b8   :  { %3481 = vmatpush1.bf16.msra.mxu1 %v3425_v4  ;;  %v3616_v6 = vpop.permute.xlu0 %3615  ;;  %v3614_v19 = vpop.permute.xlu1 %3613  ;;  %3512 = vmatprep.mubr.bf16.mxu1 %v19917_v3 }
 0x2b9   :  { %15524 = vmatprep.subr.bf16.mxu1 %v19919_v28  ;;  %v3625_v47 = vsel %vm127_vm3, %v3612_v7, %v3614_v19  ;;  %v3626_v29 = vsel %vm127_vm3, %v3614_v19, %v3616_v6 }
 0x2ba   :  { %5557 = vrot.lane.b32.xlu0 %v16577_v45, %s15910_s10  ;;  %5555 = vrot.lane.b32.xlu1 %v16579_v55, %s15910_s10  ;;  %v3642_v10 = vsel %vm2286_vm11, %v3626_v29, 0 }
 0x2bb   :  { %14942 = vmatmul.mubr.msk.bf16.vlgmr.msra.gmra.mrb[112].mxu0 %vm2360_vm13, %v14940_v46 }
 0x2bc   :  { %3522 = vmatpush1.bf16.msra.mxu0 %v3431_v21  ;;  %v3620_v26 = vpop.permute.xlu0 %3619  ;;  %v3618_v27 = vpop.permute.xlu1 %3617  ;;  %3553 = vmatprep.mubr.bf16.mxu0 %v19917_v3 }
 0x2bd   :  { %14949 = vmatprep.subr.msk.bf16.mxu0 %vm2286_vm11, %v3625_v47  ;;  %v3627_v31 = vsel %vm127_vm3, %v3616_v6, %v3618_v27  ;;  %v3628_v43 = vsel %vm127_vm3, %v3618_v27, %v3620_v26 }
 0x2be   :  { %5561 = vrot.lane.b32.xlu0 %v16585_v5, %s15910_s10  ;;  %5559 = vrot.lane.b32.xlu1 %v16587_v57, %s15910_s10  ;;  %v3648_v48 = vsel %vm2286_vm11, %v3628_v43, 0  ;;  %s15912_s10 = smov 90  }
 0x2bf   :  { %14944 = vmatmul.mubr.msk.bf16.vlgmr.msra.gmra.mrb[112].mxu1 %vm2360_vm13, %v14940_v46 }
 0x2c0   :  { %15525 = vmatpush3.bf16.msra.mxu1 %v3437_v33  ;;  %v3624_v36 = vpop.permute.xlu0 %3623  ;;  %v3622_v14 = vpop.permute.xlu1 %3621  ;;  %15526 = vmatprep.mubr.msk.bf16.mxu1 %vm15900_vm4, %v19919_v28 }
 0x2c1   :  { %14951 = vmatprep.subr.msk.bf16.mxu1 %vm2286_vm11, %v3627_v31  ;;  %v3629_v37 = vsel %vm127_vm3, %v3620_v26, %v3622_v14  ;;  %v3630_v51 = vsel %vm127_vm3, %v3622_v14, %v3624_v36 }
 0x2c2   :  { %5770 = vrot.lane.b32.xlu0 %v16569_v34, %s15896_s1  ;;  %5768 = vrot.lane.b32.xlu1 %v16549_v32, %s15896_s1  ;;  %v3654_v41 = vsel %vm2286_vm11, %v3630_v51, 0 }
 0x2c3   :  { %14946 = vmatmul.mubr.msk.bf16.vlgmr.msra.gmra.mrb[116].mxu0 %vm2360_vm13, %v14940_v46 }
 0x2c4   :  { %3657 = vmatpush1.bf16.msra.mxu0 %v3636_v38  ;;  %v3831_v30 = vpop.permute.xlu0 %3830  ;;  %v3829_v40 = vpop.permute.xlu1 %3828  ;;  %3688 = vmatprep.mubr.bf16.mxu0 %v19917_v3  ;;  %v14964_v38 = vld [vmem:[%s19983_s30 + $0x20] sm:$0xf] }
 0x2c5   :  { %14953 = vmatprep.subr.msk.bf16.mxu0 %vm2286_vm11, %v3629_v37  ;;  %v3842_v52 = vsel %vm154_vm0, %v3829_v40, %v3831_v30  ;;  %v3849_v20 = vsel %vm154_vm0, 0, %v3829_v40 }
 0x2c6   :  { %5774 = vrot.lane.b32.xlu0 %v16579_v55, %s15896_s1  ;;  %5772 = vrot.lane.b32.xlu1 %v16556_v39, %s15896_s1  ;;  %v3853_v58 = vsel %vm2286_vm11, %v3849_v20, 0 }
 0x2c7   :  { %15527 = vmatmul.mubr.msk.bf16.vlgmr.msra.gmra.mrb[116].mxu1 %vm2360_vm13, %v14940_v46 }
 0x2c8   :  { %3698 = vmatpush1.bf16.msra.mxu1 %v3642_v10  ;;  %v3835_v44 = vpop.permute.xlu0 %3834  ;;  %v3833_v35 = vpop.permute.xlu1 %3832  ;;  %3729 = vmatprep.mubr.bf16.mxu1 %v19917_v3 }
 0x2c9   :  { %15530 = vmatprep.subr.bf16.mxu1 %v19919_v28  ;;  %v3844_v54 = vsel %vm154_vm0, %v3833_v35, %v3835_v44  ;;  %v3843_v12 = vsel %vm154_vm0, %v3831_v30, %v3833_v35 }
 0x2ca   :  { %5778 = vrot.lane.b32.xlu0 %v16587_v57, %s15896_s1  ;;  %5776 = vrot.lane.b32.xlu1 %v16577_v45, %s15896_s1  ;;  %v3859_v15 = vsel %vm2286_vm11, %v3843_v12, 0  ;;  %v14972_v12 = vld [vmem:[%s19983_s30 + $0x24] sm:$0xf] }
 0x2cb   :  { %14950 = vmatmul.mubr.msk.bf16.vlgmr.msra.gmra.mrb[120].mxu0 %vm2360_vm13, %v14948_v11 }
 0x2cc   :  { %3739 = vmatpush1.bf16.msra.mxu0 %v3648_v48  ;;  %v3839_v8 = vpop.permute.xlu0 %3838  ;;  %v3837_v59 = vpop.permute.xlu1 %3836  ;;  %3770 = vmatprep.mubr.bf16.mxu0 %v19917_v3 }
 0x2cd   :  { %14957 = vmatprep.subr.msk.bf16.mxu0 %vm2286_vm11, %v3842_v52  ;;  %v3846_v53 = vsel %vm154_vm0, %v3837_v59, %v3839_v8  ;;  %v3845_v16 = vsel %vm154_vm0, %v3835_v44, %v3837_v59 }
 0x2ce   :  { %5985 = vrot.lane.b32.xlu0 %v16549_v32, %s15897_s27  ;;  %5780 = vrot.lane.b32.xlu1 %v16585_v5, %s15896_s1  ;;  %v3865_v24 = vsel %vm2286_vm11, %v3845_v16, 0 }
 0x2cf   :  { %14952 = vmatmul.mubr.msk.bf16.vlgmr.msra.gmra.mrb[120].mxu1 %vm2360_vm13, %v14948_v11 }
 0x2d0   :  { %15531 = vmatpush3.bf16.msra.mxu1 %v3654_v41  ;;  %v4046_v49 = vpop.permute.xlu0 %4045  ;;  %v3841_v56 = vpop.permute.xlu1 %3840  ;;  %15532 = vmatprep.mubr.msk.bf16.mxu1 %vm15900_vm4, %v19919_v28 }
 0x2d1   :  { %14959 = vmatprep.subr.msk.bf16.mxu1 %vm2286_vm11, %v3844_v54  ;;  %v3847_v7 = vsel %vm154_vm0, %v3839_v8, %v3841_v56  ;;  %v4066_v19 = vsel %vm554_vm5, 0, %v4046_v49 }
 0x2d2   :  { %5989 = vrot.lane.b32.xlu0 %v16556_v39, %s15897_s27  ;;  %5987 = vrot.lane.b32.xlu1 %v16569_v34, %s15897_s27  ;;  %v3871_v6 = vsel %vm2286_vm11, %v3847_v7, 0  ;;  %v4070_v25 = vsel %vm2286_vm11, %v4066_v19, 0 }
 0x2d3   :  { %14954 = vmatmul.mubr.msk.bf16.vlgmr.msra.gmra.mrb[124].mxu0 %vm2360_vm13, %v14948_v11 }
 0x2d4   :  { %3874 = vmatpush1.bf16.msra.mxu0 %v3853_v58  ;;  %v4050_v60 = vpop.permute.xlu0 %4049  ;;  %v4048_v61 = vpop.permute.xlu1 %4047  ;;  %3905 = vmatprep.mubr.bf16.mxu0 %v19917_v3 }
 0x2d5   :  { %14961 = vmatprep.subr.msk.bf16.mxu0 %vm2286_vm11, %v3846_v53  ;;  %v4059_v42 = vsel %vm554_vm5, %v4046_v49, %v4048_v61  ;;  %v4060_v26 = vsel %vm554_vm5, %v4048_v61, %v4050_v60 }
 0x2d6   :  { %5993 = vrot.lane.b32.xlu0 %v16577_v45, %s15897_s27  ;;  %5991 = vrot.lane.b32.xlu1 %v16579_v55, %s15897_s27  ;;  %v4076_v18 = vsel %vm2286_vm11, %v4060_v26, 0  ;;  %v14980_v26 = vld [vmem:[%s19983_s30 + $0x28] sm:$0xf] }
 0x2d7   :  { %15533 = vmatmul.mubr.msk.bf16.vlgmr.msra.gmra.mrb[124].mxu1 %vm2360_vm13, %v14948_v11 }
 0x2d8   :  { %3915 = vmatpush1.bf16.msra.mxu1 %v3859_v15  ;;  %v4054_v17 = vpop.permute.xlu0 %4053  ;;  %v4052_v22 = vpop.permute.xlu1 %4051  ;;  %3946 = vmatprep.mubr.bf16.mxu1 %v19917_v3 }
 0x2d9   :  { %15536 = vmatprep.subr.bf16.mxu1 %v19919_v28  ;;  %v4061_v46 = vsel %vm554_vm5, %v4050_v60, %v4052_v22  ;;  %v4062_v36 = vsel %vm554_vm5, %v4052_v22, %v4054_v17 }
 0x2da   :  { %5997 = vrot.lane.b32.xlu0 %v16585_v5, %s15897_s27  ;;  %5995 = vrot.lane.b32.xlu1 %v16587_v57, %s15897_s27  ;;  %v4082_v29 = vsel %vm2286_vm11, %v4062_v36, 0 }
 0x2db   :  { %14958 = vmatmul.mubr.msk.bf16.vlgmr.msra.gmra.mrb[128].mxu0 %vm2360_vm13, %v14956_v23 }
 0x2dc   :  { %3956 = vmatpush1.bf16.msra.mxu0 %v3865_v24  ;;  %v4058_v4 = vpop.permute.xlu0 %4057  ;;  %v4056_v62 = vpop.permute.xlu1 %4055  ;;  %3987 = vmatprep.mubr.bf16.mxu0 %v19917_v3 }
 0x2dd   :  { %14965 = vmatprep.subr.msk.bf16.mxu0 %vm2286_vm11, %v4059_v42  ;;  %v4063_v27 = vsel %vm554_vm5, %v4054_v17, %v4056_v62  ;;  %v4064_v30 = vsel %vm554_vm5, %v4056_v62, %v4058_v4 }
 0x2de   :  { %6204 = vrot.lane.b32.xlu0 %v16569_v34, %s15898_s3  ;;  %6202 = vrot.lane.b32.xlu1 %v16549_v32, %s15898_s3  ;;  %v4088_v44 = vsel %vm2286_vm11, %v4064_v30, 0 }
 0x2df   :  { %14960 = vmatmul.mubr.msk.bf16.vlgmr.msra.gmra.mrb[128].mxu1 %vm2360_vm13, %v14956_v23 }
 0x2e0   :  { %15537 = vmatpush3.bf16.msra.mxu1 %v3871_v6  ;;  %v4265_v47 = vpop.permute.xlu0 %4264  ;;  %v4263_v21 = vpop.permute.xlu1 %4262  ;;  %15538 = vmatprep.mubr.msk.bf16.mxu1 %vm15900_vm4, %v19919_v28 }
 0x2e1   :  { %14967 = vmatprep.subr.msk.bf16.mxu1 %vm2286_vm11, %v4061_v46  ;;  %v4277_v40 = vsel %vm4276_vm14, %v4263_v21, %v4265_v47  ;;  %v4285_v35 = vsel %vm4276_vm14, 0, %v4263_v21 }
 0x2e2   :  { %6208 = vrot.lane.b32.xlu0 %v16579_v55, %s15898_s3  ;;  %6206 = vrot.lane.b32.xlu1 %v16556_v39, %s15898_s3  ;;  %v4289_v52 = vsel %vm2286_vm11, %v4285_v35, 0 }
 0x2e3   :  { %14962 = vmatmul.mubr.msk.bf16.vlgmr.msra.gmra.mrb[132].mxu0 %vm2360_vm13, %v14956_v23 }
 0x2e4   :  { %4091 = vmatpush1.bf16.msra.mxu0 %v4070_v25  ;;  %v4269_v31 = vpop.permute.xlu0 %4268  ;;  %v4267_v33 = vpop.permute.xlu1 %4266  ;;  %4122 = vmatprep.mubr.bf16.mxu0 %v19917_v3 }
 0x2e5   :  { %14969 = vmatprep.subr.msk.bf16.mxu0 %vm2286_vm11, %v4063_v27  ;;  %v4279_v11 = vsel %vm4276_vm14, %v4267_v33, %v4269_v31  ;;  %v4278_v8 = vsel %vm4276_vm14, %v4265_v47, %v4267_v33 }
 0x2e6   :  { %6212 = vrot.lane.b32.xlu0 %v16587_v57, %s15898_s3  ;;  %6210 = vrot.lane.b32.xlu1 %v16577_v45, %s15898_s3  ;;  %v4295_v54 = vsel %vm2286_vm11, %v4278_v8, 0  ;;  %v14988_v8 = vld [vmem:[%s19983_s30 + $0x2c] sm:$0xf] }
 0x2e7   :  { %15539 = vmatmul.mubr.msk.bf16.vlgmr.msra.gmra.mrb[132].mxu1 %vm2360_vm13, %v14956_v23 }
 0x2e8   :  { %4132 = vmatpush1.bf16.msra.mxu1 %v4076_v18  ;;  %v4273_v14 = vpop.permute.xlu0 %4272  ;;  %v4271_v37 = vpop.permute.xlu1 %4270  ;;  %4163 = vmatprep.mubr.bf16.mxu1 %v19917_v3 }
 0x2e9   :  { %15542 = vmatprep.subr.bf16.mxu1 %v19919_v28  ;;  %v4281_v59 = vsel %vm4276_vm14, %v4271_v37, %v4273_v14  ;;  %v4280_v49 = vsel %vm4276_vm14, %v4269_v31, %v4271_v37 }
 0x2ea   :  { %6419 = vrot.lane.b32.xlu0 %v16549_v32, %s15911_s15  ;;  %6214 = vrot.lane.b32.xlu1 %v16585_v5, %s15898_s3  ;;  %v4301_v53 = vsel %vm2286_vm11, %v4280_v49, 0 }
 0x2eb   :  { %14966 = vmatmul.mubr.msk.bf16.vlgmr.msra.gmra.mrb[136].mxu0 %vm2360_vm13, %v14964_v38 }
 0x2ec   :  { %4173 = vmatpush1.bf16.msra.mxu0 %v4082_v29  ;;  %v4482_v10 = vpop.permute.xlu0 %4481  ;;  %v4275_v43 = vpop.permute.xlu1 %4274  ;;  %4204 = vmatprep.mubr.bf16.mxu0 %v19917_v3 }
 0x2ed   :  { %14973 = vmatprep.subr.msk.bf16.mxu0 %vm2286_vm11, %v4277_v40  ;;  %v4282_v60 = vsel %vm4276_vm14, %v4273_v14, %v4275_v43  ;;  %v4504_v22 = vsel %vm4495_vm15, 0, %v4482_v10  ;;  %vm6652_vm14 = vcmask 736256  }
 0x2ee   :  { %6423 = vrot.lane.b32.xlu0 %v16556_v39, %s15911_s15  ;;  %6421 = vrot.lane.b32.xlu1 %v16569_v34, %s15911_s15  ;;  %v4307_v17 = vsel %vm2286_vm11, %v4282_v60, 0  ;;  %v4508_v42 = vsel %vm2286_vm11, %v4504_v22, 0  ;;  %v4933_v22 = vsel %vm2286_vm11, %v16577_v45, 0 }
 0x2ef   :  { %14968 = vmatmul.mubr.msk.bf16.vlgmr.msra.gmra.mrb[136].mxu1 %vm2360_vm13, %v14964_v38 }
 0x2f0   :  { %15543 = vmatpush3.bf16.msra.mxu1 %v4088_v44  ;;  %v4486_v48 = vpop.permute.xlu0 %4485  ;;  %v4484_v51 = vpop.permute.xlu1 %4483  ;;  %15544 = vmatprep.mubr.msk.bf16.mxu1 %vm15900_vm4, %v19919_v28 }
 0x2f1   :  { %14975 = vmatprep.subr.msk.bf16.mxu1 %vm2286_vm11, %v4279_v11  ;;  %v4496_v61 = vsel %vm4495_vm15, %v4482_v10, %v4484_v51  ;;  %v4497_v4 = vsel %vm4495_vm15, %v4484_v51, %v4486_v48 }
 0x2f2   :  { %6427 = vrot.lane.b32.xlu0 %v16577_v45, %s15911_s15  ;;  %6425 = vrot.lane.b32.xlu1 %v16579_v55, %s15911_s15  ;;  %v4514_v46 = vsel %vm2286_vm11, %v4497_v4, 0 }
 0x2f3   :  { %14970 = vmatmul.mubr.msk.bf16.vlgmr.msra.gmra.mrb[140].mxu0 %vm2360_vm13, %v14964_v38 }
 0x2f4   :  { %4310 = vmatpush1.bf16.msra.mxu0 %v4289_v52  ;;  %v4490_v41 = vpop.permute.xlu0 %4489  ;;  %v4488_v20 = vpop.permute.xlu1 %4487  ;;  %4341 = vmatprep.mubr.bf16.mxu0 %v19917_v3 }
 0x2f5   :  { %14977 = vmatprep.subr.msk.bf16.mxu0 %vm2286_vm11, %v4281_v59  ;;  %v4498_v23 = vsel %vm4495_vm15, %v4486_v48, %v4488_v20  ;;  %v4499_v47 = vsel %vm4495_vm15, %v4488_v20, %v4490_v41 }
 0x2f6   :  { %6431 = vrot.lane.b32.xlu0 %v16585_v5, %s15911_s15  ;;  %6429 = vrot.lane.b32.xlu1 %v16587_v57, %s15911_s15  ;;  %v4520_v27 = vsel %vm2286_vm11, %v4499_v47, 0  ;;  %s19984_s15 = sld [smem:[#allocation42_spill]] }
 0x2f7   :  { %15545 = vmatmul.mubr.msk.bf16.vlgmr.msra.gmra.mrb[140].mxu1 %vm2360_vm13, %v14964_v38 }
 0x2f8   :  { %4351 = vmatpush1.bf16.msra.mxu1 %v4295_v54  ;;  %v4494_v56 = vpop.permute.xlu0 %4493  ;;  %v4492_v58 = vpop.permute.xlu1 %4491  ;;  %4382 = vmatprep.mubr.bf16.mxu1 %v19917_v3 }
 0x2f9   :  { %15548 = vmatprep.subr.bf16.mxu1 %v19919_v28  ;;  %v4500_v62 = vsel %vm4495_vm15, %v4490_v41, %v4492_v58  ;;  %v4501_v31 = vsel %vm4495_vm15, %v4492_v58, %v4494_v56  ;;  %vm6871_vm15 = vcmask 728064  }
 0x2fa   :  { %6640 = vrot.lane.b32.xlu0 %v16569_v34, %s15912_s10  ;;  %6638 = vrot.lane.b32.xlu1 %v16549_v32, %s15912_s10  ;;  %v4526_v14 = vsel %vm2286_vm11, %v4501_v31, 0 }
 0x2fb   :  { %14974 = vmatmul.mubr.msk.bf16.vlgmr.msra.gmra.mrb[144].mxu0 %vm2360_vm13, %v14972_v12 }
 0x2fc   :  { %4392 = vmatpush1.bf16.msra.mxu0 %v4301_v53  ;;  %v17074_v15 = vpop.permute.xlu0 %4702  ;;  %v4701_v16 = vpop.permute.xlu1 %4700  ;;  %4423 = vmatprep.mubr.bf16.mxu0 %v19917_v3 }
 0x2fd   :  { %14981 = vmatprep.subr.msk.bf16.mxu0 %vm2286_vm11, %v4496_v61  ;;  %v4714_v33 = vsel %vm773_vm6, %v4701_v16, %v17074_v15  ;;  %v4721_v37 = vsel %vm773_vm6, 0, %v4701_v16  ;;  %v4927_v61 = vsel %vm2286_vm11, %v16556_v39, 0 }
 0x2fe   :  { %6644 = vrot.lane.b32.xlu0 %v16579_v55, %s15912_s10  ;;  %6642 = vrot.lane.b32.xlu1 %v16556_v39, %s15912_s10  ;;  %v4725_v40 = vsel %vm2286_vm11, %v4721_v37, 0 }
 0x2ff   :  { %14976 = vmatmul.mubr.msk.bf16.vlgmr.msra.gmra.mrb[144].mxu1 %vm2360_vm13, %v14972_v12 }
 0x300   :  { %15549 = vmatpush3.bf16.msra.mxu1 %v4307_v17  ;;  %v17086_v24 = vpop.permute.xlu0 %4706  ;;  %v4705_v7 = vpop.permute.xlu1 %4704  ;;  %15550 = vmatprep.mubr.msk.bf16.mxu1 %vm15900_vm4, %v19919_v28  ;;  %v14996_v17 = vld [vmem:[%s19983_s30 + $0x30] sm:$0xf] }
 0x301   :  { %14983 = vmatprep.subr.msk.bf16.mxu1 %vm2286_vm11, %v4498_v23  ;;  %v4716_v38 = vsel %vm773_vm6, %v4705_v7, %v17086_v24  ;;  %v4715_v10 = vsel %vm773_vm6, %v17074_v15, %v4705_v7 }
 0x302   :  { %6648 = vrot.lane.b32.xlu0 %v16587_v57, %s15912_s10  ;;  %6646 = vrot.lane.b32.xlu1 %v16577_v45, %s15912_s10  ;;  %v4731_v11 = vsel %vm2286_vm11, %v4715_v10, 0 }
 0x303   :  { %14978 = vmatmul.mubr.msk.bf16.vlgmr.msra.gmra.mrb[148].mxu0 %vm2360_vm13, %v14972_v12 }
 0x304   :  { %4529 = vmatpush1.bf16.msra.mxu0 %v4508_v42  ;;  %v17099_v6 = vpop.permute.xlu0 %4710  ;;  %v4709_v19 = vpop.permute.xlu1 %4708  ;;  %4560 = vmatprep.mubr.bf16.mxu0 %v19917_v3  ;;  %v4939_v42 = vsel %vm2286_vm11, %v16585_v5, 0 }
 0x305   :  { %14985 = vmatprep.subr.msk.bf16.mxu0 %vm2286_vm11, %v4500_v62  ;;  %v4718_v43 = vsel %vm773_vm6, %v4709_v19, %v17099_v6  ;;  %v4717_v48 = vsel %vm773_vm6, %v17086_v24, %v4709_v19 }
 0x306   :  { %6857 = vrot.lane.b32.xlu0 %v16549_v32, %s15913_s28  ;;  %6650 = vrot.lane.b32.xlu1 %v16585_v5, %s15912_s10  ;;  %v4737_v59 = vsel %vm2286_vm11, %v4717_v48, 0  ;;  %s19993_s10 = sld [smem:[#allocation44_spill]] }
 0x307   :  { %15551 = vmatmul.mubr.msk.bf16.vlgmr.msra.gmra.mrb[148].mxu1 %vm2360_vm13, %v14972_v12  ;;  %v4921_v12 = vsel %vm2286_vm11, %v16549_v32, 0 }
 0x308   :  { %4570 = vmatpush1.bf16.msra.mxu1 %v4514_v46  ;;  %v17110_v21 = vpop.permute.xlu0 %5113  ;;  %v4713_v25 = vpop.permute.xlu1 %4712  ;;  %4601 = vmatprep.mubr.bf16.mxu1 %v19917_v3 }
 0x309   :  { %15554 = vmatprep.subr.bf16.mxu1 %v19919_v28  ;;  %v4719_v41 = vsel %vm773_vm6, %v17099_v6, %v4713_v25 }
 0x30a   :  { %6861 = vrot.lane.b32.xlu0 %v16556_v39, %s15913_s28  ;;  %6859 = vrot.lane.b32.xlu1 %v16569_v34, %s15913_s28  ;;  %v4743_v49 = vsel %vm2286_vm11, %v4719_v41, 0 }
 0x30b   :  { %14982 = vmatmul.mubr.msk.bf16.vlgmr.msra.gmra.mrb[152].mxu0 %vm2360_vm13, %v14980_v26 }
 0x30c   :  { %4611 = vmatpush1.bf16.msra.mxu0 %v4520_v27  ;;  %v17126_v18 = vpop.permute.xlu0 %5117  ;;  %v17128_v36 = vpop.permute.xlu1 %5115  ;;  %4642 = vmatprep.mubr.bf16.mxu0 %v19917_v3 }
 0x30d   :  { %14989 = vmatprep.subr.msk.bf16.mxu0 %vm2286_vm11, %v4714_v33  ;;  %v5128_v23 = vsel %vm1188_vm7, %v17128_v36, %v17126_v18  ;;  %v5127_v4 = vsel %vm1188_vm7, %v17110_v21, %v17128_v36  ;;  %v2294_v33 = vld [vmem:[%s19984_s15] sm:$0xff]  ;;  %s19992_s15 = sld [smem:[#allocation43_spill]] }
 0x30e   :  { %6865 = vrot.lane.b32.xlu0 %v16577_v45, %s15913_s28  ;;  %6863 = vrot.lane.b32.xlu1 %v16579_v55, %s15913_s28  ;;  %v5139_v46 = vsel %vm2286_vm11, %v5127_v4, 0 }
 0x30f   :  { %14984 = vmatmul.mubr.msk.bf16.vlgmr.msra.gmra.mrb[152].mxu1 %vm2360_vm13, %v14980_v26 }
 0x310   :  { %15555 = vmatpush3.bf16.msra.mxu1 %v4526_v14  ;;  %v17141_v29 = vpop.permute.xlu0 %5121  ;;  %v17143_v30 = vpop.permute.xlu1 %5119  ;;  %15556 = vmatprep.mubr.msk.bf16.mxu1 %vm15900_vm4, %v19919_v28 }
 0x311   :  { %14991 = vmatprep.subr.msk.bf16.mxu1 %vm2286_vm11, %v4716_v38  ;;  %v5130_v62 = vsel %vm1188_vm7, %v17143_v30, %v17141_v29  ;;  %v5129_v47 = vsel %vm1188_vm7, %v17126_v18, %v17143_v30 }
 0x312   :  { %6869 = vrot.lane.b32.xlu0 %v16585_v5, %s15913_s28  ;;  %6867 = vrot.lane.b32.xlu1 %v16587_v57, %s15913_s28  ;;  %s15915_s28 = smov 87  }
 0x313   :  { %14986 = vmatmul.mubr.msk.bf16.vlgmr.msra.gmra.mrb[156].mxu0 %vm2360_vm13, %v14980_v26 }
 0x314   :  { %4746 = vmatpush1.bf16.msra.mxu0 %v4725_v40  ;;  %v17158_v44 = vpop.permute.xlu0 %5125  ;;  %v17160_v35 = vpop.permute.xlu1 %5123  ;;  %4777 = vmatprep.mubr.bf16.mxu0 %v19917_v3 }
 0x315   :  { %14993 = vmatprep.subr.msk.bf16.mxu0 %vm2286_vm11, %v4718_v43  ;;  %v5132_v21 = vsel %vm1188_vm7, %v17160_v35, %v17158_v44  ;;  %v5134_v18 = vsel %vm1188_vm7, %v17158_v44, 0 }
 0x316   :  { %7078 = vrot.lane.b32.xlu0 %v16569_v34, %s15914_s29  ;;  %7076 = vrot.lane.b32.xlu1 %v16549_v32, %s15914_s29  ;;  %v5156_v38 = vsel %vm2286_vm11, %v5134_v18, 0 }
 0x317   :  { %15557 = vmatmul.mubr.msk.bf16.vlgmr.msra.gmra.mrb[156].mxu1 %vm2360_vm13, %v14980_v26 }
 0x318   :  { %4787 = vmatpush1.bf16.msra.mxu1 %v4731_v11  ;;  %v17172_v51 = vpop.permute.xlu0 %5332  ;;  %v17174_v52 = vpop.permute.xlu1 %5330  ;;  %4818 = vmatprep.mubr.bf16.mxu1 %v19917_v3 }
 0x319   :  { %15560 = vmatprep.subr.bf16.mxu1 %v19919_v28 }
 0x31a   :  { %7082 = vrot.lane.b32.xlu0 %v16579_v55, %s15914_s29  ;;  %7080 = vrot.lane.b32.xlu1 %v16556_v39, %s15914_s29 }
 0x31b   :  { %14990 = vmatmul.mubr.msk.bf16.vlgmr.msra.gmra.mrb[160].mxu0 %vm2360_vm13, %v14988_v8 }
 0x31c   :  { %4828 = vmatpush1.bf16.msra.mxu0 %v4737_v59  ;;  %v17189_v20 = vpop.permute.xlu0 %5336  ;;  %v17191_v54 = vpop.permute.xlu1 %5334  ;;  %4859 = vmatprep.mubr.bf16.mxu0 %v19917_v3 }
 0x31d   :  { %14997 = vmatprep.subr.msk.bf16.mxu0 %vm2286_vm11, %v16569_v34  ;;  %v5347_v48 = vsel %vm5344_vm1, %v17191_v54, %v17189_v20 }
 0x31e   :  { %7086 = vrot.lane.b32.xlu0 %v16587_v57, %s15914_s29  ;;  %7084 = vrot.lane.b32.xlu1 %v16577_v45, %s15914_s29 }
 0x31f   :  { %14992 = vmatmul.mubr.msk.bf16.vlgmr.msra.gmra.mrb[160].mxu1 %vm2360_vm13, %v14988_v8 }
 0x320   :  { %15561 = vmatpush3.bf16.msra.mxu1 %v4743_v49  ;;  %v17202_v56 = vpop.permute.xlu0 %5340  ;;  %v17204_v58 = vpop.permute.xlu1 %5338  ;;  %15562 = vmatprep.mubr.msk.bf16.mxu1 %vm15900_vm4, %v19919_v28 }
 0x321   :  { %14999 = vmatprep.subr.msk.bf16.mxu1 %vm2286_vm11, %v16579_v55  ;;  %v5348_v40 = vsel %vm5344_vm1, %v17189_v20, %v17204_v58  ;;  %v5364_v20 = vsel %vm2286_vm11, %v5347_v48, 0 }
 0x322   :  { %7295 = vrot.lane.b32.xlu0 %v16549_v32, %s15915_s28  ;;  %7088 = vrot.lane.b32.xlu1 %v16585_v5, %s15914_s29  ;;  %s15916_s29 = smov 86  }
 0x323   :  { %14994 = vmatmul.mubr.msk.bf16.vlgmr.msra.gmra.mrb[164].mxu0 %vm2360_vm13, %v14988_v8 }
 0x324   :  { %4942 = vmatpush1.bf16.msra.mxu0 %v4921_v12  ;;  %v17217_v53 = vpop.permute.xlu0 %5549  ;;  %v17219_v60 = vpop.permute.xlu1 %5342  ;;  %4973 = vmatprep.mubr.bf16.mxu0 %v19917_v3 }
 0x325   :  { %15001 = vmatprep.subr.msk.bf16.mxu0 %vm2286_vm11, %v16587_v57 }
 0x326   :  { %7299 = vrot.lane.b32.xlu0 %v16556_v39, %s15915_s28  ;;  %7297 = vrot.lane.b32.xlu1 %v16569_v34, %s15915_s28 }
 0x327   :  { %15563 = vmatmul.mubr.msk.bf16.vlgmr.msra.gmra.mrb[164].mxu1 %vm2360_vm13, %v14988_v8 }
 0x328   :  { %4983 = vmatpush1.bf16.msra.mxu1 %v4927_v61  ;;  %v17231_v15 = vpop.permute.xlu0 %5553  ;;  %v17233_v16 = vpop.permute.xlu1 %5551  ;;  %5014 = vmatprep.mubr.bf16.mxu1 %v19917_v3 }
 0x329   :  { %15566 = vmatprep.subr.bf16.mxu1 %v19919_v28 }
 0x32a   :  { %7303 = vrot.lane.b32.xlu0 %v16577_v45, %s15915_s28  ;;  %7301 = vrot.lane.b32.xlu1 %v16579_v55, %s15915_s28 }
 0x32b   :  { %14998 = vmatmul.mubr.msk.bf16.vlgmr.msra.gmra.mrb[168].mxu0 %vm2360_vm13, %v14996_v17 }
 0x32c   :  { %5024 = vmatpush1.bf16.msra.mxu0 %v4933_v22  ;;  %v17250_v24 = vpop.permute.xlu0 %5557  ;;  %v17252_v7 = vpop.permute.xlu1 %5555  ;;  %5055 = vmatprep.mubr.bf16.mxu0 %v19917_v3 }
 0x32d   :  { %15005 = vmatprep.subr.msk.bf16.mxu0 %vm2286_vm11, %v5128_v23 }
 0x32e   :  { %7307 = vrot.lane.b32.xlu0 %v16585_v5, %s15915_s28  ;;  %7305 = vrot.lane.b32.xlu1 %v16587_v57, %s15915_s28 }
 0x32f   :  { %15000 = vmatmul.mubr.msk.bf16.vlgmr.msra.gmra.mrb[168].mxu1 %vm2360_vm13, %v14996_v17 }
 0x330   :  { %15567 = vmatpush3.bf16.msra.mxu1 %v4939_v42  ;;  %v17269_v6 = vpop.permute.xlu0 %5561  ;;  %v17271_v19 = vpop.permute.xlu1 %5559  ;;  %15568 = vmatprep.mubr.msk.bf16.mxu1 %vm15900_vm4, %v19919_v28 }
 0x331   :  { %15007 = vmatprep.subr.msk.bf16.mxu1 %vm2286_vm11, %v5130_v62 }
 0x332   :  { %7516 = vrot.lane.b32.xlu0 %v16569_v34, %s15916_s29  ;;  %7514 = vrot.lane.b32.xlu1 %v16549_v32, %s15916_s29  ;;  %v5145_v32 = vsel %vm2286_vm11, %v5129_v47, 0  ;;  %v5131_v34 = vsel %vm1188_vm7, %v17141_v29, %v17160_v35  ;;  %v5345_v29 = vsel %vm5344_vm1, %v17174_v52, %v17172_v51  ;;  %v5350_v52 = vsel %vm5344_vm1, %v17202_v56, %v17219_v60 }
 0x333   :  { %15002 = vmatmul.mubr.msk.bf16.vlgmr.msra.gmra.mrb[172].mxu0 %vm2360_vm13, %v14996_v17  ;;  %v5358_v35 = vsel %vm2286_vm11, %v5345_v29, 0  ;;  %v5565_v47 = vsel %vm5563_vm2, %v17233_v16, %v17231_v15 }
 0x334   :  { %5159 = vmatpush1.bf16.msra.mxu0 %v5139_v46  ;;  %v17288_v25 = vpop.permute.xlu0 %5770  ;;  %v17290_v26 = vpop.permute.xlu1 %5768  ;;  %5190 = vmatprep.mubr.bf16.mxu0 %v19917_v3 }
 0x335   :  { %15009 = vmatprep.subr.msk.bf16.mxu0 %vm2286_vm11, %v5132_v21 }
 0x336   :  { %7520 = vrot.lane.b32.xlu0 %v16579_v55, %s15916_s29  ;;  %7518 = vrot.lane.b32.xlu1 %v16556_v39, %s15916_s29  ;;  %v15004_v55 = vld [vmem:[%s19983_s30 + $0x34] sm:$0xf]  ;;  %v5151_v39 = vsel %vm2286_vm11, %v5131_v34, 0 }
 0x337   :  { %15569 = vmatmul.mubr.msk.bf16.vlgmr.msra.gmra.mrb[172].mxu1 %vm2360_vm13, %v14996_v17  ;;  %v15012_v17 = vld [vmem:[%s19983_s30 + $0x38] sm:$0xf] }
 0x338   :  { %5200 = vmatpush1.bf16.msra.mxu1 %v5145_v32  ;;  %v17303_v27 = vpop.permute.xlu0 %5774  ;;  %v17305_v31 = vpop.permute.xlu1 %5772  ;;  %5231 = vmatprep.mubr.bf16.mxu1 %v19917_v3 }
 0x339   :  { %15572 = vmatprep.subr.bf16.mxu1 %v19919_v28 }
 0x33a   :  { %7524 = vrot.lane.b32.xlu0 %v16587_v57, %s15916_s29  ;;  %7522 = vrot.lane.b32.xlu1 %v16577_v45, %s15916_s29  ;;  %v5346_v57 = vsel %vm5344_vm1, %v17172_v51, %v17191_v54  ;;  %v5349_v54 = vsel %vm5344_vm1, %v17204_v58, %v17202_v56  ;;  %v5353_v58 = vsel %vm5344_vm1, %v17219_v60, 0  ;;  %vm7090_vm1 = vcmask 719872  }
 0x33b   :  { %15006 = vmatmul.mubr.msk.bf16.vlgmr.msra.gmra.mrb[176].mxu0 %vm2360_vm13, %v15004_v55  ;;  %v5370_v56 = vsel %vm2286_vm11, %v5349_v54, 0  ;;  %v5375_v60 = vsel %vm2286_vm11, %v5353_v58, 0 }
 0x33c   :  { %5241 = vmatpush1.bf16.msra.mxu0 %v5151_v39  ;;  %v17326_v36 = vpop.permute.xlu0 %5778  ;;  %v17328_v45 = vpop.permute.xlu1 %5776  ;;  %5272 = vmatprep.mubr.bf16.mxu0 %v19917_v3 }
 0x33d   :  { %15013 = vmatprep.subr.msk.bf16.mxu0 %vm2286_vm11, %v5346_v57 }
 0x33e   :  { %v2418_v14 = vpop.f32.mrb[72].mxu0  ;;  %7733 = vperm.xlu0 %15859, %v2294_v33   ;;  %7526 = vrot.lane.b32.xlu1 %v16585_v5, %s15916_s29  ;;  %v5564_v33 = vsel %vm5563_vm2, %v17217_v53, %v17233_v16 }
 0x33f   :  { %v2420_v37 = vpop.f32.mrb[73].mxu0  ;;  %15008 = vmatmul.mubr.msk.bf16.vlgmr.msra.gmra.mrb[176].mxu1 %vm2360_vm13, %v15004_v55  ;;  %v5577_v16 = vsel %vm2286_vm11, %v5564_v33, 0  ;;  %v5782_v33 = vsel %vm1407_vm8, %v17290_v26, %v17288_v25  ;;  %v5784_v26 = vsel %vm1407_vm8, %v17305_v31, %v17303_v27 }
 0x340   :  { %15573 = vmatpush3.bf16.msra.mxu1 %v5156_v38  ;;  %v2422_v30 = vpop.f32.mrb[74].mxu0  ;;  %v17342_v10 = vpop.permute.xlu0 %5985  ;;  %15574 = vmatprep.mubr.msk.bf16.mxu1 %vm15900_vm4, %v19919_v28  ;;  %v5567_v38 = vsel %vm5563_vm2, %v17252_v7, %v17250_v24 }
 0x341   :  { %15015 = vmatprep.subr.msk.bf16.mxu1 %vm2286_vm11, %v5348_v40  ;;  %v2423_v5 = vpop.f32.mrb[75].mxu0  ;;  %v17347_v43 = vpop.permute.xlu1 %5780 }
 0x342   :  { %v2459_v44 = vpop.f32.mrb[72].mxu1 }
 0x343   :  { %v2461_v11 = vpop.f32.mrb[73].mxu1  ;;  %15010 = vmatmul.mubr.msk.bf16.vlgmr.msra.gmra.mrb[180].mxu0 %vm2360_vm13, %v15004_v55 }
 0x344   :  { %5378 = vmatpush1.bf16.msra.mxu0 %v5358_v35  ;;  %v2463_v51 = vpop.f32.mrb[74].mxu1  ;;  %5409 = vmatprep.mubr.bf16.mxu0 %v19917_v3  ;;  %v17361_v41 = vpop.permute.xlu0 %5989 }
 0x345   :  { %15017 = vmatprep.subr.msk.bf16.mxu0 %vm2286_vm11, %v5350_v52  ;;  %v2464_v8 = vpop.f32.mrb[75].mxu1  ;;  %v17359_v59 = vpop.permute.xlu1 %5987  ;;  %v5569_v51 = vsel %vm5563_vm2, %v17271_v19, %v17269_v6 }
 0x346   :  { %v2500_v49 = vpop.f32.mrb[76].mxu0 }
 0x347   :  { %v2502_v12 = vpop.f32.mrb[77].mxu0  ;;  %15575 = vmatmul.mubr.msk.bf16.vlgmr.msra.gmra.mrb[180].mxu1 %vm2360_vm13, %v15004_v55 }
 0x348   :  { %5419 = vmatpush1.bf16.msra.mxu1 %v5364_v20  ;;  %v2504_v61 = vpop.f32.mrb[78].mxu0  ;;  %5450 = vmatprep.mubr.bf16.mxu1 %v19917_v3  ;;  %v17379_v62 = vpop.permute.xlu0 %5993 }
 0x349   :  { %v2505_v22 = vpop.f32.mrb[79].mxu0  ;;  %v17372_v23 = vpop.permute.xlu1 %5991  ;;  %15578 = vmatprep.subr.bf16.mxu1 %v19919_v28 }
 0x34a   :  { %v2541_v42 = vpop.f32.mrb[76].mxu1  ;;  %v15020_v22 = vld [vmem:[%s19983_s30 + $0x3c] sm:$0xf] }
 0x34b   :  { %v15498_v4 = vpop.f32.mrb[77].mxu1  ;;  %15014 = vmatmul.mubr.msk.bf16.vlgmr.msra.gmra.mrb[184].mxu0 %vm2360_vm13, %v15012_v17 }
 0x34c   :  { %5460 = vmatpush1.bf16.msra.mxu0 %v5370_v56  ;;  %v2544_v46 = vpop.f32.mrb[78].mxu1  ;;  %5491 = vmatprep.mubr.bf16.mxu0 %v19917_v3  ;;  %v17401_v40 = vpop.permute.xlu0 %5997 }
 0x34d   :  { %15021 = vmatprep.subr.msk.bf16.mxu0 %vm2286_vm11, %v5565_v47  ;;  %v15499_v21 = vpop.f32.mrb[79].mxu1  ;;  %v17386_v32 = vpop.permute.xlu1 %5995  ;;  %v5783_v46 = vsel %vm1407_vm8, %v17288_v25, %v17305_v31  ;;  %v5786_v31 = vsel %vm1407_vm8, %v17328_v45, %v17326_v36 }
 0x34e   :  { %v2604_v34 = vpop.f32.mrb[80].mxu0 }
 0x34f   :  { %v2605_v55 = vadd.f32 %v2604_v34, %v2418_v14  ;;  %v2606_v39 = vpop.f32.mrb[81].mxu0  ;;  %15016 = vmatmul.mubr.msk.bf16.vlgmr.msra.gmra.mrb[184].mxu1 %vm2360_vm13, %v15012_v17 }
 0x350   :  { %v2607_v18 = vadd.f32 %v2606_v39, %v2420_v37  ;;  %15579 = vmatpush3.bf16.msra.mxu1 %v5375_v60  ;;  %v2608_v57 = vpop.f32.mrb[82].mxu0  ;;  %15580 = vmatprep.mubr.msk.bf16.mxu1 %vm15900_vm4, %v19919_v28  ;;  %v5566_v37 = vsel %vm5563_vm2, %v17231_v15, %v17252_v7  ;;  %v5568_v7 = vsel %vm5563_vm2, %v17250_v24, %v17271_v19  ;;  %v17424_v4 = vpop.permute.xlu0 %6204  ;;  %v5572_v19 = vsel %vm5563_vm2, %v17269_v6, 0 }
 0x351   :  { %15023 = vmatprep.subr.msk.bf16.mxu1 %vm2286_vm11, %v5567_v38  ;;  %v2609_v14 = vpop.f32.mrb[83].mxu0  ;;  %v17399_v29 = vpop.permute.xlu1 %6202  ;;  %v5583_v15 = vsel %vm2286_vm11, %v5566_v37, 0  ;;  %v5589_v24 = vsel %vm2286_vm11, %v5568_v7, 0  ;;  %v5594_v6 = vsel %vm2286_vm11, %v5572_v19, 0  ;;  %v6000_v19 = vsel %vm1626_vm9, %v17359_v59, %v17361_v41 }
 0x352   :  { %v2645_v30 = vpop.f32.mrb[80].mxu1  ;;  %v5785_v14 = vsel %vm1407_vm8, %v17303_v27, %v17328_v45  ;;  %v5800_v27 = vsel %vm2286_vm11, %v5784_v26, 0  ;;  %v5789_v45 = vsel %vm1407_vm8, %v17347_v43, 0  ;;  %v6004_v26 = vsel %vm1626_vm9, %v17386_v32, %v17401_v40 }
 0x353   :  { %v2646_v5 = vadd.f32 %v2645_v30, %v2459_v44  ;;  %v2647_v53 = vpop.f32.mrb[81].mxu1  ;;  %15018 = vmatmul.mubr.msk.bf16.vlgmr.msra.gmra.mrb[188].mxu0 %vm2360_vm13, %v15012_v17  ;;  %vm7309_vm2 = vcmask 711680  }
 0x354   :  { %v2648_v35 = vadd.f32 %v2647_v53, %v2461_v11  ;;  %5597 = vmatpush1.bf16.msra.mxu0 %v5577_v16  ;;  %v2649_v48 = vpop.f32.mrb[82].mxu1  ;;  %5628 = vmatprep.mubr.bf16.mxu0 %v19917_v3  ;;  %v17438_v34 = vpop.permute.xlu0 %6208  ;;  %v5794_v53 = vsel %vm2286_vm11, %v5782_v33, 0 }
 0x355   :  { %15025 = vmatprep.subr.msk.bf16.mxu0 %vm2286_vm11, %v5569_v51  ;;  %v2650_v44 = vpop.f32.mrb[83].mxu1  ;;  %v17413_v8 = vpop.permute.xlu1 %6206  ;;  %v5787_v51 = vsel %vm1407_vm8, %v17326_v36, %v17347_v43  ;;  %v5806_v36 = vsel %vm2286_vm11, %v5786_v31, 0  ;;  %v5811_v43 = vsel %vm2286_vm11, %v5789_v45, 0  ;;  %v15036_v31 = vld [vmem:[%s19983_s30 + $0x44] sm:$0xf] }
 0x356   :  { %v2686_v52 = vpop.f32.mrb[84].mxu0 }
 0x357   :  { %v2687_v20 = vadd.f32 %v2686_v52, %v2500_v49  ;;  %v2688_v54 = vpop.f32.mrb[85].mxu0  ;;  %15581 = vmatmul.mubr.msk.bf16.vlgmr.msra.gmra.mrb[188].mxu1 %vm2360_vm13, %v15012_v17 }
 0x358   :  { %v2689_v11 = vadd.f32 %v2688_v54, %v2502_v12  ;;  %5638 = vmatpush1.bf16.msra.mxu1 %v5583_v15  ;;  %v2690_v61 = vpop.f32.mrb[86].mxu0  ;;  %5669 = vmatprep.mubr.bf16.mxu1 %v19917_v3  ;;  %v17462_v44 = vpop.permute.xlu0 %6212 }
 0x359   :  { %v2691_v49 = vpop.f32.mrb[87].mxu0  ;;  %15584 = vmatprep.subr.bf16.mxu1 %v19919_v28  ;;  %v17435_v47 = vpop.permute.xlu1 %6210  ;;  %v15028_v61 = vld [vmem:[%s19983_s30 + $0x40] sm:$0xf] }
 0x35a   :  { %v2727_v17 = vpop.f32.mrb[84].mxu1 }
 0x35b   :  { %v2728_v56 = vadd.f32 %v2727_v17, %v2541_v42  ;;  %v15504_v58 = vpop.f32.mrb[85].mxu1  ;;  %15022 = vmatmul.mubr.msk.bf16.vlgmr.msra.gmra.mrb[192].mxu0 %vm2360_vm13, %v15020_v22 }
 0x35c   :  { %5679 = vmatpush1.bf16.msra.mxu0 %v5589_v24  ;;  %v2730_v12 = vpop.f32.mrb[86].mxu1  ;;  %5710 = vmatprep.mubr.bf16.mxu0 %v19917_v3  ;;  %v17477_v17 = vpop.permute.xlu0 %6419 }
 0x35d   :  { %15029 = vmatprep.subr.msk.bf16.mxu0 %vm2286_vm11, %v5783_v46  ;;  %v15505_v42 = vpop.f32.mrb[87].mxu1  ;;  %v17452_v16 = vpop.permute.xlu1 %6214 }
 0x35e   :  { %v2816_v21 = vpop.f32.mrb[88].mxu0 }
 0x35f   :  { %v2945_v39 = vadd.f32 %v2816_v21, %v2605_v55  ;;  %v2818_v60 = vpop.f32.mrb[89].mxu0  ;;  %15024 = vmatmul.mubr.msk.bf16.vlgmr.msra.gmra.mrb[192].mxu1 %vm2360_vm13, %v15020_v22 }
 0x360   :  { %v2946_v57 = vadd.f32 %v2818_v60, %v2607_v18  ;;  %15585 = vmatpush3.bf16.msra.mxu1 %v5594_v6  ;;  %v2820_v38 = vpop.f32.mrb[90].mxu0  ;;  %15586 = vmatprep.mubr.msk.bf16.mxu1 %vm15900_vm4, %v19919_v28  ;;  %v5999_v60 = vsel %vm1626_vm9, %v17342_v10, %v17359_v59  ;;  %v6001_v59 = vsel %vm1626_vm9, %v17361_v41, %v17372_v23 }
 0x361   :  { %15031 = vmatprep.subr.msk.bf16.mxu1 %vm2286_vm11, %v5785_v14  ;;  %v2821_v55 = vpop.f32.mrb[91].mxu0  ;;  %v17474_v49 = vpop.permute.xlu1 %6421  ;;  %v6002_v38 = vsel %vm1626_vm9, %v17372_v23, %v17379_v62  ;;  %v6011_v10 = vsel %vm2286_vm11, %v5999_v60, 0  ;;  %v6017_v41 = vsel %vm2286_vm11, %v6001_v59, 0  ;;  %v6003_v23 = vsel %vm1626_vm9, %v17379_v62, %v17386_v32 }
 0x362   :  { %v2857_v30 = vpop.f32.mrb[88].mxu1  ;;  %v6023_v62 = vsel %vm2286_vm11, %v6003_v23, 0  ;;  %v6006_v32 = vsel %vm1626_vm9, %v17401_v40, 0 }
 0x363   :  { %v2947_v37 = vadd.f32 %v2857_v30, %v2646_v5  ;;  %v2859_v25 = vpop.f32.mrb[89].mxu1  ;;  %15026 = vmatmul.mubr.msk.bf16.vlgmr.msra.gmra.mrb[196].mxu0 %vm2360_vm13, %v15020_v22  ;;  %v6028_v40 = vsel %vm2286_vm11, %v6006_v32, 0 }
 0x364   :  { %v2948_v18 = vadd.f32 %v2859_v25, %v2648_v35  ;;  %5814 = vmatpush1.bf16.msra.mxu0 %v5794_v53  ;;  %v2861_v48 = vpop.f32.mrb[90].mxu1  ;;  %5845 = vmatprep.mubr.bf16.mxu0 %v19917_v3 }
 0x365   :  { %15033 = vmatprep.subr.msk.bf16.mxu0 %vm2286_vm11, %v5787_v51  ;;  %v2862_v5 = vpop.f32.mrb[91].mxu1  ;;  %v17488_v46 = vpop.permute.xlu1 %6425 }
 0x366   :  { %v2898_v52 = vpop.f32.mrb[92].mxu0 }
 0x367   :  { %v2949_v54 = vadd.f32 %v2898_v52, %v2687_v20  ;;  %v2900_v15 = vpop.f32.mrb[93].mxu0  ;;  %15587 = vmatmul.mubr.msk.bf16.vlgmr.msra.gmra.mrb[196].mxu1 %vm2360_vm13, %v15020_v22 }
 0x368   :  { %v2950_v35 = vadd.f32 %v2900_v15, %v2689_v11  ;;  %5855 = vmatpush1.bf16.msra.mxu1 %v5800_v27  ;;  %v2902_v7 = vpop.f32.mrb[94].mxu0  ;;  %5886 = vmatprep.mubr.bf16.mxu1 %v19917_v3 }
 0x369   :  { %v2903_v20 = vpop.f32.mrb[95].mxu0  ;;  %15590 = vmatprep.subr.bf16.mxu1 %v19919_v28  ;;  %v17512_v48 = vpop.permute.xlu1 %6429 }
 0x36a   :  { %v2939_v22 = vpop.f32.mrb[92].mxu1 }
 0x36b   :  { %v2951_v58 = vadd.f32 %v2939_v22, %v2728_v56  ;;  %v15510_v24 = vpop.f32.mrb[93].mxu1  ;;  %15030 = vmatmul.mubr.msk.bf16.vlgmr.msra.gmra.mrb[200].mxu0 %vm2360_vm13, %v15028_v61 }
 0x36c   :  { %5896 = vmatpush1.bf16.msra.mxu0 %v5806_v36  ;;  %v2942_v11 = vpop.f32.mrb[94].mxu1  ;;  %5927 = vmatprep.mubr.bf16.mxu0 %v19917_v3  ;;  %v6217_v24 = vsel %vm1845_vm10, %v17424_v4, %v17413_v8 }
 0x36d   :  { %15037 = vmatprep.subr.msk.bf16.mxu0 %vm2286_vm11, %v6000_v19  ;;  %v15511_v12 = vpop.f32.mrb[95].mxu1 }
 0x36e   :  { %v3035_v56 = vpop.f32.mrb[96].mxu0  ;;  %v6216_v12 = vsel %vm1845_vm10, %v17399_v29, %v17424_v4 }
 0x36f   :  { %v3164_v42 = vadd.f32 %v3035_v56, %v2945_v39  ;;  %v3037_v21 = vpop.f32.mrb[97].mxu0  ;;  %15032 = vmatmul.mubr.msk.bf16.vlgmr.msra.gmra.mrb[200].mxu1 %vm2360_vm13, %v15028_v61  ;;  %v17500_v39 = vpop.permute.xlu0 %6423 }
 0x370   :  { %v3165_v6 = vadd.f32 %v3037_v21, %v2946_v57  ;;  %15591 = vmatpush3.bf16.msra.mxu1 %v5811_v43  ;;  %v3039_v33 = vpop.f32.mrb[98].mxu0  ;;  %15592 = vmatprep.mubr.msk.bf16.mxu1 %vm15900_vm4, %v19919_v28  ;;  %v6219_v43 = vsel %vm1845_vm10, %v17438_v34, %v17435_v47 }
 0x371   :  { %15039 = vmatprep.subr.msk.bf16.mxu1 %vm2286_vm11, %v6002_v38  ;;  %v3040_v14 = vpop.f32.mrb[99].mxu0  ;;  %v6228_v38 = vsel %vm2286_vm11, %v6216_v12, 0 }
 0x372   :  { %v3076_v55 = vpop.f32.mrb[96].mxu1 }
 0x373   :  { %v3166_v30 = vadd.f32 %v3076_v55, %v2947_v37  ;;  %v3078_v53 = vpop.f32.mrb[97].mxu1  ;;  %15034 = vmatmul.mubr.msk.bf16.vlgmr.msra.gmra.mrb[204].mxu0 %vm2360_vm13, %v15028_v61  ;;  %v17515_v5 = vpop.permute.xlu0 %6427 }
 0x374   :  { %v3167_v57 = vadd.f32 %v3078_v53, %v2948_v18  ;;  %6031 = vmatpush1.bf16.msra.mxu0 %v6011_v10  ;;  %v3080_v25 = vpop.f32.mrb[98].mxu1  ;;  %6062 = vmatprep.mubr.bf16.mxu0 %v19917_v3  ;;  %v6221_v10 = vsel %vm1845_vm10, %v17462_v44, %v17452_v16 }
 0x375   :  { %15041 = vmatprep.subr.msk.bf16.mxu0 %vm2286_vm11, %v6004_v26  ;;  %v3081_v37 = vpop.f32.mrb[99].mxu1 }
 0x376   :  { %v3117_v51 = vpop.f32.mrb[100].mxu0 }
 0x377   :  { %v3168_v52 = vadd.f32 %v3117_v51, %v2949_v54  ;;  %v3119_v15 = vpop.f32.mrb[101].mxu0  ;;  %15593 = vmatmul.mubr.msk.bf16.vlgmr.msra.gmra.mrb[204].mxu1 %vm2360_vm13, %v15028_v61  ;;  %v17527_v61 = vpop.permute.xlu1 %6638 }
 0x378   :  { %v3169_v18 = vadd.f32 %v3119_v15, %v2950_v35  ;;  %6072 = vmatpush1.bf16.msra.mxu1 %v6017_v41  ;;  %v3121_v27 = vpop.f32.mrb[102].mxu0  ;;  %6103 = vmatprep.mubr.bf16.mxu1 %v19917_v3  ;;  %v17537_v36 = vpop.permute.xlu0 %6431  ;;  %v15044_v15 = vld [vmem:[%s19983_s30 + $0x48] sm:$0xf] }
 0x379   :  { %v3122_v7 = vpop.f32.mrb[103].mxu0  ;;  %15596 = vmatprep.subr.bf16.mxu1 %v19919_v28 }
 0x37a   :  { %v3158_v54 = vpop.f32.mrb[100].mxu1  ;;  %v6435_v7 = vsel %vm6433_vm12, %v17474_v49, %v17500_v39 }
 0x37b   :  { %v3170_v20 = vadd.f32 %v3158_v54, %v2951_v58  ;;  %v15516_v22 = vpop.f32.mrb[101].mxu1  ;;  %15038 = vmatmul.mubr.msk.bf16.vlgmr.msra.gmra.mrb[208].mxu0 %vm2360_vm13, %v15036_v31 }
 0x37c   :  { %6113 = vmatpush1.bf16.msra.mxu0 %v6023_v62  ;;  %v3161_v35 = vpop.f32.mrb[102].mxu1  ;;  %6144 = vmatprep.mubr.bf16.mxu0 %v19917_v3  ;;  %v17554_v14 = vpop.permute.xlu0 %6640 }
 0x37d   :  { %15045 = vmatprep.subr.msk.bf16.mxu0 %vm2286_vm11, %v6217_v24  ;;  %v15517_v58 = vpop.f32.mrb[103].mxu1  ;;  %v6434_v24 = vsel %vm6433_vm12, %v17477_v17, %v17474_v49  ;;  %v6436_v17 = vsel %vm6433_vm12, %v17500_v39, %v17488_v46  ;;  %v6438_v39 = vsel %vm6433_vm12, %v17515_v5, %v17512_v48 }
 0x37e   :  { %v3254_v45 = vpop.f32.mrb[104].mxu0  ;;  %v6447_v49 = vsel %vm2286_vm11, %v6434_v24, 0 }
 0x37f   :  { %v3383_v11 = vadd.f32 %v3254_v45, %v3164_v42  ;;  %v3256_v19 = vpop.f32.mrb[105].mxu0  ;;  %15040 = vmatmul.mubr.msk.bf16.vlgmr.msra.gmra.mrb[208].mxu1 %vm2360_vm13, %v15036_v31  ;;  %v17550_v42 = vpop.permute.xlu1 %6642 }
 0x380   :  { %v3384_v56 = vadd.f32 %v3256_v19, %v3165_v6  ;;  %15597 = vmatpush3.bf16.msra.mxu1 %v6028_v40  ;;  %v3258_v21 = vpop.f32.mrb[106].mxu0  ;;  %15598 = vmatprep.mubr.msk.bf16.mxu1 %vm15900_vm4, %v19919_v28  ;;  %v6218_v6 = vsel %vm1845_vm10, %v17413_v8, %v17438_v34  ;;  %v6220_v34 = vsel %vm1845_vm10, %v17435_v47, %v17462_v44  ;;  %v6223_v44 = vsel %vm1845_vm10, %v17452_v16, 0 }
 0x381   :  { %15047 = vmatprep.subr.msk.bf16.mxu1 %vm2286_vm11, %v6219_v43  ;;  %v3259_v60 = vpop.f32.mrb[107].mxu0  ;;  %v6234_v8 = vsel %vm2286_vm11, %v6218_v6, 0  ;;  %v6240_v47 = vsel %vm2286_vm11, %v6220_v34, 0  ;;  %v6245_v16 = vsel %vm2286_vm11, %v6223_v44, 0  ;;  %v6437_v19 = vsel %vm6433_vm12, %v17488_v46, %v17515_v5 }
 0x382   :  { %v3295_v33 = vpop.f32.mrb[104].mxu1  ;;  %v6453_v46 = vsel %vm2286_vm11, %v6436_v17, 0  ;;  %v6459_v5 = vsel %vm2286_vm11, %v6438_v39, 0  ;;  %v6653_v44 = vsel %vm6652_vm14, %v17527_v61, %v17554_v14 }
 0x383   :  { %v3385_v29 = vadd.f32 %v3295_v33, %v3166_v30  ;;  %v3297_v4 = vpop.f32.mrb[105].mxu1  ;;  %15042 = vmatmul.mubr.msk.bf16.vlgmr.msra.gmra.mrb[212].mxu0 %vm2360_vm13, %v15036_v31  ;;  %v17565_v25 = vpop.permute.xlu1 %6646  ;;  %v6439_v33 = vsel %vm6433_vm12, %v17512_v48, %v17537_v36 }
 0x384   :  { %v3386_v55 = vadd.f32 %v3297_v4, %v3167_v57  ;;  %6248 = vmatpush1.bf16.msra.mxu0 %v6228_v38  ;;  %v3299_v53 = vpop.f32.mrb[106].mxu1  ;;  %6279 = vmatprep.mubr.bf16.mxu0 %v19917_v3 }
 0x385   :  { %15049 = vmatprep.subr.msk.bf16.mxu0 %vm2286_vm11, %v6221_v10  ;;  %v3300_v59 = vpop.f32.mrb[107].mxu1 }
 0x386   :  { %v3336_v30 = vpop.f32.mrb[108].mxu0  ;;  %v15052_v59 = vld [vmem:[%s19983_s30 + $0x4c] sm:$0xf] }
 0x387   :  { %v3387_v26 = vadd.f32 %v3336_v30, %v3168_v52  ;;  %v3338_v37 = vpop.f32.mrb[109].mxu0  ;;  %15599 = vmatmul.mubr.msk.bf16.vlgmr.msra.gmra.mrb[212].mxu1 %vm2360_vm13, %v15036_v31  ;;  %v17576_v52 = vpop.permute.xlu0 %6644 }
 0x388   :  { %v3388_v57 = vadd.f32 %v3338_v37, %v3169_v18  ;;  %6289 = vmatpush1.bf16.msra.mxu1 %v6234_v8  ;;  %v3340_v51 = vpop.f32.mrb[110].mxu0  ;;  %6320 = vmatprep.mubr.bf16.mxu1 %v19917_v3  ;;  %v17587_v54 = vpop.permute.xlu1 %6650 }
 0x389   :  { %v3341_v41 = vpop.f32.mrb[111].mxu0  ;;  %15602 = vmatprep.subr.bf16.mxu1 %v19919_v28 }
 0x38a   :  { %v3377_v23 = vpop.f32.mrb[108].mxu1 }
 0x38b   :  { %v3389_v27 = vadd.f32 %v3377_v23, %v3170_v20  ;;  %v15522_v31 = vpop.f32.mrb[109].mxu1  ;;  %15046 = vmatmul.mubr.msk.bf16.vlgmr.msra.gmra.mrb[216].mxu0 %vm2360_vm13, %v15044_v15  ;;  %v17590_v62 = vpop.permute.xlu0 %6648 }
 0x38c   :  { %6330 = vmatpush1.bf16.msra.mxu0 %v6240_v47  ;;  %v3380_v18 = vpop.f32.mrb[110].mxu1  ;;  %6361 = vmatprep.mubr.bf16.mxu0 %v19917_v3  ;;  %v17603_v12 = vpop.permute.xlu1 %6859 }
 0x38d   :  { %15053 = vmatprep.subr.msk.bf16.mxu0 %vm2286_vm11, %v6435_v7  ;;  %v15523_v20 = vpop.f32.mrb[111].mxu1 }
 0x38e   :  { %v3473_v22 = vpop.f32.mrb[112].mxu0  ;;  %v6656_v20 = vsel %vm6652_vm14, %v17576_v52, %v17565_v25 }
 0x38f   :  { %v3602_v32 = vadd.f32 %v3473_v22, %v3383_v11  ;;  %v3475_v35 = vpop.f32.mrb[113].mxu0  ;;  %15048 = vmatmul.mubr.msk.bf16.vlgmr.msra.gmra.mrb[216].mxu1 %vm2360_vm13, %v15044_v15  ;;  %v17614_v38 = vpop.permute.xlu0 %6857 }
 0x390   :  { %v3603_v58 = vadd.f32 %v3475_v35, %v3384_v56  ;;  %15603 = vmatpush3.bf16.msra.mxu1 %v6245_v16  ;;  %v3477_v45 = vpop.f32.mrb[114].mxu0  ;;  %15604 = vmatprep.mubr.msk.bf16.mxu1 %vm15900_vm4, %v19919_v28  ;;  %v17626_v30 = vpop.permute.xlu1 %6863  ;;  %v6666_v16 = vsel %vm2286_vm11, %v6653_v44, 0 }
 0x391   :  { %15055 = vmatprep.subr.msk.bf16.mxu1 %vm2286_vm11, %v6437_v19  ;;  %v3478_v11 = vpop.f32.mrb[115].mxu0  ;;  %v6658_v19 = vsel %vm6652_vm14, %v17590_v62, %v17587_v54 }
 0x392   :  { %v3514_v40 = vpop.f32.mrb[112].mxu1 }
 0x393   :  { %v3604_v21 = vadd.f32 %v3514_v40, %v3385_v29  ;;  %v3516_v43 = vpop.f32.mrb[113].mxu1  ;;  %15050 = vmatmul.mubr.msk.bf16.vlgmr.msra.gmra.mrb[220].mxu0 %vm2360_vm13, %v15044_v15  ;;  %v17629_v8 = vpop.permute.xlu0 %6861 }
 0x394   :  { %v3605_v56 = vadd.f32 %v3516_v43, %v3386_v55  ;;  %6467 = vmatpush1.bf16.msra.mxu0 %v6447_v49  ;;  %v3518_v60 = vpop.f32.mrb[114].mxu1  ;;  %6498 = vmatprep.mubr.bf16.mxu0 %v19917_v3 }
 0x395   :  { %15057 = vmatprep.subr.msk.bf16.mxu0 %vm2286_vm11, %v6439_v33  ;;  %v3519_v29 = vpop.f32.mrb[115].mxu1  ;;  %v15060_v33 = vld [vmem:[%s19983_s30 + $0x50] sm:$0xf] }
 0x396   :  { %v3555_v4 = vpop.f32.mrb[116].mxu0 }
 0x397   :  { %v3606_v6 = vadd.f32 %v3555_v4, %v3387_v26  ;;  %v3557_v53 = vpop.f32.mrb[117].mxu0  ;;  %15605 = vmatmul.mubr.msk.bf16.vlgmr.msra.gmra.mrb[220].mxu1 %vm2360_vm13, %v15044_v15  ;;  %v6654_v15 = vsel %vm6652_vm14, %v17554_v14, %v17550_v42  ;;  %v17652_v22 = vpop.permute.xlu0 %6865  ;;  %v6655_v14 = vsel %vm6652_vm14, %v17550_v42, %v17576_v52  ;;  %v6657_v52 = vsel %vm6652_vm14, %v17565_v25, %v17590_v62 }
 0x398   :  { %v3607_v55 = vadd.f32 %v3557_v53, %v3388_v57  ;;  %6508 = vmatpush1.bf16.msra.mxu1 %v6453_v46  ;;  %v3559_v10 = vpop.f32.mrb[118].mxu0  ;;  %6539 = vmatprep.mubr.bf16.mxu1 %v19917_v3  ;;  %v6442_v57 = vsel %vm6433_vm12, %v17537_v36, 0  ;;  %v6672_v42 = vsel %vm2286_vm11, %v6655_v14, 0  ;;  %v6678_v25 = vsel %vm2286_vm11, %v6657_v52, 0 }
 0x399   :  { %v3560_v26 = vpop.f32.mrb[119].mxu0  ;;  %15608 = vmatprep.subr.bf16.mxu1 %v19919_v28  ;;  %v6464_v36 = vsel %vm2286_vm11, %v6442_v57, 0  ;;  %v6661_v62 = vsel %vm6652_vm14, %v17587_v54, 0  ;;  %vm7528_vm12 = vcmask 703488   ;;  %vm10024_vm14 = vcmask 130048  }
 0x39a   :  { %v3596_v37 = vpop.f32.mrb[116].mxu1  ;;  %v6683_v54 = vsel %vm2286_vm11, %v6661_v62, 0 }
 0x39b   :  { %v3608_v34 = vadd.f32 %v3596_v37, %v3389_v27  ;;  %v15528_v48 = vpop.f32.mrb[117].mxu1  ;;  %15054 = vmatmul.mubr.msk.bf16.vlgmr.msra.gmra.mrb[224].mxu0 %vm2360_vm13, %v15052_v59  ;;  %v17640_v27 = vpop.permute.xlu1 %6867 }
 0x39c   :  { %6549 = vmatpush1.bf16.msra.mxu0 %v6459_v5  ;;  %v3599_v51 = vpop.f32.mrb[118].mxu1  ;;  %6580 = vmatprep.mubr.bf16.mxu0 %v19917_v3  ;;  %v17667_v43 = vpop.permute.xlu0 %6869  ;;  %v6872_v48 = vsel %vm6871_vm15, %v17614_v38, %v17603_v12 }
 0x39d   :  { %15061 = vmatprep.subr.msk.bf16.mxu0 %vm2286_vm11, %v6654_v15  ;;  %v15529_v41 = vpop.f32.mrb[119].mxu1  ;;  %v6875_v51 = vsel %vm6871_vm15, %v17626_v30, %v17652_v22  ;;  %v6885_v38 = vsel %vm2286_vm11, %v6872_v48, 0 }
 0x39e   :  { %v3690_v23 = vpop.f32.mrb[120].mxu0 }
 0x39f   :  { %v3819_v31 = vadd.f32 %v3690_v23, %v3602_v32  ;;  %v3692_v47 = vpop.f32.mrb[121].mxu0  ;;  %15056 = vmatmul.mubr.msk.bf16.vlgmr.msra.gmra.mrb[224].mxu1 %vm2360_vm13, %v15052_v59  ;;  %v17664_v11 = vpop.permute.xlu1 %7076 }
 0x3a0   :  { %v3820_v18 = vadd.f32 %v3692_v47, %v3603_v58  ;;  %15609 = vmatpush3.bf16.msra.mxu1 %v6464_v36  ;;  %v3694_v7 = vpop.f32.mrb[122].mxu0  ;;  %15610 = vmatprep.mubr.msk.bf16.mxu1 %vm15900_vm4, %v19919_v28  ;;  %v17689_v10 = vpop.permute.xlu0 %7078  ;;  %v6874_v36 = vsel %vm6871_vm15, %v17629_v8, %v17626_v30 }
 0x3a1   :  { %15063 = vmatprep.subr.msk.bf16.mxu1 %vm2286_vm11, %v6656_v20  ;;  %v3695_v32 = vpop.f32.mrb[123].mxu0  ;;  %v6877_v7 = vsel %vm6871_vm15, %v17640_v27, %v17667_v43  ;;  %v6891_v30 = vsel %vm2286_vm11, %v6874_v36, 0 }
 0x3a2   :  { %v3731_v35 = vpop.f32.mrb[120].mxu1 }
 0x3a3   :  { %v3821_v24 = vadd.f32 %v3731_v35, %v3604_v21  ;;  %v3733_v61 = vpop.f32.mrb[121].mxu1  ;;  %15058 = vmatmul.mubr.msk.bf16.vlgmr.msra.gmra.mrb[228].mxu0 %vm2360_vm13, %v15052_v59 }
 0x3a4   :  { %v3822_v58 = vadd.f32 %v3733_v61, %v3605_v56  ;;  %6686 = vmatpush1.bf16.msra.mxu0 %v6666_v16  ;;  %v3735_v45 = vpop.f32.mrb[122].mxu1  ;;  %6717 = vmatprep.mubr.bf16.mxu0 %v19917_v3 }
 0x3a5   :  { %15065 = vmatprep.subr.msk.bf16.mxu0 %vm2286_vm11, %v6658_v19  ;;  %v3736_v40 = vpop.f32.mrb[123].mxu1 }
 0x3a6   :  { %v3772_v21 = vpop.f32.mrb[124].mxu0 }
 0x3a7   :  { %v3823_v49 = vadd.f32 %v3772_v21, %v3606_v6  ;;  %v3774_v17 = vpop.f32.mrb[125].mxu0  ;;  %15611 = vmatmul.mubr.msk.bf16.vlgmr.msra.gmra.mrb[228].mxu1 %vm2360_vm13, %v15052_v59  ;;  %v17679_v6 = vpop.permute.xlu1 %7080 }
 0x3a8   :  { %v3824_v56 = vadd.f32 %v3774_v17, %v3607_v55  ;;  %6727 = vmatpush1.bf16.msra.mxu1 %v6672_v42  ;;  %v3776_v60 = vpop.f32.mrb[126].mxu0  ;;  %6758 = vmatprep.mubr.bf16.mxu1 %v19917_v3  ;;  %v6873_v55 = vsel %vm6871_vm15, %v17603_v12, %v17629_v8  ;;  %v6876_v8 = vsel %vm6871_vm15, %v17652_v22, %v17640_v27  ;;  %v6880_v22 = vsel %vm6871_vm15, %v17667_v43, 0  ;;  %vm18533_vm15 = vmneg %vm127_vm3 }
 0x3a9   :  { %v3777_v29 = vpop.f32.mrb[127].mxu0  ;;  %15614 = vmatprep.subr.bf16.mxu1 %v19919_v28  ;;  %v6897_v27 = vsel %vm2286_vm11, %v6876_v8, 0  ;;  %v7092_v42 = vsel %vm7090_vm1, %v17689_v10, %v17679_v6  ;;  %v6902_v43 = vsel %vm2286_vm11, %v6880_v22, 0 }
 0x3aa   :  { %v3813_v4 = vpop.f32.mrb[124].mxu1 }
 0x3ab   :  { %v3825_v53 = vadd.f32 %v3813_v4, %v3608_v34  ;;  %v15534_v46 = vpop.f32.mrb[125].mxu1  ;;  %15062 = vmatmul.mubr.msk.bf16.vlgmr.msra.gmra.mrb[232].mxu0 %vm2360_vm13, %v15060_v33  ;;  %v17702_v15 = vpop.permute.xlu1 %7084 }
 0x3ac   :  { %6768 = vmatpush1.bf16.msra.mxu0 %v6678_v25  ;;  %v3816_v39 = vpop.f32.mrb[126].mxu1  ;;  %6799 = vmatprep.mubr.bf16.mxu0 %v19917_v3 }
 0x3ad   :  { %15069 = vmatprep.subr.msk.bf16.mxu0 %vm2286_vm11, %v6873_v55  ;;  %v15535_v59 = vpop.f32.mrb[127].mxu1 }
 0x3ae   :  { %v3907_v26 = vpop.f32.mrb[128].mxu0 }
 0x3af   :  { %v4036_v37 = vadd.f32 %v3907_v26, %v3819_v31  ;;  %v3909_v34 = vpop.f32.mrb[129].mxu0  ;;  %15064 = vmatmul.mubr.msk.bf16.vlgmr.msra.gmra.mrb[232].mxu1 %vm2360_vm13, %v15060_v33  ;;  %v17705_v31 = vpop.permute.xlu0 %7082 }
 0x3b0   :  { %v4037_v5 = vadd.f32 %v3909_v34, %v3820_v18  ;;  %15615 = vmatpush3.bf16.msra.mxu1 %v6683_v54  ;;  %v3911_v57 = vpop.f32.mrb[130].mxu0  ;;  %15616 = vmatprep.mubr.msk.bf16.mxu1 %vm15900_vm4, %v19919_v28  ;;  %v17717_v35 = vpop.permute.xlu1 %7088  ;;  %v7094_v62 = vsel %vm7090_vm1, %v17705_v31, %v17702_v15 }
 0x3b1   :  { %15071 = vmatprep.subr.msk.bf16.mxu1 %vm2286_vm11, %v6875_v51  ;;  %v3912_v41 = vpop.f32.mrb[131].mxu0 }
 0x3b2   :  { %v3948_v23 = vpop.f32.mrb[128].mxu1 }
 0x3b3   :  { %v4038_v47 = vadd.f32 %v3948_v23, %v3821_v24  ;;  %v3950_v12 = vpop.f32.mrb[129].mxu1  ;;  %15066 = vmatmul.mubr.msk.bf16.vlgmr.msra.gmra.mrb[236].mxu0 %vm2360_vm13, %v15060_v33  ;;  %v7087_v45 = vpop.permute.xlu0 %7086 }
 0x3b4   :  { %v4039_v44 = vadd.f32 %v3950_v12, %v3822_v58  ;;  %6905 = vmatpush1.bf16.msra.mxu0 %v6885_v38  ;;  %v3952_v18 = vpop.f32.mrb[130].mxu1  ;;  %6936 = vmatprep.mubr.bf16.mxu0 %v19917_v3  ;;  %v15068_v58 = vld [vmem:[%s19983_s30 + $0x54] sm:$0xf]  ;;  %v17737_v52 = vpop.permute.xlu1 %7297  ;;  %v7096_v48 = vsel %vm7090_vm1, %v7087_v45, %v17717_v35  ;;  %v15076_v38 = vld [vmem:[%s19983_s30 + $0x58] sm:$0xf] }
 0x3b5   :  { %15073 = vmatprep.subr.msk.bf16.mxu0 %vm2286_vm11, %v6877_v7  ;;  %v3953_v20 = vpop.f32.mrb[131].mxu1 }
 0x3b6   :  { %v3989_v32 = vpop.f32.mrb[132].mxu0 }
 0x3b7   :  { %v4040_v16 = vadd.f32 %v3989_v32, %v3823_v49  ;;  %v3991_v24 = vpop.f32.mrb[133].mxu0  ;;  %15617 = vmatmul.mubr.msk.bf16.vlgmr.msra.gmra.mrb[236].mxu1 %vm2360_vm13, %v15060_v33  ;;  %v17740_v33 = vpop.permute.xlu0 %7295 }
 0x3b8   :  { %v4041_v61 = vadd.f32 %v3991_v24, %v3824_v56  ;;  %6946 = vmatpush1.bf16.msra.mxu1 %v6891_v30  ;;  %v3993_v14 = vpop.f32.mrb[134].mxu0  ;;  %6977 = vmatprep.mubr.bf16.mxu1 %v19917_v3  ;;  %v7302_v26 = vpop.permute.xlu1 %7301 }
 0x3b9   :  { %v3994_v19 = vpop.f32.mrb[135].mxu0  ;;  %15620 = vmatprep.subr.bf16.mxu1 %v19919_v28 }
 0x3ba   :  { %v4030_v40 = vpop.f32.mrb[132].mxu1 }
 0x3bb   :  { %v4042_v21 = vadd.f32 %v4030_v40, %v3825_v53  ;;  %v15540_v49 = vpop.f32.mrb[133].mxu1  ;;  %15070 = vmatmul.mubr.msk.bf16.vlgmr.msra.gmra.mrb[240].mxu0 %vm2360_vm13, %v15068_v58  ;;  %v7091_v53 = vsel %vm7090_vm1, %v17664_v11, %v17689_v10  ;;  %v7093_v11 = vsel %vm7090_vm1, %v17679_v6, %v17705_v31  ;;  %v7095_v6 = vsel %vm7090_vm1, %v17702_v15, %v7087_v45 }
 0x3bc   :  { %6987 = vmatpush1.bf16.msra.mxu0 %v6897_v27  ;;  %v4033_v17 = vpop.f32.mrb[134].mxu1  ;;  %7018 = vmatprep.mubr.bf16.mxu0 %v19917_v3  ;;  %v7104_v59 = vsel %vm2286_vm11, %v7091_v53, 0  ;;  %v7306_v36 = vpop.permute.xlu1 %7305  ;;  %v7116_v15 = vsel %vm2286_vm11, %v7095_v6, 0 }
 0x3bd   :  { %15077 = vmatprep.subr.msk.bf16.mxu0 %vm2286_vm11, %v7092_v42  ;;  %v15541_v56 = vpop.f32.mrb[135].mxu1 }
 0x3be   :  { %v4124_v60 = vpop.f32.mrb[136].mxu0 }
 0x3bf   :  { %v4253_v29 = vadd.f32 %v4124_v60, %v4036_v37  ;;  %v4126_v4 = vpop.f32.mrb[137].mxu0  ;;  %15072 = vmatmul.mubr.msk.bf16.vlgmr.msra.gmra.mrb[240].mxu1 %vm2360_vm13, %v15068_v58 }
 0x3c0   :  { %v4254_v46 = vadd.f32 %v4126_v4, %v4037_v5  ;;  %15621 = vmatpush3.bf16.msra.mxu1 %v6902_v43  ;;  %v4128_v25 = vpop.f32.mrb[138].mxu0  ;;  %15622 = vmatprep.mubr.msk.bf16.mxu1 %vm15900_vm4, %v19919_v28  ;;  %v7300_v5 = vpop.permute.xlu0 %7299 }
 0x3c1   :  { %15079 = vmatprep.subr.msk.bf16.mxu1 %vm2286_vm11, %v7094_v62  ;;  %v4129_v39 = vpop.f32.mrb[139].mxu0  ;;  %v7311_v30 = vsel %vm7309_vm2, %v17737_v52, %v7300_v5  ;;  %v17779_v14 = vpop.permute.xlu1 %7514 }
 0x3c2   :  { %v4165_v55 = vpop.f32.mrb[136].mxu1 }
 0x3c3   :  { %v4255_v37 = vadd.f32 %v4165_v55, %v4038_v47  ;;  %v4167_v34 = vpop.f32.mrb[137].mxu1  ;;  %15074 = vmatmul.mubr.msk.bf16.vlgmr.msra.gmra.mrb[244].mxu0 %vm2360_vm13, %v15068_v58  ;;  %v7110_v47 = vsel %vm2286_vm11, %v7093_v11, 0 }
 0x3c4   :  { %v4256_v10 = vadd.f32 %v4167_v34, %v4039_v44  ;;  %7124 = vmatpush1.bf16.msra.mxu0 %v7104_v59  ;;  %v4169_v54 = vpop.f32.mrb[138].mxu1  ;;  %7155 = vmatprep.mubr.bf16.mxu0 %v19917_v3  ;;  %v7304_v7 = vpop.permute.xlu0 %7303  ;;  %v15084_v34 = vld [vmem:[%s19983_s30 + $0x5c] sm:$0xf] }
 0x3c5   :  { %15081 = vmatprep.subr.msk.bf16.mxu0 %vm2286_vm11, %v7096_v48  ;;  %v4170_v57 = vpop.f32.mrb[139].mxu1  ;;  %v7313_v49 = vsel %vm7309_vm2, %v7302_v26, %v7304_v7  ;;  %v7519_v43 = vpop.permute.xlu1 %7518  ;;  %v7314_v59 = vsel %vm7309_vm2, %v7304_v7, %v7306_v36 }
 0x3c6   :  { %v4206_v51 = vpop.f32.mrb[140].mxu0  ;;  %v7335_v57 = vsel %vm2286_vm11, %v7314_v59, 0 }
 0x3c7   :  { %v4257_v41 = vadd.f32 %v4206_v51, %v4040_v16  ;;  %v4208_v23 = vpop.f32.mrb[141].mxu0  ;;  %15623 = vmatmul.mubr.msk.bf16.vlgmr.msra.gmra.mrb[244].mxu1 %vm2360_vm13, %v15068_v58  ;;  %v7099_v16 = vsel %vm7090_vm1, %v17717_v35, 0  ;;  %v7310_v35 = vsel %vm7309_vm2, %v17740_v33, %v17737_v52  ;;  %v7312_v52 = vsel %vm7309_vm2, %v7300_v5, %v7302_v26  ;;  %vm18559_vm1 = vmneg %vm554_vm5 }
 0x3c8   :  { %v4258_v31 = vadd.f32 %v4208_v23, %v4041_v61  ;;  %7165 = vmatpush1.bf16.msra.mxu1 %v7110_v47  ;;  %v4210_v12 = vpop.f32.mrb[142].mxu0  ;;  %7196 = vmatprep.mubr.bf16.mxu1 %v19917_v3  ;;  %v7121_v19 = vsel %vm2286_vm11, %v7099_v16, 0  ;;  %v7308_v27 = vpop.permute.xlu0 %7307  ;;  %v7323_v60 = vsel %vm2286_vm11, %v7310_v35, 0  ;;  %v7329_v55 = vsel %vm2286_vm11, %v7312_v52, 0 }
 0x3c9   :  { %v4211_v44 = vpop.f32.mrb[143].mxu0  ;;  %15626 = vmatprep.subr.bf16.mxu1 %v19919_v28  ;;  %v7315_v4 = vsel %vm7309_vm2, %v7306_v36, %v7308_v27  ;;  %v7523_v54 = vpop.permute.xlu1 %7522  ;;  %v7318_v51 = vsel %vm7309_vm2, %v7308_v27, 0  ;;  %vm18587_vm2 = vmneg %vm773_vm6 }
 0x3ca   :  { %v4247_v18 = vpop.f32.mrb[140].mxu1  ;;  %v7340_v36 = vsel %vm2286_vm11, %v7318_v51, 0 }
 0x3cb   :  { %v4259_v20 = vadd.f32 %v4247_v18, %v4042_v21  ;;  %v15546_v32 = vpop.f32.mrb[141].mxu1  ;;  %15078 = vmatmul.mubr.msk.bf16.vlgmr.msra.gmra.mrb[248].mxu0 %vm2360_vm13, %v15076_v38 }
 0x3cc   :  { %7206 = vmatpush1.bf16.msra.mxu0 %v7116_v15  ;;  %v4250_v24 = vpop.f32.mrb[142].mxu1  ;;  %7237 = vmatprep.mubr.bf16.mxu0 %v19917_v3  ;;  %v7517_v25 = vpop.permute.xlu0 %7516 }
 0x3cd   :  { %15085 = vmatprep.subr.msk.bf16.mxu0 %vm2286_vm11, %v7311_v30  ;;  %v15547_v8 = vpop.f32.mrb[143].mxu1  ;;  %v7530_v23 = vsel %vm7528_vm12, %v7517_v25, %v7519_v43  ;;  %v7529_v44 = vsel %vm7528_vm12, %v17779_v14, %v7517_v25  ;;  %v7527_v32 = vpop.permute.xlu1 %7526 }
 0x3ce   :  { %v4343_v61 = vpop.f32.mrb[144].mxu0  ;;  %v7542_v24 = vsel %vm2286_vm11, %v7529_v44, 0 }
 0x3cf   :  { %v4472_v58 = vadd.f32 %v4343_v61, %v4253_v29  ;;  %v4345_v45 = vpop.f32.mrb[145].mxu0  ;;  %15080 = vmatmul.mubr.msk.bf16.vlgmr.msra.gmra.mrb[248].mxu1 %vm2360_vm13, %v15076_v38 }
 0x3d0   :  { %v4473_v40 = vadd.f32 %v4345_v45, %v4254_v46  ;;  %15627 = vmatpush3.bf16.msra.mxu1 %v7121_v19  ;;  %v4347_v21 = vpop.f32.mrb[146].mxu0  ;;  %15628 = vmatprep.mubr.msk.bf16.mxu1 %vm15900_vm4, %v19919_v28  ;;  %v7521_v47 = vpop.permute.xlu0 %7520 }
 0x3d1   :  { %15087 = vmatprep.subr.msk.bf16.mxu1 %vm2286_vm11, %v7313_v49  ;;  %v4348_v22 = vpop.f32.mrb[147].mxu0  ;;  %v7531_v14 = vsel %vm7528_vm12, %v7519_v43, %v7521_v47  ;;  %v7537_v43 = vsel %vm7528_vm12, %v7527_v32, 0 }
 0x3d2   :  { %v4384_v17 = vpop.f32.mrb[144].mxu1  ;;  %v7548_v27 = vsel %vm2286_vm11, %v7531_v14, 0 }
 0x3d3   :  { %v4474_v42 = vadd.f32 %v4384_v17, %v4255_v37  ;;  %v4386_v56 = vpop.f32.mrb[145].mxu1  ;;  %15082 = vmatmul.mubr.msk.bf16.vlgmr.msra.gmra.mrb[252].mxu0 %vm2360_vm13, %v15076_v38 }
 0x3d4   :  { %v4475_v33 = vadd.f32 %v4386_v56, %v4256_v10  ;;  %7343 = vmatpush1.bf16.msra.mxu0 %v7323_v60  ;;  %v4388_v29 = vpop.f32.mrb[146].mxu1  ;;  %7374 = vmatprep.mubr.bf16.mxu0 %v19917_v3  ;;  %v7525_v30 = vpop.permute.xlu0 %7524  ;;  %v15092_v56 = vld [vmem:[%s19983_s30 + $0x60] sm:$0xf] }
 0x3d5   :  { %15089 = vmatprep.subr.msk.bf16.mxu0 %vm2286_vm11, %v7315_v4  ;;  %v4389_v53 = vpop.f32.mrb[147].mxu1  ;;  %v7534_v19 = vsel %vm7528_vm12, %v7525_v30, %v7527_v32  ;;  %v7533_v22 = vsel %vm7528_vm12, %v7523_v54, %v7525_v30 }
 0x3d6   :  { %v4425_v46 = vpop.f32.mrb[148].mxu0  ;;  %v7554_v4 = vsel %vm2286_vm11, %v7533_v22, 0 }
 0x3d7   :  { %v4476_v62 = vadd.f32 %v4425_v46, %v4257_v41  ;;  %v4427_v39 = vpop.f32.mrb[149].mxu0  ;;  %15629 = vmatmul.mubr.msk.bf16.vlgmr.msra.gmra.mrb[252].mxu1 %vm2360_vm13, %v15076_v38 }
 0x3d8   :  { %v4477_v26 = vadd.f32 %v4427_v39, %v4258_v31  ;;  %7384 = vmatpush1.bf16.msra.mxu1 %v7329_v55  ;;  %v4429_v37 = vpop.f32.mrb[150].mxu0  ;;  %7415 = vmatprep.mubr.bf16.mxu1 %v19917_v3  ;;  %v7559_v55 = vsel %vm2286_vm11, %v7537_v43, 0 }
 0x3d9   :  { %v4430_v11 = vpop.f32.mrb[151].mxu0  ;;  %15632 = vmatprep.subr.bf16.mxu1 %v19919_v28 }
 0x3da   :  { %v4466_v10 = vpop.f32.mrb[148].mxu1 }
 0x3db   :  { %v4478_v48 = vadd.f32 %v4466_v10, %v4259_v20  ;;  %v15552_v5 = vpop.f32.mrb[149].mxu1  ;;  %15086 = vmatmul.mubr.msk.bf16.vlgmr.msra.gmra.mrb[0].mxu0 %vm2360_vm13, %v15084_v34  ;;  %v7532_v20 = vsel %vm7528_vm12, %v7521_v47, %v7523_v54  ;;  %vm12156_vm12 = vcmask 195584  }
 0x3dc   :  { %7425 = vmatpush1.bf16.msra.mxu0 %v7335_v57  ;;  %v4469_v41 = vpop.f32.mrb[150].mxu1  ;;  %7456 = vmatprep.mubr.bf16.mxu0 %v19917_v3 }
 0x3dd   :  { %15093 = vmatprep.subr.msk.bf16.mxu0 %vm2286_vm11, %v7530_v23  ;;  %v15553_v6 = vpop.f32.mrb[151].mxu1 }
 0x3de   :  { %v4562_v31 = vpop.f32.mrb[152].mxu0 }
 0x3df   :  { %v4691_v12 = vadd.f32 %v4562_v31, %v4472_v58  ;;  %v4564_v38 = vpop.f32.mrb[153].mxu0  ;;  %15088 = vmatmul.mubr.msk.bf16.vlgmr.msra.gmra.mrb[0].mxu1 %vm2360_vm13, %v15084_v34 }
 0x3e0   :  { %v4692_v18 = vadd.f32 %v4564_v38, %v4473_v40  ;;  %15633 = vmatpush3.bf16.msra.mxu1 %v7340_v36  ;;  %v4566_v7 = vpop.f32.mrb[154].mxu0  ;;  %15634 = vmatprep.mubr.msk.bf16.mxu1 %vm15900_vm4, %v19919_v28 }
 0x3e1   :  { %15095 = vmatprep.subr.msk.bf16.mxu1 %vm2286_vm11, %v7532_v20  ;;  %v4567_v15 = vpop.f32.mrb[155].mxu0 }
 0x3e2   :  { %v4603_v16 = vpop.f32.mrb[152].mxu1 }
 0x3e3   :  { %v4693_v8 = vadd.f32 %v4603_v16, %v4474_v42  ;;  %v4605_v61 = vpop.f32.mrb[153].mxu1  ;;  %15090 = vmatmul.mubr.msk.bf16.vlgmr.msra.gmra.mrb[4].mxu0 %vm2360_vm13, %v15084_v34 }
 0x3e4   :  { %v4694_v58 = vadd.f32 %v4605_v61, %v4475_v33  ;;  %7562 = vmatpush1.bf16.msra.mxu0 %v7542_v24  ;;  %v4607_v45 = vpop.f32.mrb[154].mxu1  ;;  %7593 = vmatprep.mubr.bf16.mxu0 %v19917_v3 }
 0x3e5   :  { %15097 = vmatprep.subr.msk.bf16.mxu0 %vm2286_vm11, %v7534_v19  ;;  %v4608_v35 = vpop.f32.mrb[155].mxu1 }
 0x3e6   :  { %v4644_v40 = vpop.f32.mrb[156].mxu0 }
 0x3e7   :  { %v4695_v21 = vadd.f32 %v4644_v40, %v4476_v62  ;;  %v4646_v49 = vpop.f32.mrb[157].mxu0  ;;  %15635 = vmatmul.mubr.msk.bf16.vlgmr.msra.gmra.mrb[4].mxu1 %vm2360_vm13, %v15084_v34 }
 0x3e8   :  { %v4696_v17 = vadd.f32 %v4646_v49, %v4477_v26  ;;  %7603 = vmatpush1.bf16.msra.mxu1 %v7548_v27  ;;  %v4648_v42 = vpop.f32.mrb[158].mxu0  ;;  %7634 = vmatprep.mubr.bf16.mxu1 %v19917_v3 }
 0x3e9   :  { %v4649_v60 = vpop.f32.mrb[159].mxu0  ;;  %15638 = vmatprep.subr.bf16.mxu1 %v19919_v28 }
 0x3ea   :  { %v4685_v52 = vpop.f32.mrb[156].mxu1 }
 0x3eb   :  { %v4697_v33 = vadd.f32 %v4685_v52, %v4478_v48  ;;  %v15558_v29 = vpop.f32.mrb[157].mxu1  ;;  %15094 = vmatmul.mubr.msk.bf16.vlgmr.msra.gmra.mrb[8].mxu0 %vm2360_vm13, %v15092_v56 }
 0x3ec   :  { %7644 = vmatpush1.bf16.msra.mxu0 %v7554_v4  ;;  %v4688_v53 = vpop.f32.mrb[158].mxu1  ;;  %7675 = vmatprep.mubr.bf16.mxu0 %v19917_v3 }
 0x3ed   :  { %v15559_v46 = vpop.f32.mrb[159].mxu1 }
 0x3ee   :  { %v4779_v25 = vpop.f32.mrb[160].mxu0 }
 0x3ef   :  { %v4908_v62 = vadd.f32 %v4779_v25, %v4691_v12  ;;  %v4781_v39 = vpop.f32.mrb[161].mxu0  ;;  %15096 = vmatmul.mubr.msk.bf16.vlgmr.msra.gmra.mrb[8].mxu1 %vm2360_vm13, %v15092_v56 }
 0x3f0   :  { %v4909_v59 = vadd.f32 %v4781_v39, %v4692_v18  ;;  %15639 = vmatpush3.bf16.msra.mxu1 %v7559_v55  ;;  %v4783_v26 = vpop.f32.mrb[162].mxu0  ;;  %15640 = vmatprep.mubr.msk.bf16.mxu1 %vm15900_vm4, %v19919_v28 }
 0x3f1   :  { %v4784_v37 = vpop.f32.mrb[163].mxu0 }
 0x3f2   :  { %v4820_v34 = vpop.f32.mrb[160].mxu1 }
 0x3f3   :  { %v4910_v11 = vadd.f32 %v4820_v34, %v4693_v8  ;;  %v4822_v10 = vpop.f32.mrb[161].mxu1  ;;  %15098 = vmatmul.mubr.msk.bf16.vlgmr.msra.gmra.mrb[12].mxu0 %vm2360_vm13, %v15092_v56 }
 0x3f4   :  { %v4911_v54 = vadd.f32 %v4822_v10, %v4694_v58  ;;  %v4824_v48 = vpop.f32.mrb[162].mxu1  ;;  %7947 = vmatprep.mubr.bf16.mxu0 %v19917_v3 }
 0x3f5   :  { %v4825_v5 = vpop.f32.mrb[163].mxu1 }
 0x3f6   :  { %v4861_v57 = vpop.f32.mrb[164].mxu0 }
 0x3f7   :  { %v4912_v51 = vadd.f32 %v4861_v57, %v4695_v21  ;;  %v4863_v41 = vpop.f32.mrb[165].mxu0  ;;  %15641 = vmatmul.mubr.msk.bf16.vlgmr.msra.gmra.mrb[12].mxu1 %vm2360_vm13, %v15092_v56 }
 0x3f8   :  { %v4913_v23 = vadd.f32 %v4863_v41, %v4696_v17  ;;  %v4865_v47 = vpop.f32.mrb[166].mxu0  ;;  %7988 = vmatprep.mubr.bf16.mxu1 %v19917_v3 }
 0x3f9   :  { %v4866_v6 = vpop.f32.mrb[167].mxu0 }
 0x3fa   :  { %v4902_v31 = vpop.f32.mrb[164].mxu1 }
 0x3fb   :  { %v4914_v12 = vadd.f32 %v4902_v31, %v4697_v33  ;;  %v15564_v38 = vpop.f32.mrb[165].mxu1 }
 0x3fc   :  { %v4905_v36 = vpop.f32.mrb[166].mxu1 }
 0x3fd   :  { %v15565_v44 = vpop.f32.mrb[167].mxu1 }
 0x3fe   :  { %v4975_v18 = vpop.f32.mrb[168].mxu0 }
 0x3ff   :  { %v5104_v7 = vadd.f32 %v4975_v18, %v4908_v62  ;;  %v4977_v20 = vpop.f32.mrb[169].mxu0 }
 0x400   :  { %v5105_v32 = vadd.f32 %v4977_v20, %v4909_v59  ;;  %v4979_v15 = vpop.f32.mrb[170].mxu0 }
 0x401   :  { %v4980_v16 = vpop.f32.mrb[171].mxu0 }
 0x402   :  { %v5016_v24 = vpop.f32.mrb[168].mxu1 }
 0x403   :  { %v5106_v30 = vadd.f32 %v5016_v24, %v4910_v11  ;;  %v5018_v8 = vpop.f32.mrb[169].mxu1 }
 0x404   :  { %v5107_v61 = vadd.f32 %v5018_v8, %v4911_v54  ;;  %v5020_v14 = vpop.f32.mrb[170].mxu1 }
 0x405   :  { %v5021_v58 = vpop.f32.mrb[171].mxu1 }
 0x406   :  { %v5057_v45 = vpop.f32.mrb[172].mxu0 }
 0x407   :  { %v5108_v19 = vadd.f32 %v5057_v45, %v4912_v51  ;;  %v5059_v35 = vpop.f32.mrb[173].mxu0 }
 0x408   :  { %v5109_v40 = vadd.f32 %v5059_v35, %v4913_v23  ;;  %v5061_v21 = vpop.f32.mrb[174].mxu0 }
 0x409   :  { %v5062_v49 = vpop.f32.mrb[175].mxu0 }
 0x40a   :  { %v5098_v27 = vpop.f32.mrb[172].mxu1 }
 0x40b   :  { %v5110_v22 = vadd.f32 %v5098_v27, %v4914_v12  ;;  %v15570_v17 = vpop.f32.mrb[173].mxu1 }
 0x40c   :  { %v5101_v42 = vpop.f32.mrb[174].mxu1 }
 0x40d   :  { %v15571_v56 = vpop.f32.mrb[175].mxu1 }
 0x40e   :  { %v5192_v60 = vpop.f32.mrb[176].mxu0 }
 0x40f   :  { %v5321_v52 = vadd.f32 %v5192_v60, %v5104_v7  ;;  %v5194_v33 = vpop.f32.mrb[177].mxu0 }
 0x410   :  { %v5322_v29 = vadd.f32 %v5194_v33, %v5105_v32  ;;  %v5196_v4 = vpop.f32.mrb[178].mxu0 }
 0x411   :  { %v5197_v43 = vpop.f32.mrb[179].mxu0 }
 0x412   :  { %v5233_v53 = vpop.f32.mrb[176].mxu1 }
 0x413   :  { %v5323_v46 = vadd.f32 %v5233_v53, %v5106_v30  ;;  %v5235_v25 = vpop.f32.mrb[177].mxu1 }
 0x414   :  { %v5324_v62 = vadd.f32 %v5235_v25, %v5107_v61  ;;  %v5237_v39 = vpop.f32.mrb[178].mxu1 }
 0x415   :  { %v5238_v55 = vpop.f32.mrb[179].mxu1 }
 0x416   :  { %v5274_v59 = vpop.f32.mrb[180].mxu0 }
 0x417   :  { %v5325_v26 = vadd.f32 %v5274_v59, %v5108_v19  ;;  %v5276_v37 = vpop.f32.mrb[181].mxu0 }
 0x418   :  { %v5326_v34 = vadd.f32 %v5276_v37, %v5109_v40  ;;  %v5278_v11 = vpop.f32.mrb[182].mxu0 }
 0x419   :  { %v5279_v10 = vpop.f32.mrb[183].mxu0 }
 0x41a   :  { %v5315_v54 = vpop.f32.mrb[180].mxu1 }
 0x41b   :  { %v5327_v48 = vadd.f32 %v5315_v54, %v5110_v22  ;;  %v15576_v5 = vpop.f32.mrb[181].mxu1 }
 0x41c   :  { %v5318_v57 = vpop.f32.mrb[182].mxu1 }
 0x41d   :  { %v15577_v51 = vpop.f32.mrb[183].mxu1 }
 0x41e   :  { %v5411_v41 = vpop.f32.mrb[184].mxu0 }
 0x41f   :  { %v5540_v23 = vadd.f32 %v5411_v41, %v5321_v52  ;;  %v5413_v47 = vpop.f32.mrb[185].mxu0 }
 0x420   :  { %v5541_v6 = vadd.f32 %v5413_v47, %v5322_v29  ;;  %v5415_v31 = vpop.f32.mrb[186].mxu0 }
 0x421   :  { %v5416_v12 = vpop.f32.mrb[187].mxu0 }
 0x422   :  { %v5452_v38 = vpop.f32.mrb[184].mxu1 }
 0x423   :  { %v5542_v36 = vadd.f32 %v5452_v38, %v5323_v46  ;;  %v5454_v44 = vpop.f32.mrb[185].mxu1 }
 0x424   :  { %v5543_v18 = vadd.f32 %v5454_v44, %v5324_v62  ;;  %v5456_v7 = vpop.f32.mrb[186].mxu1 }
 0x425   :  { %v5457_v20 = vpop.f32.mrb[187].mxu1 }
 0x426   :  { %v5493_v32 = vpop.f32.mrb[188].mxu0 }
 0x427   :  { %v5544_v15 = vadd.f32 %v5493_v32, %v5325_v26  ;;  %v5495_v16 = vpop.f32.mrb[189].mxu0 }
 0x428   :  { %v5545_v24 = vadd.f32 %v5495_v16, %v5326_v34  ;;  %v5497_v30 = vpop.f32.mrb[190].mxu0 }
 0x429   :  { %v5498_v8 = vpop.f32.mrb[191].mxu0 }
 0x42a   :  { %v5534_v61 = vpop.f32.mrb[188].mxu1 }
 0x42b   :  { %v5546_v14 = vadd.f32 %v5534_v61, %v5327_v48  ;;  %v15582_v58 = vpop.f32.mrb[189].mxu1 }
 0x42c   :  { %v5537_v45 = vpop.f32.mrb[190].mxu1 }
 0x42d   :  { %v15583_v19 = vpop.f32.mrb[191].mxu1 }
 0x42e   :  { %v5630_v35 = vpop.f32.mrb[192].mxu0 }
 0x42f   :  { %v5759_v40 = vadd.f32 %v5630_v35, %v5540_v23  ;;  %v5632_v21 = vpop.f32.mrb[193].mxu0 }
 0x430   :  { %v5760_v49 = vadd.f32 %v5632_v21, %v5541_v6  ;;  %v5634_v27 = vpop.f32.mrb[194].mxu0 }
 0x431   :  { %v5635_v22 = vpop.f32.mrb[195].mxu0 }
 0x432   :  { %v5671_v17 = vpop.f32.mrb[192].mxu1 }
 0x433   :  { %v5761_v42 = vadd.f32 %v5671_v17, %v5542_v36  ;;  %v5673_v56 = vpop.f32.mrb[193].mxu1 }
 0x434   :  { %v5762_v60 = vadd.f32 %v5673_v56, %v5543_v18  ;;  %v5675_v52 = vpop.f32.mrb[194].mxu1 }
 0x435   :  { %v5676_v33 = vpop.f32.mrb[195].mxu1 }
 0x436   :  { %v5712_v29 = vpop.f32.mrb[196].mxu0 }
 0x437   :  { %v5763_v4 = vadd.f32 %v5712_v29, %v5544_v15  ;;  %v5714_v43 = vpop.f32.mrb[197].mxu0 }
 0x438   :  { %v5764_v53 = vadd.f32 %v5714_v43, %v5545_v24  ;;  %v5716_v46 = vpop.f32.mrb[198].mxu0 }
 0x439   :  { %v5717_v25 = vpop.f32.mrb[199].mxu0 }
 0x43a   :  { %v5753_v62 = vpop.f32.mrb[196].mxu1 }
 0x43b   :  { %v5765_v39 = vadd.f32 %v5753_v62, %v5546_v14  ;;  %v15588_v55 = vpop.f32.mrb[197].mxu1 }
 0x43c   :  { %v5756_v59 = vpop.f32.mrb[198].mxu1 }
 0x43d   :  { %v15589_v26 = vpop.f32.mrb[199].mxu1 }
 0x43e   :  { %v5847_v37 = vpop.f32.mrb[200].mxu0 }
 0x43f   :  { %v5976_v34 = vadd.f32 %v5847_v37, %v5759_v40  ;;  %v5849_v11 = vpop.f32.mrb[201].mxu0 }
 0x440   :  { %v5977_v10 = vadd.f32 %v5849_v11, %v5760_v49  ;;  %v5851_v54 = vpop.f32.mrb[202].mxu0 }
 0x441   :  { %v5852_v48 = vpop.f32.mrb[203].mxu0 }
 0x442   :  { %v5888_v5 = vpop.f32.mrb[200].mxu1 }
 0x443   :  { %v5978_v57 = vadd.f32 %v5888_v5, %v5761_v42  ;;  %v5890_v51 = vpop.f32.mrb[201].mxu1 }
 0x444   :  { %v5979_v41 = vadd.f32 %v5890_v51, %v5762_v60  ;;  %v5892_v23 = vpop.f32.mrb[202].mxu1 }
 0x445   :  { %v5893_v47 = vpop.f32.mrb[203].mxu1 }
 0x446   :  { %v5929_v6 = vpop.f32.mrb[204].mxu0 }
 0x447   :  { %v5980_v31 = vadd.f32 %v5929_v6, %v5763_v4  ;;  %v5931_v12 = vpop.f32.mrb[205].mxu0 }
 0x448   :  { %v5981_v38 = vadd.f32 %v5931_v12, %v5764_v53  ;;  %v5933_v36 = vpop.f32.mrb[206].mxu0 }
 0x449   :  { %v5934_v44 = vpop.f32.mrb[207].mxu0 }
 0x44a   :  { %v5970_v18 = vpop.f32.mrb[204].mxu1 }
 0x44b   :  { %v5982_v7 = vadd.f32 %v5970_v18, %v5765_v39  ;;  %v15594_v20 = vpop.f32.mrb[205].mxu1 }
 0x44c   :  { %v5973_v32 = vpop.f32.mrb[206].mxu1 }
 0x44d   :  { %v15595_v15 = vpop.f32.mrb[207].mxu1 }
 0x44e   :  { %v6064_v16 = vpop.f32.mrb[208].mxu0 }
 0x44f   :  { %v6193_v24 = vadd.f32 %v6064_v16, %v5976_v34  ;;  %v6066_v30 = vpop.f32.mrb[209].mxu0 }
 0x450   :  { %v6194_v8 = vadd.f32 %v6066_v30, %v5977_v10  ;;  %v6068_v61 = vpop.f32.mrb[210].mxu0 }
 0x451   :  { %v6069_v14 = vpop.f32.mrb[211].mxu0 }
 0x452   :  { %v6105_v58 = vpop.f32.mrb[208].mxu1 }
 0x453   :  { %v6195_v45 = vadd.f32 %v6105_v58, %v5978_v57  ;;  %v6107_v19 = vpop.f32.mrb[209].mxu1 }
 0x454   :  { %v6196_v35 = vadd.f32 %v6107_v19, %v5979_v41  ;;  %v6109_v40 = vpop.f32.mrb[210].mxu1 }
 0x455   :  { %v6110_v21 = vpop.f32.mrb[211].mxu1 }
 0x456   :  { %v6146_v49 = vpop.f32.mrb[212].mxu0 }
 0x457   :  { %v6197_v27 = vadd.f32 %v6146_v49, %v5980_v31  ;;  %v6148_v22 = vpop.f32.mrb[213].mxu0 }
 0x458   :  { %v6198_v17 = vadd.f32 %v6148_v22, %v5981_v38  ;;  %v6150_v42 = vpop.f32.mrb[214].mxu0 }
 0x459   :  { %v6151_v56 = vpop.f32.mrb[215].mxu0 }
 0x45a   :  { %v6187_v60 = vpop.f32.mrb[212].mxu1 }
 0x45b   :  { %v6199_v52 = vadd.f32 %v6187_v60, %v5982_v7  ;;  %v15600_v33 = vpop.f32.mrb[213].mxu1 }
 0x45c   :  { %v6190_v29 = vpop.f32.mrb[214].mxu1 }
 0x45d   :  { %v15601_v4 = vpop.f32.mrb[215].mxu1 }
 0x45e   :  { %v6281_v43 = vpop.f32.mrb[216].mxu0 }
 0x45f   :  { %v6410_v53 = vadd.f32 %v6281_v43, %v6193_v24  ;;  %v6283_v46 = vpop.f32.mrb[217].mxu0 }
 0x460   :  { %v6411_v25 = vadd.f32 %v6283_v46, %v6194_v8  ;;  %v6285_v62 = vpop.f32.mrb[218].mxu0 }
 0x461   :  { %v6286_v39 = vpop.f32.mrb[219].mxu0 }
 0x462   :  { %v6322_v55 = vpop.f32.mrb[216].mxu1 }
 0x463   :  { %v6412_v59 = vadd.f32 %v6322_v55, %v6195_v45  ;;  %v6324_v26 = vpop.f32.mrb[217].mxu1 }
 0x464   :  { %v6413_v37 = vadd.f32 %v6324_v26, %v6196_v35  ;;  %v6326_v34 = vpop.f32.mrb[218].mxu1 }
 0x465   :  { %v6327_v11 = vpop.f32.mrb[219].mxu1 }
 0x466   :  { %v6363_v10 = vpop.f32.mrb[220].mxu0 }
 0x467   :  { %v6414_v54 = vadd.f32 %v6363_v10, %v6197_v27  ;;  %v6365_v48 = vpop.f32.mrb[221].mxu0 }
 0x468   :  { %v6415_v5 = vadd.f32 %v6365_v48, %v6198_v17  ;;  %v6367_v57 = vpop.f32.mrb[222].mxu0 }
 0x469   :  { %v6368_v51 = vpop.f32.mrb[223].mxu0 }
 0x46a   :  { %v6404_v41 = vpop.f32.mrb[220].mxu1 }
 0x46b   :  { %v6416_v23 = vadd.f32 %v6404_v41, %v6199_v52  ;;  %v15606_v47 = vpop.f32.mrb[221].mxu1 }
 0x46c   :  { %v6407_v6 = vpop.f32.mrb[222].mxu1 }
 0x46d   :  { %v15607_v31 = vpop.f32.mrb[223].mxu1 }
 0x46e   :  { %v6500_v12 = vpop.f32.mrb[224].mxu0 }
 0x46f   :  { %v6629_v38 = vadd.f32 %v6500_v12, %v6410_v53  ;;  %v6502_v36 = vpop.f32.mrb[225].mxu0 }
 0x470   :  { %v6630_v44 = vadd.f32 %v6502_v36, %v6411_v25  ;;  %v6504_v18 = vpop.f32.mrb[226].mxu0 }
 0x471   :  { %v6505_v7 = vpop.f32.mrb[227].mxu0 }
 0x472   :  { %v6541_v20 = vpop.f32.mrb[224].mxu1 }
 0x473   :  { %v6631_v32 = vadd.f32 %v6541_v20, %v6412_v59  ;;  %v6543_v15 = vpop.f32.mrb[225].mxu1 }
 0x474   :  { %v6632_v16 = vadd.f32 %v6543_v15, %v6413_v37  ;;  %v6545_v24 = vpop.f32.mrb[226].mxu1 }
 0x475   :  { %v6546_v30 = vpop.f32.mrb[227].mxu1 }
 0x476   :  { %v6582_v8 = vpop.f32.mrb[228].mxu0 }
 0x477   :  { %v6633_v61 = vadd.f32 %v6582_v8, %v6414_v54  ;;  %v6584_v14 = vpop.f32.mrb[229].mxu0 }
 0x478   :  { %v6634_v58 = vadd.f32 %v6584_v14, %v6415_v5  ;;  %v6586_v45 = vpop.f32.mrb[230].mxu0 }
 0x479   :  { %v6587_v19 = vpop.f32.mrb[231].mxu0 }
 0x47a   :  { %v6623_v35 = vpop.f32.mrb[228].mxu1 }
 0x47b   :  { %v6635_v40 = vadd.f32 %v6623_v35, %v6416_v23  ;;  %v15612_v21 = vpop.f32.mrb[229].mxu1 }
 0x47c   :  { %v6626_v49 = vpop.f32.mrb[230].mxu1 }
 0x47d   :  { %v15613_v27 = vpop.f32.mrb[231].mxu1 }
 0x47e   :  { %v6719_v22 = vpop.f32.mrb[232].mxu0 }
 0x47f   :  { %v6721_v17 = vpop.f32.mrb[233].mxu0  ;;  %v6848_v42 = vadd.f32 %v6719_v22, %v6629_v38 }
 0x480   :  { %v6723_v56 = vpop.f32.mrb[234].mxu0  ;;  %v6849_v60 = vadd.f32 %v6721_v17, %v6630_v44 }
 0x481   :  { %v6724_v52 = vpop.f32.mrb[235].mxu0 }
 0x482   :  { %v6760_v33 = vpop.f32.mrb[232].mxu1 }
 0x483   :  { %v6762_v29 = vpop.f32.mrb[233].mxu1  ;;  %v6850_v4 = vadd.f32 %v6760_v33, %v6631_v32 }
 0x484   :  { %v6764_v43 = vpop.f32.mrb[234].mxu1  ;;  %v6851_v53 = vadd.f32 %v6762_v29, %v6632_v16 }
 0x485   :  { %v6765_v46 = vpop.f32.mrb[235].mxu1 }
 0x486   :  { %v6801_v25 = vpop.f32.mrb[236].mxu0 }
 0x487   :  { %v6803_v62 = vpop.f32.mrb[237].mxu0  ;;  %v6852_v39 = vadd.f32 %v6801_v25, %v6633_v61 }
 0x488   :  { %v6805_v55 = vpop.f32.mrb[238].mxu0  ;;  %v6853_v59 = vadd.f32 %v6803_v62, %v6634_v58 }
 0x489   :  { %v6806_v26 = vpop.f32.mrb[239].mxu0 }
 0x48a   :  { %v6842_v37 = vpop.f32.mrb[236].mxu1 }
 0x48b   :  { %v15618_v34 = vpop.f32.mrb[237].mxu1  ;;  %v6854_v11 = vadd.f32 %v6842_v37, %v6635_v40 }
 0x48c   :  { %v6845_v10 = vpop.f32.mrb[238].mxu1 }
 0x48d   :  { %v15619_v54 = vpop.f32.mrb[239].mxu1 }
 0x48e   :  { %v6938_v48 = vpop.f32.mrb[240].mxu0 }
 0x48f   :  { %v7067_v5 = vadd.f32 %v6938_v48, %v6848_v42  ;;  %v6940_v57 = vpop.f32.mrb[241].mxu0 }
 0x490   :  { %v7068_v51 = vadd.f32 %v6940_v57, %v6849_v60  ;;  %v6942_v41 = vpop.f32.mrb[242].mxu0 }
 0x491   :  { %v6943_v23 = vpop.f32.mrb[243].mxu0 }
 0x492   :  { %v6979_v47 = vpop.f32.mrb[240].mxu1 }
 0x493   :  { %v7069_v6 = vadd.f32 %v6979_v47, %v6850_v4  ;;  %v6981_v31 = vpop.f32.mrb[241].mxu1 }
 0x494   :  { %v7070_v12 = vadd.f32 %v6981_v31, %v6851_v53  ;;  %v6983_v38 = vpop.f32.mrb[242].mxu1 }
 0x495   :  { %v6984_v36 = vpop.f32.mrb[243].mxu1 }
 0x496   :  { %v7020_v44 = vpop.f32.mrb[244].mxu0 }
 0x497   :  { %v7071_v18 = vadd.f32 %v7020_v44, %v6852_v39  ;;  %v7022_v7 = vpop.f32.mrb[245].mxu0 }
 0x498   :  { %v7072_v20 = vadd.f32 %v7022_v7, %v6853_v59  ;;  %v7024_v32 = vpop.f32.mrb[246].mxu0 }
 0x499   :  { %v7025_v15 = vpop.f32.mrb[247].mxu0 }
 0x49a   :  { %v7061_v16 = vpop.f32.mrb[244].mxu1  ;;  %v7734_v15 = vpop.permute.xlu0 %7733 }
 0x49b   :  { %v7073_v24 = vadd.f32 %v7061_v16, %v6854_v11  ;;  %v15624_v30 = vpop.f32.mrb[245].mxu1 }
 0x49c   :  { %v7064_v8 = vpop.f32.mrb[246].mxu1 }
 0x49d   :  { %v15625_v61 = vpop.f32.mrb[247].mxu1 }
 0x49e   :  { %v7157_v14 = vpop.f32.mrb[248].mxu0 }
 0x49f   :  { %v7286_v58 = vadd.f32 %v7157_v14, %v7067_v5  ;;  %v7159_v45 = vpop.f32.mrb[249].mxu0 }
 0x4a0   :  { %v7287_v19 = vadd.f32 %v7159_v45, %v7068_v51  ;;  %v7161_v35 = vpop.f32.mrb[250].mxu0 }
 0x4a1   :  { %v7162_v40 = vpop.f32.mrb[251].mxu0 }
 0x4a2   :  { %v7198_v21 = vpop.f32.mrb[248].mxu1 }
 0x4a3   :  { %v7288_v49 = vadd.f32 %v7198_v21, %v7069_v6  ;;  %v7200_v27 = vpop.f32.mrb[249].mxu1 }
 0x4a4   :  { %v7289_v22 = vadd.f32 %v7200_v27, %v7070_v12  ;;  %v7202_v17 = vpop.f32.mrb[250].mxu1 }
 0x4a5   :  { %v7203_v42 = vpop.f32.mrb[251].mxu1 }
 0x4a6   :  { %v7239_v56 = vpop.f32.mrb[252].mxu0 }
 0x4a7   :  { %v7290_v60 = vadd.f32 %v7239_v56, %v7071_v18  ;;  %v7241_v52 = vpop.f32.mrb[253].mxu0 }
 0x4a8   :  { %v7291_v33 = vadd.f32 %v7241_v52, %v7072_v20  ;;  %v7243_v29 = vpop.f32.mrb[254].mxu0 }
 0x4a9   :  { %v7244_v4 = vpop.f32.mrb[255].mxu0 }
 0x4aa   :  { %v7280_v43 = vpop.f32.mrb[252].mxu1 }
 0x4ab   :  { %v7292_v53 = vadd.f32 %v7280_v43, %v7073_v24  ;;  %v15630_v46 = vpop.f32.mrb[253].mxu1 }
 0x4ac   :  { %v7283_v25 = vpop.f32.mrb[254].mxu1 }
 0x4ad   :  { %v15631_v62 = vpop.f32.mrb[255].mxu1 }
 0x4ae   :  { %v7376_v39 = vpop.f32.mrb[0].mxu0 }
 0x4af   :  { %v7505_v55 = vadd.f32 %v7376_v39, %v7286_v58  ;;  %v7378_v59 = vpop.f32.mrb[1].mxu0 }
 0x4b0   :  { %v7506_v26 = vadd.f32 %v7378_v59, %v7287_v19  ;;  %v7380_v37 = vpop.f32.mrb[2].mxu0 }
 0x4b1   :  { %v7381_v34 = vpop.f32.mrb[3].mxu0 }
 0x4b2   :  { %v7417_v11 = vpop.f32.mrb[0].mxu1 }
 0x4b3   :  { %v7507_v10 = vadd.f32 %v7417_v11, %v7288_v49  ;;  %v7419_v54 = vpop.f32.mrb[1].mxu1 }
 0x4b4   :  { %v7508_v48 = vadd.f32 %v7419_v54, %v7289_v22  ;;  %v7421_v5 = vpop.f32.mrb[2].mxu1 }
 0x4b5   :  { %v7422_v57 = vpop.f32.mrb[3].mxu1 }
 0x4b6   :  { %v7458_v51 = vpop.f32.mrb[4].mxu0 }
 0x4b7   :  { %v7509_v41 = vadd.f32 %v7458_v51, %v7290_v60  ;;  %v7460_v23 = vpop.f32.mrb[5].mxu0 }
 0x4b8   :  { %v7510_v47 = vadd.f32 %v7460_v23, %v7291_v33  ;;  %v7462_v6 = vpop.f32.mrb[6].mxu0 }
 0x4b9   :  { %v7463_v31 = vpop.f32.mrb[7].mxu0 }
 0x4ba   :  { %v7499_v12 = vpop.f32.mrb[4].mxu1 }
 0x4bb   :  { %v7511_v38 = vadd.f32 %v7499_v12, %v7292_v53  ;;  %v15636_v36 = vpop.f32.mrb[5].mxu1 }
 0x4bc   :  { %v7502_v44 = vpop.f32.mrb[6].mxu1 }
 0x4bd   :  { %v15637_v18 = vpop.f32.mrb[7].mxu1 }
 0x4be   :  { %v7595_v7 = vpop.f32.mrb[8].mxu0 }
 0x4bf   :  { %v7724_v20 = vadd.f32 %v7595_v7, %v7505_v55  ;;  %v7597_v32 = vpop.f32.mrb[9].mxu0 }
 0x4c0   :  { %v7725_v16 = vadd.f32 %v7597_v32, %v7506_v26  ;;  %v7599_v24 = vpop.f32.mrb[10].mxu0 }
 0x4c1   :  { %v7736_v30 = vadd.f32 %v7734_v15, %v7724_v20  ;;  %v7600_v8 = vpop.f32.mrb[11].mxu0 }
 0x4c2   :  { %v7737_v61 = vadd.f32 %v7734_v15, %v7725_v16  ;;  %v7636_v14 = vpop.f32.mrb[8].mxu1 }
 0x4c3   :  { %v17845_v58 = vmul.f32 %v7736_v30, %v16485_v63  ;;  %v7726_v45 = vadd.f32 %v7636_v14, %v7507_v10  ;;  %v7638_v19 = vpop.f32.mrb[9].mxu1 }
 0x4c4   :  { %v17848_v35 = vmul.f32 %v7737_v61, %v16488_v0  ;;  %v7727_v40 = vadd.f32 %v7638_v19, %v7508_v48  ;;  %v7640_v21 = vpop.f32.mrb[10].mxu1 }
 0x4c5   :  { %19985 = vst [vmem:[#allocation10_spill] sm:$0xff] %v17845_v58  ;;  %v7738_v49 = vadd.f32 %v7734_v15, %v7726_v45  ;;  %v7641_v27 = vpop.f32.mrb[11].mxu1  ;;  %v7768_v22 = vmul.f32 %v17845_v58, %v17845_v58  ;;  %v7757_v45 = vld [vmem:[%s19992_s15] sm:$0xff] }
 0x4c6   :  { %19986 = vst [vmem:[#allocation11_spill] sm:$0xff] %v17848_v35  ;;  %v7739_v17 = vadd.f32 %v7734_v15, %v7727_v40  ;;  %v7677_v42 = vpop.f32.mrb[12].mxu0  ;;  %v7759_v56 = vadd.f32 %v17848_v35, %v17845_v58  ;;  %v7769_v60 = vmul.f32 %v17848_v35, %v17848_v35  ;;  %v7758_v21 = vld [vmem:[%s19993_s10] sm:$0xff] }
 0x4c7   :  { %v17857_v52 = vmul.f32 %v7738_v49, %v16494_v2  ;;  %v7728_v33 = vadd.f32 %v7677_v42, %v7509_v41  ;;  %v7679_v29 = vpop.f32.mrb[13].mxu0 }
 0x4c8   :  { %v17860_v4 = vmul.f32 %v7739_v17, %v16501_v13  ;;  %v7729_v43 = vadd.f32 %v7679_v29, %v7510_v47  ;;  %v7681_v53 = vpop.f32.mrb[14].mxu0  ;;  %v7775_v46 = vadd.f32 %v7769_v60, %v7768_v22 }
 0x4c9   :  { %19987 = vst [vmem:[#allocation12_spill] sm:$0xff] %v17857_v52  ;;  %v7740_v25 = vadd.f32 %v7734_v15, %v7728_v33  ;;  %v7682_v62 = vpop.f32.mrb[15].mxu0  ;;  %v7760_v39 = vadd.f32 %v7759_v56, %v17857_v52  ;;  %v7770_v55 = vmul.f32 %v17857_v52, %v17857_v52 }
 0x4ca   :  { %19988 = vst [vmem:[#allocation13_spill] sm:$0xff] %v17860_v4  ;;  %v7741_v59 = vadd.f32 %v7734_v15, %v7729_v43  ;;  %v7718_v26 = vpop.f32.mrb[12].mxu1  ;;  %v7771_v37 = vmul.f32 %v17860_v4, %v17860_v4 }
 0x4cb   :  { %v17868_v34 = vmul.f32 %v7740_v25, %v16491_v1  ;;  %v7730_v11 = vadd.f32 %v7718_v26, %v7511_v38  ;;  %v15642_v10 = vpop.f32.mrb[13].mxu1  ;;  %v7761_v54 = vadd.f32 %v7760_v39, %v17860_v4  ;;  %v7776_v48 = vadd.f32 %v7775_v46, %v7770_v55 }
 0x4cc   :  { %v17872_v5 = vmul.f32 %v7741_v59, %v16527_v50  ;;  %v7721_v57 = vpop.f32.mrb[14].mxu1 }
 0x4cd   :  { %19989 = vst [vmem:[#allocation14_spill] sm:$0xff] %v17868_v34  ;;  %v7742_v51 = vadd.f32 %v7734_v15, %v7730_v11  ;;  %v15643_v41 = vpop.f32.mrb[15].mxu1  ;;  %v7762_v23 = vadd.f32 %v7761_v54, %v17868_v34  ;;  %v7772_v47 = vmul.f32 %v17868_v34, %v17868_v34  ;;  %v7777_v6 = vadd.f32 %v7776_v48, %v7771_v37 }
 0x4ce   :  { %19990 = vst [vmem:[#allocation15_spill] sm:$0xff] %v17872_v5  ;;  %v7773_v31 = vmul.f32 %v17872_v5, %v17872_v5 }
 0x4cf   :  { %v17880_v12 = vmul.f32 %v7742_v51, %v16521_v9  ;;  %v7763_v38 = vadd.f32 %v7762_v23, %v17872_v5  ;;  %v7778_v36 = vadd.f32 %v7777_v6, %v7772_v47 }
 0x4d1   :  { %19991 = vst [vmem:[#allocation16_spill] sm:$0xff] %v17880_v12  ;;  %v17884_v44 = vadd.f32 %v7763_v38, %v17880_v12  ;;  %v7774_v18 = vmul.f32 %v17880_v12, %v17880_v12  ;;  %v7779_v7 = vadd.f32 %v7778_v36, %v7773_v31 }
 0x4d3   :  { %7765 = vadd.xlane.f32.xlu1 %v17884_v44  ;;  %v17889_v20 = vadd.f32 %v7779_v7, %v7774_v18 }
 0x4d5   :  { %7781 = vadd.xlane.f32.xlu0 %v17889_v20 }
 0x560   :  { %v7766_v32 = vpop.xlane.xlu1 %7765 }
 0x561   :  { %v7767_v15 = vmul.f32 0.001953125, %v7766_v32 }
 0x562   :  { %v7782_v16 = vpop.xlane.xlu0 %7781 }
 0x563   :  { %v7784_v24 = vmul.f32 %v7767_v15, %v7767_v15  ;;  %v7783_v30 = vmul.f32 0.001953125, %v7782_v16 }
 0x565   :  { %v7785_v8 = vsub.f32 %v7783_v30, %v7784_v24 }
 0x567   :  { %v7786_v61 = vmax.f32 %v7785_v8, 0.0  ;;  %v7830_v8 = vld [vmem:[%s19994_s2] sm:$0xff] }
 0x569   :  { %v7787_v14 = vadd.f32 1e-05, %v7786_v61 }
 0x56b   :  { %15868 = vrsqrt.f32 %v7787_v14 }
 0x575   :  { %v15869_v19 = vpop.eup %15868 }
 0x576   :  { %v7789_v40 = vmul.f32 %v15869_v19, %v7757_v45 }
 0x578   :  { %7792 = vperm.xlu0 %15859, %v7789_v40   ;;  %v7802_v49 = vmul.f32 %v7789_v40, %v7767_v15 }
 0x57a   :  { %v7803_v27 = vsub.f32 %v7758_v21, %v7802_v49  ;;  %v15100_v21 = vld [vmem:[%s19896_s5 + $0x4] sm:$0xf] }
 0x57c   :  { %7806 = vperm.xlu1 %15860, %v7803_v27  }
 0x5f7   :  { %v7793_v22 = vpop.permute.xlu0 %7792 }
 0x5f8   :  { %v7795_v17 = vmul.f32 %v7793_v22, %v17845_v58  ;;  %v7796_v42 = vmul.f32 %v7793_v22, %v17848_v35  ;;  %v7797_v56 = vmul.f32 %v7793_v22, %v17857_v52  ;;  %v7798_v60 = vmul.f32 %v7793_v22, %v17860_v4 }
 0x5f9   :  { %v7799_v33 = vmul.f32 %v7793_v22, %v17868_v34  ;;  %v7800_v29 = vmul.f32 %v7793_v22, %v17872_v5  ;;  %v7801_v10 = vmul.f32 %v7793_v22, %v17880_v12 }
 0x5fb   :  { %v7807_v43 = vpop.permute.xlu1 %7806 }
 0x5fc   :  { %v7809_v53 = vadd.f32 %v7807_v43, %v7795_v17  ;;  %v7810_v46 = vadd.f32 %v7807_v43, %v7796_v42  ;;  %v7811_v25 = vadd.f32 %v7807_v43, %v7797_v56  ;;  %v7812_v62 = vadd.f32 %v7807_v43, %v7798_v60 }
 0x5fd   :  { %v7813_v39 = vadd.f32 %v7807_v43, %v7799_v33  ;;  %v7814_v55 = vadd.f32 %v7807_v43, %v7800_v29  ;;  %v7815_v57 = vadd.f32 %v7807_v43, %v7801_v10  ;;  %v7838_v10 = vld [vmem:[%s19896_s5] sm:$0xf] }
 0x5fe   :  { %v7816_v59 = vmax.f32 %v7809_v53, 0.0  ;;  %v7817_v26 = vmax.f32 %v7810_v46, 0.0  ;;  %v7818_v37 = vmax.f32 %v7811_v25, 0.0  ;;  %v7819_v11 = vmax.f32 %v7812_v62, 0.0 }
 0x5ff   :  { %v7820_v51 = vmax.f32 %v7813_v39, 0.0  ;;  %v7821_v41 = vmax.f32 %v7814_v55, 0.0  ;;  %v7822_v38 = vmax.f32 %v7815_v57, 0.0 }
 0x600   :  { %v7823_v54 = vmul.f32 %v7816_v59, %v16485_v63  ;;  %v7824_v48 = vmul.f32 %v7817_v26, %v16488_v0  ;;  %v7825_v23 = vmul.f32 %v7818_v37, %v16494_v2  ;;  %v7826_v47 = vmul.f32 %v7819_v11, %v16501_v13 }
 0x601   :  { %v7827_v36 = vmul.f32 %v7820_v51, %v16491_v1  ;;  %v7828_v18 = vmul.f32 %v7821_v41, %v16527_v50  ;;  %v7829_v15 = vmul.f32 %v7822_v38, %v16521_v9 }
 0x602   :  { %v17909_v6 = vpack.c.bf16 %v7823_v54, %v7823_v54  ;;  %v17911_v31 = vpack.c.bf16 %v7824_v48, %v7824_v48  ;;  %v17919_v7 = vpack.c.bf16 %v7825_v23, %v7825_v23  ;;  %v17921_v32 = vpack.c.bf16 %v7826_v47, %v7826_v47 }
 0x603   :  { %v17928_v16 = vpack.c.bf16 %v7827_v36, %v7827_v36  ;;  %v17930_v24 = vpack.c.bf16 %v7828_v18, %v7828_v18  ;;  %v17936_v30 = vpack.c.bf16 %v7829_v15, %v7829_v15 }
 0x604   :  { %7872 = vrot.lane.b32.xlu0 %v17911_v31, %s15891_s0  ;;  %7870 = vrot.lane.b32.xlu1 %v17909_v6, %s15891_s0 }
 0x608   :  { %7876 = vrot.lane.b32.xlu0 %v17921_v32, %s15891_s0  ;;  %7874 = vrot.lane.b32.xlu1 %v17919_v7, %s15891_s0 }
 0x60c   :  { %7880 = vrot.lane.b32.xlu0 %v17930_v24, %s15891_s0  ;;  %7878 = vrot.lane.b32.xlu1 %v17928_v16, %s15891_s0 }
 0x610   :  { %7846 = vrot.lane.b32.xlu0 %v17909_v6, %s15892_s9  ;;  %7882 = vrot.lane.b32.xlu1 %v17936_v30, %s15891_s0 }
 0x614   :  { %7850 = vrot.lane.b32.xlu0 %v17919_v7, %s15892_s9  ;;  %7848 = vrot.lane.b32.xlu1 %v17911_v31, %s15892_s9 }
 0x618   :  { %7854 = vrot.lane.b32.xlu0 %v17928_v16, %s15892_s9  ;;  %7852 = vrot.lane.b32.xlu1 %v17921_v32, %s15892_s9 }
 0x61c   :  { %7858 = vrot.lane.b32.xlu0 %v17936_v30, %s15892_s9  ;;  %7856 = vrot.lane.b32.xlu1 %v17930_v24, %s15892_s9 }
 0x620   :  { %8268 = vrot.lane.b32.xlu0 %v17911_v31, %s15893_s26  ;;  %8266 = vrot.lane.b32.xlu1 %v17909_v6, %s15893_s26 }
 0x624   :  { %8272 = vrot.lane.b32.xlu0 %v17921_v32, %s15893_s26  ;;  %8270 = vrot.lane.b32.xlu1 %v17919_v7, %s15893_s26 }
 0x628   :  { %8276 = vrot.lane.b32.xlu0 %v17930_v24, %s15893_s26  ;;  %8274 = vrot.lane.b32.xlu1 %v17928_v16, %s15893_s26 }
 0x62c   :  { %8483 = vrot.lane.b32.xlu0 %v17909_v6, %s15894_s11  ;;  %8278 = vrot.lane.b32.xlu1 %v17936_v30, %s15893_s26 }
 0x630   :  { %8487 = vrot.lane.b32.xlu0 %v17919_v7, %s15894_s11  ;;  %8485 = vrot.lane.b32.xlu1 %v17911_v31, %s15894_s11 }
 0x634   :  { %8491 = vrot.lane.b32.xlu0 %v17928_v16, %s15894_s11  ;;  %8489 = vrot.lane.b32.xlu1 %v17921_v32, %s15894_s11 }
 0x638   :  { %8495 = vrot.lane.b32.xlu0 %v17936_v30, %s15894_s11  ;;  %8493 = vrot.lane.b32.xlu1 %v17930_v24, %s15894_s11 }
 0x63c   :  { %8898 = vrot.lane.b32.xlu0 %v17911_v31, %s15895_s4  ;;  %8896 = vrot.lane.b32.xlu1 %v17909_v6, %s15895_s4 }
 0x640   :  { %8902 = vrot.lane.b32.xlu0 %v17921_v32, %s15895_s4  ;;  %8900 = vrot.lane.b32.xlu1 %v17919_v7, %s15895_s4 }
 0x644   :  { %8906 = vrot.lane.b32.xlu0 %v17930_v24, %s15895_s4  ;;  %8904 = vrot.lane.b32.xlu1 %v17928_v16, %s15895_s4 }
 0x648   :  { %9113 = vrot.lane.b32.xlu0 %v17909_v6, %s15896_s1  ;;  %8908 = vrot.lane.b32.xlu1 %v17936_v30, %s15895_s4 }
 0x64c   :  { %9117 = vrot.lane.b32.xlu0 %v17919_v7, %s15896_s1  ;;  %9115 = vrot.lane.b32.xlu1 %v17911_v31, %s15896_s1 }
 0x650   :  { %9121 = vrot.lane.b32.xlu0 %v17928_v16, %s15896_s1  ;;  %9119 = vrot.lane.b32.xlu1 %v17921_v32, %s15896_s1 }
 0x654   :  { %9125 = vrot.lane.b32.xlu0 %v17936_v30, %s15896_s1  ;;  %9123 = vrot.lane.b32.xlu1 %v17930_v24, %s15896_s1 }
 0x658   :  { %9332 = vrot.lane.b32.xlu0 %v17911_v31, %s15897_s27  ;;  %9330 = vrot.lane.b32.xlu1 %v17909_v6, %s15897_s27 }
 0x65c   :  { %9336 = vrot.lane.b32.xlu0 %v17921_v32, %s15897_s27  ;;  %9334 = vrot.lane.b32.xlu1 %v17919_v7, %s15897_s27 }
 0x660   :  { %9340 = vrot.lane.b32.xlu0 %v17930_v24, %s15897_s27  ;;  %9338 = vrot.lane.b32.xlu1 %v17928_v16, %s15897_s27 }
 0x664   :  { %9547 = vrot.lane.b32.xlu0 %v17909_v6, %s15898_s3  ;;  %9342 = vrot.lane.b32.xlu1 %v17936_v30, %s15897_s27 }
 0x668   :  { %9551 = vrot.lane.b32.xlu0 %v17919_v7, %s15898_s3  ;;  %9549 = vrot.lane.b32.xlu1 %v17911_v31, %s15898_s3 }
 0x66c   :  { %9555 = vrot.lane.b32.xlu0 %v17928_v16, %s15898_s3  ;;  %9553 = vrot.lane.b32.xlu1 %v17921_v32, %s15898_s3 }
 0x670   :  { %9559 = vrot.lane.b32.xlu0 %v17936_v30, %s15898_s3  ;;  %9557 = vrot.lane.b32.xlu1 %v17930_v24, %s15898_s3 }
 0x674   :  { %9764 = vperm.xlu1 %15860, %v7830_v8  }
 0x676   :  { %v7873_v61 = vpop.permute.xlu0 %7872  ;;  %v7871_v14 = vpop.permute.xlu1 %7870 }
 0x677   :  { %v7891_v45 = vsel %vm154_vm0, 0, %v7871_v14  ;;  %v7884_v19 = vsel %vm154_vm0, %v7871_v14, %v7873_v61 }
 0x678   :  { %15101 = vmatprep.subr.msk.bf16.mxu0 %vm2286_vm11, %v7884_v19  ;;  %v7895_v40 = vsel %vm2286_vm11, %v7891_v45, 0 }
 0x679   :  { %7916 = vmatpush1.bf16.msra.mxu0 %v7895_v40 }
 0x67a   :  { %v7877_v49 = vpop.permute.xlu0 %7876  ;;  %v7875_v27 = vpop.permute.xlu1 %7874 }
 0x67b   :  { %v7885_v22 = vsel %vm154_vm0, %v7873_v61, %v7875_v27  ;;  %v7886_v17 = vsel %vm154_vm0, %v7875_v27, %v7877_v49 }
 0x67c   :  { %15102 = vmatmul.mubr.msk.bf16.vlgmr.msra.gmra.mrb[16].mxu0 %vm2360_vm13, %v15100_v21  ;;  %15103 = vmatprep.subr.msk.bf16.mxu1 %vm2286_vm11, %v7886_v17  ;;  %v7901_v42 = vsel %vm2286_vm11, %v7885_v22, 0  ;;  %v15115_v17 = vld [vmem:[%s19896_s5 + $0x8] sm:$0xf] }
 0x67d   :  { %7957 = vmatpush1.bf16.msra.mxu1 %v7901_v42  ;;  %8029 = vmatprep.mubr.bf16.mxu0 %v19917_v3 }
 0x67e   :  { %v7881_v56 = vpop.permute.xlu0 %7880  ;;  %v7879_v60 = vpop.permute.xlu1 %7878  ;;  %15644 = vmatprep.subr.bf16.mxu1 %v19919_v28 }
 0x67f   :  { %v7887_v33 = vsel %vm154_vm0, %v7877_v49, %v7879_v60  ;;  %v7888_v29 = vsel %vm154_vm0, %v7879_v60, %v7881_v56 }
 0x680   :  { %15104 = vmatmul.mubr.msk.bf16.vlgmr.msra.gmra.mrb[16].mxu1 %vm2360_vm13, %v15100_v21  ;;  %15105 = vmatprep.subr.msk.bf16.mxu0 %vm2286_vm11, %v7888_v29  ;;  %v7907_v43 = vsel %vm2286_vm11, %v7887_v33, 0 }
 0x681   :  { %7998 = vmatpush1.bf16.msra.mxu0 %v7907_v43  ;;  %15646 = vmatprep.mubr.msk.bf16.mxu1 %vm15900_vm4, %v19919_v28 }
 0x682   :  { %v7847_v53 = vpop.permute.xlu0 %7846  ;;  %v7883_v46 = vpop.permute.xlu1 %7882 }
 0x683   :  { %v7889_v25 = vsel %vm154_vm0, %v7881_v56, %v7883_v46  ;;  %v7867_v39 = vsel %vm127_vm3, 0, %v7847_v53 }
 0x684   :  { %v7913_v62 = vsel %vm2286_vm11, %v7889_v25, 0  ;;  %15106 = vmatmul.mubr.msk.bf16.vlgmr.msra.gmra.mrb[20].mxu0 %vm2360_vm13, %v15100_v21  ;;  %v8081_v37 = vsel %vm2286_vm11, %v7867_v39, 0 }
 0x685   :  { %15645 = vmatpush3.bf16.msra.mxu1 %v7913_v62  ;;  %8133 = vmatprep.mubr.bf16.mxu0 %v19917_v3 }
 0x686   :  { %v7851_v55 = vpop.permute.xlu0 %7850  ;;  %v7849_v59 = vpop.permute.xlu1 %7848 }
 0x687   :  { %v7860_v26 = vsel %vm127_vm3, %v7847_v53, %v7849_v59  ;;  %v7861_v11 = vsel %vm127_vm3, %v7849_v59, %v7851_v55 }
 0x688   :  { %15647 = vmatmul.mubr.msk.bf16.vlgmr.msra.gmra.mrb[20].mxu1 %vm2360_vm13, %v15100_v21  ;;  %15108 = vmatprep.subr.msk.bf16.mxu0 %vm2286_vm11, %v7860_v26  ;;  %v8087_v51 = vsel %vm2286_vm11, %v7861_v11, 0 }
 0x689   :  { %8102 = vmatpush1.bf16.msra.mxu0 %v8081_v37  ;;  %8174 = vmatprep.mubr.bf16.mxu1 %v19917_v3 }
 0x68a   :  { %v7855_v54 = vpop.permute.xlu0 %7854  ;;  %v7853_v48 = vpop.permute.xlu1 %7852 }
 0x68b   :  { %v7862_v57 = vsel %vm127_vm3, %v7851_v55, %v7853_v48  ;;  %v7863_v41 = vsel %vm127_vm3, %v7853_v48, %v7855_v54 }
 0x68c   :  { %15109 = vmatmul.mubr.msk.bf16.vlgmr.msra.gmra.mrb[24].mxu0 %vm2360_vm13, %v7838_v10  ;;  %15110 = vmatprep.subr.msk.bf16.mxu1 %vm2286_vm11, %v7862_v57  ;;  %v8093_v18 = vsel %vm2286_vm11, %v7863_v41, 0 }
 0x68d   :  { %8143 = vmatpush1.bf16.msra.mxu1 %v8087_v51  ;;  %8215 = vmatprep.mubr.bf16.mxu0 %v19917_v3  ;;  %v15123_v51 = vld [vmem:[%s19896_s5 + $0xc] sm:$0xf] }
 0x68e   :  { %v7859_v23 = vpop.permute.xlu0 %7858  ;;  %v7857_v47 = vpop.permute.xlu1 %7856  ;;  %15650 = vmatprep.subr.bf16.mxu1 %v19919_v28 }
 0x68f   :  { %v7865_v38 = vsel %vm127_vm3, %v7857_v47, %v7859_v23  ;;  %9812 = vadd.xlane.f32.xlu0 %v17884_v44  ;;  %v7864_v36 = vsel %vm127_vm3, %v7855_v54, %v7857_v47 }
 0x690   :  { %15111 = vmatmul.mubr.msk.bf16.vlgmr.msra.gmra.mrb[24].mxu1 %vm2360_vm13, %v7838_v10  ;;  %15112 = vmatprep.subr.msk.bf16.mxu0 %vm2286_vm11, %v7864_v36  ;;  %v8099_v15 = vsel %vm2286_vm11, %v7865_v38, 0 }
 0x691   :  { %8184 = vmatpush1.bf16.msra.mxu0 %v8093_v18  ;;  %15651 = vmatpush3.bf16.msra.mxu1 %v8099_v15 }
 0x692   :  { %v8269_v8 = vpop.permute.xlu0 %8268  ;;  %v8267_v61 = vpop.permute.xlu1 %8266  ;;  %15652 = vmatprep.mubr.msk.bf16.mxu1 %vm15900_vm4, %v19919_v28 }
 0x693   :  { %v8287_v14 = vsel %vm554_vm5, 0, %v8267_v61  ;;  %9844 = vadd.xlane.f32.xlu0 %v17889_v20  ;;  %v8280_v45 = vsel %vm554_vm5, %v8267_v61, %v8269_v8 }
 0x694   :  { %15113 = vmatmul.mubr.msk.bf16.vlgmr.msra.gmra.mrb[28].mxu0 %vm2360_vm13, %v7838_v10  ;;  %15116 = vmatprep.subr.msk.bf16.mxu0 %vm2286_vm11, %v8280_v45  ;;  %v8291_v19 = vsel %vm2286_vm11, %v8287_v14, 0  ;;  %v8704_v45 = vsel %vm2286_vm11, %v17909_v6, 0 }
 0x695   :  { %8312 = vmatpush1.bf16.msra.mxu0 %v8291_v19  ;;  %8343 = vmatprep.mubr.bf16.mxu0 %v19917_v3 }
 0x696   :  { %v8273_v40 = vpop.permute.xlu0 %8272  ;;  %v8271_v21 = vpop.permute.xlu1 %8270 }
 0x697   :  { %v8281_v49 = vsel %vm554_vm5, %v8269_v8, %v8271_v21  ;;  %v8282_v27 = vsel %vm554_vm5, %v8271_v21, %v8273_v40 }
 0x698   :  { %15653 = vmatmul.mubr.msk.bf16.vlgmr.msra.gmra.mrb[28].mxu1 %vm2360_vm13, %v7838_v10  ;;  %15118 = vmatprep.subr.msk.bf16.mxu1 %vm2286_vm11, %v8282_v27  ;;  %v8297_v22 = vsel %vm2286_vm11, %v8281_v49, 0 }
 0x699   :  { %8353 = vmatpush1.bf16.msra.mxu1 %v8297_v22  ;;  %8384 = vmatprep.mubr.bf16.mxu1 %v19917_v3  ;;  %v8722_v22 = vsel %vm2286_vm11, %v17936_v30, 0 }
 0x69a   :  { %v8277_v42 = vpop.permute.xlu0 %8276  ;;  %v8275_v56 = vpop.permute.xlu1 %8274  ;;  %15656 = vmatprep.subr.bf16.mxu1 %v19919_v28 }
 0x69b   :  { %v8283_v60 = vsel %vm554_vm5, %v8273_v40, %v8275_v56  ;;  %v8284_v33 = vsel %vm554_vm5, %v8275_v56, %v8277_v42  ;;  %v15131_v40 = vld [vmem:[%s19896_s5 + $0x10] sm:$0xf] }
 0x69c   :  { %15117 = vmatmul.mubr.msk.bf16.vlgmr.msra.gmra.mrb[32].mxu0 %vm2360_vm13, %v15115_v17  ;;  %15120 = vmatprep.subr.msk.bf16.mxu0 %vm2286_vm11, %v8284_v33  ;;  %v8303_v29 = vsel %vm2286_vm11, %v8283_v60, 0 }
 0x69d   :  { %8394 = vmatpush1.bf16.msra.mxu0 %v8303_v29  ;;  %8425 = vmatprep.mubr.bf16.mxu0 %v19917_v3 }
 0x69e   :  { %v8484_v43 = vpop.permute.xlu0 %8483  ;;  %v8279_v53 = vpop.permute.xlu1 %8278 }
 0x69f   :  { %v8285_v46 = vsel %vm554_vm5, %v8277_v42, %v8279_v53  ;;  %v8504_v62 = vsel %vm773_vm6, 0, %v8484_v43 }
 0x6a0   :  { %v8309_v25 = vsel %vm2286_vm11, %v8285_v46, 0  ;;  %15119 = vmatmul.mubr.msk.bf16.vlgmr.msra.gmra.mrb[32].mxu1 %vm2360_vm13, %v15115_v17  ;;  %v8508_v26 = vsel %vm2286_vm11, %v8504_v62, 0 }
 0x6a1   :  { %15657 = vmatpush3.bf16.msra.mxu1 %v8309_v25  ;;  %15658 = vmatprep.mubr.msk.bf16.mxu1 %vm15900_vm4, %v19919_v28  ;;  %v15139_v25 = vld [vmem:[%s19896_s5 + $0x14] sm:$0xf] }
 0x6a2   :  { %v8488_v39 = vpop.permute.xlu0 %8487  ;;  %v8486_v55 = vpop.permute.xlu1 %8485 }
 0x6a3   :  { %v8497_v59 = vsel %vm773_vm6, %v8484_v43, %v8486_v55  ;;  %v8498_v37 = vsel %vm773_vm6, %v8486_v55, %v8488_v39 }
 0x6a4   :  { %15121 = vmatmul.mubr.msk.bf16.vlgmr.msra.gmra.mrb[36].mxu0 %vm2360_vm13, %v15115_v17  ;;  %15124 = vmatprep.subr.msk.bf16.mxu0 %vm2286_vm11, %v8497_v59  ;;  %v8514_v48 = vsel %vm2286_vm11, %v8498_v37, 0 }
 0x6a5   :  { %8529 = vmatpush1.bf16.msra.mxu0 %v8508_v26  ;;  %8560 = vmatprep.mubr.bf16.mxu0 %v19917_v3 }
 0x6a6   :  { %v8492_v11 = vpop.permute.xlu0 %8491  ;;  %v8490_v10 = vpop.permute.xlu1 %8489 }
 0x6a7   :  { %v8499_v54 = vsel %vm773_vm6, %v8488_v39, %v8490_v10  ;;  %v8500_v57 = vsel %vm773_vm6, %v8490_v10, %v8492_v11 }
 0x6a8   :  { %15659 = vmatmul.mubr.msk.bf16.vlgmr.msra.gmra.mrb[36].mxu1 %vm2360_vm13, %v15115_v17  ;;  %15126 = vmatprep.subr.msk.bf16.mxu1 %vm2286_vm11, %v8499_v54  ;;  %v8520_v38 = vsel %vm2286_vm11, %v8500_v57, 0 }
 0x6a9   :  { %8570 = vmatpush1.bf16.msra.mxu1 %v8514_v48  ;;  %8601 = vmatprep.mubr.bf16.mxu1 %v19917_v3 }
 0x6aa   :  { %v8496_v41 = vpop.permute.xlu0 %8495  ;;  %v8494_v23 = vpop.permute.xlu1 %8493  ;;  %15662 = vmatprep.subr.bf16.mxu1 %v19919_v28 }
 0x6ab   :  { %v8501_v47 = vsel %vm773_vm6, %v8492_v11, %v8494_v23  ;;  %v8502_v36 = vsel %vm773_vm6, %v8494_v23, %v8496_v41 }
 0x6ac   :  { %15125 = vmatmul.mubr.msk.bf16.vlgmr.msra.gmra.mrb[40].mxu0 %vm2360_vm13, %v15123_v51  ;;  %15128 = vmatprep.subr.msk.bf16.mxu0 %vm2286_vm11, %v8501_v47  ;;  %v8526_v8 = vsel %vm2286_vm11, %v8502_v36, 0 }
 0x6ad   :  { %8611 = vmatpush1.bf16.msra.mxu0 %v8520_v38  ;;  %8642 = vmatprep.mubr.bf16.mxu0 %v19917_v3  ;;  %v15147_v38 = vld [vmem:[%s19896_s5 + $0x18] sm:$0xf] }
 0x6ae   :  { %v8899_v18 = vpop.permute.xlu0 %8898  ;;  %15132 = vmatprep.subr.msk.bf16.mxu0 %vm2286_vm11, %v17911_v31  ;;  %v8897_v15 = vpop.permute.xlu1 %8896 }
 0x6af   :  { %v8910_v17 = vsel %vm1188_vm7, %v8897_v15, %v8899_v18 }
 0x6b0   :  { %15127 = vmatmul.mubr.msk.bf16.vlgmr.msra.gmra.mrb[40].mxu1 %vm2360_vm13, %v15123_v51  ;;  %v8922_v60 = vsel %vm2286_vm11, %v8910_v17, 0 }
 0x6b1   :  { %15663 = vmatpush3.bf16.msra.mxu1 %v8526_v8  ;;  %15664 = vmatprep.mubr.msk.bf16.mxu1 %vm15900_vm4, %v19919_v28 }
 0x6b2   :  { %15134 = vmatprep.subr.msk.bf16.mxu1 %vm2286_vm11, %v17921_v32  ;;  %v8903_v61 = vpop.permute.xlu0 %8902  ;;  %v8901_v14 = vpop.permute.xlu1 %8900  ;;  %v8710_v32 = vsel %vm2286_vm11, %v17919_v7, 0 }
 0x6b3   :  { %v8911_v49 = vsel %vm1188_vm7, %v8899_v18, %v8901_v14  ;;  %v8912_v33 = vsel %vm1188_vm7, %v8901_v14, %v8903_v61 }
 0x6b4   :  { %15129 = vmatmul.mubr.msk.bf16.vlgmr.msra.gmra.mrb[44].mxu0 %vm2360_vm13, %v15123_v51  ;;  %v8928_v53 = vsel %vm2286_vm11, %v8912_v33, 0 }
 0x6b5   :  { %8725 = vmatpush1.bf16.msra.mxu0 %v8704_v45  ;;  %8756 = vmatprep.mubr.bf16.mxu0 %v19917_v3 }
 0x6b6   :  { %15136 = vmatprep.subr.msk.bf16.mxu0 %vm2286_vm11, %v17930_v24  ;;  %v8907_v31 = vpop.permute.xlu0 %8906  ;;  %v8905_v19 = vpop.permute.xlu1 %8904  ;;  %v8716_v24 = vsel %vm2286_vm11, %v17928_v16, 0 }
 0x6b7   :  { %v8913_v42 = vsel %vm1188_vm7, %v8903_v61, %v8905_v19  ;;  %v8914_v46 = vsel %vm1188_vm7, %v8905_v19, %v8907_v31 }
 0x6b8   :  { %15665 = vmatmul.mubr.msk.bf16.vlgmr.msra.gmra.mrb[44].mxu1 %vm2360_vm13, %v15123_v51  ;;  %v8934_v62 = vsel %vm2286_vm11, %v8914_v46, 0 }
 0x6b9   :  { %8766 = vmatpush1.bf16.msra.mxu1 %v8710_v32  ;;  %8797 = vmatprep.mubr.bf16.mxu1 %v19917_v3 }
 0x6ba   :  { %v9114_v6 = vpop.permute.xlu0 %9113  ;;  %v8909_v21 = vpop.permute.xlu1 %8908  ;;  %15668 = vmatprep.subr.bf16.mxu1 %v19919_v28 }
 0x6bb   :  { %v8915_v30 = vsel %vm1188_vm7, %v8907_v31, %v8909_v21  ;;  %v8917_v39 = vsel %vm1188_vm7, %v8909_v21, 0 }
 0x6bc   :  { %15133 = vmatmul.mubr.msk.bf16.vlgmr.msra.gmra.mrb[48].mxu0 %vm2360_vm13, %v15131_v40  ;;  %v8939_v37 = vsel %vm2286_vm11, %v8917_v39, 0 }
 0x6bd   :  { %8807 = vmatpush1.bf16.msra.mxu0 %v8716_v24  ;;  %8838 = vmatprep.mubr.bf16.mxu0 %v19917_v3 }
 0x6be   :  { %15140 = vmatprep.subr.msk.bf16.mxu0 %vm2286_vm11, %v8911_v49  ;;  %v9118_v7 = vpop.permute.xlu0 %9117  ;;  %v9116_v27 = vpop.permute.xlu1 %9115 }
 0x6bf   :  { %v9128_v55 = vsel %vm1407_vm8, %v9116_v27, %v9118_v7  ;;  %v9127_v11 = vsel %vm1407_vm8, %v9114_v6, %v9116_v27 }
 0x6c0   :  { %15135 = vmatmul.mubr.msk.bf16.vlgmr.msra.gmra.mrb[48].mxu1 %vm2360_vm13, %v15131_v40  ;;  %v9139_v57 = vsel %vm2286_vm11, %v9127_v11, 0 }
 0x6c1   :  { %15669 = vmatpush3.bf16.msra.mxu1 %v8722_v22  ;;  %15670 = vmatprep.mubr.msk.bf16.mxu1 %vm15900_vm4, %v19919_v28  ;;  %v15155_v22 = vld [vmem:[%s19896_s5 + $0x1c] sm:$0xf] }
 0x6c2   :  { %15142 = vmatprep.subr.msk.bf16.mxu1 %vm2286_vm11, %v8913_v42  ;;  %v9122_v16 = vpop.permute.xlu0 %9121  ;;  %v9120_v56 = vpop.permute.xlu1 %9119 }
 0x6c3   :  { %v9130_v10 = vsel %vm1407_vm8, %v9120_v56, %v9122_v16  ;;  %v9129_v51 = vsel %vm1407_vm8, %v9118_v7, %v9120_v56 }
 0x6c4   :  { %15137 = vmatmul.mubr.msk.bf16.vlgmr.msra.gmra.mrb[52].mxu0 %vm2360_vm13, %v15131_v40  ;;  %v9145_v23 = vsel %vm2286_vm11, %v9129_v51, 0 }
 0x6c5   :  { %8942 = vmatpush1.bf16.msra.mxu0 %v8922_v60  ;;  %8973 = vmatprep.mubr.bf16.mxu0 %v19917_v3 }
 0x6c6   :  { %15144 = vmatprep.subr.msk.bf16.mxu0 %vm2286_vm11, %v8915_v30  ;;  %v9126_v29 = vpop.permute.xlu0 %9125  ;;  %v9124_v43 = vpop.permute.xlu1 %9123 }
 0x6c7   :  { %v9132_v41 = vsel %vm1407_vm8, %v9124_v43, %v9126_v29  ;;  %v9131_v47 = vsel %vm1407_vm8, %v9122_v16, %v9124_v43  ;;  %v9134_v8 = vsel %vm1407_vm8, %v9126_v29, 0 }
 0x6c8   :  { %15671 = vmatmul.mubr.msk.bf16.vlgmr.msra.gmra.mrb[52].mxu1 %vm2360_vm13, %v15131_v40  ;;  %v9151_v15 = vsel %vm2286_vm11, %v9131_v47, 0  ;;  %v9156_v31 = vsel %vm2286_vm11, %v9134_v8, 0 }
 0x6c9   :  { %8983 = vmatpush1.bf16.msra.mxu1 %v8928_v53  ;;  %9014 = vmatprep.mubr.bf16.mxu1 %v19917_v3 }
 0x6ca   :  { %15674 = vmatprep.subr.bf16.mxu1 %v19919_v28  ;;  %v9333_v59 = vpop.permute.xlu0 %9332  ;;  %v9331_v26 = vpop.permute.xlu1 %9330 }
 0x6cb   :  { %v9344_v19 = vsel %vm1626_vm9, %v9331_v26, %v9333_v59 }
 0x6cc   :  { %15141 = vmatmul.mubr.msk.bf16.vlgmr.msra.gmra.mrb[56].mxu0 %vm2360_vm13, %v15139_v25  ;;  %v9356_v40 = vsel %vm2286_vm11, %v9344_v19, 0 }
 0x6cd   :  { %9024 = vmatpush1.bf16.msra.mxu0 %v8934_v62  ;;  %9055 = vmatprep.mubr.bf16.mxu0 %v19917_v3 }
 0x6ce   :  { %15148 = vmatprep.subr.msk.bf16.mxu0 %vm2286_vm11, %v9128_v55  ;;  %v9337_v54 = vpop.permute.xlu0 %9336  ;;  %v9335_v48 = vpop.permute.xlu1 %9334 }
 0x6cf   :  { %v9345_v61 = vsel %vm1626_vm9, %v9333_v59, %v9335_v48  ;;  %v9346_v6 = vsel %vm1626_vm9, %v9335_v48, %v9337_v54  ;;  %v15163_v59 = vld [vmem:[%s19896_s5 + $0x20] sm:$0xf] }
 0x6d0   :  { %15143 = vmatmul.mubr.msk.bf16.vlgmr.msra.gmra.mrb[56].mxu1 %vm2360_vm13, %v15139_v25  ;;  %v9362_v7 = vsel %vm2286_vm11, %v9346_v6, 0 }
 0x6d1   :  { %15675 = vmatpush3.bf16.msra.mxu1 %v8939_v37  ;;  %15676 = vmatprep.mubr.msk.bf16.mxu1 %vm15900_vm4, %v19919_v28 }
 0x6d2   :  { %15150 = vmatprep.subr.msk.bf16.mxu1 %vm2286_vm11, %v9130_v10  ;;  %v9341_v36 = vpop.permute.xlu0 %9340  ;;  %v9339_v18 = vpop.permute.xlu1 %9338 }
 0x6d3   :  { %v9347_v32 = vsel %vm1626_vm9, %v9337_v54, %v9339_v18  ;;  %v9348_v27 = vsel %vm1626_vm9, %v9339_v18, %v9341_v36 }
 0x6d4   :  { %15145 = vmatmul.mubr.msk.bf16.vlgmr.msra.gmra.mrb[60].mxu0 %vm2360_vm13, %v15139_v25  ;;  %v9368_v16 = vsel %vm2286_vm11, %v9348_v27, 0 }
 0x6d5   :  { %9159 = vmatpush1.bf16.msra.mxu0 %v9139_v57  ;;  %9190 = vmatprep.mubr.bf16.mxu0 %v19917_v3 }
 0x6d6   :  { %15152 = vmatprep.subr.msk.bf16.mxu0 %vm2286_vm11, %v9132_v41  ;;  %v9548_v14 = vpop.permute.xlu0 %9547  ;;  %v9343_v45 = vpop.permute.xlu1 %9342 }
 0x6d7   :  { %v9349_v21 = vsel %vm1626_vm9, %v9341_v36, %v9343_v45  ;;  %v9351_v56 = vsel %vm1626_vm9, %v9343_v45, 0 }
 0x6d8   :  { %15677 = vmatmul.mubr.msk.bf16.vlgmr.msra.gmra.mrb[60].mxu1 %vm2360_vm13, %v15139_v25  ;;  %v9373_v33 = vsel %vm2286_vm11, %v9351_v56, 0 }
 0x6d9   :  { %9200 = vmatpush1.bf16.msra.mxu1 %v9145_v23  ;;  %9231 = vmatprep.mubr.bf16.mxu1 %v19917_v3 }
 0x6da   :  { %15680 = vmatprep.subr.bf16.mxu1 %v19919_v28  ;;  %v9552_v24 = vpop.permute.xlu0 %9551  ;;  %v9550_v49 = vpop.permute.xlu1 %9549 }
 0x6db   :  { %v9562_v60 = vsel %vm1845_vm10, %v9550_v49, %v9552_v24  ;;  %v9561_v30 = vsel %vm1845_vm10, %v9548_v14, %v9550_v49 }
 0x6dc   :  { %15149 = vmatmul.mubr.msk.bf16.vlgmr.msra.gmra.mrb[64].mxu0 %vm2360_vm13, %v15147_v38  ;;  %v9573_v46 = vsel %vm2286_vm11, %v9561_v30, 0 }
 0x6dd   :  { %9241 = vmatpush1.bf16.msra.mxu0 %v9151_v15  ;;  %9272 = vmatprep.mubr.bf16.mxu0 %v19917_v3 }
 0x6de   :  { %15156 = vmatprep.subr.msk.bf16.mxu0 %vm2286_vm11, %v9345_v61  ;;  %v9556_v17 = vpop.permute.xlu0 %9555  ;;  %v9554_v42 = vpop.permute.xlu1 %9553 }
 0x6df   :  { %v9564_v29 = vsel %vm1845_vm10, %v9554_v42, %v9556_v17  ;;  %v9563_v25 = vsel %vm1845_vm10, %v9552_v24, %v9554_v42 }
 0x6e0   :  { %15151 = vmatmul.mubr.msk.bf16.vlgmr.msra.gmra.mrb[64].mxu1 %vm2360_vm13, %v15147_v38  ;;  %v9579_v39 = vsel %vm2286_vm11, %v9563_v25, 0 }
 0x6e1   :  { %15681 = vmatpush3.bf16.msra.mxu1 %v9156_v31  ;;  %15682 = vmatprep.mubr.msk.bf16.mxu1 %vm15900_vm4, %v19919_v28 }
 0x6e2   :  { %15158 = vmatprep.subr.msk.bf16.mxu1 %vm2286_vm11, %v9347_v32  ;;  %v9560_v43 = vpop.permute.xlu0 %9559  ;;  %v9558_v53 = vpop.permute.xlu1 %9557 }
 0x6e3   :  { %v9566_v62 = vsel %vm1845_vm10, %v9558_v53, %v9560_v43  ;;  %v9565_v55 = vsel %vm1845_vm10, %v9556_v17, %v9558_v53  ;;  %v9568_v37 = vsel %vm1845_vm10, %v9560_v43, 0 }
 0x6e4   :  { %15153 = vmatmul.mubr.msk.bf16.vlgmr.msra.gmra.mrb[68].mxu0 %vm2360_vm13, %v15147_v38  ;;  %v9585_v26 = vsel %vm2286_vm11, %v9565_v55, 0  ;;  %v9590_v11 = vsel %vm2286_vm11, %v9568_v37, 0 }
 0x6e5   :  { %9376 = vmatpush1.bf16.msra.mxu0 %v9356_v40  ;;  %9407 = vmatprep.mubr.bf16.mxu0 %v19917_v3 }
 0x6e6   :  { %15160 = vmatprep.subr.msk.bf16.mxu0 %vm2286_vm11, %v9349_v21 }
 0x6e8   :  { %15683 = vmatmul.mubr.msk.bf16.vlgmr.msra.gmra.mrb[68].mxu1 %vm2360_vm13, %v15147_v38 }
 0x6e9   :  { %9417 = vmatpush1.bf16.msra.mxu1 %v9362_v7  ;;  %9448 = vmatprep.mubr.bf16.mxu1 %v19917_v3 }
 0x6ea   :  { %15686 = vmatprep.subr.bf16.mxu1 %v19919_v28 }
 0x6ec   :  { %15157 = vmatmul.mubr.msk.bf16.vlgmr.msra.gmra.mrb[72].mxu0 %vm2360_vm13, %v15155_v22 }
 0x6ed   :  { %9458 = vmatpush1.bf16.msra.mxu0 %v9368_v16  ;;  %9489 = vmatprep.mubr.bf16.mxu0 %v19917_v3 }
 0x6ee   :  { %15164 = vmatprep.subr.msk.bf16.mxu0 %vm2286_vm11, %v9562_v60 }
 0x6f0   :  { %15159 = vmatmul.mubr.msk.bf16.vlgmr.msra.gmra.mrb[72].mxu1 %vm2360_vm13, %v15155_v22 }
 0x6f1   :  { %15687 = vmatpush3.bf16.msra.mxu1 %v9373_v33  ;;  %15688 = vmatprep.mubr.msk.bf16.mxu1 %vm15900_vm4, %v19919_v28 }
 0x6f2   :  { %15166 = vmatprep.subr.msk.bf16.mxu1 %vm2286_vm11, %v9564_v29 }
 0x6f4   :  { %15161 = vmatmul.mubr.msk.bf16.vlgmr.msra.gmra.mrb[76].mxu0 %vm2360_vm13, %v15155_v22 }
 0x6f5   :  { %9593 = vmatpush1.bf16.msra.mxu0 %v9573_v46  ;;  %9624 = vmatprep.mubr.bf16.mxu0 %v19917_v3 }
 0x6f6   :  { %15168 = vmatprep.subr.msk.bf16.mxu0 %vm2286_vm11, %v9566_v62 }
 0x6f8   :  { %15689 = vmatmul.mubr.msk.bf16.vlgmr.msra.gmra.mrb[76].mxu1 %vm2360_vm13, %v15155_v22 }
 0x6f9   :  { %9634 = vmatpush1.bf16.msra.mxu1 %v9579_v39  ;;  %9665 = vmatprep.mubr.bf16.mxu1 %v19917_v3 }
 0x6fa   :  { %15692 = vmatprep.subr.bf16.mxu1 %v19919_v28 }
 0x6fc   :  { %15165 = vmatmul.mubr.msk.bf16.vlgmr.msra.gmra.mrb[80].mxu0 %vm2360_vm13, %v15163_v59 }
 0x6fd   :  { %9675 = vmatpush1.bf16.msra.mxu0 %v9585_v26  ;;  %9706 = vmatprep.mubr.bf16.mxu0 %v19917_v3 }
 0x700   :  { %15167 = vmatmul.mubr.msk.bf16.vlgmr.msra.gmra.mrb[80].mxu1 %vm2360_vm13, %v15163_v59 }
 0x701   :  { %15693 = vmatpush3.bf16.msra.mxu1 %v9590_v11  ;;  %15694 = vmatprep.mubr.msk.bf16.mxu1 %vm15900_vm4, %v19919_v28 }
 0x704   :  { %15169 = vmatmul.mubr.msk.bf16.vlgmr.msra.gmra.mrb[84].mxu0 %vm2360_vm13, %v15163_v59 }
 0x705   :  { %10060 = vmatprep.mubr.bf16.mxu0 %v19917_v3 }
 0x708   :  { %15695 = vmatmul.mubr.msk.bf16.vlgmr.msra.gmra.mrb[84].mxu1 %vm2360_vm13, %v15163_v59  ;;  %vm18509_vm13 = vmneg %vm154_vm0 }
 0x709   :  { %10101 = vmatprep.mubr.bf16.mxu1 %v19917_v3 }
 0x74f   :  { %v7949_v10 = vpop.f32.mrb[16].mxu0 }
 0x750   :  { %v7951_v54 = vpop.f32.mrb[17].mxu0 }
 0x751   :  { %v7953_v48 = vpop.f32.mrb[18].mxu0 }
 0x752   :  { %v7954_v57 = vpop.f32.mrb[19].mxu0 }
 0x753   :  { %v7990_v51 = vpop.f32.mrb[16].mxu1 }
 0x754   :  { %v7992_v41 = vpop.f32.mrb[17].mxu1 }
 0x755   :  { %v7994_v23 = vpop.f32.mrb[18].mxu1 }
 0x756   :  { %v7995_v47 = vpop.f32.mrb[19].mxu1 }
 0x757   :  { %v8031_v38 = vpop.f32.mrb[20].mxu0 }
 0x758   :  { %v8033_v36 = vpop.f32.mrb[21].mxu0 }
 0x759   :  { %v8035_v18 = vpop.f32.mrb[22].mxu0 }
 0x75a   :  { %v8036_v15 = vpop.f32.mrb[23].mxu0 }
 0x75b   :  { %v8072_v8 = vpop.f32.mrb[20].mxu1 }
 0x75c   :  { %v15648_v61 = vpop.f32.mrb[21].mxu1 }
 0x75d   :  { %v8075_v14 = vpop.f32.mrb[22].mxu1 }
 0x75e   :  { %v15649_v45 = vpop.f32.mrb[23].mxu1 }
 0x75f   :  { %v8135_v31 = vpop.f32.mrb[24].mxu0 }
 0x760   :  { %v8136_v19 = vadd.f32 %v8135_v31, %v7949_v10  ;;  %v8137_v32 = vpop.f32.mrb[25].mxu0 }
 0x761   :  { %v8138_v40 = vadd.f32 %v8137_v32, %v7951_v54  ;;  %v8139_v6 = vpop.f32.mrb[26].mxu0 }
 0x762   :  { %v8140_v21 = vpop.f32.mrb[27].mxu0 }
 0x763   :  { %v8176_v24 = vpop.f32.mrb[24].mxu1 }
 0x764   :  { %v8177_v49 = vadd.f32 %v8176_v24, %v7990_v51  ;;  %v8178_v7 = vpop.f32.mrb[25].mxu1 }
 0x765   :  { %v8179_v27 = vadd.f32 %v8178_v7, %v7992_v41  ;;  %v8180_v22 = vpop.f32.mrb[26].mxu1 }
 0x766   :  { %v8181_v17 = vpop.f32.mrb[27].mxu1 }
 0x767   :  { %v8217_v42 = vpop.f32.mrb[28].mxu0 }
 0x768   :  { %v8218_v16 = vadd.f32 %v8217_v42, %v8031_v38  ;;  %v8219_v56 = vpop.f32.mrb[29].mxu0 }
 0x769   :  { %v8220_v60 = vadd.f32 %v8219_v56, %v8033_v36  ;;  %v8221_v33 = vpop.f32.mrb[30].mxu0 }
 0x76a   :  { %v8222_v30 = vpop.f32.mrb[31].mxu0 }
 0x76b   :  { %v8258_v29 = vpop.f32.mrb[28].mxu1 }
 0x76c   :  { %v8259_v43 = vadd.f32 %v8258_v29, %v8072_v8  ;;  %v15654_v53 = vpop.f32.mrb[29].mxu1 }
 0x76d   :  { %v8261_v46 = vpop.f32.mrb[30].mxu1 }
 0x76e   :  { %v15655_v25 = vpop.f32.mrb[31].mxu1 }
 0x76f   :  { %v8345_v62 = vpop.f32.mrb[32].mxu0 }
 0x770   :  { %v8474_v39 = vadd.f32 %v8345_v62, %v8136_v19  ;;  %v8347_v55 = vpop.f32.mrb[33].mxu0 }
 0x771   :  { %v8475_v59 = vadd.f32 %v8347_v55, %v8138_v40  ;;  %v8349_v26 = vpop.f32.mrb[34].mxu0 }
 0x772   :  { %v8350_v37 = vpop.f32.mrb[35].mxu0 }
 0x773   :  { %v8386_v11 = vpop.f32.mrb[32].mxu1 }
 0x774   :  { %v8476_v10 = vadd.f32 %v8386_v11, %v8177_v49  ;;  %v8388_v54 = vpop.f32.mrb[33].mxu1 }
 0x775   :  { %v8477_v48 = vadd.f32 %v8388_v54, %v8179_v27  ;;  %v8390_v57 = vpop.f32.mrb[34].mxu1 }
 0x776   :  { %v8391_v51 = vpop.f32.mrb[35].mxu1 }
 0x777   :  { %v8427_v41 = vpop.f32.mrb[36].mxu0 }
 0x778   :  { %v8478_v23 = vadd.f32 %v8427_v41, %v8218_v16  ;;  %v8429_v47 = vpop.f32.mrb[37].mxu0 }
 0x779   :  { %v8479_v38 = vadd.f32 %v8429_v47, %v8220_v60  ;;  %v8431_v36 = vpop.f32.mrb[38].mxu0 }
 0x77a   :  { %v8432_v18 = vpop.f32.mrb[39].mxu0 }
 0x77b   :  { %v8468_v15 = vpop.f32.mrb[36].mxu1 }
 0x77c   :  { %v8480_v8 = vadd.f32 %v8468_v15, %v8259_v43  ;;  %v15660_v61 = vpop.f32.mrb[37].mxu1 }
 0x77d   :  { %v8471_v14 = vpop.f32.mrb[38].mxu1 }
 0x77e   :  { %v15661_v45 = vpop.f32.mrb[39].mxu1 }
 0x77f   :  { %v8562_v31 = vpop.f32.mrb[40].mxu0 }
 0x780   :  { %v8691_v19 = vadd.f32 %v8562_v31, %v8474_v39  ;;  %v8564_v32 = vpop.f32.mrb[41].mxu0 }
 0x781   :  { %v8692_v40 = vadd.f32 %v8564_v32, %v8475_v59  ;;  %v8566_v6 = vpop.f32.mrb[42].mxu0 }
 0x782   :  { %v8567_v21 = vpop.f32.mrb[43].mxu0 }
 0x783   :  { %v8603_v24 = vpop.f32.mrb[40].mxu1 }
 0x784   :  { %v8693_v49 = vadd.f32 %v8603_v24, %v8476_v10  ;;  %v8605_v7 = vpop.f32.mrb[41].mxu1 }
 0x785   :  { %v8694_v27 = vadd.f32 %v8605_v7, %v8477_v48  ;;  %v8607_v22 = vpop.f32.mrb[42].mxu1 }
 0x786   :  { %v8608_v17 = vpop.f32.mrb[43].mxu1 }
 0x787   :  { %v8644_v42 = vpop.f32.mrb[44].mxu0 }
 0x788   :  { %v8695_v16 = vadd.f32 %v8644_v42, %v8478_v23  ;;  %v8646_v56 = vpop.f32.mrb[45].mxu0 }
 0x789   :  { %v8696_v60 = vadd.f32 %v8646_v56, %v8479_v38  ;;  %v8648_v33 = vpop.f32.mrb[46].mxu0 }
 0x78a   :  { %v8649_v30 = vpop.f32.mrb[47].mxu0 }
 0x78b   :  { %v8685_v29 = vpop.f32.mrb[44].mxu1 }
 0x78c   :  { %v8697_v43 = vadd.f32 %v8685_v29, %v8480_v8  ;;  %v15666_v53 = vpop.f32.mrb[45].mxu1 }
 0x78d   :  { %v8688_v46 = vpop.f32.mrb[46].mxu1 }
 0x78e   :  { %v15667_v25 = vpop.f32.mrb[47].mxu1 }
 0x78f   :  { %v8758_v62 = vpop.f32.mrb[48].mxu0 }
 0x790   :  { %v8887_v39 = vadd.f32 %v8758_v62, %v8691_v19  ;;  %v8760_v55 = vpop.f32.mrb[49].mxu0 }
 0x791   :  { %v8888_v59 = vadd.f32 %v8760_v55, %v8692_v40  ;;  %v8762_v26 = vpop.f32.mrb[50].mxu0 }
 0x792   :  { %v8763_v37 = vpop.f32.mrb[51].mxu0 }
 0x793   :  { %v8799_v11 = vpop.f32.mrb[48].mxu1 }
 0x794   :  { %v8889_v10 = vadd.f32 %v8799_v11, %v8693_v49  ;;  %v8801_v54 = vpop.f32.mrb[49].mxu1 }
 0x795   :  { %v8890_v48 = vadd.f32 %v8801_v54, %v8694_v27  ;;  %v8803_v57 = vpop.f32.mrb[50].mxu1 }
 0x796   :  { %v8804_v51 = vpop.f32.mrb[51].mxu1 }
 0x797   :  { %v8840_v41 = vpop.f32.mrb[52].mxu0 }
 0x798   :  { %v8891_v23 = vadd.f32 %v8840_v41, %v8695_v16  ;;  %v8842_v47 = vpop.f32.mrb[53].mxu0 }
 0x799   :  { %v8892_v38 = vadd.f32 %v8842_v47, %v8696_v60  ;;  %v8844_v36 = vpop.f32.mrb[54].mxu0 }
 0x79a   :  { %v8845_v18 = vpop.f32.mrb[55].mxu0 }
 0x79b   :  { %v8881_v15 = vpop.f32.mrb[52].mxu1 }
 0x79c   :  { %v8893_v8 = vadd.f32 %v8881_v15, %v8697_v43  ;;  %v15672_v61 = vpop.f32.mrb[53].mxu1 }
 0x79d   :  { %v8884_v14 = vpop.f32.mrb[54].mxu1 }
 0x79e   :  { %v15673_v45 = vpop.f32.mrb[55].mxu1 }
 0x79f   :  { %v8975_v31 = vpop.f32.mrb[56].mxu0 }
 0x7a0   :  { %v9104_v19 = vadd.f32 %v8975_v31, %v8887_v39  ;;  %v8977_v32 = vpop.f32.mrb[57].mxu0 }
 0x7a1   :  { %v9105_v40 = vadd.f32 %v8977_v32, %v8888_v59  ;;  %v8979_v6 = vpop.f32.mrb[58].mxu0 }
 0x7a2   :  { %v8980_v21 = vpop.f32.mrb[59].mxu0 }
 0x7a3   :  { %v9016_v24 = vpop.f32.mrb[56].mxu1 }
 0x7a4   :  { %v9106_v49 = vadd.f32 %v9016_v24, %v8889_v10  ;;  %v9018_v7 = vpop.f32.mrb[57].mxu1 }
 0x7a5   :  { %v9107_v27 = vadd.f32 %v9018_v7, %v8890_v48  ;;  %v9020_v22 = vpop.f32.mrb[58].mxu1 }
 0x7a6   :  { %v9021_v17 = vpop.f32.mrb[59].mxu1 }
 0x7a7   :  { %v9057_v42 = vpop.f32.mrb[60].mxu0 }
 0x7a8   :  { %v9108_v16 = vadd.f32 %v9057_v42, %v8891_v23  ;;  %v9059_v56 = vpop.f32.mrb[61].mxu0 }
 0x7a9   :  { %v9109_v60 = vadd.f32 %v9059_v56, %v8892_v38  ;;  %v9061_v33 = vpop.f32.mrb[62].mxu0 }
 0x7aa   :  { %v9062_v30 = vpop.f32.mrb[63].mxu0 }
 0x7ab   :  { %v9098_v29 = vpop.f32.mrb[60].mxu1 }
 0x7ac   :  { %v9110_v43 = vadd.f32 %v9098_v29, %v8893_v8  ;;  %v15678_v53 = vpop.f32.mrb[61].mxu1 }
 0x7ad   :  { %v9101_v46 = vpop.f32.mrb[62].mxu1 }
 0x7ae   :  { %v15679_v25 = vpop.f32.mrb[63].mxu1 }
 0x7af   :  { %v9192_v62 = vpop.f32.mrb[64].mxu0 }
 0x7b0   :  { %v9321_v39 = vadd.f32 %v9192_v62, %v9104_v19  ;;  %v9194_v55 = vpop.f32.mrb[65].mxu0 }
 0x7b1   :  { %v9322_v59 = vadd.f32 %v9194_v55, %v9105_v40  ;;  %v9196_v26 = vpop.f32.mrb[66].mxu0 }
 0x7b2   :  { %v9197_v37 = vpop.f32.mrb[67].mxu0 }
 0x7b3   :  { %v9233_v11 = vpop.f32.mrb[64].mxu1 }
 0x7b4   :  { %v9323_v10 = vadd.f32 %v9233_v11, %v9106_v49  ;;  %v9235_v54 = vpop.f32.mrb[65].mxu1  ;;  %v9765_v11 = vpop.permute.xlu1 %9764 }
 0x7b5   :  { %v9324_v48 = vadd.f32 %v9235_v54, %v9107_v27  ;;  %v9237_v57 = vpop.f32.mrb[66].mxu1 }
 0x7b6   :  { %v9238_v51 = vpop.f32.mrb[67].mxu1 }
 0x7b7   :  { %v9274_v41 = vpop.f32.mrb[68].mxu0 }
 0x7b8   :  { %v9325_v23 = vadd.f32 %v9274_v41, %v9108_v16  ;;  %v9276_v47 = vpop.f32.mrb[69].mxu0  ;;  %v9813_v16 = vpop.xlane.xlu0 %9812 }
 0x7b9   :  { %v9326_v38 = vadd.f32 %v9276_v47, %v9109_v60  ;;  %v9278_v36 = vpop.f32.mrb[70].mxu0  ;;  %v18286_v55 = vmul.f32 0.001953125, %v9813_v16 }
 0x7ba   :  { %v9279_v18 = vpop.f32.mrb[71].mxu0 }
 0x7bb   :  { %v9315_v15 = vpop.f32.mrb[68].mxu1  ;;  %v9856_v41 = vmul.f32 %v18286_v55, %v18286_v55 }
 0x7bc   :  { %v9327_v8 = vadd.f32 %v9315_v15, %v9110_v43  ;;  %v15684_v61 = vpop.f32.mrb[69].mxu1  ;;  %v9845_v62 = vpop.xlane.xlu0 %9844 }
 0x7bd   :  { %v9318_v14 = vpop.f32.mrb[70].mxu1 }
 0x7be   :  { %v15685_v45 = vpop.f32.mrb[71].mxu1 }
 0x7bf   :  { %v9409_v31 = vpop.f32.mrb[72].mxu0 }
 0x7c0   :  { %v9538_v19 = vadd.f32 %v9409_v31, %v9321_v39  ;;  %v9411_v32 = vpop.f32.mrb[73].mxu0 }
 0x7c1   :  { %v9539_v40 = vadd.f32 %v9411_v32, %v9322_v59  ;;  %v9413_v6 = vpop.f32.mrb[74].mxu0 }
 0x7c2   :  { %v9414_v21 = vpop.f32.mrb[75].mxu0 }
 0x7c3   :  { %v9450_v24 = vpop.f32.mrb[72].mxu1 }
 0x7c4   :  { %v9540_v49 = vadd.f32 %v9450_v24, %v9323_v10  ;;  %v9452_v7 = vpop.f32.mrb[73].mxu1  ;;  %v9854_v10 = vmul.f32 0.001953125, %v9845_v62 }
 0x7c5   :  { %v9541_v27 = vadd.f32 %v9452_v7, %v9324_v48  ;;  %v9454_v22 = vpop.f32.mrb[74].mxu1 }
 0x7c6   :  { %v9455_v17 = vpop.f32.mrb[75].mxu1  ;;  %v9858_v15 = vsub.f32 %v9854_v10, %v9856_v41 }
 0x7c7   :  { %v9491_v42 = vpop.f32.mrb[76].mxu0 }
 0x7c8   :  { %v9542_v56 = vadd.f32 %v9491_v42, %v9325_v23  ;;  %v9493_v60 = vpop.f32.mrb[77].mxu0 }
 0x7c9   :  { %v9543_v33 = vadd.f32 %v9493_v60, %v9326_v38  ;;  %v9495_v30 = vpop.f32.mrb[78].mxu0 }
 0x7ca   :  { %v9496_v29 = vpop.f32.mrb[79].mxu0 }
 0x7cb   :  { %v9532_v43 = vpop.f32.mrb[76].mxu1 }
 0x7cc   :  { %v9544_v53 = vadd.f32 %v9532_v43, %v9327_v8  ;;  %v15690_v46 = vpop.f32.mrb[77].mxu1 }
 0x7cd   :  { %v9535_v25 = vpop.f32.mrb[78].mxu1 }
 0x7ce   :  { %v15691_v39 = vpop.f32.mrb[79].mxu1 }
 0x7cf   :  { %v9626_v59 = vpop.f32.mrb[80].mxu0 }
 0x7d0   :  { %v9755_v26 = vadd.f32 %v9626_v59, %v9538_v19  ;;  %v9628_v37 = vpop.f32.mrb[81].mxu0 }
 0x7d1   :  { %v9756_v54 = vadd.f32 %v9628_v37, %v9539_v40  ;;  %v9630_v48 = vpop.f32.mrb[82].mxu0 }
 0x7d2   :  { %v9767_v57 = vadd.f32 %v9765_v11, %v9755_v26  ;;  %v9631_v51 = vpop.f32.mrb[83].mxu0 }
 0x7d3   :  { %v9768_v23 = vadd.f32 %v9765_v11, %v9756_v54  ;;  %v9667_v47 = vpop.f32.mrb[80].mxu1 }
 0x7d4   :  { %v18291_v38 = vmul.f32 %v9767_v57, %v16485_v63  ;;  %v9757_v36 = vadd.f32 %v9667_v47, %v9540_v49  ;;  %v9669_v18 = vpop.f32.mrb[81].mxu1 }
 0x7d5   :  { %v18294_v8 = vmul.f32 %v9768_v23, %v16488_v0  ;;  %v9758_v61 = vadd.f32 %v9669_v18, %v9541_v27  ;;  %v9671_v14 = vpop.f32.mrb[82].mxu1  ;;  %v9860_v27 = vmax.f32 %v9858_v15, 0.0 }
 0x7d6   :  { %19995 = vst [vmem:[#allocation17_spill] sm:$0xff] %v18291_v38  ;;  %v9769_v45 = vadd.f32 %v9765_v11, %v9757_v36  ;;  %v9672_v31 = vpop.f32.mrb[83].mxu1  ;;  %v9831_v19 = vmul.f32 %v18291_v38, %v18291_v38 }
 0x7d7   :  { %19996 = vst [vmem:[#allocation18_spill] sm:$0xff] %v18294_v8  ;;  %v9770_v32 = vadd.f32 %v9765_v11, %v9758_v61  ;;  %v9708_v40 = vpop.f32.mrb[84].mxu0  ;;  %v9814_v6 = vadd.f32 %v18294_v8, %v18291_v38  ;;  %v9832_v21 = vmul.f32 %v18294_v8, %v18294_v8  ;;  %v9862_v37 = vadd.f32 1e-05, %v9860_v27  ;;  %v9802_v31 = vld [vmem:[%s19897_s17] sm:$0xff] }
 0x7d8   :  { %v18303_v24 = vmul.f32 %v9769_v45, %v16494_v2  ;;  %v9759_v49 = vadd.f32 %v9708_v40, %v9542_v56  ;;  %v9710_v7 = vpop.f32.mrb[85].mxu0  ;;  %v9804_v40 = vld [vmem:[%s19898_s18] sm:$0xff] }
 0x7d9   :  { %v18306_v22 = vmul.f32 %v9770_v32, %v16501_v13  ;;  %v9760_v17 = vadd.f32 %v9710_v7, %v9543_v33  ;;  %v9712_v42 = vpop.f32.mrb[86].mxu0  ;;  %v9846_v16 = vadd.f32 %v9832_v21, %v9831_v19  ;;  %15870 = vrsqrt.f32 %v9862_v37 }
 0x7da   :  { %19997 = vst [vmem:[#allocation19_spill] sm:$0xff] %v18303_v24  ;;  %v9771_v60 = vadd.f32 %v9765_v11, %v9759_v49  ;;  %v9713_v30 = vpop.f32.mrb[87].mxu0  ;;  %v9815_v29 = vadd.f32 %v9814_v6, %v18303_v24  ;;  %v9833_v43 = vmul.f32 %v18303_v24, %v18303_v24 }
 0x7db   :  { %19998 = vst [vmem:[#allocation20_spill] sm:$0xff] %v18306_v22  ;;  %v9772_v46 = vadd.f32 %v9765_v11, %v9760_v17  ;;  %v9749_v25 = vpop.f32.mrb[84].mxu1  ;;  %v9834_v56 = vmul.f32 %v18306_v22, %v18306_v22 }
 0x7dc   :  { %v18314_v62 = vmul.f32 %v9771_v60, %v16491_v1  ;;  %v9761_v39 = vadd.f32 %v9749_v25, %v9544_v53  ;;  %v15696_v59 = vpop.f32.mrb[85].mxu1  ;;  %v9816_v33 = vadd.f32 %v9815_v29, %v18306_v22  ;;  %v9847_v26 = vadd.f32 %v9846_v16, %v9833_v43  ;;  %v9805_v43 = vld [vmem:[%s19898_s18 + $0x8] sm:$0xff] }
 0x7dd   :  { %v18318_v10 = vmul.f32 %v9772_v46, %v16527_v50  ;;  %v9752_v54 = vpop.f32.mrb[86].mxu1 }
 0x7de   :  { %19999 = vst [vmem:[#allocation21_spill] sm:$0xff] %v18314_v62  ;;  %v9773_v48 = vadd.f32 %v9765_v11, %v9761_v39  ;;  %v15697_v57 = vpop.f32.mrb[87].mxu1  ;;  %v9817_v51 = vadd.f32 %v9816_v33, %v18314_v62  ;;  %v9835_v41 = vmul.f32 %v18314_v62, %v18314_v62  ;;  %v9848_v23 = vadd.f32 %v9847_v26, %v9834_v56 }
 0x7df   :  { %20000 = vst [vmem:[#allocation22_spill] sm:$0xff] %v18318_v10  ;;  %v9836_v53 = vmul.f32 %v18318_v10, %v18318_v10 }
 0x7e0   :  { %v18326_v47 = vmul.f32 %v9773_v48, %v16521_v9  ;;  %v9818_v36 = vadd.f32 %v9817_v51, %v18318_v10  ;;  %v9849_v18 = vadd.f32 %v9848_v23, %v9835_v41 }
 0x7e2   :  { %20001 = vst [vmem:[#allocation23_spill] sm:$0xff] %v18326_v47  ;;  %v18330_v15 = vadd.f32 %v9818_v36, %v18326_v47  ;;  %v9837_v11 = vmul.f32 %v18326_v47, %v18326_v47  ;;  %v9850_v61 = vadd.f32 %v9849_v18, %v9836_v53 }
 0x7e3   :  { %v15871_v45 = vpop.eup %15870 }
 0x7e4   :  { %9820 = vadd.xlane.f32.xlu1 %v18330_v15  ;;  %v18335_v14 = vadd.f32 %v9850_v61, %v9837_v11  ;;  %v9866_v19 = vmul.f32 %v15871_v45, %v9802_v31 }
 0x7e6   :  { %9852 = vadd.xlane.f32.xlu0 %v18335_v14  ;;  %v9892_v32 = vmul.f32 %v9866_v19, %v18286_v55  ;;  %v9803_v55 = vld [vmem:[%s19897_s17 + $0x8] sm:$0xff] }
 0x7e8   :  { %v9894_v6 = vsub.f32 %v9804_v40, %v9892_v32 }
 0x7f5   :  { %9870 = vperm.xlu1 %15860, %v9866_v19  }
 0x7f9   :  { %9898 = vperm.xlu1 %15860, %v9894_v6  }
 0x871   :  { %v9821_v21 = vpop.xlane.xlu1 %9820 }
 0x872   :  { %v9823_v49 = vmul.f32 0.001953125, %v9821_v21 }
 0x873   :  { %v9853_v7 = vpop.xlane.xlu0 %9852 }
 0x874   :  { %v9857_v27 = vmul.f32 %v9823_v49, %v9823_v49  ;;  %v9855_v17 = vmul.f32 0.001953125, %v9853_v7 }
 0x875   :  { %v9871_v56 = vpop.permute.xlu1 %9870 }
 0x876   :  { %v9859_v42 = vsub.f32 %v9855_v17, %v9857_v27  ;;  %v9878_v59 = vmul.f32 %v9871_v56, %v17845_v58  ;;  %v9879_v33 = vmul.f32 %v9871_v56, %v17848_v35  ;;  %v9880_v26 = vmul.f32 %v9871_v56, %v17857_v52 }
 0x877   :  { %v9881_v37 = vmul.f32 %v9871_v56, %v17860_v4  ;;  %v9882_v51 = vmul.f32 %v9871_v56, %v17868_v34  ;;  %v9883_v7 = vmul.f32 %v9871_v56, %v17872_v5 }
 0x878   :  { %v9861_v16 = vmax.f32 %v9859_v42, 0.0 }
 0x879   :  { %v9899_v39 = vpop.permute.xlu1 %9898 }
 0x87a   :  { %v9863_v60 = vadd.f32 1e-05, %v9861_v16  ;;  %v9906_v54 = vadd.f32 %v9899_v39, %v9878_v59  ;;  %v9907_v48 = vadd.f32 %v9899_v39, %v9879_v33  ;;  %v9908_v41 = vadd.f32 %v9899_v39, %v9880_v26 }
 0x87b   :  { %v9909_v23 = vadd.f32 %v9899_v39, %v9881_v37  ;;  %v9910_v27 = vadd.f32 %v9899_v39, %v9882_v51 }
 0x87c   :  { %15872 = vrsqrt.f32 %v9863_v60  ;;  %v9920_v61 = vmax.f32 %v9906_v54, 0.0  ;;  %v9921_v45 = vmax.f32 %v9907_v48, 0.0  ;;  %v9884_v54 = vmul.f32 %v9871_v56, %v17880_v12 }
 0x87e   :  { %v9934_v59 = vmul.f32 %v9920_v61, %v16485_v63  ;;  %v9935_v33 = vmul.f32 %v9921_v45, %v16488_v0 }
 0x886   :  { %v15873_v30 = vpop.eup %15872 }
 0x887   :  { %v9867_v29 = vmul.f32 %v15873_v30, %v9803_v55 }
 0x889   :  { %9875 = vperm.xlu0 %15859, %v9867_v29   ;;  %v9893_v46 = vmul.f32 %v9867_v29, %v9823_v49  ;;  %v9911_v29 = vadd.f32 %v9899_v39, %v9883_v7 }
 0x88b   :  { %v9895_v25 = vsub.f32 %v9805_v43, %v9893_v46  ;;  %v9922_v43 = vmax.f32 %v9908_v41, 0.0  ;;  %v9923_v46 = vmax.f32 %v9909_v23, 0.0  ;;  %v9925_v61 = vmax.f32 %v9911_v29, 0.0 }
 0x88d   :  { %9903 = vperm.xlu1 %15860, %v9895_v25   ;;  %v9936_v45 = vmul.f32 %v9922_v43, %v16494_v2 }
 0x908   :  { %v9876_v57 = vpop.permute.xlu0 %9875 }
 0x909   :  { %v9885_v53 = vmul.f32 %v9876_v57, %v18291_v38  ;;  %v9886_v36 = vmul.f32 %v9876_v57, %v18294_v8  ;;  %v9887_v18 = vmul.f32 %v9876_v57, %v18303_v24  ;;  %v9888_v11 = vmul.f32 %v9876_v57, %v18306_v22 }
 0x90a   :  { %v9889_v31 = vmul.f32 %v9876_v57, %v18314_v62  ;;  %v9890_v19 = vmul.f32 %v9876_v57, %v18318_v10  ;;  %v9891_v25 = vmul.f32 %v9876_v57, %v18326_v47 }
 0x90c   :  { %v9904_v32 = vpop.permute.xlu1 %9903 }
 0x90d   :  { %v9913_v40 = vadd.f32 %v9904_v32, %v9885_v53  ;;  %v9914_v6 = vadd.f32 %v9904_v32, %v9886_v36  ;;  %v9915_v21 = vadd.f32 %v9904_v32, %v9887_v18  ;;  %v9916_v49 = vadd.f32 %v9904_v32, %v9888_v11 }
 0x90e   :  { %v9917_v17 = vadd.f32 %v9904_v32, %v9889_v31  ;;  %v9918_v42 = vadd.f32 %v9904_v32, %v9890_v19  ;;  %v9919_v48 = vadd.f32 %v9904_v32, %v9891_v25  ;;  %v9912_v18 = vadd.f32 %v9899_v39, %v9884_v54 }
 0x90f   :  { %v9927_v16 = vmax.f32 %v9913_v40, 0.0  ;;  %v9928_v60 = vmax.f32 %v9914_v6, 0.0  ;;  %v9929_v55 = vmax.f32 %v9915_v21, 0.0  ;;  %v9930_v30 = vmax.f32 %v9916_v49, 0.0 }
 0x910   :  { %v9931_v51 = vmax.f32 %v9917_v17, 0.0  ;;  %v9932_v53 = vmax.f32 %v9918_v42, 0.0  ;;  %v9924_v11 = vmax.f32 %v9910_v27, 0.0  ;;  %v9937_v31 = vmul.f32 %v9923_v46, %v16501_v13  ;;  %v15171_v46 = vld [vmem:[%s19900_s6 + $0x4] sm:$0xf] }
 0x911   :  { %v9941_v26 = vmul.f32 %v9927_v16, %v16485_v63  ;;  %v9942_v37 = vmul.f32 %v9928_v60, %v16488_v0  ;;  %v9943_v36 = vmul.f32 %v9929_v55, %v16494_v2  ;;  %v9944_v41 = vmul.f32 %v9930_v30, %v16501_v13  ;;  %v9948_v60 = vld [vmem:[%s19899_s12] sm:$0xff] }
 0x912   :  { %v9933_v56 = vmax.f32 %v9919_v48, 0.0  ;;  %v9945_v19 = vmul.f32 %v9931_v51, %v16491_v1  ;;  %v9946_v32 = vmul.f32 %v9932_v53, %v16527_v50  ;;  %v9926_v6 = vmax.f32 %v9912_v18, 0.0 }
 0x913   :  { %v18371_v23 = vpack.c.bf16 %v9941_v26, %v9934_v59  ;;  %v18373_v57 = vpack.c.bf16 %v9942_v37, %v9935_v33  ;;  %v18383_v40 = vpack.c.bf16 %v9943_v36, %v9936_v45  ;;  %v18385_v39 = vpack.c.bf16 %v9944_v41, %v9937_v31  ;;  %v9956_v31 = vld [vmem:[%s19900_s6] sm:$0xf] }
 0x914   :  { %v9938_v21 = vmul.f32 %v9924_v11, %v16491_v1  ;;  %v9939_v49 = vmul.f32 %v9925_v61, %v16527_v50  ;;  %v9947_v7 = vmul.f32 %v9933_v56, %v16521_v9  ;;  %v9940_v42 = vmul.f32 %v9926_v6, %v16521_v9 }
 0x915   :  { %9997 = vrot.lane.b32.xlu1 %v18373_v57, %s15891_s0  ;;  %9995 = vrot.lane.b32.xlu0 %v18371_v23, %s15891_s0 }
 0x916   :  { %v18394_v27 = vpack.c.bf16 %v9945_v19, %v9938_v21  ;;  %v18396_v17 = vpack.c.bf16 %v9946_v32, %v9939_v49  ;;  %v18403_v16 = vpack.c.bf16 %v9947_v7, %v9940_v42 }
 0x919   :  { %10001 = vrot.lane.b32.xlu1 %v18385_v39, %s15891_s0  ;;  %9999 = vrot.lane.b32.xlu0 %v18383_v40, %s15891_s0 }
 0x91d   :  { %10005 = vrot.lane.b32.xlu1 %v18396_v17, %s15891_s0  ;;  %10003 = vrot.lane.b32.xlu0 %v18394_v27, %s15891_s0 }
 0x921   :  { %9964 = vrot.lane.b32.xlu1 %v18371_v23, %s15892_s9  ;;  %10007 = vrot.lane.b32.xlu0 %v18403_v16, %s15891_s0 }
 0x925   :  { %9968 = vrot.lane.b32.xlu1 %v18383_v40, %s15892_s9  ;;  %9966 = vrot.lane.b32.xlu0 %v18373_v57, %s15892_s9 }
 0x929   :  { %9972 = vrot.lane.b32.xlu1 %v18394_v27, %s15892_s9  ;;  %9970 = vrot.lane.b32.xlu0 %v18385_v39, %s15892_s9 }
 0x92d   :  { %9976 = vrot.lane.b32.xlu1 %v18403_v16, %s15892_s9  ;;  %9974 = vrot.lane.b32.xlu0 %v18396_v17, %s15892_s9 }
 0x931   :  { %10361 = vrot.lane.b32.xlu1 %v18373_v57, %s15893_s26  ;;  %10359 = vrot.lane.b32.xlu0 %v18371_v23, %s15893_s26 }
 0x935   :  { %10365 = vrot.lane.b32.xlu1 %v18385_v39, %s15893_s26  ;;  %10363 = vrot.lane.b32.xlu0 %v18383_v40, %s15893_s26 }
 0x939   :  { %10369 = vrot.lane.b32.xlu1 %v18396_v17, %s15893_s26  ;;  %10367 = vrot.lane.b32.xlu0 %v18394_v27, %s15893_s26 }
 0x93d   :  { %10563 = vrot.lane.b32.xlu1 %v18371_v23, %s15894_s11  ;;  %10371 = vrot.lane.b32.xlu0 %v18403_v16, %s15893_s26 }
 0x941   :  { %10567 = vrot.lane.b32.xlu1 %v18383_v40, %s15894_s11  ;;  %10565 = vrot.lane.b32.xlu0 %v18373_v57, %s15894_s11 }
 0x945   :  { %10571 = vrot.lane.b32.xlu1 %v18394_v27, %s15894_s11  ;;  %10569 = vrot.lane.b32.xlu0 %v18385_v39, %s15894_s11 }
 0x949   :  { %10575 = vrot.lane.b32.xlu1 %v18403_v16, %s15894_s11  ;;  %10573 = vrot.lane.b32.xlu0 %v18396_v17, %s15894_s11 }
 0x94d   :  { %10946 = vrot.lane.b32.xlu1 %v18383_v40, %s15895_s4  ;;  %10944 = vrot.lane.b32.xlu0 %v18373_v57, %s15895_s4 }
 0x951   :  { %10948 = vrot.lane.b32.xlu1 %v18385_v39, %s15895_s4  ;;  %10942 = vrot.lane.b32.xlu0 %v18371_v23, %s15895_s4 }
 0x955   :  { %10952 = vrot.lane.b32.xlu1 %v18396_v17, %s15895_s4  ;;  %10950 = vrot.lane.b32.xlu0 %v18394_v27, %s15895_s4 }
 0x959   :  { %11148 = vrot.lane.b32.xlu1 %v18373_v57, %s15896_s1  ;;  %10954 = vrot.lane.b32.xlu0 %v18403_v16, %s15895_s4 }
 0x95d   :  { %11146 = vrot.lane.b32.xlu1 %v18371_v23, %s15896_s1  ;;  %11150 = vrot.lane.b32.xlu0 %v18383_v40, %s15896_s1 }
 0x961   :  { %11154 = vrot.lane.b32.xlu1 %v18394_v27, %s15896_s1  ;;  %11152 = vrot.lane.b32.xlu0 %v18385_v39, %s15896_s1 }
 0x965   :  { %11158 = vrot.lane.b32.xlu1 %v18403_v16, %s15896_s1  ;;  %11156 = vrot.lane.b32.xlu0 %v18396_v17, %s15896_s1 }
 0x969   :  { %11354 = vrot.lane.b32.xlu1 %v18383_v40, %s15897_s27  ;;  %11352 = vrot.lane.b32.xlu0 %v18373_v57, %s15897_s27 }
 0x96d   :  { %11356 = vrot.lane.b32.xlu1 %v18385_v39, %s15897_s27  ;;  %11350 = vrot.lane.b32.xlu0 %v18371_v23, %s15897_s27 }
 0x971   :  { %11360 = vrot.lane.b32.xlu1 %v18396_v17, %s15897_s27  ;;  %11358 = vrot.lane.b32.xlu0 %v18394_v27, %s15897_s27 }
 0x975   :  { %11556 = vrot.lane.b32.xlu1 %v18373_v57, %s15898_s3  ;;  %11362 = vrot.lane.b32.xlu0 %v18403_v16, %s15897_s27 }
 0x979   :  { %11554 = vrot.lane.b32.xlu1 %v18371_v23, %s15898_s3  ;;  %11558 = vrot.lane.b32.xlu0 %v18383_v40, %s15898_s3 }
 0x97d   :  { %11562 = vrot.lane.b32.xlu1 %v18394_v27, %s15898_s3  ;;  %11560 = vrot.lane.b32.xlu0 %v18385_v39, %s15898_s3 }
 0x981   :  { %11566 = vrot.lane.b32.xlu1 %v18403_v16, %s15898_s3  ;;  %11564 = vrot.lane.b32.xlu0 %v18396_v17, %s15898_s3 }
 0x985   :  { %11758 = vperm.xlu0 %15859, %v9948_v60  }
 0x987   :  { %v9998_v55 = vpop.permute.xlu1 %9997  ;;  %v9996_v30 = vpop.permute.xlu0 %9995 }
 0x988   :  { %v10009_v43 = vsel %vm154_vm0, %v9996_v30, %v9998_v55 }
 0x989   :  { %10028 = vmatprep.subr.bf16.mxu0 %v10009_v43 }
 0x98a   :  { %15173 = vmatpush1.bf16.msk.msra.mxu0 %vm18509_vm13, %v9996_v30 }
 0x98b   :  { %v10002_v25 = vpop.permute.xlu1 %10001  ;;  %v10000_v59 = vpop.permute.xlu0 %9999 }
 0x98c   :  { %v10011_v33 = vsel %vm154_vm0, %v10000_v59, %v10002_v25  ;;  %v10010_v26 = vsel %vm154_vm0, %v9998_v55, %v10000_v59 }
 0x98d   :  { %15174 = vmatmul.mubr.msk.bf16.vlgmr.msra.gmra.mrb[88].mxu0 %vm10024_vm14, %v15171_v46  ;;  %10069 = vmatprep.subr.bf16.mxu1 %v10011_v33 }
 0x98e   :  { %10070 = vmatpush1.bf16.msra.mxu1 %v10010_v26  ;;  %10142 = vmatprep.mubr.bf16.mxu0 %v19917_v3 }
 0x98f   :  { %v10006_v37 = vpop.permute.xlu1 %10005  ;;  %v10004_v54 = vpop.permute.xlu0 %10003  ;;  %15698 = vmatprep.subr.bf16.mxu1 %v19919_v28 }
 0x990   :  { %v10013_v48 = vsel %vm154_vm0, %v10004_v54, %v10006_v37  ;;  %v10012_v51 = vsel %vm154_vm0, %v10002_v25, %v10004_v54 }
 0x991   :  { %15175 = vmatmul.mubr.msk.bf16.vlgmr.msra.gmra.mrb[88].mxu1 %vm10024_vm14, %v15171_v46  ;;  %10110 = vmatprep.subr.bf16.mxu0 %v10013_v48 }
 0x992   :  { %10111 = vmatpush1.bf16.msra.mxu0 %v10012_v51  ;;  %15700 = vmatprep.mubr.msk.bf16.mxu1 %vm15900_vm4, %v19919_v28 }
 0x993   :  { %v9965_v53 = vpop.permute.xlu1 %9964  ;;  %v10008_v36 = vpop.permute.xlu0 %10007 }
 0x994   :  { %v10014_v41 = vsel %vm154_vm0, %v10006_v37, %v10008_v36  ;;  %v15184_v37 = vld [vmem:[%s19900_s6 + $0x8] sm:$0xf] }
 0x995   :  { %15176 = vmatmul.mubr.msk.bf16.vlgmr.msra.gmra.mrb[92].mxu0 %vm10024_vm14, %v15171_v46  ;;  %15699 = vmatpush3.bf16.msra.mxu1 %v10014_v41 }
 0x996   :  { %10226 = vmatprep.mubr.bf16.mxu0 %v19917_v3 }
 0x997   :  { %v9969_v18 = vpop.permute.xlu1 %9968  ;;  %v9967_v11 = vpop.permute.xlu0 %9966 }
 0x998   :  { %v9978_v45 = vsel %vm127_vm3, %v9965_v53, %v9967_v11  ;;  %v9979_v6 = vsel %vm127_vm3, %v9967_v11, %v9969_v18 }
 0x999   :  { %15701 = vmatmul.mubr.msk.bf16.vlgmr.msra.gmra.mrb[92].mxu1 %vm10024_vm14, %v15171_v46  ;;  %10194 = vmatprep.subr.bf16.mxu0 %v9978_v45 }
 0x99a   :  { %15179 = vmatpush1.bf16.msk.msra.mxu0 %vm18533_vm15, %v9965_v53  ;;  %10267 = vmatprep.mubr.bf16.mxu1 %v19917_v3 }
 0x99b   :  { %v9973_v56 = vpop.permute.xlu1 %9972  ;;  %v9971_v19 = vpop.permute.xlu0 %9970 }
 0x99c   :  { %v9980_v32 = vsel %vm127_vm3, %v9969_v18, %v9971_v19  ;;  %v9981_v60 = vsel %vm127_vm3, %v9971_v19, %v9973_v56 }
 0x99d   :  { %15180 = vmatmul.mubr.msk.bf16.vlgmr.msra.gmra.mrb[96].mxu0 %vm10024_vm14, %v9956_v31  ;;  %10235 = vmatprep.subr.bf16.mxu1 %v9980_v32 }
 0x99e   :  { %10236 = vmatpush1.bf16.msra.mxu1 %v9979_v6  ;;  %10308 = vmatprep.mubr.bf16.mxu0 %v19917_v3 }
 0x99f   :  { %v9977_v21 = vpop.permute.xlu1 %9976  ;;  %v9975_v49 = vpop.permute.xlu0 %9974  ;;  %15704 = vmatprep.subr.bf16.mxu1 %v19919_v28 }
 0x9a0   :  { %v9982_v7 = vsel %vm127_vm3, %v9973_v56, %v9975_v49  ;;  %v9983_v42 = vsel %vm127_vm3, %v9975_v49, %v9977_v21  ;;  %v15191_v49 = vld [vmem:[%s19900_s6 + $0xc] sm:$0xf] }
 0x9a1   :  { %15181 = vmatmul.mubr.msk.bf16.vlgmr.msra.gmra.mrb[96].mxu1 %vm10024_vm14, %v9956_v31  ;;  %10276 = vmatprep.subr.bf16.mxu0 %v9982_v7 }
 0x9a2   :  { %10277 = vmatpush1.bf16.msra.mxu0 %v9981_v60  ;;  %15705 = vmatpush3.bf16.msra.mxu1 %v9983_v42 }
 0x9a3   :  { %v10362_v55 = vpop.permute.xlu1 %10361  ;;  %v10360_v30 = vpop.permute.xlu0 %10359  ;;  %15706 = vmatprep.mubr.msk.bf16.mxu1 %vm15900_vm4, %v19919_v28 }
 0x9a4   :  { %11823 = vadd.xlane.f32.xlu0 %v18330_v15  ;;  %v10373_v43 = vsel %vm554_vm5, %v10360_v30, %v10362_v55 }
 0x9a5   :  { %11815 = vadd.xlane.f32.xlu1 %v17884_v44  ;;  %15182 = vmatmul.mubr.msk.bf16.vlgmr.msra.gmra.mrb[100].mxu0 %vm10024_vm14, %v9956_v31 }
 0x9a6   :  { %10391 = vmatprep.subr.bf16.mxu0 %v10373_v43  ;;  %10423 = vmatprep.mubr.bf16.mxu0 %v19917_v3 }
 0x9a7   :  { %15186 = vmatpush1.bf16.msk.msra.mxu0 %vm18559_vm1, %v10360_v30  ;;  %v10366_v25 = vpop.permute.xlu1 %10365  ;;  %v10364_v59 = vpop.permute.xlu0 %10363 }
 0x9a8   :  { %11863 = vadd.xlane.f32.xlu0 %v17889_v20  ;;  %v10375_v33 = vsel %vm554_vm5, %v10364_v59, %v10366_v25  ;;  %v10374_v26 = vsel %vm554_vm5, %v10362_v55, %v10364_v59 }
 0x9a9   :  { %11871 = vadd.xlane.f32.xlu1 %v18335_v14  ;;  %15707 = vmatmul.mubr.msk.bf16.vlgmr.msra.gmra.mrb[100].mxu1 %vm10024_vm14, %v9956_v31 }
 0x9aa   :  { %10432 = vmatprep.subr.bf16.mxu1 %v10375_v33  ;;  %10464 = vmatprep.mubr.bf16.mxu1 %v19917_v3 }
 0x9ab   :  { %10433 = vmatpush1.bf16.msra.mxu1 %v10374_v26  ;;  %v10370_v54 = vpop.permute.xlu1 %10369  ;;  %v10368_v48 = vpop.permute.xlu0 %10367 }
 0x9ac   :  { %v10377_v51 = vsel %vm554_vm5, %v10368_v48, %v10370_v54  ;;  %v10376_v53 = vsel %vm554_vm5, %v10366_v25, %v10368_v48  ;;  %15710 = vmatprep.subr.bf16.mxu1 %v19919_v28 }
 0x9ad   :  { %15187 = vmatmul.mubr.msk.bf16.vlgmr.msra.gmra.mrb[104].mxu0 %vm10024_vm14, %v15184_v37  ;;  %10473 = vmatprep.subr.bf16.mxu0 %v10377_v51 }
 0x9ae   :  { %10474 = vmatpush1.bf16.msra.mxu0 %v10376_v53  ;;  %10505 = vmatprep.mubr.bf16.mxu0 %v19917_v3 }
 0x9af   :  { %v10564_v36 = vpop.permute.xlu1 %10563  ;;  %v10372_v41 = vpop.permute.xlu0 %10371 }
 0x9b0   :  { %v10378_v18 = vsel %vm554_vm5, %v10370_v54, %v10372_v41 }
 0x9b1   :  { %15188 = vmatmul.mubr.msk.bf16.vlgmr.msra.gmra.mrb[104].mxu1 %vm10024_vm14, %v15184_v37 }
 0x9b2   :  { %15711 = vmatpush3.bf16.msra.mxu1 %v10378_v18  ;;  %15712 = vmatprep.mubr.msk.bf16.mxu1 %vm15900_vm4, %v19919_v28 }
 0x9b3   :  { %v10568_v11 = vpop.permute.xlu1 %10567  ;;  %v10566_v45 = vpop.permute.xlu0 %10565 }
 0x9b4   :  { %v10577_v56 = vsel %vm773_vm6, %v10564_v36, %v10566_v45  ;;  %v10578_v21 = vsel %vm773_vm6, %v10566_v45, %v10568_v11 }
 0x9b5   :  { %15189 = vmatmul.mubr.msk.bf16.vlgmr.msra.gmra.mrb[108].mxu0 %vm10024_vm14, %v15184_v37  ;;  %10595 = vmatprep.subr.bf16.mxu0 %v10577_v56 }
 0x9b6   :  { %15193 = vmatpush1.bf16.msk.msra.mxu0 %vm18587_vm2, %v10564_v36  ;;  %10627 = vmatprep.mubr.bf16.mxu0 %v19917_v3 }
 0x9b7   :  { %v10572_v19 = vpop.permute.xlu1 %10571  ;;  %v10570_v32 = vpop.permute.xlu0 %10569 }
 0x9b8   :  { %v10579_v6 = vsel %vm773_vm6, %v10568_v11, %v10570_v32  ;;  %v10580_v55 = vsel %vm773_vm6, %v10570_v32, %v10572_v19  ;;  %v15203_v11 = vld [vmem:[%s19900_s6 + $0x14] sm:$0xf] }
 0x9b9   :  { %15713 = vmatmul.mubr.msk.bf16.vlgmr.msra.gmra.mrb[108].mxu1 %vm10024_vm14, %v15184_v37  ;;  %10636 = vmatprep.subr.bf16.mxu1 %v10579_v6 }
 0x9ba   :  { %10637 = vmatpush1.bf16.msra.mxu1 %v10578_v21  ;;  %10668 = vmatprep.mubr.bf16.mxu1 %v19917_v3 }
 0x9bb   :  { %v10576_v7 = vpop.permute.xlu1 %10575  ;;  %v10574_v42 = vpop.permute.xlu0 %10573  ;;  %15716 = vmatprep.subr.bf16.mxu1 %v19919_v28 }
 0x9bc   :  { %v10581_v60 = vsel %vm773_vm6, %v10572_v19, %v10574_v42  ;;  %v10582_v25 = vsel %vm773_vm6, %v10574_v42, %v10576_v7 }
 0x9bd   :  { %15194 = vmatmul.mubr.msk.bf16.vlgmr.msra.gmra.mrb[112].mxu0 %vm10024_vm14, %v15191_v49  ;;  %10677 = vmatprep.subr.bf16.mxu0 %v10581_v60 }
 0x9be   :  { %10678 = vmatpush1.bf16.msra.mxu0 %v10580_v55  ;;  %10709 = vmatprep.mubr.bf16.mxu0 %v19917_v3 }
 0x9bf   :  { %v10947_v30 = vpop.permute.xlu1 %10946  ;;  %10770 = vmatprep.subr.bf16.mxu0 %v18373_v57  ;;  %v10945_v43 = vpop.permute.xlu0 %10944 }
 0x9c1   :  { %15195 = vmatmul.mubr.msk.bf16.vlgmr.msra.gmra.mrb[112].mxu1 %vm10024_vm14, %v15191_v49 }
 0x9c2   :  { %15717 = vmatpush3.bf16.msra.mxu1 %v10582_v25  ;;  %15718 = vmatprep.mubr.msk.bf16.mxu1 %vm15900_vm4, %v19919_v28 }
 0x9c3   :  { %10811 = vmatprep.subr.bf16.mxu1 %v18385_v39  ;;  %v10949_v59 = vpop.permute.xlu1 %10948  ;;  %v10943_v33 = vpop.permute.xlu0 %10942  ;;  %v15198_v39 = vld [vmem:[%s19900_s6 + $0x10] sm:$0xf] }
 0x9c4   :  { %v10958_v18 = vsel %vm1188_vm7, %v10947_v30, %v10949_v59 }
 0x9c5   :  { %15196 = vmatmul.mubr.msk.bf16.vlgmr.msra.gmra.mrb[116].mxu0 %vm10024_vm14, %v15191_v49 }
 0x9c6   :  { %10771 = vmatpush1.bf16.msra.mxu0 %v18371_v23  ;;  %10802 = vmatprep.mubr.bf16.mxu0 %v19917_v3  ;;  %v10957_v23 = vsel %vm1188_vm7, %v10945_v43, %v10947_v30  ;;  %v15208_v30 = vld [vmem:[%s19900_s6 + $0x18] sm:$0xf] }
 0x9c7   :  { %10852 = vmatprep.subr.bf16.mxu0 %v18396_v17  ;;  %v10953_v57 = vpop.permute.xlu1 %10952  ;;  %v10951_v26 = vpop.permute.xlu0 %10950 }
 0x9c8   :  { %v10959_v48 = vsel %vm1188_vm7, %v10949_v59, %v10951_v26  ;;  %v10960_v45 = vsel %vm1188_vm7, %v10951_v26, %v10953_v57 }
 0x9c9   :  { %15719 = vmatmul.mubr.msk.bf16.vlgmr.msra.gmra.mrb[116].mxu1 %vm10024_vm14, %v15191_v49 }
 0x9ca   :  { %10812 = vmatpush1.bf16.msra.mxu1 %v18383_v40  ;;  %10843 = vmatprep.mubr.bf16.mxu1 %v19917_v3 }
 0x9cb   :  { %v11149_v37 = vpop.permute.xlu1 %11148  ;;  %v10955_v54 = vpop.permute.xlu0 %10954  ;;  %15722 = vmatprep.subr.bf16.mxu1 %v19919_v28 }
 0x9cc   :  { %v10961_v36 = vsel %vm1188_vm7, %v10953_v57, %v10955_v54  ;;  %v10969_v6 = vsel %vm1188_vm7, %v10955_v54, 0 }
 0x9cd   :  { %15199 = vmatmul.mubr.msk.bf16.vlgmr.msra.gmra.mrb[120].mxu0 %vm10024_vm14, %v15198_v39 }
 0x9ce   :  { %10853 = vmatpush1.bf16.msra.mxu0 %v18394_v27  ;;  %10884 = vmatprep.mubr.bf16.mxu0 %v19917_v3  ;;  %v10956_v27 = vsel %vm1188_vm7, %v10943_v33, %v10945_v43 }
 0x9cf   :  { %10974 = vmatprep.subr.bf16.mxu0 %v10957_v23  ;;  %v11147_v40 = vpop.permute.xlu1 %11146  ;;  %v11151_v17 = vpop.permute.xlu0 %11150 }
 0x9d0   :  { %v11161_v56 = vsel %vm1407_vm8, %v11149_v37, %v11151_v17  ;;  %v11160_v49 = vsel %vm1407_vm8, %v11147_v40, %v11149_v37 }
 0x9d1   :  { %15200 = vmatmul.mubr.msk.bf16.vlgmr.msra.gmra.mrb[120].mxu1 %vm10024_vm14, %v15198_v39 }
 0x9d2   :  { %15723 = vmatpush3.bf16.msra.mxu1 %v18403_v16  ;;  %15724 = vmatprep.mubr.msk.bf16.mxu1 %vm15900_vm4, %v19919_v28 }
 0x9d3   :  { %11015 = vmatprep.subr.bf16.mxu1 %v10959_v48  ;;  %v11155_v51 = vpop.permute.xlu1 %11154  ;;  %v11153_v53 = vpop.permute.xlu0 %11152 }
 0x9d4   :  { %v11163_v21 = vsel %vm1407_vm8, %v11153_v53, %v11155_v51  ;;  %v11162_v55 = vsel %vm1407_vm8, %v11151_v17, %v11153_v53 }
 0x9d5   :  { %15201 = vmatmul.mubr.msk.bf16.vlgmr.msra.gmra.mrb[124].mxu0 %vm10024_vm14, %v15198_v39 }
 0x9d6   :  { %10975 = vmatpush1.bf16.msra.mxu0 %v10956_v27  ;;  %11006 = vmatprep.mubr.bf16.mxu0 %v19917_v3 }
 0x9d7   :  { %11056 = vmatprep.subr.bf16.mxu0 %v10961_v36  ;;  %v11159_v41 = vpop.permute.xlu1 %11158  ;;  %v11157_v16 = vpop.permute.xlu0 %11156 }
 0x9d8   :  { %v11165_v60 = vsel %vm1407_vm8, %v11157_v16, %v11159_v41  ;;  %v11164_v59 = vsel %vm1407_vm8, %v11155_v51, %v11157_v16  ;;  %v15213_v51 = vld [vmem:[%s19900_s6 + $0x1c] sm:$0xf] }
 0x9d9   :  { %15725 = vmatmul.mubr.msk.bf16.vlgmr.msra.gmra.mrb[124].mxu1 %vm10024_vm14, %v15198_v39  ;;  %v11173_v39 = vsel %vm1407_vm8, %v11159_v41, 0 }
 0x9da   :  { %11016 = vmatpush1.bf16.msra.mxu1 %v10958_v18  ;;  %11047 = vmatprep.mubr.bf16.mxu1 %v19917_v3 }
 0x9db   :  { %15728 = vmatprep.subr.bf16.mxu1 %v19919_v28  ;;  %v11355_v19 = vpop.permute.xlu1 %11354  ;;  %v11353_v32 = vpop.permute.xlu0 %11352 }
 0x9dc   :  { %v11365_v33 = vsel %vm1626_vm9, %v11353_v32, %v11355_v19 }
 0x9dd   :  { %15204 = vmatmul.mubr.msk.bf16.vlgmr.msra.gmra.mrb[128].mxu0 %vm10024_vm14, %v15203_v11 }
 0x9de   :  { %11057 = vmatpush1.bf16.msra.mxu0 %v10960_v45  ;;  %11088 = vmatprep.mubr.bf16.mxu0 %v19917_v3 }
 0x9df   :  { %11178 = vmatprep.subr.bf16.mxu0 %v11161_v56  ;;  %v11357_v7 = vpop.permute.xlu1 %11356  ;;  %v11351_v42 = vpop.permute.xlu0 %11350 }
 0x9e0   :  { %v11364_v54 = vsel %vm1626_vm9, %v11351_v42, %v11353_v32  ;;  %v11366_v48 = vsel %vm1626_vm9, %v11355_v19, %v11357_v7 }
 0x9e1   :  { %15205 = vmatmul.mubr.msk.bf16.vlgmr.msra.gmra.mrb[128].mxu1 %vm10024_vm14, %v15203_v11 }
 0x9e2   :  { %15729 = vmatpush3.bf16.msra.mxu1 %v10969_v6  ;;  %15730 = vmatprep.mubr.msk.bf16.mxu1 %vm15900_vm4, %v19919_v28  ;;  %v15218_v6 = vld [vmem:[%s19900_s6 + $0x20] sm:$0xf] }
 0x9e3   :  { %11219 = vmatprep.subr.bf16.mxu1 %v11163_v21  ;;  %v11361_v43 = vpop.permute.xlu1 %11360  ;;  %v11359_v25 = vpop.permute.xlu0 %11358 }
 0x9e4   :  { %v11367_v37 = vsel %vm1626_vm9, %v11357_v7, %v11359_v25  ;;  %v11368_v36 = vsel %vm1626_vm9, %v11359_v25, %v11361_v43 }
 0x9e5   :  { %15206 = vmatmul.mubr.msk.bf16.vlgmr.msra.gmra.mrb[132].mxu0 %vm10024_vm14, %v15203_v11 }
 0x9e6   :  { %11179 = vmatpush1.bf16.msra.mxu0 %v11160_v49  ;;  %11210 = vmatprep.mubr.bf16.mxu0 %v19917_v3 }
 0x9e7   :  { %11260 = vmatprep.subr.bf16.mxu0 %v11165_v60  ;;  %v11557_v57 = vpop.permute.xlu1 %11556  ;;  %v11363_v26 = vpop.permute.xlu0 %11362 }
 0x9e8   :  { %v11369_v23 = vsel %vm1626_vm9, %v11361_v43, %v11363_v26  ;;  %v11377_v16 = vsel %vm1626_vm9, %v11363_v26, 0 }
 0x9e9   :  { %15731 = vmatmul.mubr.msk.bf16.vlgmr.msra.gmra.mrb[132].mxu1 %vm10024_vm14, %v15203_v11 }
 0x9ea   :  { %11220 = vmatpush1.bf16.msra.mxu1 %v11162_v55  ;;  %11251 = vmatprep.mubr.bf16.mxu1 %v19917_v3 }
 0x9eb   :  { %15734 = vmatprep.subr.bf16.mxu1 %v19919_v28  ;;  %v11555_v40 = vpop.permute.xlu1 %11554  ;;  %v11559_v17 = vpop.permute.xlu0 %11558 }
 0x9ec   :  { %v11569_v41 = vsel %vm1845_vm10, %v11557_v57, %v11559_v17  ;;  %v11568_v56 = vsel %vm1845_vm10, %v11555_v40, %v11557_v57 }
 0x9ed   :  { %15209 = vmatmul.mubr.msk.bf16.vlgmr.msra.gmra.mrb[136].mxu0 %vm10024_vm14, %v15208_v30 }
 0x9ee   :  { %11261 = vmatpush1.bf16.msra.mxu0 %v11164_v59  ;;  %11292 = vmatprep.mubr.bf16.mxu0 %v19917_v3 }
 0x9ef   :  { %11382 = vmatprep.subr.bf16.mxu0 %v11365_v33  ;;  %v11563_v53 = vpop.permute.xlu1 %11562  ;;  %v11561_v27 = vpop.permute.xlu0 %11560 }
 0x9f0   :  { %v11571_v18 = vsel %vm1845_vm10, %v11561_v27, %v11563_v53  ;;  %v11570_v32 = vsel %vm1845_vm10, %v11559_v17, %v11561_v27 }
 0x9f1   :  { %15210 = vmatmul.mubr.msk.bf16.vlgmr.msra.gmra.mrb[136].mxu1 %vm10024_vm14, %v15208_v30 }
 0x9f2   :  { %15735 = vmatpush3.bf16.msra.mxu1 %v11173_v39  ;;  %15736 = vmatprep.mubr.msk.bf16.mxu1 %vm15900_vm4, %v19919_v28 }
 0x9f3   :  { %11423 = vmatprep.subr.bf16.mxu1 %v11367_v37  ;;  %v11567_v11 = vpop.permute.xlu1 %11566  ;;  %v11565_v45 = vpop.permute.xlu0 %11564 }
 0x9f4   :  { %v11573_v19 = vsel %vm1845_vm10, %v11565_v45, %v11567_v11  ;;  %v11572_v21 = vsel %vm1845_vm10, %v11563_v53, %v11565_v45  ;;  %v11581_v49 = vsel %vm1845_vm10, %v11567_v11, 0 }
 0x9f5   :  { %15211 = vmatmul.mubr.msk.bf16.vlgmr.msra.gmra.mrb[140].mxu0 %vm10024_vm14, %v15208_v30 }
 0x9f6   :  { %11383 = vmatpush1.bf16.msra.mxu0 %v11364_v54  ;;  %11414 = vmatprep.mubr.bf16.mxu0 %v19917_v3 }
 0x9f7   :  { %11464 = vmatprep.subr.bf16.mxu0 %v11369_v23 }
 0x9f9   :  { %15737 = vmatmul.mubr.msk.bf16.vlgmr.msra.gmra.mrb[140].mxu1 %vm10024_vm14, %v15208_v30 }
 0x9fa   :  { %11424 = vmatpush1.bf16.msra.mxu1 %v11366_v48  ;;  %11455 = vmatprep.mubr.bf16.mxu1 %v19917_v3 }
 0x9fb   :  { %15740 = vmatprep.subr.bf16.mxu1 %v19919_v28 }
 0x9fd   :  { %15214 = vmatmul.mubr.msk.bf16.vlgmr.msra.gmra.mrb[144].mxu0 %vm10024_vm14, %v15213_v51 }
 0x9fe   :  { %11465 = vmatpush1.bf16.msra.mxu0 %v11368_v36  ;;  %11496 = vmatprep.mubr.bf16.mxu0 %v19917_v3 }
 0x9ff   :  { %11586 = vmatprep.subr.bf16.mxu0 %v11569_v41 }
 0xa01   :  { %15215 = vmatmul.mubr.msk.bf16.vlgmr.msra.gmra.mrb[144].mxu1 %vm10024_vm14, %v15213_v51 }
 0xa02   :  { %15741 = vmatpush3.bf16.msra.mxu1 %v11377_v16  ;;  %15742 = vmatprep.mubr.msk.bf16.mxu1 %vm15900_vm4, %v19919_v28 }
 0xa03   :  { %11627 = vmatprep.subr.bf16.mxu1 %v11571_v18 }
 0xa05   :  { %15216 = vmatmul.mubr.msk.bf16.vlgmr.msra.gmra.mrb[148].mxu0 %vm10024_vm14, %v15213_v51 }
 0xa06   :  { %11587 = vmatpush1.bf16.msra.mxu0 %v11568_v56  ;;  %11618 = vmatprep.mubr.bf16.mxu0 %v19917_v3 }
 0xa07   :  { %11668 = vmatprep.subr.bf16.mxu0 %v11573_v19 }
 0xa09   :  { %15743 = vmatmul.mubr.msk.bf16.vlgmr.msra.gmra.mrb[148].mxu1 %vm10024_vm14, %v15213_v51 }
 0xa0a   :  { %11628 = vmatpush1.bf16.msra.mxu1 %v11570_v32  ;;  %11659 = vmatprep.mubr.bf16.mxu1 %v19917_v3 }
 0xa0b   :  { %15746 = vmatprep.subr.bf16.mxu1 %v19919_v28 }
 0xa0d   :  { %15219 = vmatmul.mubr.msk.bf16.vlgmr.msra.gmra.mrb[152].mxu0 %vm10024_vm14, %v15218_v6 }
 0xa0e   :  { %11669 = vmatpush1.bf16.msra.mxu0 %v11572_v21  ;;  %11700 = vmatprep.mubr.bf16.mxu0 %v19917_v3 }
 0xa11   :  { %15220 = vmatmul.mubr.msk.bf16.vlgmr.msra.gmra.mrb[152].mxu1 %vm10024_vm14, %v15218_v6 }
 0xa12   :  { %15747 = vmatpush3.bf16.msra.mxu1 %v11581_v49  ;;  %15748 = vmatprep.mubr.msk.bf16.mxu1 %vm15900_vm4, %v19919_v28 }
 0xa15   :  { %15221 = vmatmul.mubr.msk.bf16.vlgmr.msra.gmra.mrb[156].mxu0 %vm10024_vm14, %v15218_v6 }
 0xa16   :  { %12212 = vmatprep.mubr.bf16.mxu0 %v19917_v3 }
 0xa19   :  { %15749 = vmatmul.mubr.msk.bf16.vlgmr.msra.gmra.mrb[156].mxu1 %vm10024_vm14, %v15218_v6 }
 0xa1a   :  { %12253 = vmatprep.mubr.bf16.mxu1 %v19917_v3 }
 0xa60   :  { %v10062_v7 = vpop.f32.mrb[88].mxu0 }
 0xa61   :  { %v10064_v42 = vpop.f32.mrb[89].mxu0 }
 0xa62   :  { %v10066_v60 = vpop.f32.mrb[90].mxu0 }
 0xa63   :  { %v10067_v55 = vpop.f32.mrb[91].mxu0 }
 0xa64   :  { %v10103_v30 = vpop.f32.mrb[88].mxu1 }
 0xa65   :  { %v10105_v43 = vpop.f32.mrb[89].mxu1 }
 0xa66   :  { %v10107_v25 = vpop.f32.mrb[90].mxu1 }
 0xa67   :  { %v10108_v59 = vpop.f32.mrb[91].mxu1 }
 0xa68   :  { %v10144_v33 = vpop.f32.mrb[92].mxu0 }
 0xa69   :  { %v10146_v57 = vpop.f32.mrb[93].mxu0 }
 0xa6a   :  { %v10148_v26 = vpop.f32.mrb[94].mxu0 }
 0xa6b   :  { %v10149_v39 = vpop.f32.mrb[95].mxu0 }
 0xa6c   :  { %v10185_v37 = vpop.f32.mrb[92].mxu1 }
 0xa6d   :  { %v15702_v54 = vpop.f32.mrb[93].mxu1 }
 0xa6e   :  { %v10188_v23 = vpop.f32.mrb[94].mxu1 }
 0xa6f   :  { %v15703_v40 = vpop.f32.mrb[95].mxu1 }
 0xa70   :  { %v10228_v17 = vpop.f32.mrb[96].mxu0 }
 0xa71   :  { %v10229_v48 = vadd.f32 %v10228_v17, %v10062_v7  ;;  %v10230_v51 = vpop.f32.mrb[97].mxu0 }
 0xa72   :  { %v10231_v53 = vadd.f32 %v10230_v51, %v10064_v42  ;;  %v10232_v27 = vpop.f32.mrb[98].mxu0 }
 0xa73   :  { %v10233_v36 = vpop.f32.mrb[99].mxu0 }
 0xa74   :  { %v10269_v41 = vpop.f32.mrb[96].mxu1 }
 0xa75   :  { %v10270_v16 = vadd.f32 %v10269_v41, %v10103_v30  ;;  %v10271_v18 = vpop.f32.mrb[97].mxu1 }
 0xa76   :  { %v10272_v11 = vadd.f32 %v10271_v18, %v10105_v43  ;;  %v10273_v45 = vpop.f32.mrb[98].mxu1 }
 0xa77   :  { %v10274_v56 = vpop.f32.mrb[99].mxu1 }
 0xa78   :  { %v10310_v19 = vpop.f32.mrb[100].mxu0 }
 0xa79   :  { %v10311_v32 = vadd.f32 %v10310_v19, %v10144_v33  ;;  %v10312_v6 = vpop.f32.mrb[101].mxu0 }
 0xa7a   :  { %v10313_v21 = vadd.f32 %v10312_v6, %v10146_v57  ;;  %v10314_v49 = vpop.f32.mrb[102].mxu0 }
 0xa7b   :  { %v10315_v60 = vpop.f32.mrb[103].mxu0 }
 0xa7c   :  { %v10351_v55 = vpop.f32.mrb[100].mxu1 }
 0xa7d   :  { %v10352_v25 = vadd.f32 %v10351_v55, %v10185_v37  ;;  %v15708_v59 = vpop.f32.mrb[101].mxu1 }
 0xa7e   :  { %v10354_v7 = vpop.f32.mrb[102].mxu1 }
 0xa7f   :  { %v15709_v26 = vpop.f32.mrb[103].mxu1 }
 0xa80   :  { %v10425_v42 = vpop.f32.mrb[104].mxu0 }
 0xa81   :  { %v10554_v39 = vadd.f32 %v10425_v42, %v10229_v48  ;;  %v10427_v54 = vpop.f32.mrb[105].mxu0 }
 0xa82   :  { %v10555_v23 = vadd.f32 %v10427_v54, %v10231_v53  ;;  %v10429_v30 = vpop.f32.mrb[106].mxu0 }
 0xa83   :  { %v10430_v40 = vpop.f32.mrb[107].mxu0 }
 0xa84   :  { %v10466_v43 = vpop.f32.mrb[104].mxu1 }
 0xa85   :  { %v10556_v17 = vadd.f32 %v10466_v43, %v10270_v16  ;;  %v10468_v51 = vpop.f32.mrb[105].mxu1 }
 0xa86   :  { %v10557_v27 = vadd.f32 %v10468_v51, %v10272_v11  ;;  %v10470_v33 = vpop.f32.mrb[106].mxu1 }
 0xa87   :  { %v10471_v36 = vpop.f32.mrb[107].mxu1 }
 0xa88   :  { %v10507_v57 = vpop.f32.mrb[108].mxu0 }
 0xa89   :  { %v10558_v41 = vadd.f32 %v10507_v57, %v10311_v32  ;;  %v10509_v18 = vpop.f32.mrb[109].mxu0 }
 0xa8a   :  { %v10559_v45 = vadd.f32 %v10509_v18, %v10313_v21  ;;  %v10511_v37 = vpop.f32.mrb[110].mxu0 }
 0xa8b   :  { %v10512_v56 = vpop.f32.mrb[111].mxu0 }
 0xa8c   :  { %v10548_v19 = vpop.f32.mrb[108].mxu1 }
 0xa8d   :  { %v10560_v6 = vadd.f32 %v10548_v19, %v10352_v25  ;;  %v15714_v49 = vpop.f32.mrb[109].mxu1 }
 0xa8e   :  { %v10551_v48 = vpop.f32.mrb[110].mxu1 }
 0xa8f   :  { %v15715_v60 = vpop.f32.mrb[111].mxu1 }
 0xa90   :  { %v10629_v53 = vpop.f32.mrb[112].mxu0 }
 0xa91   :  { %v10758_v55 = vadd.f32 %v10629_v53, %v10554_v39  ;;  %v10631_v59 = vpop.f32.mrb[113].mxu0 }
 0xa92   :  { %v10759_v7 = vadd.f32 %v10631_v59, %v10555_v23  ;;  %v10633_v16 = vpop.f32.mrb[114].mxu0 }
 0xa93   :  { %v10634_v26 = vpop.f32.mrb[115].mxu0 }
 0xa94   :  { %v10670_v11 = vpop.f32.mrb[112].mxu1 }
 0xa95   :  { %v10760_v42 = vadd.f32 %v10670_v11, %v10556_v17  ;;  %v10672_v54 = vpop.f32.mrb[113].mxu1 }
 0xa96   :  { %v10761_v30 = vadd.f32 %v10672_v54, %v10557_v27  ;;  %v10674_v32 = vpop.f32.mrb[114].mxu1 }
 0xa97   :  { %v10675_v40 = vpop.f32.mrb[115].mxu1 }
 0xa98   :  { %v10711_v21 = vpop.f32.mrb[116].mxu0 }
 0xa99   :  { %v10762_v43 = vadd.f32 %v10711_v21, %v10558_v41  ;;  %v10713_v51 = vpop.f32.mrb[117].mxu0 }
 0xa9a   :  { %v10763_v33 = vadd.f32 %v10713_v51, %v10559_v45  ;;  %v10715_v25 = vpop.f32.mrb[118].mxu0 }
 0xa9b   :  { %v10716_v36 = vpop.f32.mrb[119].mxu0 }
 0xa9c   :  { %v10752_v57 = vpop.f32.mrb[116].mxu1 }
 0xa9d   :  { %v10764_v18 = vadd.f32 %v10752_v57, %v10560_v6  ;;  %v15720_v37 = vpop.f32.mrb[117].mxu1 }
 0xa9e   :  { %v10755_v39 = vpop.f32.mrb[118].mxu1 }
 0xa9f   :  { %v15721_v56 = vpop.f32.mrb[119].mxu1 }
 0xaa0   :  { %v10804_v23 = vpop.f32.mrb[120].mxu0 }
 0xaa1   :  { %v10933_v19 = vadd.f32 %v10804_v23, %v10758_v55  ;;  %v10806_v49 = vpop.f32.mrb[121].mxu0 }
 0xaa2   :  { %v10934_v48 = vadd.f32 %v10806_v49, %v10759_v7  ;;  %v10808_v17 = vpop.f32.mrb[122].mxu0 }
 0xaa3   :  { %v10809_v60 = vpop.f32.mrb[123].mxu0 }
 0xaa4   :  { %v10845_v27 = vpop.f32.mrb[120].mxu1 }
 0xaa5   :  { %v10935_v53 = vadd.f32 %v10845_v27, %v10760_v42  ;;  %v10847_v59 = vpop.f32.mrb[121].mxu1 }
 0xaa6   :  { %v10936_v16 = vadd.f32 %v10847_v59, %v10761_v30  ;;  %v10849_v41 = vpop.f32.mrb[122].mxu1 }
 0xaa7   :  { %v10850_v26 = vpop.f32.mrb[123].mxu1 }
 0xaa8   :  { %v10886_v45 = vpop.f32.mrb[124].mxu0 }
 0xaa9   :  { %v10937_v11 = vadd.f32 %v10886_v45, %v10762_v43  ;;  %v10888_v54 = vpop.f32.mrb[125].mxu0 }
 0xaaa   :  { %v10938_v32 = vadd.f32 %v10888_v54, %v10763_v33  ;;  %v10890_v6 = vpop.f32.mrb[126].mxu0 }
 0xaab   :  { %v10891_v40 = vpop.f32.mrb[127].mxu0 }
 0xaac   :  { %v10927_v21 = vpop.f32.mrb[124].mxu1 }
 0xaad   :  { %v10939_v51 = vadd.f32 %v10927_v21, %v10764_v18  ;;  %v15726_v25 = vpop.f32.mrb[125].mxu1 }
 0xaae   :  { %v10930_v55 = vpop.f32.mrb[126].mxu1 }
 0xaaf   :  { %v15727_v36 = vpop.f32.mrb[127].mxu1 }
 0xab0   :  { %v11008_v7 = vpop.f32.mrb[128].mxu0 }
 0xab1   :  { %v11137_v57 = vadd.f32 %v11008_v7, %v10933_v19  ;;  %v11010_v37 = vpop.f32.mrb[129].mxu0 }
 0xab2   :  { %v11138_v39 = vadd.f32 %v11010_v37, %v10934_v48  ;;  %v11012_v42 = vpop.f32.mrb[130].mxu0 }
 0xab3   :  { %v11013_v56 = vpop.f32.mrb[131].mxu0 }
 0xab4   :  { %v11049_v30 = vpop.f32.mrb[128].mxu1 }
 0xab5   :  { %v11139_v23 = vadd.f32 %v11049_v30, %v10935_v53  ;;  %v11051_v49 = vpop.f32.mrb[129].mxu1 }
 0xab6   :  { %v11140_v17 = vadd.f32 %v11051_v49, %v10936_v16  ;;  %v11053_v43 = vpop.f32.mrb[130].mxu1 }
 0xab7   :  { %v11054_v60 = vpop.f32.mrb[131].mxu1 }
 0xab8   :  { %v11090_v33 = vpop.f32.mrb[132].mxu0 }
 0xab9   :  { %v11141_v27 = vadd.f32 %v11090_v33, %v10937_v11  ;;  %v11092_v59 = vpop.f32.mrb[133].mxu0 }
 0xaba   :  { %v11142_v41 = vadd.f32 %v11092_v59, %v10938_v32  ;;  %v11094_v18 = vpop.f32.mrb[134].mxu0 }
 0xabb   :  { %v11095_v26 = vpop.f32.mrb[135].mxu0 }
 0xabc   :  { %v11131_v45 = vpop.f32.mrb[132].mxu1 }
 0xabd   :  { %v11143_v54 = vadd.f32 %v11131_v45, %v10939_v51  ;;  %v15732_v6 = vpop.f32.mrb[133].mxu1 }
 0xabe   :  { %v11134_v19 = vpop.f32.mrb[134].mxu1 }
 0xabf   :  { %v15733_v40 = vpop.f32.mrb[135].mxu1 }
 0xac0   :  { %v11212_v48 = vpop.f32.mrb[136].mxu0 }
 0xac1   :  { %v11341_v21 = vadd.f32 %v11212_v48, %v11137_v57  ;;  %v11214_v25 = vpop.f32.mrb[137].mxu0 }
 0xac2   :  { %v11342_v55 = vadd.f32 %v11214_v25, %v11138_v39  ;;  %v11216_v53 = vpop.f32.mrb[138].mxu0 }
 0xac3   :  { %v11217_v36 = vpop.f32.mrb[139].mxu0 }
 0xac4   :  { %v11253_v16 = vpop.f32.mrb[136].mxu1  ;;  %v18716_v36 = vpop.permute.xlu0 %11758 }
 0xac5   :  { %v11343_v7 = vadd.f32 %v11253_v16, %v11139_v23  ;;  %v11255_v37 = vpop.f32.mrb[137].mxu1 }
 0xac6   :  { %v11344_v42 = vadd.f32 %v11255_v37, %v11140_v17  ;;  %v11257_v11 = vpop.f32.mrb[138].mxu1 }
 0xac7   :  { %v11258_v56 = vpop.f32.mrb[139].mxu1 }
 0xac8   :  { %v11294_v32 = vpop.f32.mrb[140].mxu0 }
 0xac9   :  { %v11345_v30 = vadd.f32 %v11294_v32, %v11141_v27  ;;  %v11296_v49 = vpop.f32.mrb[141].mxu0  ;;  %v11824_v32 = vpop.xlane.xlu0 %11823 }
 0xaca   :  { %v11346_v43 = vadd.f32 %v11296_v49, %v11142_v41  ;;  %v11298_v51 = vpop.f32.mrb[142].mxu0 }
 0xacb   :  { %v11299_v60 = vpop.f32.mrb[143].mxu0  ;;  %v11816_v51 = vpop.xlane.xlu1 %11815 }
 0xacc   :  { %v11335_v33 = vpop.f32.mrb[140].mxu1 }
 0xacd   :  { %v11347_v59 = vadd.f32 %v11335_v33, %v11143_v54  ;;  %v15738_v18 = vpop.f32.mrb[141].mxu1 }
 0xace   :  { %v11338_v57 = vpop.f32.mrb[142].mxu1 }
 0xacf   :  { %v15739_v26 = vpop.f32.mrb[143].mxu1  ;;  %v11864_v57 = vpop.xlane.xlu0 %11863 }
 0xad0   :  { %v11416_v39 = vpop.f32.mrb[144].mxu0 }
 0xad1   :  { %v11545_v45 = vadd.f32 %v11416_v39, %v11341_v21  ;;  %v11418_v6 = vpop.f32.mrb[145].mxu0 }
 0xad2   :  { %v11546_v19 = vadd.f32 %v11418_v6, %v11342_v55  ;;  %v11420_v23 = vpop.f32.mrb[146].mxu0 }
 0xad3   :  { %v11421_v40 = vpop.f32.mrb[147].mxu0 }
 0xad4   :  { %v11457_v17 = vpop.f32.mrb[144].mxu1 }
 0xad5   :  { %v11547_v48 = vadd.f32 %v11457_v17, %v11343_v7  ;;  %v11459_v25 = vpop.f32.mrb[145].mxu1  ;;  %v18718_v7 = vmul.f32 0.001953125, %v11816_v51  ;;  %v11881_v17 = vmul.f32 0.001953125, %v11864_v57 }
 0xad6   :  { %v11548_v53 = vadd.f32 %v11459_v25, %v11344_v42  ;;  %v11461_v27 = vpop.f32.mrb[146].mxu1  ;;  %v11872_v25 = vpop.xlane.xlu1 %11871 }
 0xad7   :  { %v11462_v41 = vpop.f32.mrb[147].mxu1  ;;  %v11884_v40 = vmul.f32 %v18718_v7, %v18718_v7 }
 0xad8   :  { %v11498_v16 = vpop.f32.mrb[148].mxu0 }
 0xad9   :  { %v11549_v37 = vadd.f32 %v11498_v16, %v11345_v30  ;;  %v11500_v54 = vpop.f32.mrb[149].mxu0 }
 0xada   :  { %v11550_v11 = vadd.f32 %v11500_v54, %v11346_v43  ;;  %v11502_v56 = vpop.f32.mrb[150].mxu0 }
 0xadb   :  { %v11503_v49 = vpop.f32.mrb[151].mxu0 }
 0xadc   :  { %v11539_v21 = vpop.f32.mrb[148].mxu1 }
 0xadd   :  { %v11551_v55 = vadd.f32 %v11539_v21, %v11347_v59  ;;  %v15744_v60 = vpop.f32.mrb[149].mxu1  ;;  %v11882_v21 = vmul.f32 0.001953125, %v11872_v25 }
 0xade   :  { %v11542_v33 = vpop.f32.mrb[150].mxu1 }
 0xadf   :  { %v15745_v18 = vpop.f32.mrb[151].mxu1 }
 0xae0   :  { %v11620_v42 = vpop.f32.mrb[152].mxu0  ;;  %v11887_v18 = vsub.f32 %v11881_v17, %v11884_v40 }
 0xae1   :  { %v11749_v26 = vadd.f32 %v11620_v42, %v11545_v45  ;;  %v11622_v39 = vpop.f32.mrb[153].mxu0  ;;  %v18727_v45 = vmul.f32 0.001953125, %v11824_v32 }
 0xae2   :  { %v11750_v6 = vadd.f32 %v11622_v39, %v11546_v19  ;;  %v11624_v23 = vpop.f32.mrb[154].mxu0 }
 0xae3   :  { %v11761_v30 = vadd.f32 %v18716_v36, %v11749_v26  ;;  %v11625_v43 = vpop.f32.mrb[155].mxu0 }
 0xae4   :  { %v11762_v59 = vadd.f32 %v18716_v36, %v11750_v6  ;;  %v11661_v27 = vpop.f32.mrb[152].mxu1  ;;  %v11885_v6 = vmul.f32 %v18727_v45, %v18727_v45 }
 0xae5   :  { %v18725_v41 = vmul.f32 %v11761_v30, %v16485_v63  ;;  %v11751_v16 = vadd.f32 %v11661_v27, %v11547_v48  ;;  %v11663_v54 = vpop.f32.mrb[153].mxu1 }
 0xae6   :  { %v18730_v19 = vmul.f32 %v11762_v59, %v16488_v0  ;;  %v11752_v56 = vadd.f32 %v11663_v54, %v11548_v53  ;;  %v11665_v49 = vpop.f32.mrb[154].mxu1 }
 0xae7   :  { %20010 = vst [vmem:[#allocation24_spill] sm:$0xff] %v18725_v41  ;;  %v11850_v51 = vmul.f32 %v18725_v41, %v18725_v41  ;;  %v11763_v60 = vadd.f32 %v18716_v36, %v11751_v16  ;;  %v11666_v33 = vpop.f32.mrb[155].mxu1  ;;  %v11890_v16 = vmax.f32 %v11887_v18, 0.0 }
 0xae8   :  { %20011 = vst [vmem:[#allocation25_spill] sm:$0xff] %v18730_v19  ;;  %v11825_v42 = vadd.f32 %v18730_v19, %v18725_v41  ;;  %v11851_v48 = vmul.f32 %v18730_v19, %v18730_v19  ;;  %v11764_v32 = vadd.f32 %v18716_v36, %v11752_v56  ;;  %v11702_v57 = vpop.f32.mrb[156].mxu0 }
 0xae9   :  { %v18741_v53 = vmul.f32 %v11763_v60, %v16494_v2  ;;  %v11753_v26 = vadd.f32 %v11702_v57, %v11549_v37  ;;  %v11704_v39 = vpop.f32.mrb[157].mxu0  ;;  %v11888_v37 = vsub.f32 %v11882_v21, %v11885_v6 }
 0xaea   :  { %v18746_v23 = vmul.f32 %v11764_v32, %v16501_v13  ;;  %v11754_v30 = vadd.f32 %v11704_v39, %v11550_v11  ;;  %v11706_v43 = vpop.f32.mrb[158].mxu0  ;;  %v11873_v40 = vadd.f32 %v11851_v48, %v11850_v51 }
 0xaeb   :  { %20012 = vst [vmem:[#allocation26_spill] sm:$0xff] %v18741_v53  ;;  %v11852_v17 = vmul.f32 %v18741_v53, %v18741_v53  ;;  %v11765_v25 = vadd.f32 %v18716_v36, %v11753_v26  ;;  %v11707_v59 = vpop.f32.mrb[159].mxu0  ;;  %v11826_v27 = vadd.f32 %v11825_v42, %v18741_v53  ;;  %v11891_v6 = vmax.f32 %v11888_v37, 0.0 }
 0xaec   :  { %20013 = vst [vmem:[#allocation27_spill] sm:$0xff] %v18746_v23  ;;  %v11766_v54 = vadd.f32 %v18716_v36, %v11754_v30  ;;  %v11743_v56 = vpop.f32.mrb[156].mxu1  ;;  %v11853_v49 = vmul.f32 %v18746_v23, %v18746_v23  ;;  %v11893_v30 = vadd.f32 1e-05, %v11890_v16 }
 0xaed   :  { %v18756_v11 = vmul.f32 %v11765_v25, %v16491_v1  ;;  %v11755_v51 = vadd.f32 %v11743_v56, %v11551_v55  ;;  %v15750_v60 = vpop.f32.mrb[157].mxu1  ;;  %v11827_v33 = vadd.f32 %v11826_v27, %v18746_v23  ;;  %v11874_v48 = vadd.f32 %v11873_v40, %v11852_v17 }
 0xaee   :  { %v18760_v32 = vmul.f32 %v11766_v54, %v16527_v50  ;;  %v11746_v42 = vpop.f32.mrb[158].mxu1  ;;  %v11894_v27 = vadd.f32 1e-05, %v11891_v6  ;;  %15874 = vrsqrt.f32 %v11893_v30  ;;  %v11803_v54 = vld [vmem:[%s19901_s19] sm:$0xff] }
 0xaef   :  { %20014 = vst [vmem:[#allocation28_spill] sm:$0xff] %v18756_v11  ;;  %v11767_v21 = vadd.f32 %v18716_v36, %v11755_v51  ;;  %v15751_v18 = vpop.f32.mrb[159].mxu1  ;;  %v11828_v57 = vadd.f32 %v11827_v33, %v18756_v11  ;;  %v11854_v26 = vmul.f32 %v18756_v11, %v18756_v11  ;;  %v11875_v39 = vadd.f32 %v11874_v48, %v11853_v49  ;;  %v11804_v49 = vld [vmem:[%s19901_s19 + $0x8] sm:$0xff]  ;;  %v11806_v48 = vld [vmem:[%s19902_s20] sm:$0xff] }
 0xaf0   :  { %20015 = vst [vmem:[#allocation29_spill] sm:$0xff] %v18760_v32  ;;  %v11855_v55 = vmul.f32 %v18760_v32, %v18760_v32  ;;  %15876 = vrsqrt.f32 %v11894_v27  ;;  %v11807_v18 = vld [vmem:[%s19902_s20 + $0x8] sm:$0xff] }
 0xaf1   :  { %v18769_v43 = vmul.f32 %v11767_v21, %v16521_v9  ;;  %v11829_v40 = vadd.f32 %v11828_v57, %v18760_v32  ;;  %v11876_v17 = vadd.f32 %v11875_v39, %v11854_v26 }
 0xaf3   :  { %20016 = vst [vmem:[#allocation30_spill] sm:$0xff] %v18769_v43  ;;  %v18773_v36 = vadd.f32 %v11829_v40, %v18769_v43  ;;  %v11856_v25 = vmul.f32 %v18769_v43, %v18769_v43  ;;  %v11877_v59 = vadd.f32 %v11876_v17, %v11855_v55 }
 0xaf5   :  { %11831 = vadd.xlane.f32.xlu0 %v18773_v36  ;;  %v18778_v37 = vadd.f32 %v11877_v59, %v11856_v25 }
 0xaf7   :  { %11879 = vadd.xlane.f32.xlu1 %v18778_v37 }
 0xaf8   :  { %v15875_v16 = vpop.eup %15874 }
 0xaf9   :  { %v11899_v51 = vmul.f32 %v15875_v16, %v11803_v54 }
 0xafa   :  { %v15877_v56 = vpop.eup %15876 }
 0xafb   :  { %v11900_v60 = vmul.f32 %v15877_v56, %v11804_v49  ;;  %v11938_v33 = vmul.f32 %v11899_v51, %v18718_v7 }
 0xafd   :  { %v11939_v42 = vmul.f32 %v11900_v60, %v18727_v45  ;;  %v11941_v21 = vsub.f32 %v11806_v48, %v11938_v33 }
 0xaff   :  { %v11942_v57 = vsub.f32 %v11807_v18, %v11939_v42 }
 0xb08   :  { %11909 = vperm.xlu1 %15860, %v11900_v60  }
 0xb0b   :  { %11904 = vperm.xlu0 %15859, %v11899_v51  }
 0xb0c   :  { %11946 = vperm.xlu1 %15860, %v11941_v21  }
 0xb0f   :  { %11951 = vperm.xlu0 %15859, %v11942_v57  }
 0xb82   :  { %v11832_v26 = vpop.xlane.xlu0 %11831 }
 0xb83   :  { %v18795_v39 = vmul.f32 0.001953125, %v11832_v26 }
 0xb84   :  { %v11880_v7 = vpop.xlane.xlu1 %11879 }
 0xb85   :  { %v11886_v6 = vmul.f32 %v18795_v39, %v18795_v39  ;;  %v11883_v55 = vmul.f32 0.001953125, %v11880_v7 }
 0xb87   :  { %v11889_v30 = vsub.f32 %v11883_v55, %v11886_v6 }
 0xb88   :  { %v11910_v40 = vpop.permute.xlu1 %11909 }
 0xb89   :  { %v11892_v45 = vmax.f32 %v11889_v30, 0.0  ;;  %v11924_v49 = vmul.f32 %v11910_v40, %v18291_v38  ;;  %v11925_v48 = vmul.f32 %v11910_v40, %v18294_v8  ;;  %v11926_v42 = vmul.f32 %v11910_v40, %v18303_v24 }
 0xb8a   :  { %v11905_v17 = vpop.permute.xlu0 %11904  ;;  %v11927_v21 = vmul.f32 %v11910_v40, %v18306_v22  ;;  %v11928_v18 = vmul.f32 %v11910_v40, %v18314_v62  ;;  %v11929_v6 = vmul.f32 %v11910_v40, %v18318_v10 }
 0xb8b   :  { %v11895_v25 = vadd.f32 1e-05, %v11892_v45  ;;  %v11917_v59 = vmul.f32 %v11905_v17, %v17845_v58  ;;  %v11918_v27 = vmul.f32 %v11905_v17, %v17848_v35  ;;  %v11919_v54 = vmul.f32 %v11905_v17, %v17857_v52 }
 0xb8c   :  { %v11947_v16 = vpop.permute.xlu1 %11946  ;;  %v11920_v56 = vmul.f32 %v11905_v17, %v17860_v4  ;;  %v11921_v57 = vmul.f32 %v11905_v17, %v17868_v34  ;;  %v11922_v26 = vmul.f32 %v11905_v17, %v17872_v5 }
 0xb8d   :  { %v11959_v51 = vadd.f32 %v11947_v16, %v11917_v59  ;;  %v11960_v60 = vadd.f32 %v11947_v16, %v11918_v27  ;;  %15878 = vrsqrt.f32 %v11895_v25  ;;  %v11961_v55 = vadd.f32 %v11947_v16, %v11919_v54 }
 0xb8e   :  { %v11952_v33 = vpop.permute.xlu0 %11951  ;;  %v11962_v30 = vadd.f32 %v11947_v16, %v11920_v56  ;;  %v11963_v38 = vadd.f32 %v11947_v16, %v11921_v57  ;;  %v11964_v22 = vadd.f32 %v11947_v16, %v11922_v26 }
 0xb8f   :  { %v11966_v7 = vadd.f32 %v11952_v33, %v11924_v49  ;;  %v11967_v45 = vadd.f32 %v11952_v33, %v11925_v48  ;;  %v11980_v59 = vmax.f32 %v11959_v51, 0.0  ;;  %v11981_v25 = vmax.f32 %v11960_v60, 0.0 }
 0xb90   :  { %v11968_v27 = vadd.f32 %v11952_v33, %v11926_v42  ;;  %v11969_v3 = vadd.f32 %v11952_v33, %v11927_v21  ;;  %v11970_v28 = vadd.f32 %v11952_v33, %v11928_v18  ;;  %v11971_v24 = vadd.f32 %v11952_v33, %v11929_v6 }
 0xb91   :  { %v11987_v8 = vmax.f32 %v11966_v7, 0.0  ;;  %v11988_v62 = vmax.f32 %v11967_v45, 0.0  ;;  %v11982_v52 = vmax.f32 %v11961_v55, 0.0  ;;  %v11983_v58 = vmax.f32 %v11962_v30, 0.0 }
 0xb92   :  { %v11989_v4 = vmax.f32 %v11968_v27, 0.0  ;;  %v11990_v35 = vmax.f32 %v11969_v3, 0.0  ;;  %v12001_v49 = vmul.f32 %v11980_v59, %v16485_v63  ;;  %v12002_v54 = vmul.f32 %v11981_v25, %v16488_v0 }
 0xb93   :  { %v12008_v56 = vmul.f32 %v11987_v8, %v16485_v63  ;;  %v12009_v51 = vmul.f32 %v11988_v62, %v16488_v0  ;;  %v11991_v60 = vmax.f32 %v11970_v28, 0.0  ;;  %v11992_v48 = vmax.f32 %v11971_v24, 0.0  ;;  %v11805_v8 = vld [vmem:[%s19901_s19 + $0x10] sm:$0xff] }
 0xb94   :  { %v12010_v42 = vmul.f32 %v11989_v4, %v16494_v2  ;;  %v12011_v21 = vmul.f32 %v11990_v35, %v16501_v13  ;;  %v11930_v3 = vmul.f32 %v11910_v40, %v18326_v47  ;;  %v11923_v7 = vmul.f32 %v11905_v17, %v17880_v12 }
 0xb95   :  { %v18817_v18 = vpack.c.bf16 %v12008_v56, %v12001_v49  ;;  %v18819_v57 = vpack.c.bf16 %v12009_v51, %v12002_v54  ;;  %v11984_v62 = vmax.f32 %v11963_v38, 0.0  ;;  %v11985_v28 = vmax.f32 %v11964_v22, 0.0 }
 0xb96   :  { %v12003_v24 = vmul.f32 %v11982_v52, %v16494_v2  ;;  %v12004_v4 = vmul.f32 %v11983_v58, %v16501_v13  ;;  %v11972_v35 = vadd.f32 %v11952_v33, %v11930_v3  ;;  %v12012_v40 = vmul.f32 %v11991_v60, %v16491_v1 }
 0xb97   :  { %v15879_v26 = vpop.eup %15878  ;;  %12107 = vrot.lane.b32.xlu0 %v18819_v57, %s15891_s0  ;;  %12105 = vrot.lane.b32.xlu1 %v18817_v18, %s15891_s0  ;;  %v12013_v17 = vmul.f32 %v11992_v48, %v16527_v50  ;;  %v11965_v22 = vadd.f32 %v11947_v16, %v11923_v7  ;;  %v12005_v52 = vmul.f32 %v11984_v62, %v16491_v1  ;;  %v11808_v16 = vld [vmem:[%s19902_s20 + $0x10] sm:$0xff] }
 0xb98   :  { %v18834_v6 = vpack.c.bf16 %v12010_v42, %v12003_v24  ;;  %v18836_v55 = vpack.c.bf16 %v12011_v21, %v12004_v4  ;;  %v11901_v38 = vmul.f32 %v15879_v26, %v11805_v8  ;;  %v12006_v58 = vmul.f32 %v11985_v28, %v16527_v50 }
 0xb99   :  { %v11993_v33 = vmax.f32 %v11972_v35, 0.0  ;;  %v18844_v30 = vpack.c.bf16 %v12012_v40, %v12005_v52  ;;  %v11986_v25 = vmax.f32 %v11965_v22, 0.0 }
 0xb9a   :  { %v18846_v45 = vpack.c.bf16 %v12013_v17, %v12006_v58  ;;  %v11940_v59 = vmul.f32 %v11901_v38, %v18795_v39 }
 0xb9b   :  { %12111 = vrot.lane.b32.xlu0 %v18836_v55, %s15891_s0  ;;  %12109 = vrot.lane.b32.xlu1 %v18834_v6, %s15891_s0  ;;  %v12014_v27 = vmul.f32 %v11993_v33, %v16521_v9  ;;  %v12007_v54 = vmul.f32 %v11986_v25, %v16521_v9 }
 0xb9c   :  { %v11943_v49 = vsub.f32 %v11808_v16, %v11940_v59 }
 0xb9d   :  { %v18858_v56 = vpack.c.bf16 %v12014_v27, %v12007_v54 }
 0xb9f   :  { %12115 = vrot.lane.b32.xlu0 %v18846_v45, %s15891_s0  ;;  %12113 = vrot.lane.b32.xlu1 %v18844_v30, %s15891_s0 }
 0xba3   :  { %11956 = vperm.xlu0 %15859, %v11943_v49   ;;  %11914 = vperm.xlu1 %15860, %v11901_v38  }
 0xba7   :  { %12052 = vrot.lane.b32.xlu0 %v18817_v18, %s15892_s9  ;;  %12117 = vrot.lane.b32.xlu1 %v18858_v56, %s15891_s0 }
 0xbab   :  { %12058 = vrot.lane.b32.xlu0 %v18836_v55, %s15892_s9  ;;  %12054 = vrot.lane.b32.xlu1 %v18819_v57, %s15892_s9 }
 0xbaf   :  { %12062 = vrot.lane.b32.xlu0 %v18846_v45, %s15892_s9  ;;  %12056 = vrot.lane.b32.xlu1 %v18834_v6, %s15892_s9 }
 0xbb3   :  { %12533 = vrot.lane.b32.xlu0 %v18819_v57, %s15893_s26  ;;  %12060 = vrot.lane.b32.xlu1 %v18844_v30, %s15892_s9 }
 0xbb7   :  { %12537 = vrot.lane.b32.xlu0 %v18836_v55, %s15893_s26  ;;  %12064 = vrot.lane.b32.xlu1 %v18858_v56, %s15892_s9 }
 0xbbb   :  { %12541 = vrot.lane.b32.xlu0 %v18846_v45, %s15893_s26  ;;  %12531 = vrot.lane.b32.xlu1 %v18817_v18, %s15893_s26 }
 0xbbf   :  { %12779 = vrot.lane.b32.xlu0 %v18819_v57, %s15894_s11  ;;  %12535 = vrot.lane.b32.xlu1 %v18834_v6, %s15893_s26 }
 0xbc3   :  { %12783 = vrot.lane.b32.xlu0 %v18836_v55, %s15894_s11  ;;  %12539 = vrot.lane.b32.xlu1 %v18844_v30, %s15893_s26 }
 0xbc7   :  { %12787 = vrot.lane.b32.xlu0 %v18846_v45, %s15894_s11  ;;  %12543 = vrot.lane.b32.xlu1 %v18858_v56, %s15893_s26 }
 0xbcb   :  { %13223 = vrot.lane.b32.xlu0 %v18834_v6, %s15895_s4  ;;  %12777 = vrot.lane.b32.xlu1 %v18817_v18, %s15894_s11 }
 0xbcf   :  { %13225 = vrot.lane.b32.xlu0 %v18836_v55, %s15895_s4  ;;  %12781 = vrot.lane.b32.xlu1 %v18834_v6, %s15894_s11 }
 0xbd3   :  { %13231 = vrot.lane.b32.xlu0 %v18858_v56, %s15895_s4  ;;  %12785 = vrot.lane.b32.xlu1 %v18844_v30, %s15894_s11 }
 0xbd7   :  { %13469 = vrot.lane.b32.xlu0 %v18834_v6, %s15896_s1  ;;  %12789 = vrot.lane.b32.xlu1 %v18858_v56, %s15894_s11 }
 0xbdb   :  { %13221 = vrot.lane.b32.xlu1 %v18819_v57, %s15895_s4 }
 0xbdf   :  { %13219 = vrot.lane.b32.xlu1 %v18817_v18, %s15895_s4 }
 0xbe3   :  { %13227 = vrot.lane.b32.xlu1 %v18844_v30, %s15895_s4 }
 0xbe7   :  { %13229 = vrot.lane.b32.xlu1 %v18846_v45, %s15895_s4 }
 0xbeb   :  { %13467 = vrot.lane.b32.xlu1 %v18819_v57, %s15896_s1 }
 0xc09   :  { %v12108_v39 = vpop.permute.xlu0 %12107  ;;  %v12106_v51 = vpop.permute.xlu1 %12105 }
 0xc0a   :  { %v12133_v60 = vsel %vm154_vm0, %v12106_v51, %v12108_v39 }
 0xc0b   :  { %12180 = vmatprep.subr.bf16.mxu0 %v12133_v60 }
 0xc0c   :  { %15225 = vmatpush1.bf16.msk.msra.mxu0 %vm18509_vm13, %v12106_v51 }
 0xc0d   :  { %v18925_v48 = vpop.permute.xlu0 %12111  ;;  %v12110_v42 = vpop.permute.xlu1 %12109 }
 0xc0e   :  { %v12135_v21 = vsel %vm154_vm0, %v12110_v42, %v18925_v48  ;;  %v12134_v26 = vsel %vm154_vm0, %v12108_v39, %v12110_v42 }
 0xc0f   :  { %12221 = vmatprep.subr.bf16.mxu1 %v12135_v21 }
 0xc10   :  { %12222 = vmatpush1.bf16.msra.mxu1 %v12134_v26 }
 0xc11   :  { %v18930_v3 = vpop.permute.xlu1 %12113  ;;  %v18932_v7 = vpop.permute.xlu0 %12115 }
 0xc22   :  { %v11915_v8 = vpop.permute.xlu1 %11914  ;;  %v11957_v4 = vpop.permute.xlu0 %11956 }
 0xc23   :  { %v11931_v62 = vmul.f32 %v11915_v8, %v18725_v41  ;;  %v11932_v29 = vmul.f32 %v11915_v8, %v18730_v19  ;;  %v11933_v28 = vmul.f32 %v11915_v8, %v18741_v53  ;;  %v11934_v24 = vmul.f32 %v11915_v8, %v18746_v23 }
 0xc24   :  { %v11935_v35 = vmul.f32 %v11915_v8, %v18756_v11  ;;  %v11936_v52 = vmul.f32 %v11915_v8, %v18760_v32  ;;  %v11937_v39 = vmul.f32 %v11915_v8, %v18769_v43 }
 0xc25   :  { %v11973_v40 = vadd.f32 %v11957_v4, %v11931_v62  ;;  %v11974_v17 = vadd.f32 %v11957_v4, %v11932_v29  ;;  %v11975_v38 = vadd.f32 %v11957_v4, %v11933_v28  ;;  %v11976_v22 = vadd.f32 %v11957_v4, %v11934_v24 }
 0xc26   :  { %v11977_v58 = vadd.f32 %v11957_v4, %v11935_v35  ;;  %v18940_v33 = vpop.permute.xlu1 %12117  ;;  %v11978_v51 = vadd.f32 %v11957_v4, %v11936_v52  ;;  %v11979_v28 = vadd.f32 %v11957_v4, %v11937_v39 }
 0xc27   :  { %v11994_v59 = vmax.f32 %v11973_v40, 0.0  ;;  %v11995_v16 = vmax.f32 %v11974_v17, 0.0  ;;  %v11996_v25 = vmax.f32 %v11975_v38, 0.0  ;;  %v11997_v27 = vmax.f32 %v11976_v22, 0.0 }
 0xc28   :  { %v11998_v60 = vmax.f32 %v11977_v58, 0.0  ;;  %v11999_v24 = vmax.f32 %v11978_v51, 0.0  ;;  %v12000_v22 = vmax.f32 %v11979_v28, 0.0 }
 0xc29   :  { %v12015_v49 = vmul.f32 %v11994_v59, %v16485_v63  ;;  %v12016_v54 = vmul.f32 %v11995_v16, %v16488_v0  ;;  %v12017_v21 = vmul.f32 %v11996_v25, %v16494_v2  ;;  %v12018_v26 = vmul.f32 %v11997_v27, %v16501_v13 }
 0xc2a   :  { %v18945_v42 = vpop.permute.xlu1 %12054  ;;  %v12019_v35 = vmul.f32 %v11998_v60, %v16491_v1  ;;  %v12020_v4 = vmul.f32 %v11999_v24, %v16527_v50  ;;  %v12021_v59 = vmul.f32 %v12000_v22, %v16521_v9 }
 0xc2b   :  { %v18949_v62 = vpack.c.bf16 %v12015_v49, %v12015_v49  ;;  %v18951_v29 = vpack.c.bf16 %v12016_v54, %v12016_v54  ;;  %v18960_v40 = vpack.c.bf16 %v12017_v21, %v12017_v21  ;;  %v18962_v17 = vpack.c.bf16 %v12018_v26, %v12018_v26  ;;  %v19026_v26 = vpop.permute.xlu0 %12052 }
 0xc2c   :  { %v18971_v52 = vpack.c.bf16 %v12019_v35, %v12019_v35  ;;  %v18980_v16 = vpack.c.bf16 %v12020_v4, %v12020_v4  ;;  %v18988_v27 = vpack.c.bf16 %v12021_v59, %v12021_v59 }
 0xc2d   :  { %12121 = vrot.lane.b32.xlu0 %v18951_v29, %s15891_s0  ;;  %12119 = vrot.lane.b32.xlu1 %v18949_v62, %s15891_s0 }
 0xc2e   :  { %v18957_v8 = vpop.permute.xlu1 %12056 }
 0xc2f   :  { %v19034_v24 = vpop.permute.xlu0 %12058  ;;  %v12081_v61 = vsel %vm127_vm3, %v18945_v42, %v18957_v8 }
 0xc31   :  { %12125 = vrot.lane.b32.xlu0 %v18962_v17, %s15891_s0  ;;  %12123 = vrot.lane.b32.xlu1 %v18960_v40, %s15891_s0 }
 0xc32   :  { %v18968_v38 = vpop.permute.xlu1 %12060 }
 0xc33   :  { %v19048_v4 = vpop.permute.xlu0 %12062 }
 0xc35   :  { %13471 = vrot.lane.b32.xlu0 %v18836_v55, %s15896_s1  ;;  %12127 = vrot.lane.b32.xlu1 %v18971_v52, %s15891_s0 }
 0xc36   :  { %v18977_v58 = vpop.permute.xlu1 %12064 }
 0xc37   :  { %v19056_v43 = vpop.permute.xlu0 %12533 }
 0xc39   :  { %12129 = vrot.lane.b32.xlu0 %v18980_v16, %s15891_s0  ;;  %13465 = vrot.lane.b32.xlu1 %v18817_v18, %s15896_s1 }
 0xc3a   :  { %v18986_v25 = vpop.permute.xlu1 %12531 }
 0xc3b   :  { %v19073_v53 = vpop.permute.xlu0 %12537 }
 0xc3d   :  { %12131 = vrot.lane.b32.xlu0 %v18988_v27, %s15891_s0  ;;  %12066 = vrot.lane.b32.xlu1 %v18949_v62, %s15892_s9 }
 0xc3e   :  { %v18994_v49 = vpop.permute.xlu1 %12535 }
 0xc3f   :  { %v19079_v41 = vpop.permute.xlu0 %12541  ;;  %v12560_v46 = vsel %vm554_vm5, %v19056_v43, %v18994_v49 }
 0xc41   :  { %12068 = vrot.lane.b32.xlu0 %v18951_v29, %s15892_s9  ;;  %12070 = vrot.lane.b32.xlu1 %v18960_v40, %s15892_s9 }
 0xc42   :  { %v19000_v54 = vpop.permute.xlu1 %12539 }
 0xc43   :  { %v19089_v23 = vpop.permute.xlu0 %12779 }
 0xc45   :  { %12072 = vrot.lane.b32.xlu0 %v18962_v17, %s15892_s9  ;;  %12074 = vrot.lane.b32.xlu1 %v18971_v52, %s15892_s9 }
 0xc46   :  { %v19006_v39 = vpop.permute.xlu1 %12543 }
 0xc47   :  { %v19095_v19 = vpop.permute.xlu0 %12783 }
 0xc49   :  { %12076 = vrot.lane.b32.xlu0 %v18980_v16, %s15892_s9  ;;  %13473 = vrot.lane.b32.xlu1 %v18844_v30, %s15896_s1 }
 0xc4a   :  { %v19012_v51 = vpop.permute.xlu1 %12777 }
 0xc4b   :  { %v19105_v47 = vpop.permute.xlu0 %12787 }
 0xc4d   :  { %12078 = vrot.lane.b32.xlu0 %v18988_v27, %s15892_s9  ;;  %12545 = vrot.lane.b32.xlu1 %v18949_v62, %s15893_s26 }
 0xc4e   :  { %v19018_v60 = vpop.permute.xlu1 %12781 }
 0xc4f   :  { %v19111_v10 = vpop.permute.xlu0 %13223  ;;  %v12806_v31 = vsel %vm773_vm6, %v19089_v23, %v19018_v60 }
 0xc51   :  { %12547 = vrot.lane.b32.xlu0 %v18951_v29, %s15893_s26  ;;  %12549 = vrot.lane.b32.xlu1 %v18960_v40, %s15893_s26 }
 0xc52   :  { %v19024_v21 = vpop.permute.xlu1 %12785 }
 0xc53   :  { %v19121_v9 = vpop.permute.xlu0 %13225 }
 0xc55   :  { %12551 = vrot.lane.b32.xlu0 %v18962_v17, %s15893_s26  ;;  %12553 = vrot.lane.b32.xlu1 %v18971_v52, %s15893_s26 }
 0xc56   :  { %v19032_v28 = vpop.permute.xlu1 %12789 }
 0xc57   :  { %v19127_v12 = vpop.permute.xlu0 %13231 }
 0xc59   :  { %13477 = vrot.lane.b32.xlu0 %v18858_v56, %s15896_s1  ;;  %13475 = vrot.lane.b32.xlu1 %v18846_v45, %s15896_s1 }
 0xc5a   :  { %v19040_v35 = vpop.permute.xlu1 %13221 }
 0xc5b   :  { %v19137_v50 = vpop.permute.xlu0 %13469 }
 0xc5c   :  { %20019 = vst [vmem:[#allocation33_spill] sm:$0xff] %v19137_v50 }
 0xc5d   :  { %12555 = vrot.lane.b32.xlu0 %v18980_v16, %s15893_s26  ;;  %12791 = vrot.lane.b32.xlu1 %v18949_v62, %s15894_s11 }
 0xc5e   :  { %v19046_v22 = vpop.permute.xlu1 %13219 }
 0xc61   :  { %12557 = vrot.lane.b32.xlu0 %v18988_v27, %s15893_s26  ;;  %12795 = vrot.lane.b32.xlu1 %v18960_v40, %s15894_s11 }
 0xc62   :  { %v19054_v59 = vpop.permute.xlu1 %13227 }
 0xc65   :  { %12793 = vrot.lane.b32.xlu0 %v18951_v29, %s15894_s11  ;;  %12799 = vrot.lane.b32.xlu1 %v18971_v52, %s15894_s11 }
 0xc66   :  { %v19062_v11 = vpop.permute.xlu1 %13229 }
 0xc67   :  { %20017 = vst [vmem:[#allocation31_spill] sm:$0xff] %v19062_v11  ;;  %v19067_v32 = vsel %vm1188_vm7, %v19054_v59, %v19062_v11 }
 0xc68   :  { %20018 = vst [vmem:[#allocation32_spill] sm:$0xff] %v19067_v32 }
 0xc69   :  { %12797 = vrot.lane.b32.xlu0 %v18962_v17, %s15894_s11  ;;  %13713 = vrot.lane.b32.xlu1 %v18819_v57, %s15897_s27 }
 0xc6a   :  { %v19139_v1 = vpop.permute.xlu1 %13467 }
 0xc6b   :  { %20020 = vst [vmem:[#allocation34_spill] sm:$0xff] %v19139_v1  ;;  %v12137_v1 = vsel %vm154_vm0, %v18930_v3, %v18932_v7 }
 0xc6d   :  { %13715 = vrot.lane.b32.xlu0 %v18834_v6, %s15897_s27  ;;  %13711 = vrot.lane.b32.xlu1 %v18817_v18, %s15897_s27 }
 0xc71   :  { %13717 = vrot.lane.b32.xlu0 %v18836_v55, %s15897_s27  ;;  %13719 = vrot.lane.b32.xlu1 %v18844_v30, %s15897_s27 }
 0xc75   :  { %13723 = vrot.lane.b32.xlu0 %v18858_v56, %s15897_s27  ;;  %13721 = vrot.lane.b32.xlu1 %v18846_v45, %s15897_s27 }
 0xc79   :  { %12801 = vrot.lane.b32.xlu0 %v18980_v16, %s15894_s11  ;;  %13959 = vrot.lane.b32.xlu1 %v18819_v57, %s15898_s3 }
 0xc7d   :  { %12803 = vrot.lane.b32.xlu0 %v18988_v27, %s15894_s11  ;;  %13235 = vrot.lane.b32.xlu1 %v18951_v29, %s15895_s4 }
 0xc81   :  { %13961 = vrot.lane.b32.xlu0 %v18834_v6, %s15898_s3  ;;  %13239 = vrot.lane.b32.xlu1 %v18962_v17, %s15895_s4 }
 0xc85   :  { %13233 = vrot.lane.b32.xlu0 %v18949_v62, %s15895_s4  ;;  %13243 = vrot.lane.b32.xlu1 %v18980_v16, %s15895_s4 }
 0xc89   :  { %13237 = vrot.lane.b32.xlu0 %v18960_v40, %s15895_s4  ;;  %13957 = vrot.lane.b32.xlu1 %v18817_v18, %s15898_s3 }
 0xc8d   :  { %13241 = vrot.lane.b32.xlu0 %v18971_v52, %s15895_s4  ;;  %13481 = vrot.lane.b32.xlu1 %v18951_v29, %s15896_s1 }
 0xc91   :  { %13963 = vrot.lane.b32.xlu0 %v18836_v55, %s15898_s3  ;;  %13485 = vrot.lane.b32.xlu1 %v18962_v17, %s15896_s1 }
 0xc95   :  { %13245 = vrot.lane.b32.xlu0 %v18988_v27, %s15895_s4  ;;  %13489 = vrot.lane.b32.xlu1 %v18980_v16, %s15896_s1 }
 0xc99   :  { %13479 = vrot.lane.b32.xlu0 %v18949_v62, %s15896_s1  ;;  %13965 = vrot.lane.b32.xlu1 %v18844_v30, %s15898_s3 }
 0xc9d   :  { %13483 = vrot.lane.b32.xlu0 %v18960_v40, %s15896_s1  ;;  %13727 = vrot.lane.b32.xlu1 %v18951_v29, %s15897_s27 }
 0xc9f   :  { %v12122_v34 = vpop.permute.xlu0 %12121  ;;  %v12120_v5 = vpop.permute.xlu1 %12119 }
 0xca0   :  { %v12139_v13 = vsel %vm154_vm0, %v12120_v5, %v12122_v34  ;;  %v12155_v2 = vsel %vm154_vm0, 0, %v12120_v5  ;;  %v15223_v5 = vld [vmem:[%s19903_s7 + $0x4] sm:$0xf] }
 0xca1   :  { %v12160_v0 = vsel %vm2286_vm11, %v12155_v2, 0  ;;  %13487 = vrot.lane.b32.xlu0 %v18971_v52, %s15896_s1  ;;  %13731 = vrot.lane.b32.xlu1 %v18962_v17, %s15897_s27 }
 0xca2   :  { %15226 = vmatprep.subr.msk.bf16.mxu0 %vm2286_vm11, %v12139_v13 }
 0xca3   :  { %12183 = vmatpush1.bf16.msra.mxu0 %v12160_v0  ;;  %v12126_v63 = vpop.permute.xlu0 %12125  ;;  %v12124_v50 = vpop.permute.xlu1 %12123  ;;  %v12136_v0 = vsel %vm154_vm0, %v18925_v48, %v18930_v3 }
 0xca4   :  { %12262 = vmatprep.subr.bf16.mxu0 %v12137_v1  ;;  %v12140_v2 = vsel %vm154_vm0, %v12122_v34, %v12124_v50  ;;  %v12141_v32 = vsel %vm154_vm0, %v12124_v50, %v12126_v63  ;;  %v20021_v50 = vmov 0.0   ;;  %v20022_v34 = vmov 0  }
 0xca5   :  { %v12166_v11 = vsel %vm2286_vm11, %v12140_v2, 0  ;;  %13491 = vrot.lane.b32.xlu0 %v18988_v27, %s15896_s1  ;;  %13735 = vrot.lane.b32.xlu1 %v18980_v16, %s15897_s27 }
 0xca6   :  { %15228 = vmatprep.subr.msk.bf16.mxu1 %vm2286_vm11, %v12141_v32  ;;  %15227 = vmatmul.mubr.msk.bf16.vlgmr.msra.gmra.mrb[160].mxu0 %vm12156_vm12, %v15223_v5  ;;  %v12138_v32 = vsel %vm154_vm0, %v18932_v7, %v18940_v33  ;;  %v12080_v33 = vsel %vm127_vm3, %v19026_v26, %v18945_v42 }
 0xca7   :  { %12224 = vmatpush1.bf16.msra.mxu1 %v12166_v11  ;;  %12263 = vmatpush1.bf16.msra.mxu0 %v12136_v0  ;;  %v19171_v1 = vpop.permute.xlu0 %13471  ;;  %v12128_v13 = vpop.permute.xlu1 %12127 }
 0xca8   :  { %15752 = vmatprep.subr.bf16.mxu1 %v20021_v50  ;;  %12294 = vmatprep.mubr.bf16.mxu0 %v20022_v34  ;;  %v12142_v11 = vsel %vm154_vm0, %v12126_v63, %v12128_v13 }
 0xca9   :  { %13725 = vrot.lane.b32.xlu0 %v18949_v62, %s15897_s27  ;;  %13967 = vrot.lane.b32.xlu1 %v18846_v45, %s15898_s3  ;;  %v12172_v7 = vsel %vm2286_vm11, %v12142_v11, 0  ;;  %v12082_v11 = vsel %vm127_vm3, %v18957_v8, %v19034_v24 }
 0xcaa   :  { %15229 = vmatmul.mubr.msk.bf16.vlgmr.msra.gmra.mrb[160].mxu1 %vm12156_vm12, %v15223_v5 }
 0xcab   :  { %15753 = vmatpush3.bf16.msra.mxu1 %v12138_v32  ;;  %v12130_v48 = vpop.permute.xlu0 %12129  ;;  %v19184_v3 = vpop.permute.xlu1 %13465  ;;  %15756 = vmatprep.mubr.msk.bf16.mxu1 %vm15900_vm4, %v20021_v50 }
 0xcac   :  { %v12143_v2 = vsel %vm154_vm0, %v12128_v13, %v12130_v48  ;;  %15754 = vmatprep.subr.bf16.mxu1 %v20021_v50 }
 0xcad   :  { %13729 = vrot.lane.b32.xlu0 %v18960_v40, %s15897_s27  ;;  %13973 = vrot.lane.b32.xlu1 %v18951_v29, %s15898_s3 }
 0xcae   :  { %15230 = vmatprep.subr.msk.bf16.mxu0 %vm2286_vm11, %v12143_v2 }
 0xcaf   :  { %12265 = vmatpush1.bf16.msra.mxu0 %v12172_v7  ;;  %v12132_v63 = vpop.permute.xlu0 %12131  ;;  %v12067_v0 = vpop.permute.xlu1 %12066 }
 0xcb0   :  { %v12144_v13 = vsel %vm154_vm0, %v12130_v48, %v12132_v63  ;;  %12366 = vmatprep.subr.bf16.mxu0 %v12080_v33  ;;  %v12102_v2 = vsel %vm127_vm3, 0, %v12067_v0  ;;  %vm14568_vm0 = vcmask 261120  }
 0xcb1   :  { %v12178_v32 = vsel %vm2286_vm11, %v12144_v13, 0  ;;  %13733 = vrot.lane.b32.xlu0 %v18971_v52, %s15897_s27  ;;  %13977 = vrot.lane.b32.xlu1 %v18962_v17, %s15898_s3  ;;  %v12346_v33 = vsel %vm2286_vm11, %v12102_v2, 0  ;;  %v12083_v2 = vsel %vm127_vm3, %v19034_v24, %v18968_v38 }
 0xcb2   :  { %15231 = vmatmul.mubr.msk.bf16.vlgmr.msra.gmra.mrb[164].mxu0 %vm12156_vm12, %v15223_v5  ;;  %15755 = vmatpush3.bf16.msra.mxu1 %v12178_v32  ;;  %v12084_v32 = vsel %vm127_vm3, %v18968_v38, %v19048_v4  ;;  %v12085_v38 = vsel %vm127_vm3, %v19048_v4, %v18977_v58 }
 0xcb3   :  { %15234 = vmatpush1.bf16.msk.msra.mxu0 %vm18533_vm15, %v19026_v26  ;;  %v12069_v48 = vpop.permute.xlu0 %12068  ;;  %12407 = vmatprep.subr.bf16.mxu1 %v12082_v11  ;;  %v12071_v7 = vpop.permute.xlu1 %12070  ;;  %v12022_v26 = vld [vmem:[%s19904_s13] sm:$0xff] }
 0xcb4   :  { %v12086_v63 = vsel %vm127_vm3, %v12067_v0, %v12069_v48  ;;  %12398 = vmatprep.mubr.bf16.mxu0 %v20022_v34  ;;  %v12087_v0 = vsel %vm127_vm3, %v12069_v48, %v12071_v7  ;;  %v12037_v11 = vld [vmem:[%s19903_s7] sm:$0xf] }
 0xcb5   :  { %13969 = vrot.lane.b32.xlu0 %v18858_v56, %s15898_s3  ;;  %13981 = vrot.lane.b32.xlu1 %v18980_v16, %s15898_s3  ;;  %v12352_v8 = vsel %vm2286_vm11, %v12087_v0, 0  ;;  %v12559_v0 = vsel %vm554_vm5, %v18986_v25, %v19056_v43 }
 0xcb6   :  { %15757 = vmatmul.mubr.msk.bf16.vlgmr.msra.gmra.mrb[164].mxu1 %vm12156_vm12, %v15223_v5  ;;  %15235 = vmatprep.subr.msk.bf16.mxu0 %vm2286_vm11, %v12086_v63 }
 0xcb7   :  { %12369 = vmatpush1.bf16.msra.mxu0 %v12346_v33  ;;  %12408 = vmatpush1.bf16.msra.mxu1 %v12081_v61  ;;  %v12073_v13 = vpop.permute.xlu0 %12072  ;;  %v12075_v5 = vpop.permute.xlu1 %12074 }
 0xcb8   :  { %v12088_v42 = vsel %vm127_vm3, %v12071_v7, %v12073_v13  ;;  %12448 = vmatprep.subr.bf16.mxu0 %v12084_v32  ;;  %12439 = vmatprep.mubr.bf16.mxu1 %v20022_v34  ;;  %v12089_v48 = vsel %vm127_vm3, %v12073_v13, %v12075_v5 }
 0xcb9   :  { %13737 = vrot.lane.b32.xlu0 %v18988_v27, %s15897_s27  ;;  %14203 = vperm.xlu1 %15860, %v12022_v26   ;;  %v12358_v24 = vsel %vm2286_vm11, %v12089_v48, 0 }
 0xcba   :  { %15236 = vmatmul.mubr.msk.bf16.vlgmr.msra.gmra.mrb[168].mxu0 %vm12156_vm12, %v12037_v11  ;;  %15237 = vmatprep.subr.msk.bf16.mxu1 %vm2286_vm11, %v12088_v42  ;;  %v12561_v42 = vsel %vm554_vm5, %v18994_v49, %v19073_v53  ;;  %v12562_v49 = vsel %vm554_vm5, %v19073_v53, %v19000_v54  ;;  %v12564_v53 = vsel %vm554_vm5, %v19079_v41, %v19006_v39 }
 0xcbb   :  { %12410 = vmatpush1.bf16.msra.mxu1 %v12352_v8  ;;  %12449 = vmatpush1.bf16.msra.mxu0 %v12083_v2  ;;  %v12077_v7 = vpop.permute.xlu0 %12076  ;;  %v13474_v63 = vpop.permute.xlu1 %13473 }
 0xcbc   :  { %v12090_v33 = vsel %vm127_vm3, %v12075_v5, %v12077_v7  ;;  %15760 = vmatprep.subr.bf16.mxu1 %v20021_v50  ;;  %12480 = vmatprep.mubr.bf16.mxu0 %v20022_v34  ;;  %v19251_v61 = vsel %vm1407_vm8, %v19171_v1, %v13474_v63 }
 0xcbd   :  { %13971 = vrot.lane.b32.xlu0 %v18949_v62, %s15898_s3  ;;  %15239 = vmatprep.subr.msk.bf16.mxu0 %vm2286_vm11, %v12090_v33  ;;  %v12563_v33 = vsel %vm554_vm5, %v19000_v54, %v19079_v41  ;;  %v12805_v41 = vsel %vm773_vm6, %v19012_v51, %v19089_v23 }
 0xcbe   :  { %15238 = vmatmul.mubr.msk.bf16.vlgmr.msra.gmra.mrb[168].mxu1 %vm12156_vm12, %v12037_v11 }
 0xcbf   :  { %12451 = vmatpush1.bf16.msra.mxu0 %v12358_v24  ;;  %15761 = vmatpush3.bf16.msra.mxu1 %v12085_v38  ;;  %v12079_v26 = vpop.permute.xlu0 %12078  ;;  %v12546_v13 = vpop.permute.xlu1 %12545  ;;  %v15242_v24 = vld [vmem:[%s19903_s7 + $0x8] sm:$0xf] }
 0xcc0   :  { %v12091_v32 = vsel %vm127_vm3, %v12077_v7, %v12079_v26  ;;  %12605 = vmatprep.subr.bf16.mxu0 %v12559_v0  ;;  %15762 = vmatprep.subr.bf16.mxu1 %v20021_v50  ;;  %v12581_v58 = vsel %vm554_vm5, 0, %v12546_v13 }
 0xcc1   :  { %v12364_v5 = vsel %vm2286_vm11, %v12091_v32, 0  ;;  %13975 = vrot.lane.b32.xlu0 %v18960_v40, %s15898_s3  ;;  %15764 = vmatprep.mubr.msk.bf16.mxu1 %vm15900_vm4, %v20021_v50  ;;  %v12585_v48 = vsel %vm2286_vm11, %v12581_v58, 0 }
 0xcc2   :  { %15240 = vmatmul.mubr.msk.bf16.vlgmr.msra.gmra.mrb[172].mxu0 %vm12156_vm12, %v12037_v11 }
 0xcc3   :  { %15763 = vmatpush3.bf16.msra.mxu1 %v12364_v5  ;;  %15244 = vmatpush1.bf16.msk.msra.mxu0 %vm18559_vm1, %v18986_v25  ;;  %v12548_v4 = vpop.permute.xlu0 %12547  ;;  %v12550_v8 = vpop.permute.xlu1 %12549 }
 0xcc4   :  { %v12565_v2 = vsel %vm554_vm5, %v12546_v13, %v12548_v4  ;;  %12646 = vmatprep.subr.bf16.mxu1 %v12561_v42  ;;  %12637 = vmatprep.mubr.bf16.mxu0 %v20022_v34  ;;  %v12566_v25 = vsel %vm554_vm5, %v12548_v4, %v12550_v8 }
 0xcc5   :  { %13979 = vrot.lane.b32.xlu0 %v18971_v52, %s15898_s3  ;;  %15245 = vmatprep.subr.msk.bf16.mxu0 %vm2286_vm11, %v12565_v2  ;;  %v12591_v43 = vsel %vm2286_vm11, %v12566_v25, 0 }
 0xcc6   :  { %15765 = vmatmul.mubr.msk.bf16.vlgmr.msra.gmra.mrb[172].mxu1 %vm12156_vm12, %v12037_v11 }
 0xcc7   :  { %12608 = vmatpush1.bf16.msra.mxu0 %v12585_v48  ;;  %12647 = vmatpush1.bf16.msra.mxu1 %v12560_v46  ;;  %v12552_v7 = vpop.permute.xlu0 %12551  ;;  %v12554_v38 = vpop.permute.xlu1 %12553  ;;  %v12807_v46 = vsel %vm773_vm6, %v19018_v60, %v19095_v19  ;;  %v12808_v60 = vsel %vm773_vm6, %v19095_v19, %v19024_v21 }
 0xcc8   :  { %v12567_v11 = vsel %vm554_vm5, %v12550_v8, %v12552_v7  ;;  %12687 = vmatprep.subr.bf16.mxu0 %v12563_v33  ;;  %12678 = vmatprep.mubr.bf16.mxu1 %v20022_v34  ;;  %v12568_v54 = vsel %vm554_vm5, %v12552_v7, %v12554_v38 }
 0xcc9   :  { %13983 = vrot.lane.b32.xlu0 %v18988_v27, %s15898_s3  ;;  %15247 = vmatprep.subr.msk.bf16.mxu1 %vm2286_vm11, %v12567_v11  ;;  %v12597_v4 = vsel %vm2286_vm11, %v12568_v54, 0  ;;  %v15252_v11 = vld [vmem:[%s19903_s7 + $0xc] sm:$0xf] }
 0xcca   :  { %15246 = vmatmul.mubr.msk.bf16.vlgmr.msra.gmra.mrb[176].mxu0 %vm12156_vm12, %v15242_v24 }
 0xccb   :  { %12649 = vmatpush1.bf16.msra.mxu1 %v12591_v43  ;;  %12688 = vmatpush1.bf16.msra.mxu0 %v12562_v49  ;;  %v19306_v26 = vpop.permute.xlu0 %13477  ;;  %v13476_v0 = vpop.permute.xlu1 %13475 }
 0xccc   :  { %v19309_v13 = vsel %vm1407_vm8, %v13474_v63, %v13476_v0  ;;  %15768 = vmatprep.subr.bf16.mxu1 %v20021_v50  ;;  %12719 = vmatprep.mubr.bf16.mxu0 %v20022_v34  ;;  %v19315_v32 = vsel %vm1407_vm8, %v13476_v0, %v19306_v26 }
 0xcce   :  { %15248 = vmatmul.mubr.msk.bf16.vlgmr.msra.gmra.mrb[176].mxu1 %vm12156_vm12, %v15242_v24 }
 0xccf   :  { %15769 = vmatpush3.bf16.msra.mxu1 %v12564_v53  ;;  %v12556_v5 = vpop.permute.xlu0 %12555  ;;  %v12792_v63 = vpop.permute.xlu1 %12791  ;;  %15772 = vmatprep.mubr.msk.bf16.mxu1 %vm15900_vm4, %v20021_v50 }
 0xcd0   :  { %v12569_v58 = vsel %vm554_vm5, %v12554_v38, %v12556_v5  ;;  %15770 = vmatprep.subr.bf16.mxu1 %v20021_v50  ;;  %v12827_v48 = vsel %vm773_vm6, 0, %v12792_v63 }
 0xcd1   :  { %15249 = vmatprep.subr.msk.bf16.mxu0 %vm2286_vm11, %v12569_v58  ;;  %v12831_v38 = vsel %vm2286_vm11, %v12827_v48, 0  ;;  %v13250_v48 = vsel %vm1188_vm7, %v19121_v9, %v19054_v59 }
 0xcd2   :  { %12690 = vmatpush1.bf16.msra.mxu0 %v12597_v4 }
 0xcd3   :  { %v12558_v39 = vpop.permute.xlu0 %12557  ;;  %12851 = vmatprep.subr.bf16.mxu0 %v12805_v41  ;;  %v12796_v42 = vpop.permute.xlu1 %12795 }
 0xcd4   :  { %v12570_v8 = vsel %vm554_vm5, %v12556_v5, %v12558_v39 }
 0xcd5   :  { %v12603_v2 = vsel %vm2286_vm11, %v12570_v8, 0  ;;  %15250 = vmatmul.mubr.msk.bf16.vlgmr.msra.gmra.mrb[180].mxu0 %vm12156_vm12, %v15242_v24 }
 0xcd6   :  { %15771 = vmatpush3.bf16.msra.mxu1 %v12603_v2  ;;  %15254 = vmatpush1.bf16.msk.msra.mxu0 %vm18587_vm2, %v19012_v51  ;;  %v12809_v51 = vsel %vm773_vm6, %v19024_v21, %v19105_v47 }
 0xcd7   :  { %v12794_v25 = vpop.permute.xlu0 %12793  ;;  %12892 = vmatprep.subr.bf16.mxu1 %v12807_v46  ;;  %v12800_v7 = vpop.permute.xlu1 %12799  ;;  %12883 = vmatprep.mubr.bf16.mxu0 %v20022_v34 }
 0xcd8   :  { %v12811_v33 = vsel %vm773_vm6, %v12792_v63, %v12794_v25  ;;  %v12812_v43 = vsel %vm773_vm6, %v12794_v25, %v12796_v42 }
 0xcd9   :  { %15773 = vmatmul.mubr.msk.bf16.vlgmr.msra.gmra.mrb[180].mxu1 %vm12156_vm12, %v15242_v24  ;;  %15255 = vmatprep.subr.msk.bf16.mxu0 %vm2286_vm11, %v12811_v33  ;;  %v12837_v0 = vsel %vm2286_vm11, %v12812_v43, 0  ;;  %v20024_v43 = vld [vmem:[#allocation32_spill] sm:$0xff] }
 0xcda   :  { %12854 = vmatpush1.bf16.msra.mxu0 %v12831_v38  ;;  %12893 = vmatpush1.bf16.msra.mxu1 %v12806_v31  ;;  %v15270_v38 = vld [vmem:[%s19903_s7 + $0x14] sm:$0xf] }
 0xcdb   :  { %v12798_v49 = vpop.permute.xlu0 %12797  ;;  %12933 = vmatprep.subr.bf16.mxu0 %v12809_v51  ;;  %v19356_v24 = vpop.permute.xlu1 %13713  ;;  %12924 = vmatprep.mubr.bf16.mxu1 %v20022_v34 }
 0xcdc   :  { %v12813_v23 = vsel %vm773_vm6, %v12796_v42, %v12798_v49 }
 0xcdd   :  { %14277 = vadd.xlane.f32.xlu1 %v18330_v15  ;;  %15256 = vmatmul.mubr.msk.bf16.vlgmr.msra.gmra.mrb[184].mxu0 %vm12156_vm12, %v15252_v11  ;;  %v12810_v15 = vsel %vm773_vm6, %v19105_v47, %v19032_v28  ;;  %v12814_v28 = vsel %vm773_vm6, %v12798_v49, %v12800_v7 }
 0xcde   :  { %15257 = vmatprep.subr.msk.bf16.mxu1 %vm2286_vm11, %v12813_v23  ;;  %12934 = vmatpush1.bf16.msra.mxu0 %v12808_v60  ;;  %v12843_v41 = vsel %vm2286_vm11, %v12814_v28, 0  ;;  %v13266_v60 = vsel %vm1188_vm7, %v19127_v12, 0  ;;  %v20026_v28 = vld [vmem:[#allocation34_spill] sm:$0xff] }
 0xcdf   :  { %12895 = vmatpush1.bf16.msra.mxu1 %v12837_v0  ;;  %v19367_v53 = vpop.permute.xlu0 %13715  ;;  %v19369_v54 = vpop.permute.xlu1 %13711  ;;  %12965 = vmatprep.mubr.bf16.mxu0 %v20022_v34 }
 0xce0   :  { %15776 = vmatprep.subr.bf16.mxu1 %v20021_v50 }
 0xce1   :  { %14285 = vadd.xlane.f32.xlu1 %v18773_v36 }
 0xce2   :  { %15258 = vmatmul.mubr.msk.bf16.vlgmr.msra.gmra.mrb[184].mxu1 %vm12156_vm12, %v15252_v11 }
 0xce3   :  { %15777 = vmatpush3.bf16.msra.mxu1 %v12810_v15  ;;  %v19378_v19 = vpop.permute.xlu0 %13717  ;;  %v19380_v21 = vpop.permute.xlu1 %13719  ;;  %15780 = vmatprep.mubr.msk.bf16.mxu1 %vm15900_vm4, %v20021_v50  ;;  %v20025_v15 = vld [vmem:[#allocation33_spill] sm:$0xff] }
 0xce4   :  { %v19387_v5 = vsel %vm1626_vm9, %v19367_v53, %v19378_v19  ;;  %15778 = vmatprep.subr.bf16.mxu1 %v20021_v50 }
 0xce5   :  { %14349 = vadd.xlane.f32.xlu1 %v18778_v37 }
 0xce7   :  { %v19391_v47 = vpop.permute.xlu0 %13723  ;;  %v19393_v36 = vpop.permute.xlu1 %13721 }
 0xce8   :  { %14269 = vadd.xlane.f32.xlu0 %v17884_v44 }
 0xceb   :  { %v12802_v63 = vpop.permute.xlu0 %12801  ;;  %v19397_v58 = vpop.permute.xlu1 %13959 }
 0xcec   :  { %v12815_v4 = vsel %vm773_vm6, %v12800_v7, %v12802_v63  ;;  %14333 = vadd.xlane.f32.xlu0 %v17889_v20  ;;  %v20023_v7 = vld [vmem:[#allocation31_spill] sm:$0xff] }
 0xced   :  { %15259 = vmatprep.subr.msk.bf16.mxu0 %vm2286_vm11, %v12815_v4  ;;  %v13252_v33 = vsel %vm1188_vm7, %v20023_v7, %v19127_v12  ;;  %v13493_v12 = vsel %vm1407_vm8, %v19184_v3, %v20026_v28  ;;  %v13495_v3 = vsel %vm1407_vm8, %v20025_v15, %v19171_v1 }
 0xcee   :  { %12936 = vmatpush1.bf16.msra.mxu0 %v12843_v41 }
 0xcef   :  { %v12804_v37 = vpop.permute.xlu0 %12803  ;;  %13047 = vmatprep.subr.bf16.mxu0 %v18819_v57  ;;  %v13236_v39 = vpop.permute.xlu1 %13235 }
 0xcf0   :  { %v12816_v44 = vsel %vm773_vm6, %v12802_v63, %v12804_v37  ;;  %14341 = vadd.xlane.f32.xlu0 %v18335_v14  ;;  %v13027_v14 = vsel %vm2286_vm11, %v18949_v62, 0  ;;  %v13033_v62 = vsel %vm2286_vm11, %v18960_v40, 0  ;;  %v13494_v63 = vsel %vm1407_vm8, %v20026_v28, %v20025_v15 }
 0xcf1   :  { %v12849_v42 = vsel %vm2286_vm11, %v12816_v44, 0  ;;  %15260 = vmatmul.mubr.msk.bf16.vlgmr.msra.gmra.mrb[188].mxu0 %vm12156_vm12, %v15252_v11 }
 0xcf2   :  { %15779 = vmatpush3.bf16.msra.mxu1 %v12849_v42  ;;  %13048 = vmatpush1.bf16.msra.mxu0 %v18817_v18  ;;  %v15262_v18 = vld [vmem:[%s19903_s7 + $0x10] sm:$0xf] }
 0xcf3   :  { %v19409_v20 = vpop.permute.xlu0 %13961  ;;  %15263 = vmatprep.subr.msk.bf16.mxu0 %vm2286_vm11, %v18951_v29  ;;  %13088 = vmatprep.subr.bf16.mxu1 %v18836_v55  ;;  %v13240_v57 = vpop.permute.xlu1 %13239 }
 0xcf4   :  { %13079 = vmatprep.mubr.bf16.mxu0 %v20022_v34 }
 0xcf5   :  { %15781 = vmatmul.mubr.msk.bf16.vlgmr.msra.gmra.mrb[188].mxu1 %vm12156_vm12, %v15252_v11 }
 0xcf6   :  { %13050 = vmatpush1.bf16.msra.mxu0 %v13027_v14  ;;  %13089 = vmatpush1.bf16.msra.mxu1 %v18834_v6 }
 0xcf7   :  { %v13234_v8 = vpop.permute.xlu0 %13233  ;;  %15265 = vmatprep.subr.msk.bf16.mxu1 %vm2286_vm11, %v18962_v17  ;;  %13129 = vmatprep.subr.bf16.mxu0 %v18846_v45  ;;  %v13244_v55 = vpop.permute.xlu1 %13243  ;;  %v13039_v45 = vsel %vm2286_vm11, %v18971_v52, 0 }
 0xcf8   :  { %13120 = vmatprep.mubr.bf16.mxu1 %v20022_v34  ;;  %v13253_v52 = vsel %vm1188_vm7, %v13234_v8, %v13236_v39 }
 0xcf9   :  { %15264 = vmatmul.mubr.msk.bf16.vlgmr.msra.gmra.mrb[192].mxu0 %vm12156_vm12, %v15262_v18 }
 0xcfa   :  { %13091 = vmatpush1.bf16.msra.mxu1 %v13033_v62  ;;  %13130 = vmatpush1.bf16.msra.mxu0 %v18844_v30  ;;  %v13248_v30 = vsel %vm1188_vm7, %v19040_v35, %v19111_v10 }
 0xcfb   :  { %v13238_v6 = vpop.permute.xlu0 %13237  ;;  %15267 = vmatprep.subr.msk.bf16.mxu0 %vm2286_vm11, %v18980_v16  ;;  %v19432_v29 = vpop.permute.xlu1 %13957  ;;  %15784 = vmatprep.subr.bf16.mxu1 %v20021_v50  ;;  %v13247_v16 = vsel %vm1188_vm7, %v19046_v22, %v19040_v35  ;;  %v13249_v22 = vsel %vm1188_vm7, %v19111_v10, %v19121_v9 }
 0xcfc   :  { %13161 = vmatprep.mubr.bf16.mxu0 %v20022_v34  ;;  %v13254_v2 = vsel %vm1188_vm7, %v13236_v39, %v13238_v6  ;;  %v13255_v25 = vsel %vm1188_vm7, %v13238_v6, %v13240_v57 }
 0xcfd   :  { %15266 = vmatmul.mubr.msk.bf16.vlgmr.msra.gmra.mrb[192].mxu1 %vm12156_vm12, %v15262_v18  ;;  %v13280_v9 = vsel %vm2286_vm11, %v13255_v25, 0 }
 0xcfe   :  { %13132 = vmatpush1.bf16.msra.mxu0 %v13039_v45  ;;  %15785 = vmatpush3.bf16.msra.mxu1 %v18858_v56  ;;  %v13045_v56 = vsel %vm2286_vm11, %v18988_v27, 0  ;;  %v13274_v27 = vsel %vm2286_vm11, %v13253_v52, 0 }
 0xcff   :  { %v13242_v40 = vpop.permute.xlu0 %13241  ;;  %13293 = vmatprep.subr.bf16.mxu0 %v13248_v30  ;;  %v13482_v17 = vpop.permute.xlu1 %13481  ;;  %15786 = vmatprep.subr.bf16.mxu1 %v20021_v50 }
 0xd00   :  { %15788 = vmatprep.mubr.msk.bf16.mxu1 %vm15900_vm4, %v20021_v50  ;;  %v13256_v59 = vsel %vm1188_vm7, %v13240_v57, %v13242_v40  ;;  %v13257_v51 = vsel %vm1188_vm7, %v13242_v40, %v13244_v55 }
 0xd01   :  { %15268 = vmatmul.mubr.msk.bf16.vlgmr.msra.gmra.mrb[196].mxu0 %vm12156_vm12, %v15262_v18  ;;  %v13286_v23 = vsel %vm2286_vm11, %v13257_v51, 0  ;;  %v13986_v51 = vsel %vm1845_vm10, %v19397_v58, %v19409_v20 }
 0xd02   :  { %15787 = vmatpush3.bf16.msra.mxu1 %v13045_v56  ;;  %13294 = vmatpush1.bf16.msra.mxu0 %v13247_v16 }
 0xd03   :  { %v19457_v46 = vpop.permute.xlu0 %13963  ;;  %15271 = vmatprep.subr.msk.bf16.mxu0 %vm2286_vm11, %v13254_v2  ;;  %13334 = vmatprep.subr.bf16.mxu1 %v13250_v48  ;;  %v13486_v35 = vpop.permute.xlu1 %13485  ;;  %v13742_v48 = vsel %vm1626_vm9, %v19378_v19, %v19380_v21  ;;  %v13744_v19 = vsel %vm1626_vm9, %v19393_v36, %v19391_v47 }
 0xd04   :  { %13325 = vmatprep.mubr.bf16.mxu0 %v20022_v34 }
 0xd05   :  { %15789 = vmatmul.mubr.msk.bf16.vlgmr.msra.gmra.mrb[196].mxu1 %vm12156_vm12, %v15262_v18 }
 0xd06   :  { %13296 = vmatpush1.bf16.msra.mxu0 %v13274_v27  ;;  %13335 = vmatpush1.bf16.msra.mxu1 %v13249_v22  ;;  %v15286_v22 = vld [vmem:[%s19903_s7 + $0x1c] sm:$0xf] }
 0xd07   :  { %v13246_v31 = vpop.permute.xlu0 %13245  ;;  %15273 = vmatprep.subr.msk.bf16.mxu1 %vm2286_vm11, %v13256_v59  ;;  %13375 = vmatprep.subr.bf16.mxu0 %v13252_v33  ;;  %v13490_v10 = vpop.permute.xlu1 %13489 }
 0xd08   :  { %13366 = vmatprep.mubr.bf16.mxu1 %v20022_v34  ;;  %v13258_v11 = vsel %vm1188_vm7, %v13244_v55, %v13246_v31  ;;  %v13269_v0 = vsel %vm1188_vm7, %v13246_v31, 0 }
 0xd09   :  { %15272 = vmatmul.mubr.msk.bf16.vlgmr.msra.gmra.mrb[200].mxu0 %vm12156_vm12, %v15270_v38  ;;  %v13291_v37 = vsel %vm2286_vm11, %v13269_v0, 0 }
 0xd0a   :  { %13337 = vmatpush1.bf16.msra.mxu1 %v13280_v9  ;;  %13376 = vmatpush1.bf16.msra.mxu0 %v20024_v43  ;;  %v13758_v9 = vsel %vm1626_vm9, %v19391_v47, 0  ;;  %v13985_v47 = vsel %vm1845_vm10, %v19432_v29, %v19397_v58  ;;  %v13987_v58 = vsel %vm1845_vm10, %v19409_v20, %v19457_v46 }
 0xd0b   :  { %v13480_v49 = vpop.permute.xlu0 %13479  ;;  %15275 = vmatprep.subr.msk.bf16.mxu0 %vm2286_vm11, %v13258_v11  ;;  %15792 = vmatprep.subr.bf16.mxu1 %v20021_v50  ;;  %v19492_v4 = vpop.permute.xlu1 %13965 }
 0xd0c   :  { %13407 = vmatprep.mubr.bf16.mxu0 %v20022_v34  ;;  %v13499_v39 = vsel %vm1407_vm8, %v13480_v49, %v13482_v17 }
 0xd0d   :  { %15274 = vmatmul.mubr.msk.bf16.vlgmr.msra.gmra.mrb[200].mxu1 %vm12156_vm12, %v15270_v38  ;;  %v13520_v57 = vsel %vm2286_vm11, %v13499_v39, 0 }
 0xd0e   :  { %13378 = vmatpush1.bf16.msra.mxu0 %v13286_v23  ;;  %15793 = vmatpush3.bf16.msra.mxu1 %v13266_v60  ;;  %v13988_v23 = vsel %vm1845_vm10, %v19457_v46, %v19492_v4 }
 0xd0f   :  { %v13484_v41 = vpop.permute.xlu0 %13483  ;;  %13539 = vmatprep.subr.bf16.mxu0 %v13494_v63  ;;  %15794 = vmatprep.subr.bf16.mxu1 %v20021_v50  ;;  %v13728_v14 = vpop.permute.xlu1 %13727 }
 0xd10   :  { %15796 = vmatprep.mubr.msk.bf16.mxu1 %vm15900_vm4, %v20021_v50  ;;  %v13500_v44 = vsel %vm1407_vm8, %v13482_v17, %v13484_v41  ;;  %v13501_v18 = vsel %vm1407_vm8, %v13484_v41, %v13486_v35  ;;  %v15294_v41 = vld [vmem:[%s19903_s7 + $0x20] sm:$0xf] }
 0xd11   :  { %15276 = vmatmul.mubr.msk.bf16.vlgmr.msra.gmra.mrb[204].mxu0 %vm12156_vm12, %v15270_v38  ;;  %v13526_v1 = vsel %vm2286_vm11, %v13501_v18, 0 }
 0xd12   :  { %15795 = vmatpush3.bf16.msra.mxu1 %v13291_v37  ;;  %13540 = vmatpush1.bf16.msra.mxu0 %v13493_v12 }
 0xd13   :  { %v13488_v42 = vpop.permute.xlu0 %13487  ;;  %15279 = vmatprep.subr.msk.bf16.mxu0 %vm2286_vm11, %v13500_v44  ;;  %13580 = vmatprep.subr.bf16.mxu1 %v19251_v61  ;;  %v15278_v61 = vld [vmem:[%s19903_s7 + $0x18] sm:$0xf]  ;;  %v13732_v45 = vpop.permute.xlu1 %13731 }
 0xd14   :  { %13571 = vmatprep.mubr.bf16.mxu0 %v20022_v34  ;;  %v13502_v8 = vsel %vm1407_vm8, %v13486_v35, %v13488_v42  ;;  %v13503_v62 = vsel %vm1407_vm8, %v13488_v42, %v13490_v10 }
 0xd15   :  { %15797 = vmatmul.mubr.msk.bf16.vlgmr.msra.gmra.mrb[204].mxu1 %vm12156_vm12, %v15270_v38  ;;  %v13532_v40 = vsel %vm2286_vm11, %v13503_v62, 0 }
 0xd16   :  { %13542 = vmatpush1.bf16.msra.mxu0 %v13520_v57  ;;  %13581 = vmatpush1.bf16.msra.mxu1 %v13495_v3 }
 0xd17   :  { %v13492_v55 = vpop.permute.xlu0 %13491  ;;  %15281 = vmatprep.subr.msk.bf16.mxu1 %vm2286_vm11, %v13502_v8  ;;  %13621 = vmatprep.subr.bf16.mxu0 %v19315_v32  ;;  %v13512_v32 = vsel %vm1407_vm8, %v19306_v26, 0  ;;  %v13739_v26 = vsel %vm1626_vm9, %v19369_v54, %v19356_v24  ;;  %v13736_v52 = vpop.permute.xlu1 %13735 }
 0xd18   :  { %13612 = vmatprep.mubr.bf16.mxu1 %v20022_v34  ;;  %v13504_v6 = vsel %vm1407_vm8, %v13490_v10, %v13492_v55  ;;  %v13515_v17 = vsel %vm1407_vm8, %v13492_v55, 0 }
 0xd19   :  { %15280 = vmatmul.mubr.msk.bf16.vlgmr.msra.gmra.mrb[208].mxu0 %vm12156_vm12, %v15278_v61  ;;  %v13537_v56 = vsel %vm2286_vm11, %v13515_v17, 0 }
 0xd1a   :  { %13583 = vmatpush1.bf16.msra.mxu1 %v13526_v1  ;;  %13622 = vmatpush1.bf16.msra.mxu0 %v19309_v13  ;;  %v13740_v13 = vsel %vm1626_vm9, %v19356_v24, %v19367_v53 }
 0xd1b   :  { %v13726_v30 = vpop.permute.xlu0 %13725  ;;  %15283 = vmatprep.subr.msk.bf16.mxu0 %vm2286_vm11, %v13504_v6  ;;  %15800 = vmatprep.subr.bf16.mxu1 %v20021_v50  ;;  %v13968_v25 = vpop.permute.xlu1 %13967 }
 0xd1c   :  { %13653 = vmatprep.mubr.bf16.mxu0 %v20022_v34  ;;  %v13745_v2 = vsel %vm1626_vm9, %v13726_v30, %v13728_v14  ;;  %v13989_v46 = vsel %vm1845_vm10, %v19492_v4, %v13968_v25 }
 0xd1d   :  { %15282 = vmatmul.mubr.msk.bf16.vlgmr.msra.gmra.mrb[208].mxu1 %vm12156_vm12, %v15278_v61  ;;  %v13766_v24 = vsel %vm2286_vm11, %v13745_v2, 0 }
 0xd1e   :  { %13624 = vmatpush1.bf16.msra.mxu0 %v13532_v40  ;;  %15801 = vmatpush3.bf16.msra.mxu1 %v13512_v32 }
 0xd1f   :  { %v13730_v16 = vpop.permute.xlu0 %13729  ;;  %13785 = vmatprep.subr.bf16.mxu0 %v13740_v13  ;;  %15802 = vmatprep.subr.bf16.mxu1 %v20021_v50  ;;  %v13974_v10 = vpop.permute.xlu1 %13973 }
 0xd20   :  { %15804 = vmatprep.mubr.msk.bf16.mxu1 %vm15900_vm4, %v20021_v50  ;;  %v13746_v53 = vsel %vm1626_vm9, %v13728_v14, %v13730_v16  ;;  %v13747_v54 = vsel %vm1626_vm9, %v13730_v16, %v13732_v45 }
 0xd21   :  { %15284 = vmatmul.mubr.msk.bf16.vlgmr.msra.gmra.mrb[212].mxu0 %vm12156_vm12, %v15278_v61  ;;  %v13772_v7 = vsel %vm2286_vm11, %v13747_v54, 0 }
 0xd22   :  { %15803 = vmatpush3.bf16.msra.mxu1 %v13537_v56  ;;  %13786 = vmatpush1.bf16.msra.mxu0 %v13739_v26 }
 0xd23   :  { %v13734_v35 = vpop.permute.xlu0 %13733  ;;  %15287 = vmatprep.subr.msk.bf16.mxu0 %vm2286_vm11, %v13746_v53  ;;  %13826 = vmatprep.subr.bf16.mxu1 %v13742_v48  ;;  %v13978_v60 = vpop.permute.xlu1 %13977 }
 0xd24   :  { %13817 = vmatprep.mubr.bf16.mxu0 %v20022_v34  ;;  %v13748_v27 = vsel %vm1626_vm9, %v13732_v45, %v13734_v35  ;;  %v13749_v33 = vsel %vm1626_vm9, %v13734_v35, %v13736_v52 }
 0xd25   :  { %15805 = vmatmul.mubr.msk.bf16.vlgmr.msra.gmra.mrb[212].mxu1 %vm12156_vm12, %v15278_v61 }
 0xd26   :  { %13788 = vmatpush1.bf16.msra.mxu0 %v13766_v24  ;;  %13827 = vmatpush1.bf16.msra.mxu1 %v19387_v5  ;;  %v13743_v5 = vsel %vm1626_vm9, %v19380_v21, %v19393_v36  ;;  %v13778_v21 = vsel %vm2286_vm11, %v13749_v33, 0 }
 0xd27   :  { %v19562_v59 = vpop.permute.xlu0 %13969  ;;  %15289 = vmatprep.subr.msk.bf16.mxu1 %vm2286_vm11, %v13748_v27  ;;  %13867 = vmatprep.subr.bf16.mxu0 %v13744_v19  ;;  %v13982_v37 = vpop.permute.xlu1 %13981 }
 0xd28   :  { %13858 = vmatprep.mubr.bf16.mxu1 %v20022_v34  ;;  %v13990_v63 = vsel %vm1845_vm10, %v13968_v25, %v19562_v59  ;;  %v14004_v4 = vsel %vm1845_vm10, %v19562_v59, 0 }
 0xd29   :  { %15288 = vmatmul.mubr.msk.bf16.vlgmr.msra.gmra.mrb[216].mxu0 %vm12156_vm12, %v15286_v22 }
 0xd2a   :  { %13829 = vmatpush1.bf16.msra.mxu1 %v13772_v7  ;;  %13868 = vmatpush1.bf16.msra.mxu0 %v13743_v5 }
 0xd2b   :  { %v13738_v38 = vpop.permute.xlu0 %13737  ;;  %15808 = vmatprep.subr.bf16.mxu1 %v20021_v50  ;;  %13899 = vmatprep.mubr.bf16.mxu0 %v20022_v34 }
 0xd2c   :  { %v13750_v31 = vsel %vm1626_vm9, %v13736_v52, %v13738_v38  ;;  %v13761_v36 = vsel %vm1626_vm9, %v13738_v38, 0  ;;  %v14255_v38 = vld [vmem:[%s19905_s21] sm:$0xff] }
 0xd2d   :  { %15290 = vmatmul.mubr.msk.bf16.vlgmr.msra.gmra.mrb[216].mxu1 %vm12156_vm12, %v15286_v22  ;;  %15291 = vmatprep.subr.msk.bf16.mxu0 %vm2286_vm11, %v13750_v31  ;;  %v13783_v43 = vsel %vm2286_vm11, %v13761_v36, 0 }
 0xd2e   :  { %13870 = vmatpush1.bf16.msra.mxu0 %v13778_v21  ;;  %15809 = vmatpush3.bf16.msra.mxu1 %v13758_v9 }
 0xd2f   :  { %v13972_v11 = vpop.permute.xlu0 %13971  ;;  %14031 = vmatprep.subr.bf16.mxu0 %v13986_v51  ;;  %15810 = vmatprep.subr.bf16.mxu1 %v20021_v50 }
 0xd30   :  { %15812 = vmatprep.mubr.msk.bf16.mxu1 %vm15900_vm4, %v20021_v50  ;;  %v13991_v49 = vsel %vm1845_vm10, %v13972_v11, %v13974_v10 }
 0xd31   :  { %15292 = vmatmul.mubr.msk.bf16.vlgmr.msra.gmra.mrb[220].mxu0 %vm12156_vm12, %v15286_v22  ;;  %v14012_v29 = vsel %vm2286_vm11, %v13991_v49, 0  ;;  %v14256_v49 = vld [vmem:[%s19905_s21 + $0x8] sm:$0xff] }
 0xd32   :  { %15811 = vmatpush3.bf16.msra.mxu1 %v13783_v43  ;;  %14032 = vmatpush1.bf16.msra.mxu0 %v13985_v47  ;;  %v14259_v43 = vld [vmem:[%s19906_s22] sm:$0xff] }
 0xd33   :  { %v13976_v0 = vpop.permute.xlu0 %13975  ;;  %14072 = vmatprep.subr.bf16.mxu1 %v13988_v23  ;;  %14063 = vmatprep.mubr.bf16.mxu0 %v20022_v34 }
 0xd34   :  { %v13992_v15 = vsel %vm1845_vm10, %v13974_v10, %v13976_v0  ;;  %v13993_v28 = vsel %vm1845_vm10, %v13976_v0, %v13978_v60 }
 0xd35   :  { %15813 = vmatmul.mubr.msk.bf16.vlgmr.msra.gmra.mrb[220].mxu1 %vm12156_vm12, %v15286_v22  ;;  %15295 = vmatprep.subr.msk.bf16.mxu0 %vm2286_vm11, %v13992_v15  ;;  %v14018_v39 = vsel %vm2286_vm11, %v13993_v28, 0 }
 0xd36   :  { %14034 = vmatpush1.bf16.msra.mxu0 %v14012_v29  ;;  %14073 = vmatpush1.bf16.msra.mxu1 %v13987_v58 }
 0xd37   :  { %v13980_v12 = vpop.permute.xlu0 %13979  ;;  %14113 = vmatprep.subr.bf16.mxu0 %v13990_v63  ;;  %14104 = vmatprep.mubr.bf16.mxu1 %v20022_v34 }
 0xd38   :  { %v13994_v20 = vsel %vm1845_vm10, %v13978_v60, %v13980_v12  ;;  %v13995_v44 = vsel %vm1845_vm10, %v13980_v12, %v13982_v37  ;;  %v19635_v8 = vpop.permute.xlu1 %14203 }
 0xd39   :  { %15296 = vmatmul.mubr.msk.bf16.vlgmr.msra.gmra.mrb[224].mxu0 %vm12156_vm12, %v15294_v41  ;;  %15297 = vmatprep.subr.msk.bf16.mxu1 %vm2286_vm11, %v13994_v20  ;;  %v14024_v57 = vsel %vm2286_vm11, %v13995_v44, 0  ;;  %v14260_v20 = vld [vmem:[%s19906_s22 + $0x8] sm:$0xff] }
 0xd3a   :  { %14075 = vmatpush1.bf16.msra.mxu1 %v14018_v39  ;;  %14114 = vmatpush1.bf16.msra.mxu0 %v13989_v46 }
 0xd3b   :  { %v13984_v42 = vpop.permute.xlu0 %13983  ;;  %15816 = vmatprep.subr.bf16.mxu1 %v20021_v50  ;;  %14145 = vmatprep.mubr.bf16.mxu0 %v20022_v34 }
 0xd3c   :  { %v13996_v3 = vsel %vm1845_vm10, %v13982_v37, %v13984_v42  ;;  %v14007_v14 = vsel %vm1845_vm10, %v13984_v42, 0 }
 0xd3d   :  { %15298 = vmatmul.mubr.msk.bf16.vlgmr.msra.gmra.mrb[224].mxu1 %vm12156_vm12, %v15294_v41  ;;  %15299 = vmatprep.subr.msk.bf16.mxu0 %vm2286_vm11, %v13996_v3  ;;  %v14029_v18 = vsel %vm2286_vm11, %v14007_v14, 0 }
 0xd3e   :  { %14116 = vmatpush1.bf16.msra.mxu0 %v14024_v57  ;;  %15817 = vmatpush3.bf16.msra.mxu1 %v14004_v4 }
 0xd3f   :  { %15818 = vmatprep.subr.bf16.mxu1 %v20021_v50  ;;  %15820 = vmatprep.mubr.msk.bf16.mxu1 %vm15900_vm4, %v20021_v50 }
 0xd41   :  { %15300 = vmatmul.mubr.msk.bf16.vlgmr.msra.gmra.mrb[228].mxu0 %vm12156_vm12, %v15294_v41 }
 0xd42   :  { %15819 = vmatpush3.bf16.msra.mxu1 %v14029_v18  ;;  %14604 = vmatprep.mubr.bf16.mxu0 %v20022_v34 }
 0xd45   :  { %15821 = vmatmul.mubr.msk.bf16.vlgmr.msra.gmra.mrb[228].mxu1 %vm12156_vm12, %v15294_v41 }
 0xd46   :  { %14645 = vmatprep.mubr.bf16.mxu1 %v20022_v34 }
 0xd6a   :  { %v14278_v1 = vpop.xlane.xlu1 %14277 }
 0xd6b   :  { %v14296_v45 = vmul.f32 0.001953125, %v14278_v1 }
 0xd6d   :  { %v14364_v52 = vmul.f32 %v14296_v45, %v14296_v45 }
 0xd75   :  { %v14270_v61 = vpop.xlane.xlu0 %14269 }
 0xd76   :  { %v14295_v55 = vmul.f32 0.001953125, %v14270_v61 }
 0xd78   :  { %v14363_v30 = vmul.f32 %v14295_v55, %v14295_v55 }
 0xd79   :  { %v14334_v62 = vpop.xlane.xlu0 %14333  ;;  %v12214_v6 = vpop.f32.mrb[160].mxu0 }
 0xd7a   :  { %v14359_v32 = vmul.f32 0.001953125, %v14334_v62  ;;  %v12216_v40 = vpop.f32.mrb[161].mxu0 }
 0xd7b   :  { %v12218_v17 = vpop.f32.mrb[162].mxu0 }
 0xd7c   :  { %v14367_v13 = vsub.f32 %v14359_v32, %v14363_v30  ;;  %v12219_v16 = vpop.f32.mrb[163].mxu0 }
 0xd7d   :  { %v14342_v26 = vpop.xlane.xlu0 %14341  ;;  %v12255_v56 = vpop.f32.mrb[160].mxu1 }
 0xd7e   :  { %v14371_v2 = vmax.f32 %v14367_v13, 0.0  ;;  %v14360_v53 = vmul.f32 0.001953125, %v14342_v26  ;;  %v12257_v48 = vpop.f32.mrb[161].mxu1 }
 0xd7f   :  { %v12259_v35 = vpop.f32.mrb[162].mxu1 }
 0xd80   :  { %v14375_v24 = vadd.f32 1e-05, %v14371_v2  ;;  %v14368_v54 = vsub.f32 %v14360_v53, %v14364_v52  ;;  %v12260_v27 = vpop.f32.mrb[163].mxu1 }
 0xd82   :  { %15880 = vrsqrt.f32 %v14375_v24  ;;  %v14372_v19 = vmax.f32 %v14368_v54, 0.0 }
 0xd84   :  { %v14376_v22 = vadd.f32 1e-05, %v14372_v19 }
 0xd85   :  { %v12296_v25 = vpop.f32.mrb[164].mxu0 }
 0xd86   :  { %15882 = vrsqrt.f32 %v14376_v22  ;;  %v12298_v59 = vpop.f32.mrb[165].mxu0 }
 0xd87   :  { %v12300_v5 = vpop.f32.mrb[166].mxu0 }
 0xd88   :  { %v12301_v7 = vpop.f32.mrb[167].mxu0 }
 0xd89   :  { %v12337_v33 = vpop.f32.mrb[164].mxu1 }
 0xd8a   :  { %v15758_v31 = vpop.f32.mrb[165].mxu1 }
 0xd8b   :  { %v12340_v9 = vpop.f32.mrb[166].mxu1 }
 0xd8c   :  { %v15881_v10 = vpop.eup %15880  ;;  %v15759_v21 = vpop.f32.mrb[167].mxu1 }
 0xd8d   :  { %v14383_v36 = vmul.f32 %v15881_v10, %v14255_v38  ;;  %v12400_v51 = vpop.f32.mrb[168].mxu0 }
 0xd8e   :  { %v12401_v11 = vadd.f32 %v12400_v51, %v12214_v6  ;;  %v12402_v47 = vpop.f32.mrb[169].mxu0 }
 0xd8f   :  { %14389 = vperm.xlu1 %15860, %v14383_v36   ;;  %v12403_v23 = vadd.f32 %v12402_v47, %v12216_v40  ;;  %v14435_v60 = vmul.f32 %v14383_v36, %v14295_v55  ;;  %v12404_v0 = vpop.f32.mrb[170].mxu0 }
 0xd90   :  { %v15883_v15 = vpop.eup %15882  ;;  %v12405_v58 = vpop.f32.mrb[171].mxu0 }
 0xd91   :  { %v14439_v29 = vsub.f32 %v14259_v43, %v14435_v60  ;;  %v12441_v28 = vpop.f32.mrb[168].mxu1  ;;  %v19646_v63 = vmul.f32 %v15883_v15, %v14256_v49 }
 0xd92   :  { %v12442_v41 = vadd.f32 %v12441_v28, %v12255_v56  ;;  %v12443_v12 = vpop.f32.mrb[169].mxu1 }
 0xd93   :  { %14445 = vperm.xlu1 %15860, %v14439_v29   ;;  %v12444_v46 = vadd.f32 %v12443_v12, %v12257_v48  ;;  %v14436_v37 = vmul.f32 %v19646_v63, %v14296_v45  ;;  %v12445_v39 = vpop.f32.mrb[170].mxu1 }
 0xd94   :  { %v12446_v44 = vpop.f32.mrb[171].mxu1 }
 0xd95   :  { %v12482_v42 = vpop.f32.mrb[172].mxu0  ;;  %v14440_v3 = vsub.f32 %v14260_v20, %v14436_v37 }
 0xd96   :  { %v12483_v4 = vadd.f32 %v12482_v42, %v12296_v25  ;;  %v12484_v57 = vpop.f32.mrb[173].mxu0 }
 0xd97   :  { %14450 = vperm.xlu1 %15860, %v14440_v3   ;;  %v12485_v14 = vadd.f32 %v12484_v57, %v12298_v59  ;;  %v12486_v18 = vpop.f32.mrb[174].mxu0 }
 0xd98   :  { %v12487_v61 = vpop.f32.mrb[175].mxu0 }
 0xd99   :  { %v12523_v55 = vpop.f32.mrb[172].mxu1 }
 0xd9a   :  { %v12524_v1 = vadd.f32 %v12523_v55, %v12337_v33  ;;  %v15766_v62 = vpop.f32.mrb[173].mxu1 }
 0xd9b   :  { %v12526_v6 = vpop.f32.mrb[174].mxu1 }
 0xd9c   :  { %v15767_v30 = vpop.f32.mrb[175].mxu1 }
 0xd9d   :  { %v12639_v32 = vpop.f32.mrb[176].mxu0 }
 0xd9e   :  { %v12768_v40 = vadd.f32 %v12639_v32, %v12401_v11  ;;  %v12641_v17 = vpop.f32.mrb[177].mxu0 }
 0xd9f   :  { %v12769_v13 = vadd.f32 %v12641_v17, %v12403_v23  ;;  %v12643_v45 = vpop.f32.mrb[178].mxu0 }
 0xda0   :  { %v12644_v16 = vpop.f32.mrb[179].mxu0 }
 0xda1   :  { %v12680_v26 = vpop.f32.mrb[176].mxu1 }
 0xda2   :  { %v12770_v56 = vadd.f32 %v12680_v26, %v12442_v41  ;;  %v12682_v52 = vpop.f32.mrb[177].mxu1 }
 0xda3   :  { %v12771_v2 = vadd.f32 %v12682_v52, %v12444_v46  ;;  %v12684_v53 = vpop.f32.mrb[178].mxu1 }
 0xda4   :  { %v12685_v48 = vpop.f32.mrb[179].mxu1 }
 0xda8   :  { %v12721_v35 = vpop.f32.mrb[180].mxu0 }
 0xda9   :  { %v12772_v24 = vadd.f32 %v12721_v35, %v12483_v4  ;;  %v12723_v54 = vpop.f32.mrb[181].mxu0 }
 0xdaa   :  { %v12773_v27 = vadd.f32 %v12723_v54, %v12485_v14  ;;  %v12725_v19 = vpop.f32.mrb[182].mxu0 }
 0xdab   :  { %v12726_v22 = vpop.f32.mrb[183].mxu0 }
 0xdac   :  { %v12762_v25 = vpop.f32.mrb[180].mxu1 }
 0xdad   :  { %v12774_v59 = vadd.f32 %v12762_v25, %v12524_v1  ;;  %v15774_v5 = vpop.f32.mrb[181].mxu1 }
 0xdae   :  { %v12765_v7 = vpop.f32.mrb[182].mxu1 }
 0xdaf   :  { %v15775_v33 = vpop.f32.mrb[183].mxu1 }
 0xdb0   :  { %v12885_v38 = vpop.f32.mrb[184].mxu0 }
 0xdb1   :  { %v13014_v31 = vadd.f32 %v12885_v38, %v12768_v40  ;;  %v12887_v9 = vpop.f32.mrb[185].mxu0 }
 0xdb2   :  { %v13015_v10 = vadd.f32 %v12887_v9, %v12769_v13  ;;  %v12889_v21 = vpop.f32.mrb[186].mxu0 }
 0xdb3   :  { %v12890_v36 = vpop.f32.mrb[187].mxu0 }
 0xdb5   :  { %v12926_v51 = vpop.f32.mrb[184].mxu1 }
 0xdb6   :  { %v13016_v11 = vadd.f32 %v12926_v51, %v12770_v56  ;;  %v12928_v47 = vpop.f32.mrb[185].mxu1 }
 0xdb7   :  { %v13017_v43 = vadd.f32 %v12928_v47, %v12771_v2  ;;  %v12930_v49 = vpop.f32.mrb[186].mxu1 }
 0xdb8   :  { %v12931_v23 = vpop.f32.mrb[187].mxu1 }
 0xdc4   :  { %v12967_v60 = vpop.f32.mrb[188].mxu0 }
 0xdc5   :  { %v13018_v0 = vadd.f32 %v12967_v60, %v12772_v24  ;;  %v12969_v15 = vpop.f32.mrb[189].mxu0 }
 0xdc6   :  { %v13019_v58 = vadd.f32 %v12969_v15, %v12773_v27  ;;  %v12971_v29 = vpop.f32.mrb[190].mxu0 }
 0xdc7   :  { %v12972_v28 = vpop.f32.mrb[191].mxu0 }
 0xdc8   :  { %v13008_v41 = vpop.f32.mrb[188].mxu1 }
 0xdc9   :  { %v13020_v12 = vadd.f32 %v13008_v41, %v12774_v59  ;;  %v15782_v20 = vpop.f32.mrb[189].mxu1 }
 0xdca   :  { %v13011_v46 = vpop.f32.mrb[190].mxu1 }
 0xdcb   :  { %v15783_v37 = vpop.f32.mrb[191].mxu1 }
 0xdcc   :  { %v13081_v39 = vpop.f32.mrb[192].mxu0 }
 0xdcd   :  { %v13210_v44 = vadd.f32 %v13081_v39, %v13014_v31  ;;  %v13083_v42 = vpop.f32.mrb[193].mxu0 }
 0xdce   :  { %v13211_v3 = vadd.f32 %v13083_v42, %v13015_v10  ;;  %v13085_v4 = vpop.f32.mrb[194].mxu0 }
 0xdcf   :  { %v13086_v57 = vpop.f32.mrb[195].mxu0 }
 0xdd0   :  { %v13122_v14 = vpop.f32.mrb[192].mxu1 }
 0xdd1   :  { %v13212_v18 = vadd.f32 %v13122_v14, %v13016_v11  ;;  %v13124_v61 = vpop.f32.mrb[193].mxu1 }
 0xdd2   :  { %v13213_v55 = vadd.f32 %v13124_v61, %v13017_v43  ;;  %v13126_v1 = vpop.f32.mrb[194].mxu1 }
 0xdd3   :  { %v13127_v62 = vpop.f32.mrb[195].mxu1 }
 0xdd4   :  { %v13163_v6 = vpop.f32.mrb[196].mxu0 }
 0xdd5   :  { %v13214_v30 = vadd.f32 %v13163_v6, %v13018_v0  ;;  %v13165_v32 = vpop.f32.mrb[197].mxu0 }
 0xdd6   :  { %v13215_v40 = vadd.f32 %v13165_v32, %v13019_v58  ;;  %v13167_v17 = vpop.f32.mrb[198].mxu0 }
 0xdd7   :  { %v13168_v13 = vpop.f32.mrb[199].mxu0 }
 0xdd8   :  { %v13204_v45 = vpop.f32.mrb[196].mxu1 }
 0xdd9   :  { %v13216_v16 = vadd.f32 %v13204_v45, %v13020_v12  ;;  %v15790_v26 = vpop.f32.mrb[197].mxu1 }
 0xdda   :  { %v13207_v56 = vpop.f32.mrb[198].mxu1 }
 0xddb   :  { %v15791_v52 = vpop.f32.mrb[199].mxu1 }
 0xddc   :  { %v13327_v2 = vpop.f32.mrb[200].mxu0 }
 0xddd   :  { %v13456_v53 = vadd.f32 %v13327_v2, %v13210_v44  ;;  %v13329_v48 = vpop.f32.mrb[201].mxu0 }
 0xdde   :  { %v13457_v35 = vadd.f32 %v13329_v48, %v13211_v3  ;;  %v13331_v24 = vpop.f32.mrb[202].mxu0 }
 0xddf   :  { %v13332_v54 = vpop.f32.mrb[203].mxu0 }
 0xde0   :  { %v13368_v27 = vpop.f32.mrb[200].mxu1 }
 0xde1   :  { %v13458_v19 = vadd.f32 %v13368_v27, %v13212_v18  ;;  %v13370_v22 = vpop.f32.mrb[201].mxu1 }
 0xde2   :  { %v13459_v25 = vadd.f32 %v13370_v22, %v13213_v55  ;;  %v13372_v59 = vpop.f32.mrb[202].mxu1 }
 0xde3   :  { %v13373_v5 = vpop.f32.mrb[203].mxu1 }
 0xde4   :  { %v13409_v7 = vpop.f32.mrb[204].mxu0 }
 0xde5   :  { %v13460_v33 = vadd.f32 %v13409_v7, %v13214_v30  ;;  %v13411_v38 = vpop.f32.mrb[205].mxu0 }
 0xde6   :  { %v13461_v31 = vadd.f32 %v13411_v38, %v13215_v40  ;;  %v13413_v9 = vpop.f32.mrb[206].mxu0 }
 0xde7   :  { %v13414_v10 = vpop.f32.mrb[207].mxu0 }
 0xde8   :  { %v13450_v21 = vpop.f32.mrb[204].mxu1 }
 0xde9   :  { %v13462_v36 = vadd.f32 %v13450_v21, %v13216_v16  ;;  %v15798_v51 = vpop.f32.mrb[205].mxu1 }
 0xdea   :  { %v13453_v11 = vpop.f32.mrb[206].mxu1  ;;  %v20027_v51 = vld [vmem:[#allocation3_spill] sm:$0xff] }
 0xdeb   :  { %v15799_v47 = vpop.f32.mrb[207].mxu1 }
 0xdec   :  { %v13573_v43 = vpop.f32.mrb[208].mxu0 }
 0xded   :  { %v13702_v49 = vadd.f32 %v13573_v43, %v13456_v53  ;;  %v13575_v23 = vpop.f32.mrb[209].mxu0 }
 0xdee   :  { %v13703_v60 = vadd.f32 %v13575_v23, %v13457_v35  ;;  %v13577_v0 = vpop.f32.mrb[210].mxu0  ;;  %v14286_v35 = vpop.xlane.xlu1 %14285  ;;  %v20028_v23 = vld [vmem:[#allocation4_spill] sm:$0xff] }
 0xdef   :  { %v13578_v15 = vpop.f32.mrb[211].mxu0 }
 0xdf0   :  { %v13614_v58 = vpop.f32.mrb[208].mxu1 }
 0xdf1   :  { %v13704_v29 = vadd.f32 %v13614_v58, %v13458_v19  ;;  %v13616_v28 = vpop.f32.mrb[209].mxu1 }
 0xdf2   :  { %v13705_v41 = vadd.f32 %v13616_v28, %v13459_v25  ;;  %v13618_v12 = vpop.f32.mrb[210].mxu1  ;;  %v14350_v5 = vpop.xlane.xlu1 %14349 }
 0xdf3   :  { %v13619_v20 = vpop.f32.mrb[211].mxu1 }
 0xdf4   :  { %v13655_v46 = vpop.f32.mrb[212].mxu0 }
 0xdf5   :  { %v13706_v37 = vadd.f32 %v13655_v46, %v13460_v33  ;;  %v13657_v39 = vpop.f32.mrb[213].mxu0 }
 0xdf6   :  { %v13707_v44 = vadd.f32 %v13657_v39, %v13461_v31  ;;  %v13659_v42 = vpop.f32.mrb[214].mxu0 }
 0xdf7   :  { %v13660_v3 = vpop.f32.mrb[215].mxu0 }
 0xdf8   :  { %v13696_v4 = vpop.f32.mrb[212].mxu1 }
 0xdf9   :  { %v13708_v57 = vadd.f32 %v13696_v4, %v13462_v36  ;;  %v15806_v14 = vpop.f32.mrb[213].mxu1  ;;  %v20030_v4 = vld [vmem:[#allocation7_spill] sm:$0xff] }
 0xdfa   :  { %v13699_v18 = vpop.f32.mrb[214].mxu1 }
 0xdfb   :  { %v15807_v61 = vpop.f32.mrb[215].mxu1 }
 0xdfc   :  { %v13819_v55 = vpop.f32.mrb[216].mxu0  ;;  %v14297_v61 = vmul.f32 0.001953125, %v14286_v35 }
 0xdfd   :  { %v13948_v1 = vadd.f32 %v13819_v55, %v13702_v49  ;;  %v13821_v62 = vpop.f32.mrb[217].mxu0 }
 0xdfe   :  { %v13949_v6 = vadd.f32 %v13821_v62, %v13703_v60  ;;  %v13823_v30 = vpop.f32.mrb[218].mxu0 }
 0xdff   :  { %v13824_v32 = vpop.f32.mrb[219].mxu0 }
 0xe00   :  { %v13860_v40 = vpop.f32.mrb[216].mxu1 }
 0xe01   :  { %v13950_v17 = vadd.f32 %v13860_v40, %v13704_v29  ;;  %v13862_v13 = vpop.f32.mrb[217].mxu1 }
 0xe02   :  { %v13951_v45 = vadd.f32 %v13862_v13, %v13705_v41  ;;  %v13864_v16 = vpop.f32.mrb[218].mxu1  ;;  %v20031_v13 = vld [vmem:[#allocation15_spill] sm:$0xff] }
 0xe03   :  { %v13865_v26 = vpop.f32.mrb[219].mxu1  ;;  %v20032_v16 = vld [vmem:[#allocation14_spill] sm:$0xff] }
 0xe04   :  { %v13901_v56 = vpop.f32.mrb[220].mxu0 }
 0xe05   :  { %v13952_v52 = vadd.f32 %v13901_v56, %v13706_v37  ;;  %v13903_v2 = vpop.f32.mrb[221].mxu0  ;;  %v20029_v37 = vld [vmem:[#allocation6_spill] sm:$0xff] }
 0xe06   :  { %v13953_v53 = vadd.f32 %v13903_v2, %v13707_v44  ;;  %v13905_v48 = vpop.f32.mrb[222].mxu0  ;;  %v20033_v2 = vld [vmem:[#allocation5_spill] sm:$0xff] }
 0xe07   :  { %v13906_v24 = vpop.f32.mrb[223].mxu0 }
 0xe08   :  { %v13942_v54 = vpop.f32.mrb[220].mxu1  ;;  %v20034_v24 = vld [vmem:[#allocation9_spill] sm:$0xff] }
 0xe09   :  { %v13954_v27 = vadd.f32 %v13942_v54, %v13708_v57  ;;  %v15814_v19 = vpop.f32.mrb[221].mxu1 }
 0xe0a   :  { %v13945_v22 = vpop.f32.mrb[222].mxu1 }
 0xe0b   :  { %v15815_v25 = vpop.f32.mrb[223].mxu1 }
 0xe0c   :  { %v14065_v59 = vpop.f32.mrb[224].mxu0 }
 0xe0d   :  { %v14194_v7 = vadd.f32 %v14065_v59, %v13948_v1  ;;  %v14067_v33 = vpop.f32.mrb[225].mxu0  ;;  %v20035_v59 = vld [vmem:[#allocation16_spill] sm:$0xff] }
 0xe0e   :  { %v14195_v38 = vadd.f32 %v14067_v33, %v13949_v6  ;;  %v14069_v31 = vpop.f32.mrb[226].mxu0  ;;  %v19657_v47 = vpop.permute.xlu1 %14389 }
 0xe0f   :  { %v14206_v9 = vadd.f32 %v19635_v8, %v14194_v7  ;;  %v14070_v10 = vpop.f32.mrb[227].mxu0  ;;  %v14411_v26 = vmul.f32 %v19657_v47, %v20032_v16  ;;  %v14413_v7 = vmul.f32 %v19657_v47, %v20035_v59 }
 0xe10   :  { %v14207_v21 = vadd.f32 %v19635_v8, %v14195_v38  ;;  %v14106_v36 = vpop.f32.mrb[224].mxu1  ;;  %v14361_v10 = vmul.f32 0.001953125, %v14350_v5 }
 0xe11   :  { %v19655_v11 = vmul.f32 %v14206_v9, %v20027_v51  ;;  %v14196_v43 = vadd.f32 %v14106_v36, %v13950_v17  ;;  %v14108_v49 = vpop.f32.mrb[225].mxu1  ;;  %v20036_v36 = vld [vmem:[#allocation8_spill] sm:$0xff] }
 0xe12   :  { %v19660_v60 = vmul.f32 %v14207_v21, %v20028_v23  ;;  %v14197_v0 = vadd.f32 %v14108_v49, %v13951_v45  ;;  %v14110_v15 = vpop.f32.mrb[226].mxu1  ;;  %v19679_v62 = vpop.permute.xlu1 %14445  ;;  %v14412_v45 = vmul.f32 %v19657_v47, %v20031_v13 }
 0xe13   :  { %v14320_v58 = vmul.f32 %v19655_v11, %v19655_v11  ;;  %v14208_v29 = vadd.f32 %v19635_v8, %v14196_v43  ;;  %v14111_v28 = vpop.f32.mrb[227].mxu1  ;;  %v19700_v25 = vadd.f32 %v19679_v62, %v14411_v26  ;;  %v19715_v15 = vadd.f32 %v19679_v62, %v14413_v7  ;;  %v20039_v26 = vld [vmem:[#allocation10_spill] sm:$0xff]  ;;  %v20040_v7 = vld [vmem:[#allocation12_spill] sm:$0xff] }
 0xe14   :  { %v14287_v41 = vadd.f32 %v19660_v60, %v19655_v11  ;;  %v14321_v12 = vmul.f32 %v19660_v60, %v19660_v60  ;;  %v14209_v20 = vadd.f32 %v19635_v8, %v14197_v0  ;;  %v14147_v46 = vpop.f32.mrb[228].mxu0  ;;  %v19697_v22 = vadd.f32 %v19679_v62, %v14412_v45 }
 0xe15   :  { %v19671_v39 = vmul.f32 %v14208_v29, %v20029_v37  ;;  %v14198_v44 = vadd.f32 %v14147_v46, %v13952_v52  ;;  %v14149_v42 = vpop.f32.mrb[229].mxu0 }
 0xe16   :  { %v14351_v3 = vadd.f32 %v14321_v12, %v14320_v58  ;;  %v19674_v57 = vmul.f32 %v14209_v20, %v20030_v4  ;;  %v14199_v14 = vadd.f32 %v14149_v42, %v13953_v53  ;;  %v14151_v18 = vpop.f32.mrb[230].mxu0  ;;  %v14365_v58 = vmul.f32 %v14297_v61, %v14297_v61 }
 0xe17   :  { %v14288_v55 = vadd.f32 %v14287_v41, %v19671_v39  ;;  %v14322_v1 = vmul.f32 %v19671_v39, %v19671_v39  ;;  %v14210_v6 = vadd.f32 %v19635_v8, %v14198_v44  ;;  %v14152_v30 = vpop.f32.mrb[231].mxu0  ;;  %v14257_v44 = vld [vmem:[%s19905_s21 + $0x10] sm:$0xff] }
 0xe18   :  { %v14323_v32 = vmul.f32 %v19674_v57, %v19674_v57  ;;  %v14211_v40 = vadd.f32 %v19635_v8, %v14199_v14  ;;  %v14188_v17 = vpop.f32.mrb[228].mxu1  ;;  %v14369_v5 = vsub.f32 %v14361_v10, %v14365_v58  ;;  %v14261_v14 = vld [vmem:[%s19906_s22 + $0x10] sm:$0xff]  ;;  %v20037_v30 = vld [vmem:[#allocation11_spill] sm:$0xff]  ;;  %v20042_v58 = vld [vmem:[#allocation20_spill] sm:$0xff] }
 0xe19   :  { %v14352_v56 = vadd.f32 %v14351_v3, %v14322_v1  ;;  %v14289_v52 = vadd.f32 %v14288_v55, %v19674_v57  ;;  %v19691_v53 = vmul.f32 %v14210_v6, %v20033_v2  ;;  %v14200_v48 = vadd.f32 %v14188_v17, %v13954_v27  ;;  %v15822_v35 = vpop.f32.mrb[229].mxu1  ;;  %v14547_v55 = vld [vmem:[%s19907_s14] sm:$0xff] }
 0xe1a   :  { %v19694_v54 = vmul.f32 %v14211_v40, %v20034_v24  ;;  %v14191_v19 = vpop.f32.mrb[230].mxu1  ;;  %v14373_v12 = vmax.f32 %v14369_v5, 0.0  ;;  %v14451_v5 = vpop.permute.xlu1 %14450 }
 0xe1b   :  { %v14324_v33 = vmul.f32 %v19691_v53, %v19691_v53  ;;  %v14212_v38 = vadd.f32 %v19635_v8, %v14200_v48  ;;  %v15823_v27 = vpop.f32.mrb[231].mxu1  ;;  %v14290_v31 = vadd.f32 %v14289_v52, %v19691_v53  ;;  %v14353_v9 = vadd.f32 %v14352_v56, %v14323_v32 }
 0xe1c   :  { %v14325_v21 = vmul.f32 %v19694_v54, %v19694_v54  ;;  %v14377_v20 = vadd.f32 1e-05, %v14373_v12  ;;  %v14408_v32 = vmul.f32 %v19657_v47, %v20037_v30  ;;  %v14407_v56 = vmul.f32 %v19657_v47, %v20039_v26 }
 0xe1d   :  { %v19711_v43 = vmul.f32 %v14212_v38, %v20036_v36  ;;  %v14291_v49 = vadd.f32 %v14290_v31, %v19694_v54  ;;  %v14354_v0 = vadd.f32 %v14353_v9, %v14324_v33  ;;  %v14409_v33 = vmul.f32 %v19657_v47, %v20040_v7 }
 0xe1e   :  { %15884 = vrsqrt.f32 %v14377_v20  ;;  %v14464_v17 = vadd.f32 %v19679_v62, %v14408_v32  ;;  %v14463_v19 = vadd.f32 %v19679_v62, %v14407_v56  ;;  %v14495_v26 = vmax.f32 %v19700_v25, 0.0  ;;  %v14258_v25 = vld [vmem:[%s19905_s21 + $0x18] sm:$0xff] }
 0xe1f   :  { %v14292_v8 = vadd.f32 %v14291_v49, %v19711_v43  ;;  %v14326_v29 = vmul.f32 %v19711_v43, %v19711_v43  ;;  %v14355_v28 = vadd.f32 %v14354_v0, %v14325_v21  ;;  %v14465_v27 = vadd.f32 %v19679_v62, %v14409_v33  ;;  %v20041_v49 = vld [vmem:[#allocation18_spill] sm:$0xff] }
 0xe20   :  { %v14492_v48 = vmax.f32 %v14464_v17, 0.0  ;;  %v14491_v21 = vmax.f32 %v14463_v19, 0.0  ;;  %v14497_v56 = vmax.f32 %v19715_v15, 0.0 }
 0xe21   :  { %14293 = vadd.xlane.f32.xlu0 %v14292_v8  ;;  %v14356_v41 = vadd.f32 %v14355_v28, %v14326_v29  ;;  %v20043_v29 = vld [vmem:[#allocation17_spill] sm:$0xff] }
 0xe22   :  { %v14520_v9 = vmul.f32 %v14492_v48, %v20028_v23 }
 0xe25   :  { %14357 = vadd.xlane.f32.xlu0 %v14356_v41  ;;  %v20044_v41 = vld [vmem:[#allocation19_spill] sm:$0xff] }
 0xe28   :  { %v15885_v46 = vpop.eup %15884 }
 0xe29   :  { %v14385_v42 = vmul.f32 %v15885_v46, %v14257_v44  ;;  %v20046_v46 = vld [vmem:[#allocation21_spill] sm:$0xff]  ;;  %v20047_v44 = vld [vmem:[#allocation23_spill] sm:$0xff] }
 0xe2b   :  { %v14437_v3 = vmul.f32 %v14385_v42, %v14297_v61 }
 0xe2d   :  { %v14441_v18 = vsub.f32 %v14261_v14, %v14437_v3 }
 0xe3b   :  { %14394 = vperm.xlu0 %15859, %v19646_v63   ;;  %v20038_v63 = vld [vmem:[#allocation13_spill] sm:$0xff] }
 0xe3c   :  { %v14410_v61 = vmul.f32 %v19657_v47, %v20038_v63  ;;  %v20045_v47 = vld [vmem:[#allocation22_spill] sm:$0xff] }
 0xe3e   :  { %v14466_v13 = vadd.f32 %v19679_v62, %v14410_v61 }
 0xe3f   :  { %14399 = vperm.xlu0 %15859, %v14385_v42  }
 0xe40   :  { %v14494_v35 = vmax.f32 %v14466_v13, 0.0  ;;  %v14519_v13 = vmul.f32 %v14491_v21, %v20027_v51 }
 0xe42   :  { %v14522_v10 = vmul.f32 %v14494_v35, %v20030_v4 }
 0xe43   :  { %14455 = vperm.xlu0 %15859, %v14441_v18  }
 0xe47   :  { %14565 = vperm.xlu0 %15859, %v14547_v55   ;;  %v14493_v55 = vmax.f32 %v14465_v27, 0.0 }
 0xeae   :  { %v14294_v1 = vpop.xlane.xlu0 %14293 }
 0xeaf   :  { %v19730_v6 = vmul.f32 0.001953125, %v14294_v1 }
 0xeb1   :  { %v14366_v45 = vmul.f32 %v19730_v6, %v19730_v6 }
 0xeb2   :  { %v14358_v40 = vpop.xlane.xlu0 %14357 }
 0xeb3   :  { %v14362_v16 = vmul.f32 0.001953125, %v14358_v40 }
 0xeb5   :  { %v14370_v52 = vsub.f32 %v14362_v16, %v14366_v45  ;;  %v14496_v16 = vmax.f32 %v19697_v22, 0.0 }
 0xeb7   :  { %v14374_v59 = vmax.f32 %v14370_v52, 0.0  ;;  %v19768_v21 = vmul.f32 %v14496_v16, %v20034_v24 }
 0xeb9   :  { %v14378_v38 = vadd.f32 1e-05, %v14374_v59  ;;  %v14521_v59 = vmul.f32 %v14493_v55, %v20029_v37 }
 0xeba   :  { %v14395_v31 = vpop.permute.xlu0 %14394 }
 0xebb   :  { %15886 = vrsqrt.f32 %v14378_v38  ;;  %v14415_v0 = vmul.f32 %v14395_v31, %v20041_v49  ;;  %v14417_v8 = vmul.f32 %v14395_v31, %v20042_v58  ;;  %v14414_v28 = vmul.f32 %v14395_v31, %v20043_v29 }
 0xebc   :  { %v14416_v12 = vmul.f32 %v14395_v31, %v20044_v41  ;;  %v14419_v20 = vmul.f32 %v14395_v31, %v20045_v47  ;;  %v14418_v62 = vmul.f32 %v14395_v31, %v20046_v46  ;;  %v14420_v42 = vmul.f32 %v14395_v31, %v20047_v44  ;;  %v20048_v44 = vld [vmem:[#allocation25_spill] sm:$0xff] }
 0xebd   :  { %v14471_v3 = vadd.f32 %v14451_v5, %v14415_v0  ;;  %v14473_v14 = vadd.f32 %v14451_v5, %v14417_v8  ;;  %v14470_v18 = vadd.f32 %v14451_v5, %v14414_v28  ;;  %v19771_v49 = vmul.f32 %v14495_v26, %v20033_v2  ;;  %v14262_v28 = vld [vmem:[%s19906_s22 + $0x18] sm:$0xff] }
 0xebe   :  { %v14472_v1 = vadd.f32 %v14451_v5, %v14416_v12  ;;  %v14475_v30 = vadd.f32 %v14451_v5, %v14419_v20  ;;  %v14474_v32 = vadd.f32 %v14451_v5, %v14418_v62  ;;  %v14476_v63 = vadd.f32 %v14451_v5, %v14420_v42  ;;  %v14400_v46 = vpop.permute.xlu0 %14399 }
 0xebf   :  { %v14499_v61 = vmax.f32 %v14471_v3, 0.0  ;;  %v14501_v40 = vmax.f32 %v14473_v14, 0.0  ;;  %v14498_v17 = vmax.f32 %v14470_v18, 0.0  ;;  %v19774_v0 = vmul.f32 %v14497_v56, %v20036_v36  ;;  %v20049_v3 = vld [vmem:[#allocation27_spill] sm:$0xff] }
 0xec0   :  { %v14500_v45 = vmax.f32 %v14472_v1, 0.0  ;;  %v14503_v19 = vmax.f32 %v14475_v30, 0.0  ;;  %v14502_v33 = vmax.f32 %v14474_v32, 0.0  ;;  %v14504_v38 = vmax.f32 %v14476_v63, 0.0  ;;  %v20050_v1 = vld [vmem:[#allocation24_spill] sm:$0xff]  ;;  %v20051_v32 = vld [vmem:[#allocation26_spill] sm:$0xff] }
 0xec1   :  { %v14527_v52 = vmul.f32 %v14499_v61, %v20028_v23  ;;  %v14529_v48 = vmul.f32 %v14501_v40, %v20030_v4  ;;  %v14526_v35 = vmul.f32 %v14498_v17, %v20027_v51  ;;  %v14422_v42 = vmul.f32 %v14400_v46, %v20048_v44 }
 0xec2   :  { %v14528_v7 = vmul.f32 %v14500_v45, %v20029_v37  ;;  %v19783_v8 = vmul.f32 %v14504_v38, %v20036_v36  ;;  %v14456_v62 = vpop.permute.xlu0 %14455  ;;  %v14424_v14 = vmul.f32 %v14400_v46, %v20049_v3  ;;  %v14421_v30 = vmul.f32 %v14400_v46, %v20050_v1 }
 0xec3   :  { %v14549_v27 = vpack.c.bf16 %v14527_v52, %v14520_v9  ;;  %v14551_v31 = vpack.c.bf16 %v14529_v48, %v14522_v10  ;;  %v14548_v22 = vpack.c.bf16 %v14526_v35, %v14519_v13  ;;  %v19777_v9 = vmul.f32 %v14503_v19, %v20034_v24  ;;  %v20052_v52 = vld [vmem:[#allocation29_spill] sm:$0xff] }
 0xec4   :  { %v14550_v15 = vpack.c.bf16 %v14528_v7, %v14521_v59  ;;  %v19780_v10 = vmul.f32 %v14502_v33, %v20033_v2  ;;  %v14554_v12 = vpack.c.bf16 %v19783_v8, %v19774_v0  ;;  %v14478_v18 = vadd.f32 %v14456_v62, %v14422_v42 }
 0xec5   :  { %v15887_v58 = vpop.eup %15886  ;;  %14572 = vmatprep.subr.bf16.mxu0 %v14549_v27  ;;  %14613 = vmatprep.subr.bf16.mxu1 %v14551_v31  ;;  %v14553_v5 = vpack.c.bf16 %v19777_v9, %v19768_v21  ;;  %v14480_v55 = vadd.f32 %v14456_v62, %v14424_v14  ;;  %v14423_v63 = vmul.f32 %v14400_v46, %v20051_v32 }
 0xec6   :  { %14573 = vmatpush1.bf16.msra.mxu0 %v14548_v22  ;;  %14614 = vmatpush1.bf16.msra.mxu1 %v14550_v15  ;;  %v14386_v29 = vmul.f32 %v15887_v58, %v14258_v25  ;;  %v14552_v41 = vpack.c.bf16 %v19780_v10, %v19771_v49  ;;  %v14477_v61 = vadd.f32 %v14456_v62, %v14421_v30  ;;  %v14506_v17 = vmax.f32 %v14478_v18, 0.0  ;;  %v20054_v18 = vld [vmem:[#allocation30_spill] sm:$0xff]  ;;  %v14566_v49 = vpop.permute.xlu0 %14565 }
 0xec7   :  { %v14479_v40 = vadd.f32 %v14456_v62, %v14423_v63  ;;  %v14508_v13 = vmax.f32 %v14480_v55, 0.0  ;;  %v14426_v48 = vmul.f32 %v14400_v46, %v20052_v52  ;;  %v14562_v52 = vld [vmem:[%s19908_s8] sm:$0xf] }
 0xec8   :  { %14404 = vperm.xlu1 %15860, %v14386_v29   ;;  %v14438_v47 = vmul.f32 %v14386_v29, %v19730_v6  ;;  %v14505_v6 = vmax.f32 %v14477_v61, 0.0  ;;  %v14534_v26 = vmul.f32 %v14506_v17, %v20028_v23 }
 0xec9   :  { %v14507_v16 = vmax.f32 %v14479_v40, 0.0  ;;  %v14536_v56 = vmul.f32 %v14508_v13, %v20030_v4  ;;  %v14482_v22 = vadd.f32 %v14456_v62, %v14426_v48 }
 0xeca   :  { %v14442_v20 = vsub.f32 %v14262_v28, %v14438_v47  ;;  %v14533_v38 = vmul.f32 %v14505_v6, %v20027_v51 }
 0xecb   :  { %v14535_v27 = vmul.f32 %v14507_v16, %v20029_v37 }
 0xecc   :  { %14460 = vperm.xlu1 %15860, %v14442_v20  }
 0xf47   :  { %v14405_v45 = vpop.permute.xlu1 %14404 }
 0xf48   :  { %v14429_v35 = vmul.f32 %v14405_v45, %v19660_v60  ;;  %v14431_v19 = vmul.f32 %v14405_v45, %v19674_v57  ;;  %v14428_v59 = vmul.f32 %v14405_v45, %v19655_v11  ;;  %v14430_v7 = vmul.f32 %v14405_v45, %v19671_v39  ;;  %v20053_v60 = vld [vmem:[#allocation28_spill] sm:$0xff] }
 0xf49   :  { %v14433_v31 = vmul.f32 %v14405_v45, %v19694_v54  ;;  %v14425_v47 = vmul.f32 %v14400_v46, %v20053_v60  ;;  %v14432_v57 = vmul.f32 %v14405_v45, %v19691_v53  ;;  %v14434_v11 = vmul.f32 %v14405_v45, %v19711_v43 }
 0xf4a   :  { %v14427_v54 = vmul.f32 %v14400_v46, %v20054_v18  ;;  %v14510_v53 = vmax.f32 %v14482_v22, 0.0 }
 0xf4b   :  { %v14461_v33 = vpop.permute.xlu1 %14460  ;;  %v14481_v61 = vadd.f32 %v14456_v62, %v14425_v47 }
 0xf4c   :  { %v14485_v25 = vadd.f32 %v14461_v33, %v14429_v35  ;;  %v14487_v15 = vadd.f32 %v14461_v33, %v14431_v19  ;;  %v14484_v58 = vadd.f32 %v14461_v33, %v14428_v59  ;;  %v14486_v29 = vadd.f32 %v14461_v33, %v14430_v7 }
 0xf4d   :  { %v14489_v28 = vadd.f32 %v14461_v33, %v14433_v31  ;;  %v14488_v14 = vadd.f32 %v14461_v33, %v14432_v57  ;;  %v14490_v55 = vadd.f32 %v14461_v33, %v14434_v11  ;;  %v14483_v43 = vadd.f32 %v14456_v62, %v14427_v54 }
 0xf4e   :  { %v14513_v39 = vmax.f32 %v14485_v25, 0.0  ;;  %v14515_v20 = vmax.f32 %v14487_v15, 0.0  ;;  %v14512_v44 = vmax.f32 %v14484_v58, 0.0  ;;  %v14514_v42 = vmax.f32 %v14486_v29, 0.0 }
 0xf4f   :  { %v14517_v3 = vmax.f32 %v14489_v28, 0.0  ;;  %v14516_v6 = vmax.f32 %v14488_v14, 0.0  ;;  %v14518_v16 = vmax.f32 %v14490_v55, 0.0  ;;  %v14509_v48 = vmax.f32 %v14481_v61, 0.0 }
 0xf50   :  { %v14541_v1 = vmul.f32 %v14513_v39, %v20028_v23  ;;  %v14543_v30 = vmul.f32 %v14515_v20, %v20030_v4  ;;  %v14540_v32 = vmul.f32 %v14512_v44, %v20027_v51  ;;  %v14542_v63 = vmul.f32 %v14514_v42, %v20029_v37 }
 0xf51   :  { %v14545_v46 = vmul.f32 %v14517_v3, %v20034_v24  ;;  %v14511_v35 = vmax.f32 %v14483_v43, 0.0  ;;  %v14538_v62 = vmul.f32 %v14510_v53, %v20034_v24  ;;  %v14537_v21 = vmul.f32 %v14509_v48, %v20033_v2 }
 0xf52   :  { %v14556_v40 = vpack.c.bf16 %v14541_v1, %v14534_v26  ;;  %v14558_v17 = vpack.c.bf16 %v14543_v30, %v14536_v56  ;;  %v14555_v13 = vpack.c.bf16 %v14540_v32, %v14533_v38  ;;  %v14557_v45 = vpack.c.bf16 %v14542_v63, %v14535_v27 }
 0xf53   :  { %v14544_v26 = vmul.f32 %v14516_v6, %v20033_v2  ;;  %v14546_v56 = vmul.f32 %v14518_v16, %v20036_v36  ;;  %v14560_v19 = vpack.c.bf16 %v14545_v46, %v14538_v62  ;;  %v14539_v9 = vmul.f32 %v14511_v35, %v20036_v36 }
 0xf54   :  { %14574 = vmatprep.subr.bf16.mxu0 %v14556_v40  ;;  %14615 = vmatprep.subr.bf16.mxu1 %v14558_v17 }
 0xf55   :  { %14575 = vmatpush1.bf16.msra.mxu0 %v14555_v13  ;;  %14616 = vmatpush1.bf16.msra.mxu1 %v14557_v45  ;;  %v14561_v59 = vpack.c.bf16 %v14546_v56, %v14539_v9 }
 0xf56   :  { %14654 = vmatprep.subr.bf16.mxu0 %v14553_v5  ;;  %15824 = vmatprep.subr.bf16.mxu1 %v20021_v50  ;;  %v14559_v5 = vpack.c.bf16 %v14544_v26, %v14537_v21 }
 0xf58   :  { %15302 = vmatmul.mubr.msk.bf16.vlgmr.msra.gmra.mrb[232].mxu0 %vm14568_vm0, %v14562_v52  ;;  %15303 = vmatmul.mubr.msk.bf16.vlgmr.msra.gmra.mrb[232].mxu1 %vm14568_vm0, %v14562_v52 }
 0xf59   :  { %14655 = vmatpush1.bf16.msra.mxu0 %v14552_v41  ;;  %15825 = vmatpush3.bf16.msra.mxu1 %v14554_v12 }
 0xf5a   :  { %14656 = vmatprep.subr.bf16.mxu0 %v14560_v19  ;;  %15826 = vmatprep.subr.bf16.mxu1 %v20021_v50 }
 0xf5b   :  { %14686 = vmatprep.mubr.bf16.mxu0 %v20022_v34  ;;  %15828 = vmatprep.mubr.msk.bf16.mxu1 %vm15900_vm4, %v20021_v50 }
 0xf5d   :  { %14657 = vmatpush1.bf16.msra.mxu0 %v14559_v5  ;;  %15827 = vmatpush3.bf16.msra.mxu1 %v14561_v59 }
 0xf60   :  { %15304 = vmatmul.mubr.msk.bf16.vlgmr.msra.gmra.mrb[236].mxu0 %vm14568_vm0, %v14562_v52  ;;  %15829 = vmatmul.mubr.msk.bf16.vlgmr.msra.gmra.mrb[236].mxu1 %vm14568_vm0, %v14562_v52 }
0x102b   :  { %v14606_v0 = vpop.f32.mrb[232].mxu0  ;;  %v14647_v10 = vpop.f32.mrb[232].mxu1 }
0x102c   :  { %v14607_v8 = vadd.f32 %v14606_v0, %v14566_v49  ;;  %v14648_v41 = vadd.f32 %v14647_v10, %v14566_v49  ;;  %v14608_v12 = vpop.f32.mrb[233].mxu0  ;;  %v14649_v7 = vpop.f32.mrb[233].mxu1  ;;  %v14742_v0 = vld [vmem:[%s19909_s23] sm:$0xff] }
0x102d   :  { %v14609_v33 = vadd.f32 %v14608_v12, %v14566_v49  ;;  %v14650_v38 = vadd.f32 %v14649_v7, %v14566_v49  ;;  %v14610_v27 = vpop.f32.mrb[234].mxu0  ;;  %v14651_v34 = vpop.f32.mrb[234].mxu1 }
0x102e   :  { %v14735_v31 = vmul.f32 %v14607_v8, %v20027_v51  ;;  %v14611_v50 = vpop.f32.mrb[235].mxu0  ;;  %v14652_v22 = vpop.f32.mrb[235].mxu1  ;;  %v14737_v25 = vmul.f32 %v14648_v41, %v20029_v37  ;;  %v14743_v41 = vld [vmem:[%s19910_s24] sm:$0xff] }
0x102f   :  { %v14736_v15 = vmul.f32 %v14609_v33, %v20028_v23  ;;  %v14738_v60 = vmul.f32 %v14650_v38, %v20030_v4 }
0x1030   :  { %v14753_v58 = vmul.f32 %v14735_v31, %v14735_v31  ;;  %v14755_v47 = vmul.f32 %v14737_v25, %v14737_v25 }
0x1031   :  { %v14744_v29 = vadd.f32 %v14736_v15, %v14735_v31  ;;  %v14754_v28 = vmul.f32 %v14736_v15, %v14736_v15  ;;  %v14756_v54 = vmul.f32 %v14738_v60, %v14738_v60 }
0x1033   :  { %v14760_v57 = vadd.f32 %v14754_v28, %v14753_v58  ;;  %v14745_v11 = vadd.f32 %v14744_v29, %v14737_v25  ;;  %v14688_v39 = vpop.f32.mrb[236].mxu0  ;;  %v14729_v20 = vpop.f32.mrb[236].mxu1 }
0x1034   :  { %v14689_v44 = vadd.f32 %v14688_v39, %v14566_v49  ;;  %v14730_v42 = vadd.f32 %v14729_v20, %v14566_v49  ;;  %v14690_v3 = vpop.f32.mrb[237].mxu0  ;;  %v15830_v14 = vpop.f32.mrb[237].mxu1 }
0x1035   :  { %v14746_v18 = vadd.f32 %v14745_v11, %v14738_v60  ;;  %v14761_v55 = vadd.f32 %v14760_v57, %v14755_v47  ;;  %v14691_v1 = vadd.f32 %v14690_v3, %v14566_v49  ;;  %v14692_v30 = vpop.f32.mrb[238].mxu0  ;;  %v14732_v32 = vpop.f32.mrb[238].mxu1 }
0x1036   :  { %v14739_v63 = vmul.f32 %v14689_v44, %v20033_v2  ;;  %v14693_v53 = vpop.f32.mrb[239].mxu0  ;;  %v15831_v61 = vpop.f32.mrb[239].mxu1  ;;  %v14741_v45 = vmul.f32 %v14730_v42, %v20036_v36 }
0x1037   :  { %v14762_v43 = vadd.f32 %v14761_v55, %v14756_v54  ;;  %v14740_v40 = vmul.f32 %v14691_v1, %v20034_v24 }
0x1038   :  { %v14747_v17 = vadd.f32 %v14746_v18, %v14739_v63  ;;  %v14757_v13 = vmul.f32 %v14739_v63, %v14739_v63  ;;  %v14759_v48 = vmul.f32 %v14741_v45, %v14741_v45 }
0x1039   :  { %v14758_v6 = vmul.f32 %v14740_v40, %v14740_v40 }
0x103a   :  { %v14748_v16 = vadd.f32 %v14747_v17, %v14740_v40  ;;  %v14763_v46 = vadd.f32 %v14762_v43, %v14757_v13 }
0x103c   :  { %v14749_v52 = vadd.f32 %v14748_v16, %v14741_v45  ;;  %v14764_v35 = vadd.f32 %v14763_v46, %v14758_v6 }
0x103e   :  { %14750 = vadd.xlane.f32.xlu1 %v14749_v52  ;;  %v14765_v62 = vadd.f32 %v14764_v35, %v14759_v48 }
0x1040   :  { %14766 = vadd.xlane.f32.xlu0 %v14765_v62 }
0x10cb   :  { %v14751_v26 = vpop.xlane.xlu1 %14750 }
0x10cc   :  { %v14752_v56 = vmul.f32 0.001953125, %v14751_v26 }
0x10cd   :  { %v14767_v19 = vpop.xlane.xlu0 %14766 }
0x10ce   :  { %v14769_v21 = vmul.f32 %v14752_v56, %v14752_v56  ;;  %v14768_v9 = vmul.f32 0.001953125, %v14767_v19 }
0x10d0   :  { %v14770_v5 = vsub.f32 %v14768_v9, %v14769_v21 }
0x10d2   :  { %v14771_v59 = vmax.f32 %v14770_v5, 0.0 }
0x10d4   :  { %v14772_v49 = vadd.f32 1e-05, %v14771_v59 }
0x10d6   :  { %15888 = vrsqrt.f32 %v14772_v49 }
0x10e0   :  { %v15889_v10 = vpop.eup %15888 }
0x10e1   :  { %v14774_v8 = vmul.f32 %v15889_v10, %v14742_v0 }
0x10e3   :  { %14777 = vperm.xlu0 %15859, %v14774_v8   ;;  %v14787_v12 = vmul.f32 %v14774_v8, %v14752_v56 }
0x10e5   :  { %v14788_v7 = vsub.f32 %v14743_v41, %v14787_v12 }
0x10e7   :  { %14791 = vperm.xlu1 %15860, %v14788_v7  }
0x1162   :  { %v14778_v33 = vpop.permute.xlu0 %14777 }
0x1163   :  { %v14780_v38 = vmul.f32 %v14778_v33, %v14735_v31  ;;  %v14781_v27 = vmul.f32 %v14778_v33, %v14736_v15  ;;  %v14782_v34 = vmul.f32 %v14778_v33, %v14737_v25  ;;  %v14783_v50 = vmul.f32 %v14778_v33, %v14738_v60 }
0x1164   :  { %v14784_v22 = vmul.f32 %v14778_v33, %v14739_v63  ;;  %v14785_v58 = vmul.f32 %v14778_v33, %v14740_v40  ;;  %v14786_v29 = vmul.f32 %v14778_v33, %v14741_v45 }
0x1166   :  { %v14792_v28 = vpop.permute.xlu1 %14791 }
0x1167   :  { %v14794_v47 = vadd.f32 %v14792_v28, %v14780_v38  ;;  %v14795_v57 = vadd.f32 %v14792_v28, %v14781_v27  ;;  %v14796_v11 = vadd.f32 %v14792_v28, %v14782_v34  ;;  %v14797_v39 = vadd.f32 %v14792_v28, %v14783_v50 }
0x1168   :  { %v14798_v20 = vadd.f32 %v14792_v28, %v14784_v22  ;;  %v14799_v44 = vadd.f32 %v14792_v28, %v14785_v58  ;;  %v14800_v42 = vadd.f32 %v14792_v28, %v14786_v29 }
0x1169   :  { %v14801_v3 = vmax.f32 %v14794_v47, 0.0  ;;  %v14802_v14 = vmax.f32 %v14795_v57, 0.0  ;;  %v14803_v18 = vmax.f32 %v14796_v11, 0.0  ;;  %v14804_v54 = vmax.f32 %v14797_v39, 0.0 }
0x116a   :  { %v14805_v55 = vmax.f32 %v14798_v20, 0.0  ;;  %v14806_v31 = vmax.f32 %v14799_v44, 0.0  ;;  %v14807_v15 = vmax.f32 %v14800_v42, 0.0 }
0x116b   :  { %v14808_v25 = vmul.f32 %v14801_v3, %v20027_v51  ;;  %v14809_v60 = vmul.f32 %v14802_v14, %v20028_v23  ;;  %v14810_v1 = vmul.f32 %v14803_v18, %v20029_v37  ;;  %v14811_v30 = vmul.f32 %v14804_v54, %v20030_v4 }
0x116c   :  { %v14812_v32 = vmul.f32 %v14805_v55, %v20033_v2  ;;  %v14813_v63 = vmul.f32 %v14806_v31, %v20034_v24  ;;  %v14814_v53 = vmul.f32 %v14807_v15, %v20036_v36 }
0x116d   :  { %14815 = vst [vmem:[%s19911_s25] sm:$0xff] %v14808_v25  ;;  %14816 = vst [vmem:[%s19911_s25 + $0x8] sm:$0xff] %v14809_v60 }
0x116e   :  { %14817 = vst [vmem:[%s19911_s25 + $0x10] sm:$0xff] %v14810_v1  ;;  %14818 = vst [vmem:[%s19911_s25 + $0x18] sm:$0xff] %v14811_v30 }
0x116f   :  { %14819 = vst [vmem:[%s19911_s25 + $0x20] sm:$0xff] %v14812_v32  ;;  %14820 = vst [vmem:[%s19911_s25 + $0x28] sm:$0xff] %v14813_v63 }
0x1170   :  { %14821 = vst [vmem:[%s19911_s25 + $0x30] sm:$0xff] %v14814_v53 }

</bundles_post_ra>
